<compile_context>
chip_gen: v6e
topology: v6e:2x2x1
jax: 0.10.0
libtpu: 0.0.40
codegen_flags: <defaults>
</compile_context>

<pallas_src>
import jax
import jax.numpy as jnp
from jax import lax
from jax.experimental import pallas as pl
from jax.experimental.pallas import tpu as pltpu


def resblock_kernel(x_ref, w1_ref, b1_ref, w2_ref, b2_ref, o_ref,
                    xpad_ref, col1_ref, ypad_ref, col2_ref):
    """Fused [conv3x3 + foldedBN bias + ReLU] x 2 for one batch element.

    x_ref:    (1, H, W, Cin)        bf16 input tile (unpadded)
    w1_ref:   (9*Cin, Cmid)         bf16, BN1 scale folded in
    b1_ref:   (1, Cmid)             f32 folded BN1 bias
    w2_ref:   (9*Cmid, Cout_p)      bf16, BN2 scale folded, zero-padded cols
    b2_ref:   (1, Cout_p)           f32 folded BN2 bias (zero-padded)
    o_ref:    (1, H*W, Cout_p)      f32 output (lane-dense, Cout_p % 128 == 0)
    xpad_ref: (H+2, W+2, Cin)       bf16 VMEM scratch (zero halo)
    col1_ref: (H*W, 9*Cin)          bf16 VMEM im2col matrix for conv1
    ypad_ref: (H+2, W+2, Cmid)      bf16 VMEM scratch (layer-1 act, zero halo)
    col2_ref: (H*W, 9*Cmid)         bf16 VMEM im2col matrix for conv2
    """
    _, H, W, Cin = x_ref.shape
    Cmid = w1_ref.shape[1]
    HW = H * W

    def im2col(pad_ref, col_ref, C):
        # Pack the 9 shifted 3x3-tap windows into one (H*W, 9*C) matrix so the
        # whole conv becomes a single MXU matmul with K = 9*C.
        for t, (dy, dx) in enumerate((a, b) for a in range(3) for b in range(3)):
            patch = pad_ref[pl.ds(dy, H), pl.ds(dx, W), :]        # (H, W, C)
            col_ref[:, pl.ds(t * C, C)] = patch.reshape(HW, C)

    # ---- layer 1: conv3x3 + folded-BN bias + ReLU ------------------------
    # Zero-pad the halo in VMEM (no HBM-side jnp.pad round-trip).
    xpad_ref[...] = jnp.zeros_like(xpad_ref)
    xpad_ref[pl.ds(1, H), pl.ds(1, W), :] = x_ref[0]
    im2col(xpad_ref, col1_ref, Cin)
    y1 = jnp.dot(col1_ref[...], w1_ref[...],
                 preferred_element_type=jnp.float32)              # (HW, Cmid) f32
    y1 = jnp.maximum(y1 + b1_ref[0, :], 0.0)

    # ---- layer 2: conv3x3 + folded-BN bias + ReLU ------------------------
    # Intermediate activation stays resident in VMEM (fusion: no HBM traffic).
    ypad_ref[...] = jnp.zeros_like(ypad_ref)
    ypad_ref[pl.ds(1, H), pl.ds(1, W), :] = (
        y1.astype(ypad_ref.dtype).reshape(H, W, Cmid))
    im2col(ypad_ref, col2_ref, Cmid)
    y2 = jnp.dot(col2_ref[...], w2_ref[...],
                 preferred_element_type=jnp.float32)              # (HW, Cout_p) f32
    y2 = jnp.maximum(y2 + b2_ref[0, :], 0.0)
    o_ref[0] = y2.astype(o_ref.dtype)                             # full-lane store


def resblock_forward(x_nchw, params):
    """Matches ResBlock.forward (stride=1). Input/output in PyTorch NCHW, f32."""
    N, Cin, H, W = x_nchw.shape
    Cmid = params["w1_mat"].shape[1]
    Cout = params["w2_mat"].shape[1]
    cout_p = ((Cout + 127) // 128) * 128          # lane-dense output width

    # bf16 activations halve input DMA volume; MXU accumulates in f32.
    x = jnp.transpose(x_nchw, (0, 2, 3, 1)).astype(jnp.bfloat16)   # NCHW -> NHWC
    w1 = params["w1_mat"]                                          # (9*Cin, Cmid) bf16
    b1 = params["b1"].reshape(1, Cmid).astype(jnp.float32)
    w2 = jnp.pad(params["w2_mat"], ((0, 0), (0, cout_p - Cout)))   # (9*Cmid, Cout_p)
    b2 = jnp.pad(params["b2"], (0, cout_p - Cout)).reshape(1, cout_p).astype(jnp.float32)

    out = pl.pallas_call(
        resblock_kernel,
        out_shape=jax.ShapeDtypeStruct((N, H * W, cout_p), jnp.float32),
        grid_spec=pltpu.PrefetchScalarGridSpec(
            num_scalar_prefetch=0,
            grid=(N,),
            in_specs=[
                pl.BlockSpec((1, H, W, Cin), lambda n: (n, 0, 0, 0)),
                pl.BlockSpec((9 * Cin, Cmid), lambda n: (0, 0)),
                pl.BlockSpec((1, Cmid), lambda n: (0, 0)),
                pl.BlockSpec((9 * Cmid, cout_p), lambda n: (0, 0)),
                pl.BlockSpec((1, cout_p), lambda n: (0, 0)),
            ],
            out_specs=pl.BlockSpec((1, H * W, cout_p), lambda n: (n, 0, 0)),
            scratch_shapes=[
                pltpu.VMEM((H + 2, W + 2, Cin), jnp.bfloat16),
                pltpu.VMEM((H * W, 9 * Cin), jnp.bfloat16),
                pltpu.VMEM((H + 2, W + 2, Cmid), jnp.bfloat16),
                pltpu.VMEM((H * W, 9 * Cmid), jnp.bfloat16),
            ],
        ),
        compiler_params=pltpu.CompilerParams(
            dimension_semantics=("parallel",),
            vmem_limit_bytes=32 * 1024 * 1024,
        ),
    )(x, w1, b1, w2, b2)

    out = out[:, :, :Cout].reshape(N, H, W, Cout)                  # drop pad cols
    return jnp.transpose(out, (0, 3, 1, 2))                        # NHWC -> NCHW


def make_resblock_params(key, in_channels, out_channels, eps=1e-5):
    """Synthetic params matching the PyTorch module; BN scale folded into conv
    weights (eval-mode BN), weights flattened to (9*Cin, Cout) im2col layout."""
    ks = jax.random.split(key, 10)
    w1_oihw = jax.random.normal(ks[0], (out_channels, in_channels, 3, 3),
                                jnp.float32) * (1.0 / (3.0 * in_channels) ** 0.5)
    w2_oihw = jax.random.normal(ks[1], (out_channels, out_channels, 3, 3),
                                jnp.float32) * (1.0 / (3.0 * out_channels) ** 0.5)

    def bn_fold(kg, kb, km, kv, c):
        gamma = 1.0 + 0.1 * jax.random.normal(kg, (c,), jnp.float32)
        beta = 0.1 * jax.random.normal(kb, (c,), jnp.float32)
        mean = 0.1 * jax.random.normal(km, (c,), jnp.float32)
        var = 1.0 + jnp.abs(jax.random.normal(kv, (c,), jnp.float32)) * 0.1
        scale = gamma / jnp.sqrt(var + eps)
        bias = beta - mean * scale
        return scale, bias

    s1, b1 = bn_fold(ks[2], ks[3], ks[4], ks[5], out_channels)
    s2, b2 = bn_fold(ks[6], ks[7], ks[8], ks[9], out_channels)

    # Fold BN scale into conv weights (one-time), OIHW -> HWIO -> (9*Cin, Cout),
    # rows ordered (ky, kx, ci) to match the kernel's im2col column order.
    w1f = w1_oihw * s1[:, None, None, None]
    w2f = w2_oihw * s2[:, None, None, None]
    w1_mat = jnp.transpose(w1f, (2, 3, 1, 0)).reshape(
        9 * in_channels, out_channels).astype(jnp.bfloat16)
    w2_mat = jnp.transpose(w2f, (2, 3, 1, 0)).reshape(
        9 * out_channels, out_channels).astype(jnp.bfloat16)
    return dict(w1_mat=w1_mat, b1=b1, w2_mat=w2_mat, b2=b2)


def resblock_reference(x_nchw, params):
    """Pure-JAX reference (lax conv) using the same bf16-rounded operands the
    kernel consumes, so the check isolates kernel correctness from the
    intended bf16 quantization of the MXU operands."""
    cin = params["w1_mat"].shape[0] // 9
    cmid = params["w1_mat"].shape[1]
    cout = params["w2_mat"].shape[1]

    def conv(x_nhwc, w_mat, ci, co):
        w_hwio = w_mat.reshape(3, 3, ci, co).astype(jnp.float32)
        return lax.conv_general_dilated(
            x_nhwc, w_hwio, window_strides=(1, 1), padding="SAME",
            dimension_numbers=("NHWC", "HWIO", "NHWC"))

    x = jnp.transpose(x_nchw, (0, 2, 3, 1)).astype(jnp.bfloat16).astype(jnp.float32)
    y = jnp.maximum(conv(x, params["w1_mat"], cin, cmid) + params["b1"], 0.0)
    y = y.astype(jnp.bfloat16).astype(jnp.float32)      # kernel stores act in bf16
    y = jnp.maximum(conv(y, params["w2_mat"], cmid, cout) + params["b2"], 0.0)
    return jnp.transpose(y, (0, 3, 1, 2))


if __name__ == "__main__":
    key = jax.random.PRNGKey(0)
    k_x, k_p = jax.random.split(key)

    in_channels, out_channels = 4, 8
    x = jax.random.normal(k_x, (2, in_channels, 16, 16), jnp.float32)  # NCHW
    params = make_resblock_params(k_p, in_channels, out_channels)

    out = jax.block_until_ready(resblock_forward(x, params))
    ref = jax.block_until_ready(resblock_reference(x, params))

    assert out.shape == (2, out_channels, 16, 16)
    err = float(jnp.max(jnp.abs(out - ref)))
    assert jnp.allclose(out, ref, atol=2e-3, rtol=2e-3), f"max abs err {err}"
    print("KERNEL_OK")
</pallas_src>

<mosaic_0001>
module attributes {stable_mosaic.version = 11 : i64} {
  func.func @resblock_kernel(%arg0: i32, %arg1: memref<1x16x16x4xbf16, #tpu.memory_space<vmem>>, %arg2: memref<36x8xbf16, #tpu.memory_space<vmem>>, %arg3: memref<1x8xf32, #tpu.memory_space<vmem>>, %arg4: memref<72x128xbf16, #tpu.memory_space<vmem>>, %arg5: memref<1x128xf32, #tpu.memory_space<vmem>>, %arg6: memref<1x256x128xf32, #tpu.memory_space<vmem>>, %arg7: memref<18x18x4xbf16, #tpu.memory_space<vmem>>, %arg8: memref<256x36xbf16, #tpu.memory_space<vmem>>, %arg9: memref<18x18x8xbf16, #tpu.memory_space<vmem>>, %arg10: memref<256x72xbf16, #tpu.memory_space<vmem>>) attributes {dimension_semantics = [#tpu.dimension_semantics<parallel>], iteration_bounds = array<i64: 2>, scalar_prefetch = 0 : i64, scratch_operands = 4 : i64, tpu.core_type = #tpu.core_type<tc>, window_params = [{transform_indices = @transform_0, window_bounds = array<i64: 1, 16, 16, 4>}, {pipeline_mode = #tpu.pipeline_mode<synchronous>, transform_indices = @transform_1, window_bounds = array<i64: 36, 8>}, {pipeline_mode = #tpu.pipeline_mode<synchronous>, transform_indices = @transform_2, window_bounds = array<i64: 1, 8>}, {pipeline_mode = #tpu.pipeline_mode<synchronous>, transform_indices = @transform_3, window_bounds = array<i64: 72, 128>}, {pipeline_mode = #tpu.pipeline_mode<synchronous>, transform_indices = @transform_4, window_bounds = array<i64: 1, 128>}, {transform_indices = @transform_5, window_bounds = array<i64: 1, 256, 128>}]} {
    %cst = arith.constant 0.000000e+00 : bf16
    %0 = vector.broadcast %cst : bf16 to vector<18x18x4xbf16>
    %c0 = arith.constant 0 : index
    %c0_0 = arith.constant 0 : index
    %c0_1 = arith.constant 0 : index
    %1 = vector.load %arg7[%c0, %c0_0, %c0_1] : memref<18x18x4xbf16, #tpu.memory_space<vmem>>, vector<18x18x4xbf16>
    tpu.vector_store %arg7[%c0, %c0_0, %c0_1], %0 {strides = array<i32>} : memref<18x18x4xbf16, #tpu.memory_space<vmem>>, vector<18x18x4xbf16>,
    %c0_2 = arith.constant 0 : index
    %c0_3 = arith.constant 0 : index
    %c0_4 = arith.constant 0 : index
    %c0_5 = arith.constant 0 : index
    %2 = vector.load %arg1[%c0_2, %c0_3, %c0_4, %c0_5] : memref<1x16x16x4xbf16, #tpu.memory_space<vmem>>, vector<1x16x16x4xbf16>
    %3 = vector.shape_cast %2 : vector<1x16x16x4xbf16> to vector<16x16x4xbf16>
    %c1 = arith.constant 1 : index
    %c1_6 = arith.constant 1 : index
    %c0_7 = arith.constant 0 : index
    %4 = vector.load %arg7[%c1, %c1_6, %c0_7] : memref<18x18x4xbf16, #tpu.memory_space<vmem>>, vector<16x16x4xbf16>
    tpu.vector_store %arg7[%c1, %c1_6, %c0_7], %3 {strides = array<i32>} : memref<18x18x4xbf16, #tpu.memory_space<vmem>>, vector<16x16x4xbf16>,
    %c0_8 = arith.constant 0 : index
    %c0_9 = arith.constant 0 : index
    %c0_10 = arith.constant 0 : index
    %5 = vector.load %arg7[%c0_8, %c0_9, %c0_10] : memref<18x18x4xbf16, #tpu.memory_space<vmem>>, vector<16x16x4xbf16>
    %6 = vector.shape_cast %5 : vector<16x16x4xbf16> to vector<256x4xbf16>
    %c0_11 = arith.constant 0 : index
    %c0_12 = arith.constant 0 : index
    %7 = vector.load %arg8[%c0_11, %c0_12] : memref<256x36xbf16, #tpu.memory_space<vmem>>, vector<256x4xbf16>
    tpu.vector_store %arg8[%c0_11, %c0_12], %6 {strides = array<i32>} : memref<256x36xbf16, #tpu.memory_space<vmem>>, vector<256x4xbf16>,
    %c0_13 = arith.constant 0 : index
    %c1_14 = arith.constant 1 : index
    %c0_15 = arith.constant 0 : index
    %8 = vector.load %arg7[%c0_13, %c1_14, %c0_15] : memref<18x18x4xbf16, #tpu.memory_space<vmem>>, vector<16x16x4xbf16>
    %9 = vector.shape_cast %8 : vector<16x16x4xbf16> to vector<256x4xbf16>
    %c0_16 = arith.constant 0 : index
    %c4 = arith.constant 4 : index
    %10 = vector.load %arg8[%c0_16, %c4] : memref<256x36xbf16, #tpu.memory_space<vmem>>, vector<256x4xbf16>
    tpu.vector_store %arg8[%c0_16, %c4], %9 {strides = array<i32>} : memref<256x36xbf16, #tpu.memory_space<vmem>>, vector<256x4xbf16>,
    %c0_17 = arith.constant 0 : index
    %c2 = arith.constant 2 : index
    %c0_18 = arith.constant 0 : index
    %11 = vector.load %arg7[%c0_17, %c2, %c0_18] : memref<18x18x4xbf16, #tpu.memory_space<vmem>>, vector<16x16x4xbf16>
    %12 = vector.shape_cast %11 : vector<16x16x4xbf16> to vector<256x4xbf16>
    %c0_19 = arith.constant 0 : index
    %c8 = arith.constant 8 : index
    %13 = vector.load %arg8[%c0_19, %c8] : memref<256x36xbf16, #tpu.memory_space<vmem>>, vector<256x4xbf16>
    tpu.vector_store %arg8[%c0_19, %c8], %12 {strides = array<i32>} : memref<256x36xbf16, #tpu.memory_space<vmem>>, vector<256x4xbf16>,
    %c1_20 = arith.constant 1 : index
    %c0_21 = arith.constant 0 : index
    %c0_22 = arith.constant 0 : index
    %14 = vector.load %arg7[%c1_20, %c0_21, %c0_22] : memref<18x18x4xbf16, #tpu.memory_space<vmem>>, vector<16x16x4xbf16>
    %15 = vector.shape_cast %14 : vector<16x16x4xbf16> to vector<256x4xbf16>
    %c0_23 = arith.constant 0 : index
    %c12 = arith.constant 12 : index
    %16 = vector.load %arg8[%c0_23, %c12] : memref<256x36xbf16, #tpu.memory_space<vmem>>, vector<256x4xbf16>
    tpu.vector_store %arg8[%c0_23, %c12], %15 {strides = array<i32>} : memref<256x36xbf16, #tpu.memory_space<vmem>>, vector<256x4xbf16>,
    %c1_24 = arith.constant 1 : index
    %c1_25 = arith.constant 1 : index
    %c0_26 = arith.constant 0 : index
    %17 = vector.load %arg7[%c1_24, %c1_25, %c0_26] : memref<18x18x4xbf16, #tpu.memory_space<vmem>>, vector<16x16x4xbf16>
    %18 = vector.shape_cast %17 : vector<16x16x4xbf16> to vector<256x4xbf16>
    %c0_27 = arith.constant 0 : index
    %c16 = arith.constant 16 : index
    %19 = vector.load %arg8[%c0_27, %c16] : memref<256x36xbf16, #tpu.memory_space<vmem>>, vector<256x4xbf16>
    tpu.vector_store %arg8[%c0_27, %c16], %18 {strides = array<i32>} : memref<256x36xbf16, #tpu.memory_space<vmem>>, vector<256x4xbf16>,
    %c1_28 = arith.constant 1 : index
    %c2_29 = arith.constant 2 : index
    %c0_30 = arith.constant 0 : index
    %20 = vector.load %arg7[%c1_28, %c2_29, %c0_30] : memref<18x18x4xbf16, #tpu.memory_space<vmem>>, vector<16x16x4xbf16>
    %21 = vector.shape_cast %20 : vector<16x16x4xbf16> to vector<256x4xbf16>
    %c0_31 = arith.constant 0 : index
    %c20 = arith.constant 20 : index
    %22 = vector.load %arg8[%c0_31, %c20] : memref<256x36xbf16, #tpu.memory_space<vmem>>, vector<256x4xbf16>
    tpu.vector_store %arg8[%c0_31, %c20], %21 {strides = array<i32>} : memref<256x36xbf16, #tpu.memory_space<vmem>>, vector<256x4xbf16>,
    %c2_32 = arith.constant 2 : index
    %c0_33 = arith.constant 0 : index
    %c0_34 = arith.constant 0 : index
    %23 = vector.load %arg7[%c2_32, %c0_33, %c0_34] : memref<18x18x4xbf16, #tpu.memory_space<vmem>>, vector<16x16x4xbf16>
    %24 = vector.shape_cast %23 : vector<16x16x4xbf16> to vector<256x4xbf16>
    %c0_35 = arith.constant 0 : index
    %c24 = arith.constant 24 : index
    %25 = vector.load %arg8[%c0_35, %c24] : memref<256x36xbf16, #tpu.memory_space<vmem>>, vector<256x4xbf16>
    tpu.vector_store %arg8[%c0_35, %c24], %24 {strides = array<i32>} : memref<256x36xbf16, #tpu.memory_space<vmem>>, vector<256x4xbf16>,
    %c2_36 = arith.constant 2 : index
    %c1_37 = arith.constant 1 : index
    %c0_38 = arith.constant 0 : index
    %26 = vector.load %arg7[%c2_36, %c1_37, %c0_38] : memref<18x18x4xbf16, #tpu.memory_space<vmem>>, vector<16x16x4xbf16>
    %27 = vector.shape_cast %26 : vector<16x16x4xbf16> to vector<256x4xbf16>
    %c0_39 = arith.constant 0 : index
    %c28 = arith.constant 28 : index
    %28 = vector.load %arg8[%c0_39, %c28] : memref<256x36xbf16, #tpu.memory_space<vmem>>, vector<256x4xbf16>
    tpu.vector_store %arg8[%c0_39, %c28], %27 {strides = array<i32>} : memref<256x36xbf16, #tpu.memory_space<vmem>>, vector<256x4xbf16>,
    %c2_40 = arith.constant 2 : index
    %c2_41 = arith.constant 2 : index
    %c0_42 = arith.constant 0 : index
    %29 = vector.load %arg7[%c2_40, %c2_41, %c0_42] : memref<18x18x4xbf16, #tpu.memory_space<vmem>>, vector<16x16x4xbf16>
    %30 = vector.shape_cast %29 : vector<16x16x4xbf16> to vector<256x4xbf16>
    %c0_43 = arith.constant 0 : index
    %c32 = arith.constant 32 : index
    %31 = vector.load %arg8[%c0_43, %c32] : memref<256x36xbf16, #tpu.memory_space<vmem>>, vector<256x4xbf16>
    tpu.vector_store %arg8[%c0_43, %c32], %30 {strides = array<i32>} : memref<256x36xbf16, #tpu.memory_space<vmem>>, vector<256x4xbf16>,
    %c0_44 = arith.constant 0 : index
    %c0_45 = arith.constant 0 : index
    %32 = vector.load %arg8[%c0_44, %c0_45] : memref<256x36xbf16, #tpu.memory_space<vmem>>, vector<256x36xbf16>
    %c0_46 = arith.constant 0 : index
    %c0_47 = arith.constant 0 : index
    %33 = vector.load %arg2[%c0_46, %c0_47] : memref<36x8xbf16, #tpu.memory_space<vmem>>, vector<36x8xbf16>
    %cst_48 = arith.constant dense<0.000000e+00> : vector<256x8xf32>
    %34 = tpu.matmul %32, %33, %cst_48 {dimension_numbers = #tpu.dot_dimension_numbers<[1], [0], [0], [1], [0, 0, 1, 1], [], []>} : vector<256x36xbf16>, vector<36x8xbf16>, vector<256x8xf32> -> vector<256x8xf32>
    %c0_49 = arith.constant 0 : index
    %c0_50 = arith.constant 0 : index
    %35 = vector.load %arg3[%c0_49, %c0_50] : memref<1x8xf32, #tpu.memory_space<vmem>>, vector<1x8xf32>
    %36 = vector.shape_cast %35 : vector<1x8xf32> to vector<8xf32>
    %37 = vector.shape_cast %36 : vector<8xf32> to vector<1x8xf32>
    %38 = vector.broadcast %37 : vector<1x8xf32> to vector<256x8xf32>
    %39 = arith.addf %34, %38 : vector<256x8xf32>
    %cst_51 = arith.constant 0.000000e+00 : f32
    %40 = vector.broadcast %cst_51 : f32 to vector<256x8xf32>
    %41 = arith.maximumf %39, %40 : vector<256x8xf32>
    %cst_52 = arith.constant 0.000000e+00 : bf16
    %42 = vector.broadcast %cst_52 : bf16 to vector<18x18x8xbf16>
    %c0_53 = arith.constant 0 : index
    %c0_54 = arith.constant 0 : index
    %c0_55 = arith.constant 0 : index
    %43 = vector.load %arg9[%c0_53, %c0_54, %c0_55] : memref<18x18x8xbf16, #tpu.memory_space<vmem>>, vector<18x18x8xbf16>
    tpu.vector_store %arg9[%c0_53, %c0_54, %c0_55], %42 {strides = array<i32>} : memref<18x18x8xbf16, #tpu.memory_space<vmem>>, vector<18x18x8xbf16>,
    %44 = arith.truncf %41 : vector<256x8xf32> to vector<256x8xbf16>
    %45 = vector.shape_cast %44 : vector<256x8xbf16> to vector<16x16x8xbf16>
    %c1_56 = arith.constant 1 : index
    %c1_57 = arith.constant 1 : index
    %c0_58 = arith.constant 0 : index
    %46 = vector.load %arg9[%c1_56, %c1_57, %c0_58] : memref<18x18x8xbf16, #tpu.memory_space<vmem>>, vector<16x16x8xbf16>
    tpu.vector_store %arg9[%c1_56, %c1_57, %c0_58], %45 {strides = array<i32>} : memref<18x18x8xbf16, #tpu.memory_space<vmem>>, vector<16x16x8xbf16>,
    %c0_59 = arith.constant 0 : index
    %c0_60 = arith.constant 0 : index
    %c0_61 = arith.constant 0 : index
    %47 = vector.load %arg9[%c0_59, %c0_60, %c0_61] : memref<18x18x8xbf16, #tpu.memory_space<vmem>>, vector<16x16x8xbf16>
    %48 = vector.shape_cast %47 : vector<16x16x8xbf16> to vector<256x8xbf16>
    %c0_62 = arith.constant 0 : index
    %c0_63 = arith.constant 0 : index
    %49 = vector.load %arg10[%c0_62, %c0_63] : memref<256x72xbf16, #tpu.memory_space<vmem>>, vector<256x8xbf16>
    tpu.vector_store %arg10[%c0_62, %c0_63], %48 {strides = array<i32>} : memref<256x72xbf16, #tpu.memory_space<vmem>>, vector<256x8xbf16>,
    %c0_64 = arith.constant 0 : index
    %c1_65 = arith.constant 1 : index
    %c0_66 = arith.constant 0 : index
    %50 = vector.load %arg9[%c0_64, %c1_65, %c0_66] : memref<18x18x8xbf16, #tpu.memory_space<vmem>>, vector<16x16x8xbf16>
    %51 = vector.shape_cast %50 : vector<16x16x8xbf16> to vector<256x8xbf16>
    %c0_67 = arith.constant 0 : index
    %c8_68 = arith.constant 8 : index
    %52 = vector.load %arg10[%c0_67, %c8_68] : memref<256x72xbf16, #tpu.memory_space<vmem>>, vector<256x8xbf16>
    tpu.vector_store %arg10[%c0_67, %c8_68], %51 {strides = array<i32>} : memref<256x72xbf16, #tpu.memory_space<vmem>>, vector<256x8xbf16>,
    %c0_69 = arith.constant 0 : index
    %c2_70 = arith.constant 2 : index
    %c0_71 = arith.constant 0 : index
    %53 = vector.load %arg9[%c0_69, %c2_70, %c0_71] : memref<18x18x8xbf16, #tpu.memory_space<vmem>>, vector<16x16x8xbf16>
    %54 = vector.shape_cast %53 : vector<16x16x8xbf16> to vector<256x8xbf16>
    %c0_72 = arith.constant 0 : index
    %c16_73 = arith.constant 16 : index
    %55 = vector.load %arg10[%c0_72, %c16_73] : memref<256x72xbf16, #tpu.memory_space<vmem>>, vector<256x8xbf16>
    tpu.vector_store %arg10[%c0_72, %c16_73], %54 {strides = array<i32>} : memref<256x72xbf16, #tpu.memory_space<vmem>>, vector<256x8xbf16>,
    %c1_74 = arith.constant 1 : index
    %c0_75 = arith.constant 0 : index
    %c0_76 = arith.constant 0 : index
    %56 = vector.load %arg9[%c1_74, %c0_75, %c0_76] : memref<18x18x8xbf16, #tpu.memory_space<vmem>>, vector<16x16x8xbf16>
    %57 = vector.shape_cast %56 : vector<16x16x8xbf16> to vector<256x8xbf16>
    %c0_77 = arith.constant 0 : index
    %c24_78 = arith.constant 24 : index
    %58 = vector.load %arg10[%c0_77, %c24_78] : memref<256x72xbf16, #tpu.memory_space<vmem>>, vector<256x8xbf16>
    tpu.vector_store %arg10[%c0_77, %c24_78], %57 {strides = array<i32>} : memref<256x72xbf16, #tpu.memory_space<vmem>>, vector<256x8xbf16>,
    %c1_79 = arith.constant 1 : index
    %c1_80 = arith.constant 1 : index
    %c0_81 = arith.constant 0 : index
    %59 = vector.load %arg9[%c1_79, %c1_80, %c0_81] : memref<18x18x8xbf16, #tpu.memory_space<vmem>>, vector<16x16x8xbf16>
    %60 = vector.shape_cast %59 : vector<16x16x8xbf16> to vector<256x8xbf16>
    %c0_82 = arith.constant 0 : index
    %c32_83 = arith.constant 32 : index
    %61 = vector.load %arg10[%c0_82, %c32_83] : memref<256x72xbf16, #tpu.memory_space<vmem>>, vector<256x8xbf16>
    tpu.vector_store %arg10[%c0_82, %c32_83], %60 {strides = array<i32>} : memref<256x72xbf16, #tpu.memory_space<vmem>>, vector<256x8xbf16>,
    %c1_84 = arith.constant 1 : index
    %c2_85 = arith.constant 2 : index
    %c0_86 = arith.constant 0 : index
    %62 = vector.load %arg9[%c1_84, %c2_85, %c0_86] : memref<18x18x8xbf16, #tpu.memory_space<vmem>>, vector<16x16x8xbf16>
    %63 = vector.shape_cast %62 : vector<16x16x8xbf16> to vector<256x8xbf16>
    %c0_87 = arith.constant 0 : index
    %c40 = arith.constant 40 : index
    %64 = vector.load %arg10[%c0_87, %c40] : memref<256x72xbf16, #tpu.memory_space<vmem>>, vector<256x8xbf16>
    tpu.vector_store %arg10[%c0_87, %c40], %63 {strides = array<i32>} : memref<256x72xbf16, #tpu.memory_space<vmem>>, vector<256x8xbf16>,
    %c2_88 = arith.constant 2 : index
    %c0_89 = arith.constant 0 : index
    %c0_90 = arith.constant 0 : index
    %65 = vector.load %arg9[%c2_88, %c0_89, %c0_90] : memref<18x18x8xbf16, #tpu.memory_space<vmem>>, vector<16x16x8xbf16>
    %66 = vector.shape_cast %65 : vector<16x16x8xbf16> to vector<256x8xbf16>
    %c0_91 = arith.constant 0 : index
    %c48 = arith.constant 48 : index
    %67 = vector.load %arg10[%c0_91, %c48] : memref<256x72xbf16, #tpu.memory_space<vmem>>, vector<256x8xbf16>
    tpu.vector_store %arg10[%c0_91, %c48], %66 {strides = array<i32>} : memref<256x72xbf16, #tpu.memory_space<vmem>>, vector<256x8xbf16>,
    %c2_92 = arith.constant 2 : index
    %c1_93 = arith.constant 1 : index
    %c0_94 = arith.constant 0 : index
    %68 = vector.load %arg9[%c2_92, %c1_93, %c0_94] : memref<18x18x8xbf16, #tpu.memory_space<vmem>>, vector<16x16x8xbf16>
    %69 = vector.shape_cast %68 : vector<16x16x8xbf16> to vector<256x8xbf16>
    %c0_95 = arith.constant 0 : index
    %c56 = arith.constant 56 : index
    %70 = vector.load %arg10[%c0_95, %c56] : memref<256x72xbf16, #tpu.memory_space<vmem>>, vector<256x8xbf16>
    tpu.vector_store %arg10[%c0_95, %c56], %69 {strides = array<i32>} : memref<256x72xbf16, #tpu.memory_space<vmem>>, vector<256x8xbf16>,
    %c2_96 = arith.constant 2 : index
    %c2_97 = arith.constant 2 : index
    %c0_98 = arith.constant 0 : index
    %71 = vector.load %arg9[%c2_96, %c2_97, %c0_98] : memref<18x18x8xbf16, #tpu.memory_space<vmem>>, vector<16x16x8xbf16>
    %72 = vector.shape_cast %71 : vector<16x16x8xbf16> to vector<256x8xbf16>
    %c0_99 = arith.constant 0 : index
    %c64 = arith.constant 64 : index
    %73 = vector.load %arg10[%c0_99, %c64] : memref<256x72xbf16, #tpu.memory_space<vmem>>, vector<256x8xbf16>
    tpu.vector_store %arg10[%c0_99, %c64], %72 {strides = array<i32>} : memref<256x72xbf16, #tpu.memory_space<vmem>>, vector<256x8xbf16>,
    %c0_100 = arith.constant 0 : index
    %c0_101 = arith.constant 0 : index
    %74 = vector.load %arg10[%c0_100, %c0_101] : memref<256x72xbf16, #tpu.memory_space<vmem>>, vector<256x72xbf16>
    %c0_102 = arith.constant 0 : index
    %c0_103 = arith.constant 0 : index
    %75 = vector.load %arg4[%c0_102, %c0_103] : memref<72x128xbf16, #tpu.memory_space<vmem>>, vector<72x128xbf16>
    %cst_104 = arith.constant dense<0.000000e+00> : vector<256x128xf32>
    %76 = tpu.matmul %74, %75, %cst_104 {dimension_numbers = #tpu.dot_dimension_numbers<[1], [0], [0], [1], [0, 0, 1, 1], [], []>} : vector<256x72xbf16>, vector<72x128xbf16>, vector<256x128xf32> -> vector<256x128xf32>
    %c0_105 = arith.constant 0 : index
    %c0_106 = arith.constant 0 : index
    %77 = vector.load %arg5[%c0_105, %c0_106] : memref<1x128xf32, #tpu.memory_space<vmem>>, vector<1x128xf32>
    %78 = vector.shape_cast %77 : vector<1x128xf32> to vector<128xf32>
    %79 = vector.shape_cast %78 : vector<128xf32> to vector<1x128xf32>
    %80 = vector.broadcast %79 : vector<1x128xf32> to vector<256x128xf32>
    %81 = arith.addf %76, %80 : vector<256x128xf32>
    %cst_107 = arith.constant 0.000000e+00 : f32
    %82 = vector.broadcast %cst_107 : f32 to vector<256x128xf32>
    %83 = arith.maximumf %81, %82 : vector<256x128xf32>
    %c0_108 = arith.constant 0 : index
    %c0_109 = arith.constant 0 : index
    %c0_110 = arith.constant 0 : index
    %84 = vector.load %arg6[%c0_108, %c0_109, %c0_110] : memref<1x256x128xf32, #tpu.memory_space<vmem>>, vector<1x256x128xf32>
    %85 = vector.shape_cast %84 : vector<1x256x128xf32> to vector<256x128xf32>
    %86 = vector.shape_cast %83 : vector<256x128xf32> to vector<1x256x128xf32>
    tpu.vector_store %arg6[%c0_108, %c0_109, %c0_110], %86 {strides = array<i32>} : memref<1x256x128xf32, #tpu.memory_space<vmem>>, vector<1x256x128xf32>,
    return
  }
  func.func @transform_0(%arg0: i32) -> (i32, i32, i32, i32) {
    %c0_i32 = arith.constant 0 : i32
    %c0_i32_0 = arith.constant 0 : i32
    %c0_i32_1 = arith.constant 0 : i32
    %c0_i32_2 = arith.constant 0 : i32
    return %arg0, %c0_i32, %c0_i32_0, %c0_i32_1 : i32, i32, i32, i32
  }
  func.func @transform_1(%arg0: i32) -> (i32, i32) {
    %c0_i32 = arith.constant 0 : i32
    %c0_i32_0 = arith.constant 0 : i32
    %c0_i32_1 = arith.constant 0 : i32
    return %c0_i32, %c0_i32_0 : i32, i32
  }
  func.func @transform_2(%arg0: i32) -> (i32, i32) {
    %c0_i32 = arith.constant 0 : i32
    %c0_i32_0 = arith.constant 0 : i32
    %c0_i32_1 = arith.constant 0 : i32
    return %c0_i32, %c0_i32_0 : i32, i32
  }
  func.func @transform_3(%arg0: i32) -> (i32, i32) {
    %c0_i32 = arith.constant 0 : i32
    %c0_i32_0 = arith.constant 0 : i32
    %c0_i32_1 = arith.constant 0 : i32
    return %c0_i32, %c0_i32_0 : i32, i32
  }
  func.func @transform_4(%arg0: i32) -> (i32, i32) {
    %c0_i32 = arith.constant 0 : i32
    %c0_i32_0 = arith.constant 0 : i32
    %c0_i32_1 = arith.constant 0 : i32
    return %c0_i32, %c0_i32_0 : i32, i32
  }
  func.func @transform_5(%arg0: i32) -> (i32, i32, i32) {
    %c0_i32 = arith.constant 0 : i32
    %c0_i32_0 = arith.constant 0 : i32
    %c0_i32_1 = arith.constant 0 : i32
    return %arg0, %c0_i32, %c0_i32_0 : i32, i32, i32
  }
}

</mosaic_0001>

<bundles_post_ra>
// kernel: tpu_custom_call.1
= control target key start
LH: loop header
LB: loop body
LE: loop exit
PB: predicated region body
PF: predicated region fallthrough
CT: control target
= control target key end

     0   :  { %10 = vsyncpa [#allocation7], 0  ;;  %s11966_s0 = inlined_call_operand.vmem [shape: bf16[2,16,16,4], index: 0, kind: input, shape index: {}]   ;;  %s11967_s1 = inlined_call_operand.vmem [shape: bf16[36,8], index: 1, kind: input, shape index: {}]   ;;  %s11968_s2 = inlined_call_operand.vmem [shape: f32[1,8], index: 2, kind: input, shape index: {}]   ;;  %s11969_s3 = inlined_call_operand.vmem [shape: bf16[72,128], index: 3, kind: input, shape index: {}]   ;;  %s11970_s4 = inlined_call_operand.vmem [shape: f32[1,128], index: 4, kind: input, shape index: {}]   ;;  %s11971_s5 = inlined_call_operand.hbm [shape: f32[2,256,128], index: 5, kind: output, shape index: {}]  }
   0x1   :  { %12 = vsyncpa [#allocation7 + $0x1], 0  ;;  %s9103_s18 = smov 0   ;;  %s9105_s19 = smov 0  }
   0x2   :  { %s9107_s20 = smov 0   ;;  %s9109_s21 = smov 0  }
   0x3 LB: > { %s9124_s22 = sadd.s32 4294967295, %s9056_s21   ;;  %s8532_s23 = sadd.s32 4294967294, %s9056_s21   ;;  %s9056_s21 = sphi %s9109_s21, %s11991_s21   ;;  %s9052_s20 = sphi %s9107_s20, %s11990_s20   ;;  %s9048_s19 = sphi %s9105_s19, %s11989_s19   ;;  %s9044_s18 = sphi %s9103_s18, %s11988_s18  }
   0x4   : > { %s9128_s24 = sadd.s32 1, %s9056_s21   ;;  %s135_s25 = sadd.s32 1, %s9052_s20 }
   0x5   : > { %s132_s26 = ssub.s32 %s9056_s21, %s9128_s24  ;;  %p145_p0 = scmp.ne.s32.totalorder %s9052_s20, %s9048_s19 }
   0x6   : > { %p133_p1 = scmp.eq.s32.totalorder %s132_s26, 0  ;;  %p146_p2 = scmp.eq.s32.totalorder %s9124_s22, 1 }
   0x7   : > { %p151_p3 = scmp.ne.s32.totalorder %s9048_s19, %s9044_s18  ;;  %p152_p4 = scmp.eq.s32.totalorder %s8532_s23, 1 }
   0x8   : > { %s9139_s27 = scalar_select %p133_p1, %s9052_s20, %s135_s25  }
   0x9   : > { %p9141_p5 = por %p146_p2, %p145_p0  ;;  %p9145_p6 = por %p152_p4, %p151_p3 }
   0xa   : > { %p8535_p7 = scmp.ge.s32.totalorder %s9056_s21, 1  ;;  %p190_p8 = scmp.lt.s32.totalorder %s9056_s21, 3 }
   0xc   : > { %p191_p9 = pnand %p8535_p7, %p190_p8 }
   0xd   : > { %p218_p10 = scmp.lt.s32.totalorder (!%p191_p9), %s9124_s22, 1  ;;  %s9059_s10 = smov (!%p191_p9), 4  }
   0xe   : > { %194 = sbr.rel (%p191_p9) target bundleno = 1765 (0x6e5), region = 40  ;;  %s9060_s11 = smov (!%p191_p9), 8  }
   0xf   : > { %s9061_s12 = smov (!%p191_p9), 12   ;;  %s9062_s13 = smov (!%p191_p9), 16  }
  0x10   : > { %s9063_s14 = smov (!%p191_p9), 20   ;;  %s9064_s15 = smov (!%p191_p9), 24  }
  0x11   : > { %s9065_s26 = smov (!%p191_p9), 28   ;;  %s9066_s7 = smov (!%p191_p9), 32  }
  0x12   : > { %s8779_s23 = sshll.u32 (!%p191_p9), %s9124_s22, 12 }
  0x13   : > { %vm224_vm0 = vcmask 27648   ;;  %v9058_v0 = vmov 0   ;;  %vm312_vm1 = vsmask.f32 256  ;;  %vm313_vm2 = vsmask.f32 4368 }
  0x14   : > { %225 = vst.msk [vmem:[#allocation2] sm:$0xf] %vm224_vm0, %v9058_v0  ;;  %226 = vst.msk [vmem:[#allocation2 + $0x4] sm:$0xf] %vm224_vm0, %v9058_v0  ;;  %vm227_vm3 = vcmask 24576   ;;  %s219_s30 = scalar_select %p218_p10, %s9124_s22, 1 }
  0x15   : > { %229 = vst.msk [vmem:[#allocation2 + $0xc] sm:$0xf] %vm224_vm0, %v9058_v0  ;;  %230 = vst.msk [vmem:[#allocation2 + $0x10] sm:$0xf] %vm224_vm0, %v9058_v0  ;;  %vm865_vm4 = vsmask.f32 3328 }
  0x16   : > { %232 = vst.msk [vmem:[#allocation2 + $0x18] sm:$0xf] %vm224_vm0, %v9058_v0  ;;  %233 = vst.msk [vmem:[#allocation2 + $0x1c] sm:$0xf] %vm224_vm0, %v9058_v0  ;;  %vm866_vm5 = vsmask.f32 7440 }
  0x17   : > { %235 = vst.msk [vmem:[#allocation2 + $0x24] sm:$0xf] %vm224_vm0, %v9058_v0  ;;  %236 = vst.msk [vmem:[#allocation2 + $0x28] sm:$0xf] %vm224_vm0, %v9058_v0  ;;  %vm637_vm6 = vsmask.f32 7938 }
  0x18   : > { %238 = vst.msk [vmem:[#allocation2 + $0x30] sm:$0xf] %vm224_vm0, %v9058_v0  ;;  %239 = vst.msk [vmem:[#allocation2 + $0x34] sm:$0xf] %vm224_vm0, %v9058_v0  ;;  %s8746_s6 = sshll.u32 %s219_s30, 7  ;;  %vm1477_vm11 = vcmask 1042432  }
  0x19   : > { %241 = vst.msk [vmem:[#allocation2 + $0x3c] sm:$0xf] %vm224_vm0, %v9058_v0  ;;  %242 = vst.msk [vmem:[#allocation2 + $0x40] sm:$0xf] %vm224_vm0, %v9058_v0  ;;  %s9264_s9 = scalar_lea.vmem %s11966_s0, %s8746_s6  ;;  %vm1478_vm12 = vcmask 1046532   ;;  %vm1348_vm14 = vcmask 60448   ;;  %s11917_s6 = scalar_lea.hbm %s11971_s5, %s8779_s23 }
  0x1a   : > { %244 = vst.msk [vmem:[#allocation2 + $0x48] sm:$0xf] %vm224_vm0, %v9058_v0  ;;  %245 = vst.msk [vmem:[#allocation2 + $0x4c] sm:$0xf] %vm224_vm0, %v9058_v0  ;;  %v280_v1 = vld [vmem:[%s9264_s9] sm:$0xf] }
  0x1b   : > { %247 = vst.msk [vmem:[#allocation2 + $0x54] sm:$0xf] %vm224_vm0, %v9058_v0  ;;  %248 = vst.msk [vmem:[#allocation2 + $0x58] sm:$0xf] %vm224_vm0, %v9058_v0  ;;  %v281_v2 = vld [vmem:[%s9264_s9 + $0x4] sm:$0xf] }
  0x1c   : > { %250 = vst.msk [vmem:[#allocation2 + $0x60] sm:$0xf] %vm224_vm0, %v9058_v0  ;;  %251 = vst.msk [vmem:[#allocation2 + $0x64] sm:$0xf] %vm224_vm0, %v9058_v0  ;;  %v282_v3 = vld [vmem:[%s9264_s9 + $0x8] sm:$0xf] }
  0x1d   : > { %253 = vst.msk [vmem:[#allocation2 + $0x6c] sm:$0xf] %vm224_vm0, %v9058_v0  ;;  %254 = vst.msk [vmem:[#allocation2 + $0x70] sm:$0xf] %vm224_vm0, %v9058_v0  ;;  %v817_v4 = vld [vmem:[#allocation2] sm:$0xf] }
  0x1e   : > { %256 = vst.msk [vmem:[#allocation2 + $0x78] sm:$0xf] %vm224_vm0, %v9058_v0  ;;  %257 = vst.msk [vmem:[#allocation2 + $0x7c] sm:$0xf] %vm224_vm0, %v9058_v0  ;;  %v818_v5 = vld [vmem:[#allocation2 + $0x4] sm:$0xf] }
  0x1f   : > { %259 = vst.msk [vmem:[#allocation2 + $0x84] sm:$0xf] %vm224_vm0, %v9058_v0  ;;  %260 = vst.msk [vmem:[#allocation2 + $0x88] sm:$0xf] %vm224_vm0, %v9058_v0  ;;  %v316_v6 = vshrl.u32 %v280_v1, 16  ;;  %v319_v7 = vshll.u32 %v280_v1, 16 }
  0x20   : > { %262 = vst.msk [vmem:[#allocation2 + $0x90] sm:$0xf] %vm224_vm0, %v9058_v0  ;;  %263 = vst.msk [vmem:[#allocation2 + $0x94] sm:$0xf] %vm224_vm0, %v9058_v0  ;;  %v869_v8 = vshrl.u32 %v817_v4, 16  ;;  %v872_v9 = vshll.u32 %v817_v4, 16 }
  0x21   : > { %265 = vst.msk [vmem:[#allocation2 + $0x9c] sm:$0xf] %vm224_vm0, %v9058_v0  ;;  %266 = vst.msk [vmem:[#allocation2 + $0xa0] sm:$0xf] %vm224_vm0, %v9058_v0  ;;  %v878_v10 = vshll.u32 %v818_v5, 16  ;;  %v882_v11 = vshrl.u32 %v818_v5, 16 }
  0x22   : > { %268 = vst.msk [vmem:[#allocation2 + $0xa8] sm:$0xf] %vm224_vm0, %v9058_v0  ;;  %269 = vst.msk [vmem:[#allocation2 + $0xac] sm:$0xf] %vm224_vm0, %v9058_v0  ;;  %v318_v12 = vrot.slane %v316_v6, 7  ;;  %v324_v13 = vshrl.u32 %v281_v2, 16 }
  0x23   : > { %271 = vst.msk [vmem:[#allocation2 + $0xb4] sm:$0xf] %vm224_vm0, %v9058_v0  ;;  %272 = vst.msk [vmem:[#allocation2 + $0xb8] sm:$0xf] %vm224_vm0, %v9058_v0  ;;  %v327_v14 = vshll.u32 %v281_v2, 16  ;;  %v333_v16 = vshrl.u32 %v282_v3, 16 }
  0x24   : > { %274 = vst.msk [vmem:[#allocation2 + $0xc0] sm:$0xf] %vm224_vm0, %v9058_v0  ;;  %275 = vst.msk [vmem:[#allocation2 + $0xc4] sm:$0xf] %vm224_vm0, %v9058_v0  ;;  %v871_v17 = vrot.slane %v869_v8, 4  ;;  %v874_v18 = vrot.slane %v872_v9, 5  ;;  %v321_v24 = vor.u32 %v319_v7, %v318_v12 }
  0x25   : > { %277 = vst.msk [vmem:[#allocation2 + $0xcc] sm:$0xf] %vm224_vm0, %v9058_v0  ;;  %278 = vst.msk [vmem:[#allocation2 + $0xd0] sm:$0xf] %vm224_vm0, %v9058_v0  ;;  %v880_v19 = vrot.slane %v878_v10, 5  ;;  %v884_v20 = vrot.slane %v882_v11, 4 }
  0x26   : > { %228 = vst.msk [vmem:[#allocation2 + $0x8] sm:$0x1] %vm227_vm3, %v9058_v0  ;;  %231 = vst.msk [vmem:[#allocation2 + $0x14] sm:$0x1] %vm227_vm3, %v9058_v0  ;;  %v639_v22 = vld [vmem:[#allocation2 + $0xc] sm:$0xf]  ;;  %v875_v28 = vor.u32 %v874_v18, %v871_v17 }
  0x27   : > { %234 = vst.msk [vmem:[#allocation2 + $0x20] sm:$0x1] %vm227_vm3, %v9058_v0  ;;  %237 = vst.msk [vmem:[#allocation2 + $0x2c] sm:$0x1] %vm227_vm3, %v9058_v0  ;;  %v322_v25 = vrot.slane %v318_v12, 4  ;;  %v326_v26 = vrot.slane %v324_v13, 7  ;;  %v885_v29 = vor.u32 %v884_v20, %v880_v19 }
  0x28   : > { %240 = vst.msk [vmem:[#allocation2 + $0x38] sm:$0x1] %vm227_vm3, %v9058_v0  ;;  %243 = vst.msk [vmem:[#allocation2 + $0x44] sm:$0x1] %vm227_vm3, %v9058_v0  ;;  %v283_v32 = vld [vmem:[%s9264_s9 + $0xc] sm:$0xf] }
  0x29   : > { %246 = vst.msk [vmem:[#allocation2 + $0x50] sm:$0x1] %vm227_vm3, %v9058_v0  ;;  %249 = vst.msk [vmem:[#allocation2 + $0x5c] sm:$0x1] %vm227_vm3, %v9058_v0  ;;  %v335_v33 = vrot.slane %v333_v16, 7  ;;  %v336_v34 = vshll.u32 %v282_v3, 16  ;;  %v329_v36 = vor.u32 %v327_v14, %v326_v26 }
  0x2a   : > { %252 = vst.msk [vmem:[#allocation2 + $0x68] sm:$0x1] %vm227_vm3, %v9058_v0  ;;  %255 = vst.msk [vmem:[#allocation2 + $0x74] sm:$0x1] %vm227_vm3, %v9058_v0  ;;  %v331_v39 = vrot.slane %v326_v26, 4  ;;  %v876_v42 = vrot.slane %v875_v28, 4 }
  0x2b   : > { %258 = vst.msk [vmem:[#allocation2 + $0x80] sm:$0x1] %vm227_vm3, %v9058_v0  ;;  %261 = vst.msk [vmem:[#allocation2 + $0x8c] sm:$0x1] %vm227_vm3, %v9058_v0  ;;  %v648_v40 = vld [vmem:[#allocation2 + $0x18] sm:$0xf]  ;;  %v338_v44 = vor.u32 %v336_v34, %v335_v33 }
  0x2c   : > { %264 = vst.msk [vmem:[#allocation2 + $0x98] sm:$0x1] %vm227_vm3, %v9058_v0  ;;  %267 = vst.msk [vmem:[#allocation2 + $0xa4] sm:$0x1] %vm227_vm3, %v9058_v0  ;;  %v284_v41 = vld [vmem:[%s9264_s9 + $0x10] sm:$0xf] }
  0x2d   : > { %270 = vst.msk [vmem:[#allocation2 + $0xb0] sm:$0x1] %vm227_vm3, %v9058_v0  ;;  %273 = vst.msk [vmem:[#allocation2 + $0xbc] sm:$0x1] %vm227_vm3, %v9058_v0  ;;  %v819_v15 = vld [vmem:[#allocation2 + $0x8] sm:$0x1] }
  0x2e   : > { %276 = vst.msk [vmem:[#allocation2 + $0xc8] sm:$0x1] %vm227_vm3, %v9058_v0  ;;  %279 = vst.msk [vmem:[#allocation2 + $0xd4] sm:$0x1] %vm227_vm3, %v9058_v0  ;;  %v888_v27 = vshll.u32 %v819_v15, 16  ;;  %v886_v43 = vrot.slane %v885_v29, 4 }
  0x2f   : > { %vm9271_vm7 = vmand %vm224_vm0, %vm637_vm6  ;;  %v645_v31 = vld [vmem:[#allocation2 + $0x14] sm:$0x1]  ;;  %v339_v45 = vrot.slane %v335_v33, 4  ;;  %v341_v49 = vshrl.u32 %v283_v32, 16  ;;  %v344_v50 = vshll.u32 %v283_v32, 16  ;;  %v350_v55 = vshrl.u32 %v284_v41, 16 }
  0x30   : > { %vm9277_vm8 = vmor %vm312_vm1, %vm313_vm2  ;;  %v640_v37 = vsel %vm9271_vm7, %v321_v24, %v639_v22  ;;  %v890_v38 = vrot.slane %v888_v27, 5  ;;  %v285_v46 = vld [vmem:[%s9264_s9 + $0x14] sm:$0xf]  ;;  %v286_v51 = vld [vmem:[%s9264_s9 + $0x18] sm:$0xf]  ;;  %v649_v54 = vsel %vm9271_vm7, %v338_v44, %v648_v40  ;;  %v353_v58 = vshll.u32 %v284_v41, 16 }
  0x31   : > { %vm9283_vm9 = vmand %vm227_vm3, %vm312_vm1  ;;  %641 = vst [vmem:[#allocation2 + $0xc] sm:$0xf] %v640_v37  ;;  %v330_v47 = vsel %vm9277_vm8, %v322_v25, %v329_v36  ;;  %v287_v56 = vld [vmem:[%s9264_s9 + $0x1c] sm:$0xf]  ;;  %v343_v57 = vrot.slane %v341_v49, 7  ;;  %v358_v59 = vshrl.u32 %v285_v46, 16 }
  0x32   : > { %vm9290_vm10 = vmor %vm865_vm4, %vm866_vm5  ;;  %v646_v48 = vsel %vm9283_vm9, %v331_v39, %v645_v31  ;;  %642 = vst.msk [vmem:[#allocation2 + $0x10] sm:$0xf] %vm224_vm0, %v330_v47  ;;  %v361_v60 = vshll.u32 %v285_v46, 16  ;;  %v652_v61 = vld [vmem:[#allocation2 + $0x20] sm:$0x1]  ;;  %v352_v62 = vrot.slane %v350_v55, 7 }
  0x33   : > { %v881_v52 = vsel %vm9290_vm10, %v876_v42, %v880_v19  ;;  %v891_v53 = vsel %vm9290_vm10, %v886_v43, %v890_v38  ;;  %647 = vst [vmem:[#allocation2 + $0x14] sm:$0x1] %v646_v48  ;;  %650 = vst [vmem:[#allocation2 + $0x18] sm:$0xf] %v649_v54  ;;  %v367_v63 = vshrl.u32 %v286_v51, 16  ;;  %v370_v1 = vshll.u32 %v286_v51, 16 }
  0x34   : > { %1252 = vrot.lane.b32.xlu0 %v881_v52, %s9059_s10  ;;  %v375_v2 = vshrl.u32 %v287_v56, 16  ;;  %v346_v3 = vor.u32 %v344_v50, %v343_v57  ;;  %v348_v4 = vrot.slane %v343_v57, 4  ;;  %v360_v5 = vrot.slane %v358_v59, 7  ;;  %v655_v6 = vld [vmem:[#allocation2 + $0x24] sm:$0xf]  ;;  %vm9554_vm13 = vmor %vm1477_vm11, %vm1478_vm12 }
  0x35   : > { %v378_v7 = vshll.u32 %v287_v56, 16  ;;  %v355_v8 = vor.u32 %v353_v58, %v352_v62  ;;  %v356_v9 = vrot.slane %v352_v62, 4  ;;  %v659_v10 = vld [vmem:[#allocation2 + $0x2c] sm:$0x1]  ;;  %v369_v11 = vrot.slane %v367_v63, 7 }
  0x36   : > { %v377_v12 = vrot.slane %v375_v2, 7  ;;  %v347_v14 = vsel %vm9277_vm8, %v339_v45, %v346_v3  ;;  %v653_v15 = vsel %vm9283_vm9, %v348_v4, %v652_v61  ;;  %v363_v16 = vor.u32 %v361_v60, %v360_v5  ;;  %v662_v24 = vld [vmem:[#allocation2 + $0x30] sm:$0xf]  ;;  %v9328_v42 = vld [vmem:[%s9264_s9 + $0x20] sm:$0xf] }
  0x37   : > { %v365_v17 = vrot.slane %v360_v5, 4  ;;  %651 = vst.msk [vmem:[#allocation2 + $0x1c] sm:$0xf] %vm224_vm0, %v347_v14  ;;  %654 = vst [vmem:[#allocation2 + $0x20] sm:$0x1] %v653_v15  ;;  %v656_v20 = vsel %vm9271_vm7, %v355_v8, %v655_v6  ;;  %v372_v22 = vor.u32 %v370_v1, %v369_v11  ;;  %v373_v29 = vrot.slane %v369_v11, 4 }
  0x38   : > { %v820_v13 = vld [vmem:[#allocation2 + $0xc] sm:$0xf]  ;;  %1254 = vrot.lane.b32.xlu0 %v891_v53, %s9059_s10  ;;  %v364_v27 = vsel %vm9277_vm8, %v356_v9, %v363_v16  ;;  %657 = vst [vmem:[#allocation2 + $0x24] sm:$0xf] %v656_v20  ;;  %v380_v31 = vor.u32 %v378_v7, %v377_v12  ;;  %v666_v47 = vld [vmem:[#allocation2 + $0x38] sm:$0x1] }
  0x39   : > { %v893_v18 = vshrl.u32 %v820_v13, 16  ;;  %v896_v19 = vshll.u32 %v820_v13, 16  ;;  %v821_v25 = vld [vmem:[#allocation2 + $0x10] sm:$0xf]  ;;  %v660_v28 = vsel %vm9283_vm9, %v365_v17, %v659_v10  ;;  %658 = vst.msk [vmem:[#allocation2 + $0x28] sm:$0xf] %vm224_vm0, %v364_v27  ;;  %v663_v46 = vsel %vm9271_vm7, %v372_v22, %v662_v24 }
  0x3a   : > { %v822_v26 = vld [vmem:[#allocation2 + $0x14] sm:$0x1]  ;;  %v902_v34 = vshll.u32 %v821_v25, 16  ;;  %v906_v36 = vshrl.u32 %v821_v25, 16  ;;  %v823_v37 = vld [vmem:[#allocation2 + $0x18] sm:$0xf]  ;;  %v381_v41 = vsel %vm9277_vm8, %v373_v29, %v380_v31 }
  0x3b   : > { %v895_v32 = vrot.slane %v893_v18, 4  ;;  %v898_v33 = vrot.slane %v896_v19, 5  ;;  %661 = vst [vmem:[#allocation2 + $0x2c] sm:$0x1] %v660_v28  ;;  %v912_v38 = vshll.u32 %v822_v26, 16  ;;  %v917_v39 = vshrl.u32 %v823_v37, 16 }
  0x3c   : > { %v920_v40 = vshll.u32 %v823_v37, 16  ;;  %v904_v44 = vrot.slane %v902_v34, 5  ;;  %v908_v45 = vrot.slane %v906_v36, 4  ;;  %665 = vst.msk [vmem:[#allocation2 + $0x34] sm:$0xf] %vm224_vm0, %v381_v41  ;;  %v382_v52 = vrot.slane %v377_v12, 4 }
  0x3d   : > { %v899_v43 = vor.u32 %v898_v33, %v895_v32  ;;  %v9334_v48 = vld [vmem:[%s9264_s9 + $0x24] sm:$0xf]  ;;  %v914_v49 = vrot.slane %v912_v38, 5  ;;  %v919_v50 = vrot.slane %v917_v39, 4  ;;  %664 = vst [vmem:[#allocation2 + $0x30] sm:$0xf] %v663_v46 }
  0x3e   : > { %v922_v51 = vrot.slane %v920_v40, 5  ;;  %v909_v54 = vor.u32 %v908_v45, %v904_v44  ;;  %v384_v55 = vshrl.u32 %v9328_v42, 16  ;;  %v387_v56 = vshll.u32 %v9328_v42, 16  ;;  %v824_v57 = vld [vmem:[#allocation2 + $0x1c] sm:$0xf] }
  0x3f   : > { %v900_v53 = vrot.slane %v899_v43, 4  ;;  %v825_v59 = vld [vmem:[#allocation2 + $0x20] sm:$0x1]  ;;  %v667_v60 = vsel %vm9283_vm9, %v382_v52, %v666_v47  ;;  %v392_v61 = vshrl.u32 %v9334_v48, 16  ;;  %v395_v62 = vshll.u32 %v9334_v48, 16 }
  0x40   : > { %v923_v58 = vor.u32 %v922_v51, %v919_v50  ;;  %v910_v1 = vrot.slane %v909_v54, 4  ;;  %v926_v2 = vshll.u32 %v824_v57, 16  ;;  %v930_v3 = vshrl.u32 %v824_v57, 16  ;;  %v826_v4 = vld [vmem:[#allocation2 + $0x24] sm:$0xf] }
  0x41   : > { %v905_v63 = vsel %vm9290_vm10, %v900_v53, %v904_v44  ;;  %668 = vst [vmem:[#allocation2 + $0x38] sm:$0x1] %v667_v60  ;;  %v936_v6 = vshll.u32 %v825_v59, 16  ;;  %v827_v7 = vld [vmem:[#allocation2 + $0x28] sm:$0xf]  ;;  %v941_v8 = vshrl.u32 %v826_v4, 16 }
  0x42   : > { %1256 = vrot.lane.b32.xlu1 %v905_v63, %s9059_s10  ;;  %v924_v5 = vrot.slane %v923_v58, 4  ;;  %v944_v9 = vshll.u32 %v826_v4, 16  ;;  %v915_v10 = vsel %vm9290_vm10, %v910_v1, %v914_v49  ;;  %v928_v11 = vrot.slane %v926_v2, 5  ;;  %v828_v14 = vld [vmem:[#allocation2 + $0x2c] sm:$0x1] }
  0x43   : > { %v932_v12 = vrot.slane %v930_v3, 4  ;;  %v950_v13 = vshll.u32 %v827_v7, 16  ;;  %v938_v15 = vrot.slane %v936_v6, 5  ;;  %v943_v16 = vrot.slane %v941_v8, 4  ;;  %v830_v19 = vld [vmem:[#allocation2 + $0x34] sm:$0xf] }
  0x44   : > { %v946_v17 = vrot.slane %v944_v9, 5  ;;  %v954_v18 = vshrl.u32 %v827_v7, 16  ;;  %v929_v20 = vsel %vm9290_vm10, %v924_v5, %v928_v11  ;;  %v960_v25 = vshll.u32 %v828_v14, 16  ;;  %v829_v26 = vld [vmem:[#allocation2 + $0x30] sm:$0xf] }
  0x45   : > { %v933_v22 = vor.u32 %v932_v12, %v928_v11  ;;  %v952_v24 = vrot.slane %v950_v13, 5  ;;  %1260 = vrot.lane.b32.xlu0 %v929_v20, %s9059_s10  ;;  %v965_v29 = vshrl.u32 %v829_v26, 16  ;;  %v968_v31 = vshll.u32 %v829_v26, 16  ;;  %v290_v37 = vld [vmem:[%s9264_s9 + $0x28] sm:$0xf] }
  0x46   : > { %1258 = vrot.lane.b32.xlu1 %v915_v10, %s9059_s10  ;;  %v947_v27 = vor.u32 %v946_v17, %v943_v16  ;;  %v956_v28 = vrot.slane %v954_v18, 4  ;;  %v962_v33 = vrot.slane %v960_v25, 5  ;;  %v974_v34 = vshll.u32 %v830_v19, 16  ;;  %v669_v53 = vld [vmem:[#allocation2 + $0x3c] sm:$0xf] }
  0x47   : > { %v934_v32 = vrot.slane %v933_v22, 4  ;;  %v978_v36 = vshrl.u32 %v830_v19, 16  ;;  %v967_v40 = vrot.slane %v965_v29, 4  ;;  %v970_v41 = vrot.slane %v968_v31, 5  ;;  %v291_v59 = vld [vmem:[%s9264_s9 + $0x2c] sm:$0xf] }
  0x48   : > { %v948_v38 = vrot.slane %v947_v27, 4  ;;  %v957_v39 = vor.u32 %v956_v28, %v952_v24  ;;  %v831_v43 = vld [vmem:[#allocation2 + $0x38] sm:$0x1]  ;;  %v976_v45 = vrot.slane %v974_v34, 5  ;;  %v386_v52 = vrot.slane %v384_v55, 7 }
  0x49   : > { %v939_v44 = vsel %vm9290_vm10, %v934_v32, %v938_v15  ;;  %v980_v46 = vrot.slane %v978_v36, 4  ;;  %v984_v47 = vshll.u32 %v831_v43, 16  ;;  %v971_v51 = vor.u32 %v970_v41, %v967_v40  ;;  %v673_v55 = vld [vmem:[#allocation2 + $0x44] sm:$0x1]  ;;  %v294_v11 = vld [vmem:[%s9264_s9 + $0x38] sm:$0xf] }
  0x4a   : > { %1262 = vrot.lane.b32.xlu1 %v939_v44, %s9059_s10  ;;  %v953_v49 = vsel %vm9290_vm10, %v948_v38, %v952_v24  ;;  %v958_v50 = vrot.slane %v957_v39, 4  ;;  %v394_v58 = vrot.slane %v392_v61, 7  ;;  %v401_v60 = vshrl.u32 %v290_v37, 16  ;;  %v292_v61 = vld [vmem:[%s9264_s9 + $0x30] sm:$0xf] }
  0x4b   : > { %1264 = vrot.lane.b32.xlu0 %v953_v49, %s9059_s10  ;;  %v981_v54 = vor.u32 %v980_v46, %v976_v45  ;;  %v986_v57 = vrot.slane %v984_v47, 5  ;;  %v972_v1 = vrot.slane %v971_v51, 4  ;;  %v389_v2 = vor.u32 %v387_v56, %v386_v52  ;;  %v293_v56 = vld [vmem:[%s9264_s9 + $0x34] sm:$0xf]  ;;  %v676_v14 = vld [vmem:[#allocation2 + $0x48] sm:$0xf] }
  0x4c   : > { %v963_v63 = vsel %vm9290_vm10, %v958_v50, %v962_v33  ;;  %v390_v3 = vrot.slane %v386_v52, 4  ;;  %v397_v5 = vor.u32 %v395_v62, %v394_v58  ;;  %v399_v6 = vrot.slane %v394_v58, 4  ;;  %v295_v19 = vld [vmem:[%s9264_s9 + $0x3c] sm:$0xf]  ;;  %v680_v20 = vld [vmem:[#allocation2 + $0x50] sm:$0x1] }
  0x4d   : > { %v982_v4 = vrot.slane %v981_v54, 4  ;;  %v403_v7 = vrot.slane %v401_v60, 7  ;;  %v977_v8 = vsel %vm9290_vm10, %v972_v1, %v976_v45  ;;  %v670_v9 = vsel %vm9271_vm7, %v389_v2, %v669_v53  ;;  %v683_v32 = vld [vmem:[#allocation2 + $0x54] sm:$0xf]  ;;  %v296_v38 = vld [vmem:[%s9264_s9 + $0x40] sm:$0xf] }
  0x4e   : > { %1266 = vrot.lane.b32.xlu1 %v963_v63, %s9059_s10  ;;  %v404_v10 = vshll.u32 %v290_v37, 16  ;;  %v409_v42 = vshrl.u32 %v291_v59, 16  ;;  %v398_v62 = vsel %vm9277_vm8, %v390_v3, %v397_v5  ;;  %671 = vst [vmem:[#allocation2 + $0x3c] sm:$0xf] %v670_v9  ;;  %v674_v12 = vsel %vm9283_vm9, %v399_v6, %v673_v55  ;;  %v687_v44 = vld [vmem:[#allocation2 + $0x5c] sm:$0x1] }
  0x4f   : > { %1268 = vrot.lane.b32.xlu0 %v977_v8, %s9059_s10  ;;  %v987_v48 = vsel %vm9290_vm10, %v982_v4, %v986_v57  ;;  %v407_v13 = vrot.slane %v403_v7, 4  ;;  %672 = vst.msk [vmem:[#allocation2 + $0x40] sm:$0xf] %vm224_vm0, %v398_v62  ;;  %675 = vst [vmem:[#allocation2 + $0x44] sm:$0x1] %v674_v12  ;;  %v412_v17 = vshll.u32 %v291_v59, 16 }
  0x50   : > { %v406_v15 = vor.u32 %v404_v10, %v403_v7  ;;  %v411_v16 = vrot.slane %v409_v42, 7  ;;  %v418_v18 = vshrl.u32 %v292_v61, 16  ;;  %v421_v22 = vshll.u32 %v292_v61, 16  ;;  %v690_v50 = vld [vmem:[#allocation2 + $0x60] sm:$0xf] }
  0x51   : > { %v426_v24 = vshrl.u32 %v293_v56, 16  ;;  %v429_v25 = vshll.u32 %v293_v56, 16  ;;  %v435_v26 = vshrl.u32 %v294_v11, 16  ;;  %v438_v36 = vshll.u32 %v294_v11, 16  ;;  %v694_v6 = vld [vmem:[#allocation2 + $0x68] sm:$0x1] }
  0x52   : > { %1270 = vrot.lane.b32.xlu1 %v987_v48, %s9059_s10  ;;  %v414_v27 = vor.u32 %v412_v17, %v411_v16  ;;  %v677_v28 = vsel %vm9271_vm7, %v406_v15, %v676_v14  ;;  %v416_v29 = vrot.slane %v411_v16, 4  ;;  %v420_v31 = vrot.slane %v418_v18, 7 }
  0x53   : > { %678 = vst [vmem:[#allocation2 + $0x48] sm:$0xf] %v677_v28  ;;  %v428_v33 = vrot.slane %v426_v24, 7  ;;  %v437_v34 = vrot.slane %v435_v26, 7  ;;  %v443_v37 = vshrl.u32 %v295_v19, 16  ;;  %v446_v54 = vshll.u32 %v295_v19, 16 }
  0x54   : > { %v415_v39 = vsel %vm9277_vm8, %v407_v13, %v414_v27  ;;  %v681_v40 = vsel %vm9283_vm9, %v416_v29, %v680_v20  ;;  %v423_v41 = vor.u32 %v421_v22, %v420_v31  ;;  %v424_v43 = vrot.slane %v420_v31, 4 }
  0x55   : > { %679 = vst.msk [vmem:[#allocation2 + $0x4c] sm:$0xf] %vm224_vm0, %v415_v39  ;;  %682 = vst [vmem:[#allocation2 + $0x50] sm:$0x1] %v681_v40  ;;  %v431_v45 = vor.u32 %v429_v25, %v428_v33  ;;  %v433_v46 = vrot.slane %v428_v33, 4  ;;  %v440_v47 = vor.u32 %v438_v36, %v437_v34  ;;  %v441_v49 = vrot.slane %v437_v34, 4 }
  0x56   : > { %v832_v51 = vld [vmem:[#allocation2 + $0x3c] sm:$0xf]  ;;  %v684_v52 = vsel %vm9271_vm7, %v423_v41, %v683_v32  ;;  %v445_v53 = vrot.slane %v443_v37, 7  ;;  %v452_v57 = vshrl.u32 %v296_v38, 16  ;;  %v833_v58 = vld [vmem:[#allocation2 + $0x40] sm:$0xf] }
  0x57   : > { %v989_v59 = vshrl.u32 %v832_v51, 16  ;;  %v992_v60 = vshll.u32 %v832_v51, 16  ;;  %v834_v63 = vld [vmem:[#allocation2 + $0x44] sm:$0x1]  ;;  %v432_v1 = vsel %vm9277_vm8, %v424_v43, %v431_v45  ;;  %685 = vst [vmem:[#allocation2 + $0x54] sm:$0xf] %v684_v52  ;;  %v688_v2 = vsel %vm9283_vm9, %v433_v46, %v687_v44 }
  0x58   : > { %v998_v3 = vshll.u32 %v833_v58, 16  ;;  %v1002_v55 = vshrl.u32 %v833_v58, 16  ;;  %v1008_v4 = vshll.u32 %v834_v63, 16  ;;  %686 = vst.msk [vmem:[#allocation2 + $0x58] sm:$0xf] %vm224_vm0, %v432_v1  ;;  %v448_v5 = vor.u32 %v446_v54, %v445_v53 }
  0x59   : > { %689 = vst [vmem:[#allocation2 + $0x5c] sm:$0x1] %v688_v2  ;;  %v991_v7 = vrot.slane %v989_v59, 4  ;;  %v994_v61 = vrot.slane %v992_v60, 5  ;;  %v691_v8 = vsel %vm9271_vm7, %v440_v47, %v690_v50  ;;  %v450_v9 = vrot.slane %v445_v53, 4 }
  0x5a   : > { %v1000_v10 = vrot.slane %v998_v3, 5  ;;  %v1004_v42 = vrot.slane %v1002_v55, 4  ;;  %v1010_v56 = vrot.slane %v1008_v4, 5  ;;  %v835_v11 = vld [vmem:[#allocation2 + $0x48] sm:$0xf]  ;;  %v449_v48 = vsel %vm9277_vm8, %v441_v49, %v448_v5 }
  0x5b   : > { %692 = vst [vmem:[#allocation2 + $0x60] sm:$0xf] %v691_v8  ;;  %v995_v62 = vor.u32 %v994_v61, %v991_v7  ;;  %v1013_v12 = vshrl.u32 %v835_v11, 16  ;;  %v1016_v13 = vshll.u32 %v835_v11, 16  ;;  %693 = vst.msk [vmem:[#allocation2 + $0x64] sm:$0xf] %vm224_vm0, %v449_v48  ;;  %v695_v14 = vsel %vm9283_vm9, %v450_v9, %v694_v6 }
  0x5c   : > { %v1005_v15 = vor.u32 %v1004_v42, %v1000_v10  ;;  %v836_v16 = vld [vmem:[#allocation2 + $0x4c] sm:$0xf]  ;;  %v837_v17 = vld [vmem:[#allocation2 + $0x50] sm:$0x1]  ;;  %696 = vst [vmem:[#allocation2 + $0x68] sm:$0x1] %v695_v14 }
  0x5d   : > { %v9405_v18 = vrot.slane %v452_v57, 7  ;;  %v455_v19 = vshll.u32 %v296_v38, 16  ;;  %v996_v20 = vrot.slane %v995_v62, 4  ;;  %v1015_v22 = vrot.slane %v1013_v12, 4  ;;  %v297_v4 = vld [vmem:[%s9264_s9 + $0x44] sm:$0xf] }
  0x5e   : > { %v1018_v24 = vrot.slane %v1016_v13, 5  ;;  %v1022_v25 = vshll.u32 %v836_v16, 16  ;;  %v1006_v26 = vrot.slane %v1005_v15, 4  ;;  %v1026_v27 = vshrl.u32 %v836_v16, 16  ;;  %v838_v29 = vld [vmem:[#allocation2 + $0x54] sm:$0xf] }
  0x5f   : > { %v1032_v28 = vshll.u32 %v837_v17, 16  ;;  %v457_v31 = vor.u32 %v455_v19, %v9405_v18  ;;  %v1001_v32 = vsel %vm9290_vm10, %v996_v20, %v1000_v10  ;;  %v839_v36 = vld [vmem:[#allocation2 + $0x58] sm:$0xf]  ;;  %v1037_v37 = vshrl.u32 %v838_v29, 16  ;;  %v697_v8 = vld [vmem:[#allocation2 + $0x6c] sm:$0xf] }
  0x60   : > { %v1019_v33 = vor.u32 %v1018_v24, %v1015_v22  ;;  %v1024_v34 = vrot.slane %v1022_v25, 5  ;;  %v840_v39 = vld [vmem:[#allocation2 + $0x5c] sm:$0x1]  ;;  %1272 = vrot.lane.b32.xlu0 %v1001_v32, %s9059_s10  ;;  %v1011_v38 = vsel %vm9290_vm10, %v1006_v26, %v1010_v56  ;;  %v1028_v40 = vrot.slane %v1026_v27, 4  ;;  %v298_v11 = vld [vmem:[%s9264_s9 + $0x48] sm:$0xf] }
  0x61   : > { %v1034_v41 = vrot.slane %v1032_v28, 5  ;;  %v1040_v43 = vshll.u32 %v838_v29, 16  ;;  %1274 = vrot.lane.b32.xlu1 %v1011_v38, %s9059_s10  ;;  %v1039_v45 = vrot.slane %v1037_v37, 4  ;;  %v1046_v46 = vshll.u32 %v839_v36, 16  ;;  %v299_v14 = vld [vmem:[%s9264_s9 + $0x4c] sm:$0xf] }
  0x62   : > { %v1020_v44 = vrot.slane %v1019_v33, 4  ;;  %v1050_v47 = vshrl.u32 %v839_v36, 16  ;;  %v841_v49 = vld [vmem:[#allocation2 + $0x60] sm:$0xf]  ;;  %v1029_v50 = vor.u32 %v1028_v40, %v1024_v34  ;;  %v1056_v52 = vshll.u32 %v840_v39, 16 }
  0x63   : > { %v1042_v51 = vrot.slane %v1040_v43, 5  ;;  %v842_v53 = vld [vmem:[#allocation2 + $0x64] sm:$0xf]  ;;  %v1061_v54 = vshrl.u32 %v841_v49, 16  ;;  %v1048_v58 = vrot.slane %v1046_v46, 5  ;;  %v1064_v60 = vshll.u32 %v841_v49, 16 }
  0x64   : > { %v1025_v57 = vsel %vm9290_vm10, %v1020_v44, %v1024_v34  ;;  %v1052_v59 = vrot.slane %v1050_v47, 4  ;;  %v843_v63 = vld [vmem:[#allocation2 + $0x68] sm:$0x1]  ;;  %v1030_v1 = vrot.slane %v1029_v50, 4  ;;  %v1058_v3 = vrot.slane %v1056_v52, 5 }
  0x65   : > { %1276 = vrot.lane.b32.xlu0 %v1025_v57, %s9059_s10  ;;  %v1043_v2 = vor.u32 %v1042_v51, %v1039_v45  ;;  %v1063_v55 = vrot.slane %v1061_v54, 4  ;;  %v1066_v6 = vrot.slane %v1064_v60, 5  ;;  %v1070_v7 = vshll.u32 %v842_v53, 16  ;;  %v300_v20 = vld [vmem:[%s9264_s9 + $0x50] sm:$0xf] }
  0x66   : > { %v1053_v5 = vor.u32 %v1052_v59, %v1048_v58  ;;  %v1074_v61 = vshrl.u32 %v842_v53, 16  ;;  %v1035_v9 = vsel %vm9290_vm10, %v1030_v1, %v1034_v41  ;;  %v1080_v42 = vshll.u32 %v843_v63, 16  ;;  %v301_v32 = vld [vmem:[%s9264_s9 + $0x54] sm:$0xf]  ;;  %v704_v43 = vld [vmem:[#allocation2 + $0x78] sm:$0xf] }
  0x67   : > { %v1044_v10 = vrot.slane %v1043_v2, 4  ;;  %v458_v56 = vrot.slane %v9405_v18, 4  ;;  %1278 = vrot.lane.b32.xlu1 %v1035_v9, %s9059_s10  ;;  %v1067_v62 = vor.u32 %v1066_v6, %v1063_v55  ;;  %v1072_v12 = vrot.slane %v1070_v7, 5  ;;  %v701_v36 = vld [vmem:[#allocation2 + $0x74] sm:$0x1] }
  0x68   : > { %v1054_v48 = vrot.slane %v1053_v5, 4  ;;  %v1076_v13 = vrot.slane %v1074_v61, 4  ;;  %v1082_v16 = vrot.slane %v1080_v42, 5  ;;  %v460_v17 = vshrl.u32 %v297_v4, 16  ;;  %v302_v49 = vld [vmem:[%s9264_s9 + $0x58] sm:$0xf] }
  0x69   : > { %v1049_v15 = vsel %vm9290_vm10, %v1044_v10, %v1048_v58  ;;  %v463_v19 = vshll.u32 %v297_v4, 16  ;;  %v1068_v22 = vrot.slane %v1067_v62, 4  ;;  %v698_v25 = vsel %vm9271_vm7, %v457_v31, %v697_v8  ;;  %v708_v54 = vld [vmem:[#allocation2 + $0x80] sm:$0x1]  ;;  %v711_v57 = vld [vmem:[#allocation2 + $0x84] sm:$0xf] }
  0x6a   : > { %1280 = vrot.lane.b32.xlu0 %v1049_v15, %s9059_s10  ;;  %v1059_v18 = vsel %vm9290_vm10, %v1054_v48, %v1058_v3  ;;  %v1077_v24 = vor.u32 %v1076_v13, %v1072_v12  ;;  %v462_v26 = vrot.slane %v460_v17, 7  ;;  %699 = vst [vmem:[#allocation2 + $0x6c] sm:$0xf] %v698_v25  ;;  %v469_v27 = vshrl.u32 %v298_v11, 16  ;;  %v303_v1 = vld [vmem:[%s9264_s9 + $0x5c] sm:$0xf] }
  0x6b   : > { %v472_v28 = vshll.u32 %v298_v11, 16  ;;  %v477_v29 = vshrl.u32 %v299_v14, 16  ;;  %1282 = vrot.lane.b32.xlu1 %v1059_v18, %s9059_s10  ;;  %v1073_v33 = vsel %vm9290_vm10, %v1068_v22, %v1072_v12  ;;  %v480_v37 = vshll.u32 %v299_v14, 16  ;;  %v304_v5 = vld [vmem:[%s9264_s9 + $0x60] sm:$0xf] }
  0x6c   : > { %v1078_v34 = vrot.slane %v1077_v24, 4  ;;  %v486_v39 = vshrl.u32 %v300_v20, 16  ;;  %v465_v38 = vor.u32 %v463_v19, %v462_v26  ;;  %v467_v40 = vrot.slane %v462_v26, 4  ;;  %v715_v9 = vld [vmem:[#allocation2 + $0x8c] sm:$0x1] }
  0x6d   : > { %v471_v41 = vrot.slane %v469_v27, 7  ;;  %v479_v31 = vrot.slane %v477_v29, 7  ;;  %v489_v46 = vshll.u32 %v300_v20, 16  ;;  %v494_v47 = vshrl.u32 %v301_v32, 16  ;;  %v9458_v14 = vld [vmem:[%s9264_s9 + $0x64] sm:$0xf] }
  0x6e   : > { %1284 = vrot.lane.b32.xlu0 %v1073_v33, %s9059_s10  ;;  %v1083_v44 = vsel %vm9290_vm10, %v1078_v34, %v1082_v16  ;;  %v488_v45 = vrot.slane %v486_v39, 7  ;;  %v466_v50 = vsel %vm9277_vm8, %v458_v56, %v465_v38  ;;  %v702_v51 = vsel %vm9283_vm9, %v467_v40, %v701_v36  ;;  %v718_v25 = vld [vmem:[#allocation2 + $0x90] sm:$0xf] }
  0x6f   : > { %v474_v52 = vor.u32 %v472_v28, %v471_v41  ;;  %v475_v53 = vrot.slane %v471_v41, 4  ;;  %1286 = vrot.lane.b32.xlu1 %v1083_v44, %s9059_s10  ;;  %700 = vst.msk [vmem:[#allocation2 + $0x70] sm:$0xf] %vm224_vm0, %v466_v50  ;;  %703 = vst [vmem:[#allocation2 + $0x74] sm:$0x1] %v702_v51  ;;  %v482_v58 = vor.u32 %v480_v37, %v479_v31  ;;  %v484_v59 = vrot.slane %v479_v31, 4 }
  0x70   : > { %v491_v60 = vor.u32 %v489_v46, %v488_v45  ;;  %v492_v63 = vrot.slane %v488_v45, 4  ;;  %v496_v3 = vrot.slane %v494_v47, 7  ;;  %v497_v55 = vshll.u32 %v301_v32, 16 }
  0x71   : > { %v705_v2 = vsel %vm9271_vm7, %v474_v52, %v704_v43  ;;  %v503_v4 = vshrl.u32 %v302_v49, 16  ;;  %v844_v6 = vld [vmem:[#allocation2 + $0x6c] sm:$0xf]  ;;  %v483_v7 = vsel %vm9277_vm8, %v475_v53, %v482_v58  ;;  %v709_v61 = vsel %vm9283_vm9, %v484_v59, %v708_v54 }
  0x72   : > { %706 = vst [vmem:[#allocation2 + $0x78] sm:$0xf] %v705_v2  ;;  %v712_v8 = vsel %vm9271_vm7, %v491_v60, %v711_v57  ;;  %v506_v10 = vshll.u32 %v302_v49, 16  ;;  %v1085_v42 = vshrl.u32 %v844_v6, 16  ;;  %v1088_v56 = vshll.u32 %v844_v6, 16 }
  0x73   : > { %707 = vst.msk [vmem:[#allocation2 + $0x7c] sm:$0xf] %vm224_vm0, %v483_v7  ;;  %710 = vst [vmem:[#allocation2 + $0x80] sm:$0x1] %v709_v61  ;;  %v499_v11 = vor.u32 %v497_v55, %v496_v3  ;;  %v501_v48 = vrot.slane %v496_v3, 4  ;;  %v505_v62 = vrot.slane %v503_v4, 7 }
  0x74   : > { %713 = vst [vmem:[#allocation2 + $0x84] sm:$0xf] %v712_v8  ;;  %v511_v12 = vshrl.u32 %v303_v1, 16  ;;  %v514_v13 = vshll.u32 %v303_v1, 16  ;;  %v520_v15 = vshrl.u32 %v304_v5, 16  ;;  %v1087_v16 = vrot.slane %v1085_v42, 4 }
  0x75   : > { %v1090_v17 = vrot.slane %v1088_v56, 5  ;;  %v500_v19 = vsel %vm9277_vm8, %v492_v63, %v499_v11  ;;  %v716_v20 = vsel %vm9283_vm9, %v501_v48, %v715_v9  ;;  %v508_v18 = vor.u32 %v506_v10, %v505_v62  ;;  %v722_v1 = vld [vmem:[#allocation2 + $0x98] sm:$0x1] }
  0x76   : > { %714 = vst.msk [vmem:[#allocation2 + $0x88] sm:$0xf] %vm224_vm0, %v500_v19  ;;  %717 = vst [vmem:[#allocation2 + $0x8c] sm:$0x1] %v716_v20  ;;  %v509_v22 = vrot.slane %v505_v62, 4  ;;  %v513_v24 = vrot.slane %v511_v12, 7 }
  0x77   : > { %v9465_v26 = vrot.slane %v520_v15, 7  ;;  %v845_v27 = vld [vmem:[#allocation2 + $0x70] sm:$0xf]  ;;  %v1091_v28 = vor.u32 %v1090_v17, %v1087_v16  ;;  %v846_v29 = vld [vmem:[#allocation2 + $0x74] sm:$0x1]  ;;  %v523_v32 = vshll.u32 %v304_v5, 16  ;;  %v719_v41 = vsel %vm9271_vm7, %v508_v18, %v718_v25 }
  0x78   : > { %v528_v33 = vshrl.u32 %v9458_v14, 16  ;;  %v1094_v34 = vshll.u32 %v845_v27, 16  ;;  %v1098_v36 = vshrl.u32 %v845_v27, 16  ;;  %v1104_v37 = vshll.u32 %v846_v29, 16  ;;  %720 = vst [vmem:[#allocation2 + $0x90] sm:$0xf] %v719_v41 }
  0x79   : > { %v516_v39 = vor.u32 %v514_v13, %v513_v24  ;;  %v1092_v38 = vrot.slane %v1091_v28, 4  ;;  %v847_v40 = vld [vmem:[#allocation2 + $0x78] sm:$0xf]  ;;  %v518_v31 = vrot.slane %v513_v24, 4  ;;  %v9471_v43 = vor.u32 %v523_v32, %v9465_v26  ;;  %v306_v41 = vld [vmem:[%s9264_s9 + $0x68] sm:$0xf] }
  0x7a   : > { %v1096_v44 = vrot.slane %v1094_v34, 5  ;;  %v1100_v45 = vrot.slane %v1098_v36, 4  ;;  %v1106_v46 = vrot.slane %v1104_v37, 5  ;;  %v848_v47 = vld [vmem:[#allocation2 + $0x7c] sm:$0xf]  ;;  %v1109_v49 = vshrl.u32 %v847_v40, 16 }
  0x7b   : > { %v1112_v50 = vshll.u32 %v847_v40, 16  ;;  %v1118_v51 = vshll.u32 %v848_v47, 16  ;;  %v1122_v52 = vshrl.u32 %v848_v47, 16  ;;  %v849_v53 = vld [vmem:[#allocation2 + $0x80] sm:$0x1]  ;;  %v517_v54 = vsel %vm9277_vm8, %v509_v22, %v516_v39 }
  0x7c   : > { %v1097_v57 = vsel %vm9290_vm10, %v1092_v38, %v1096_v44  ;;  %v1101_v58 = vor.u32 %v1100_v45, %v1096_v44  ;;  %v1111_v59 = vrot.slane %v1109_v49, 4  ;;  %v1128_v60 = vshll.u32 %v849_v53, 16  ;;  %v850_v63 = vld [vmem:[#allocation2 + $0x84] sm:$0xf]  ;;  %721 = vst.msk [vmem:[#allocation2 + $0x94] sm:$0xf] %vm224_vm0, %v517_v54 }
  0x7d   : > { %1288 = vrot.lane.b32.xlu0 %v1097_v57, %s9059_s10  ;;  %v1114_v2 = vrot.slane %v1112_v50, 5  ;;  %v1120_v3 = vrot.slane %v1118_v51, 5  ;;  %v1124_v55 = vrot.slane %v1122_v52, 4  ;;  %v851_v4 = vld [vmem:[#allocation2 + $0x88] sm:$0xf]  ;;  %v1133_v5 = vshrl.u32 %v850_v63, 16 }
  0x7e   : > { %v1102_v6 = vrot.slane %v1101_v58, 4  ;;  %v1130_v7 = vrot.slane %v1128_v60, 5  ;;  %v1136_v61 = vshll.u32 %v850_v63, 16  ;;  %v1142_v8 = vshll.u32 %v851_v4, 16  ;;  %v852_v9 = vld [vmem:[#allocation2 + $0x8c] sm:$0x1] }
  0x7f   : > { %v1115_v10 = vor.u32 %v1114_v2, %v1111_v59  ;;  %v1125_v42 = vor.u32 %v1124_v55, %v1120_v3  ;;  %v1135_v56 = vrot.slane %v1133_v5, 4  ;;  %v1146_v11 = vshrl.u32 %v851_v4, 16  ;;  %v853_v19 = vld [vmem:[#allocation2 + $0x90] sm:$0xf]  ;;  %v725_v36 = vld [vmem:[#allocation2 + $0x9c] sm:$0xf] }
  0x80   : > { %v1107_v48 = vsel %vm9290_vm10, %v1102_v6, %v1106_v46  ;;  %v1138_v62 = vrot.slane %v1136_v61, 5  ;;  %v1144_v12 = vrot.slane %v1142_v8, 5  ;;  %v1152_v13 = vshll.u32 %v852_v9, 16  ;;  %v307_v47 = vld [vmem:[%s9264_s9 + $0x6c] sm:$0xf] }
  0x81   : > { %1290 = vrot.lane.b32.xlu1 %v1107_v48, %s9059_s10  ;;  %v1116_v15 = vrot.slane %v1115_v10, 4  ;;  %v1126_v16 = vrot.slane %v1125_v42, 4  ;;  %v1148_v17 = vrot.slane %v1146_v11, 4  ;;  %v723_v20 = vsel %vm9283_vm9, %v518_v31, %v722_v1  ;;  %v729_v52 = vld [vmem:[#allocation2 + $0xa4] sm:$0x1] }
  0x82   : > { %v1139_v18 = vor.u32 %v1138_v62, %v1135_v56  ;;  %v1154_v22 = vrot.slane %v1152_v13, 5  ;;  %v1157_v24 = vshrl.u32 %v853_v19, 16  ;;  %v1160_v25 = vshll.u32 %v853_v19, 16  ;;  %724 = vst [vmem:[#allocation2 + $0x98] sm:$0x1] %v723_v20 }
  0x83   : > { %v1121_v27 = vsel %vm9290_vm10, %v1116_v15, %v1120_v3  ;;  %v1131_v28 = vsel %vm9290_vm10, %v1126_v16, %v1130_v7  ;;  %v1149_v29 = vor.u32 %v1148_v17, %v1144_v12  ;;  %v854_v32 = vld [vmem:[#allocation2 + $0x94] sm:$0xf]  ;;  %v526_v34 = vrot.slane %v9465_v26, 4  ;;  %v732_v9 = vld [vmem:[#allocation2 + $0xa8] sm:$0xf] }
  0x84   : > { %1292 = vrot.lane.b32.xlu0 %v1121_v27, %s9059_s10  ;;  %v1140_v37 = vrot.slane %v1139_v18, 4  ;;  %v1159_v39 = vrot.slane %v1157_v24, 4  ;;  %v1162_v38 = vrot.slane %v1160_v25, 5  ;;  %v1166_v40 = vshll.u32 %v854_v32, 16  ;;  %v309_v1 = vld [vmem:[%s9264_s9 + $0x74] sm:$0xf] }
  0x85   : > { %1294 = vrot.lane.b32.xlu1 %v1131_v28, %s9059_s10  ;;  %v1150_v31 = vrot.slane %v1149_v29, 4  ;;  %v1170_v44 = vshrl.u32 %v854_v32, 16  ;;  %v530_v45 = vrot.slane %v528_v33, 7  ;;  %v531_v46 = vshll.u32 %v9458_v14, 16  ;;  %v308_v14 = vld [vmem:[%s9264_s9 + $0x70] sm:$0xf] }
  0x86   : > { %v1145_v26 = vsel %vm9290_vm10, %v1140_v37, %v1144_v12  ;;  %v1163_v49 = vor.u32 %v1162_v38, %v1159_v39  ;;  %v1168_v50 = vrot.slane %v1166_v40, 5  ;;  %v726_v51 = vsel %vm9271_vm7, %v9471_v43, %v725_v36  ;;  %v736_v13 = vld [vmem:[#allocation2 + $0xb0] sm:$0x1]  ;;  %v739_v25 = vld [vmem:[#allocation2 + $0xb4] sm:$0xf] }
  0x87   : > { %v1155_v53 = vsel %vm9290_vm10, %v1150_v31, %v1154_v22  ;;  %v1172_v54 = vrot.slane %v1170_v44, 4  ;;  %v533_v57 = vor.u32 %v531_v46, %v530_v45  ;;  %727 = vst [vmem:[#allocation2 + $0x9c] sm:$0xf] %v726_v51  ;;  %v535_v33 = vrot.slane %v530_v45, 4  ;;  %v753_v27 = vld [vmem:[#allocation2] sm:$0xf] }
  0x88   : > { %1296 = vrot.lane.b32.xlu0 %v1145_v26, %s9059_s10  ;;  %v1164_v58 = vrot.slane %v1163_v49, 4  ;;  %v537_v59 = vshrl.u32 %v306_v41, 16  ;;  %v540_v60 = vshll.u32 %v306_v41, 16  ;;  %v545_v63 = vshrl.u32 %v307_v47, 16  ;;  %785 = vst.msk [vmem:[#allocation3] sm:$0xf] %vm224_vm0, %v753_v27 }
  0x89   : > { %1298 = vrot.lane.b32.xlu1 %v1155_v53, %s9059_s10  ;;  %v855_v2 = vld [vmem:[#allocation2 + $0x98] sm:$0x1]  ;;  %v1173_v43 = vor.u32 %v1172_v54, %v1168_v50  ;;  %v534_v3 = vsel %vm9277_vm8, %v526_v34, %v533_v57  ;;  %v730_v55 = vsel %vm9283_vm9, %v535_v33, %v729_v52  ;;  %v548_v4 = vshll.u32 %v307_v47, 16  ;;  %v755_v36 = vld [vmem:[#allocation2 + $0xc] sm:$0xf] }
  0x8a   : > { %v1169_v5 = vsel %vm9290_vm10, %v1164_v58, %v1168_v50  ;;  %v1176_v6 = vshll.u32 %v855_v2, 16  ;;  %728 = vst.msk [vmem:[#allocation2 + $0xa0] sm:$0xf] %vm224_vm0, %v534_v3  ;;  %731 = vst [vmem:[#allocation2 + $0xa4] sm:$0x1] %v730_v55  ;;  %v539_v7 = vrot.slane %v537_v59, 7 }
  0x8b   : > { %v547_v61 = vrot.slane %v545_v63, 7  ;;  %v1174_v8 = vrot.slane %v1173_v43, 4  ;;  %v554_v10 = vshrl.u32 %v308_v14, 16  ;;  %v557_v42 = vshll.u32 %v308_v14, 16  ;;  %v743_v40 = vld [vmem:[#allocation2 + $0xbc] sm:$0x1] }
  0x8c   : > { %v562_v56 = vshrl.u32 %v309_v1, 16  ;;  %1300 = vrot.lane.b32.xlu0 %v1169_v5, %s9059_s10  ;;  %v1178_v11 = vrot.slane %v1176_v6, 5  ;;  %v542_v48 = vor.u32 %v540_v60, %v539_v7  ;;  %v543_v62 = vrot.slane %v539_v7, 4  ;;  %787 = vst.msk [vmem:[#allocation3 + $0x8] sm:$0xf] %vm224_vm0, %v755_v36 }
  0x8d   : > { %v550_v12 = vor.u32 %v548_v4, %v547_v61  ;;  %v552_v15 = vrot.slane %v547_v61, 4  ;;  %v556_v16 = vrot.slane %v554_v10, 7  ;;  %v565_v19 = vshll.u32 %v309_v1, 16  ;;  %v754_v41 = vld [vmem:[#allocation2 + $0x4] sm:$0xf] }
  0x8e   : > { %v564_v17 = vrot.slane %v562_v56, 7  ;;  %v1179_v20 = vsel %vm9290_vm10, %v1174_v8, %v1178_v11  ;;  %v856_v18 = vld [vmem:[#allocation2 + $0x9c] sm:$0xf]  ;;  %v733_v24 = vsel %vm9271_vm7, %v542_v48, %v732_v9  ;;  %786 = vst.msk [vmem:[#allocation3 + $0x4] sm:$0xf] %vm224_vm0, %v754_v41  ;;  %vm1688_vm15 = vcmask 93248  }
  0x8f   : > { %v551_v22 = vsel %vm9277_vm8, %v543_v62, %v550_v12  ;;  %1302 = vrot.lane.b32.xlu1 %v1179_v20, %s9059_s10  ;;  %v1181_v28 = vshrl.u32 %v856_v18, 16  ;;  %v1184_v29 = vshll.u32 %v856_v18, 16  ;;  %734 = vst [vmem:[#allocation2 + $0xa8] sm:$0xf] %v733_v24  ;;  %v737_v32 = vsel %vm9283_vm9, %v552_v15, %v736_v13  ;;  %v756_v54 = vld [vmem:[#allocation2 + $0x10] sm:$0xf] }
  0x90   : > { %735 = vst.msk [vmem:[#allocation2 + $0xac] sm:$0xf] %vm224_vm0, %v551_v22  ;;  %v559_v34 = vor.u32 %v557_v42, %v556_v16  ;;  %738 = vst [vmem:[#allocation2 + $0xb0] sm:$0x1] %v737_v32  ;;  %v560_v37 = vrot.slane %v556_v16, 4  ;;  %v567_v39 = vor.u32 %v565_v19, %v564_v17  ;;  %v569_v38 = vrot.slane %v564_v17, 4 }
  0x91   : > { %v857_v31 = vld [vmem:[#allocation2 + $0xa0] sm:$0xf]  ;;  %v1183_v44 = vrot.slane %v1181_v28, 4  ;;  %v1186_v45 = vrot.slane %v1184_v29, 5  ;;  %v858_v46 = vld [vmem:[#allocation2 + $0xa4] sm:$0x1] }
  0x92   : > { %v740_v47 = vsel %vm9271_vm7, %v559_v34, %v739_v25  ;;  %v1190_v26 = vshll.u32 %v857_v31, 16  ;;  %v1194_v49 = vshrl.u32 %v857_v31, 16  ;;  %v1200_v50 = vshll.u32 %v858_v46, 16  ;;  %788 = vst.msk [vmem:[#allocation3 + $0xc] sm:$0xf] %vm224_vm0, %v756_v54 }
  0x93   : > { %v568_v51 = vsel %vm9277_vm8, %v560_v37, %v567_v39  ;;  %741 = vst [vmem:[#allocation2 + $0xb4] sm:$0xf] %v740_v47  ;;  %v1187_v52 = vor.u32 %v1186_v45, %v1183_v44  ;;  %v744_v53 = vsel %vm9283_vm9, %v569_v38, %v743_v40  ;;  %v757_v14 = vld [vmem:[#allocation2 + $0x18] sm:$0xf]  ;;  %v758_v59 = vld [vmem:[#allocation2 + $0x1c] sm:$0xf] }
  0x94   : > { %742 = vst.msk [vmem:[#allocation2 + $0xb8] sm:$0xf] %vm224_vm0, %v568_v51  ;;  %v1192_v57 = vrot.slane %v1190_v26, 5  ;;  %v1196_v33 = vrot.slane %v1194_v49, 4  ;;  %745 = vst [vmem:[#allocation2 + $0xbc] sm:$0x1] %v744_v53 }
  0x95   : > { %v1188_v58 = vrot.slane %v1187_v52, 4  ;;  %789 = vst.msk [vmem:[#allocation3 + $0x10] sm:$0xf] %vm224_vm0, %v757_v14  ;;  %v1202_v63 = vrot.slane %v1200_v50, 5  ;;  %790 = vst.msk [vmem:[#allocation3 + $0x14] sm:$0xf] %vm224_vm0, %v758_v59 }
  0x96   : > { %v1197_v60 = vor.u32 %v1196_v33, %v1192_v57  ;;  %v859_v1 = vld [vmem:[#allocation2 + $0xa8] sm:$0xf]  ;;  %v1382_v12 = vld [vmem:[#allocation2 + $0x4] sm:$0xf]  ;;  %v1381_v34 = vld [vmem:[#allocation2] sm:$0xe] }
  0x97   : > { %v860_v2 = vld [vmem:[#allocation2 + $0xac] sm:$0xf]  ;;  %v1193_v43 = vsel %vm9290_vm10, %v1188_v58, %v1192_v57  ;;  %v1205_v3 = vshrl.u32 %v859_v1, 16  ;;  %v1208_v55 = vshll.u32 %v859_v1, 16  ;;  %v861_v5 = vld [vmem:[#allocation2 + $0xb0] sm:$0x1] }
  0x98   : > { %v1214_v4 = vshll.u32 %v860_v2, 16  ;;  %1304 = vrot.lane.b32.xlu0 %v1193_v43, %s9059_s10  ;;  %v1198_v6 = vrot.slane %v1197_v60, 4  ;;  %v1218_v7 = vshrl.u32 %v860_v2, 16  ;;  %v1224_v61 = vshll.u32 %v861_v5, 16  ;;  %v1383_v37 = vld [vmem:[#allocation2 + $0x8] sm:$0x1] }
  0x99   : > { %v1207_v8 = vrot.slane %v1205_v3, 4  ;;  %v1210_v9 = vrot.slane %v1208_v55, 5  ;;  %v1482_v36 = vrot.slane %v1382_v12, 5  ;;  %v1385_v31 = vld [vmem:[#allocation2 + $0x10] sm:$0xf]  ;;  %v8539_v49 = vrot.slane %v1381_v34, 9 }
  0x9a   : > { %v1216_v10 = vrot.slane %v1214_v4, 5  ;;  %v862_v42 = vld [vmem:[#allocation2 + $0xb4] sm:$0xf]  ;;  %v1203_v56 = vsel %vm9290_vm10, %v1198_v6, %v1202_v63  ;;  %v1220_v11 = vrot.slane %v1218_v7, 4  ;;  %v1226_v18 = vrot.slane %v1224_v61, 5 }
  0x9b   : > { %v863_v48 = vld [vmem:[#allocation2 + $0xb8] sm:$0xf]  ;;  %v1229_v62 = vshrl.u32 %v862_v42, 16  ;;  %1306 = vrot.lane.b32.xlu1 %v1203_v56, %s9059_s10  ;;  %v1211_v13 = vor.u32 %v1210_v9, %v1207_v8  ;;  %v1232_v15 = vshll.u32 %v862_v42, 16  ;;  %v864_v19 = vld [vmem:[#allocation2 + $0xbc] sm:$0x1]  ;;  %v1483_v63 = vsel %vm9554_vm13, %v8539_v49, %v1482_v36 }
  0x9c   : > { %v1238_v16 = vshll.u32 %v863_v48, 16  ;;  %v1242_v17 = vshrl.u32 %v863_v48, 16  ;;  %v1221_v20 = vor.u32 %v1220_v11, %v1216_v10  ;;  %v1248_v24 = vshll.u32 %v864_v19, 16  ;;  %v759_v44 = vld [vmem:[#allocation2 + $0x24] sm:$0xf] }
  0x9d   : > { %v1231_v22 = vrot.slane %v1229_v62, 4  ;;  %v1212_v25 = vrot.slane %v1211_v13, 4  ;;  %v1234_v27 = vrot.slane %v1232_v15, 5  ;;  %791 = vst.msk [vmem:[#allocation3 + $0x18] sm:$0xf] %vm224_vm0, %v759_v44  ;;  %v1484_v52 = vrot.slane %v1482_v36, 4 }
  0x9e   : > { %v1240_v28 = vrot.slane %v1238_v16, 5  ;;  %v1244_v29 = vrot.slane %v1242_v17, 4  ;;  %v1222_v32 = vrot.slane %v1221_v20, 4  ;;  %v1250_v41 = vrot.slane %v1248_v24, 5  ;;  %v760_v46 = vld [vmem:[#allocation2 + $0x28] sm:$0xf] }
  0x9f   : > { %v1217_v39 = vsel %vm9290_vm10, %v1212_v25, %v1216_v10  ;;  %v1235_v38 = vor.u32 %v1234_v27, %v1231_v22  ;;  %v1384_v50 = vld [vmem:[#allocation2 + $0xc] sm:$0xe]  ;;  %792 = vst.msk [vmem:[#allocation3 + $0x1c] sm:$0xf] %vm224_vm0, %v760_v46  ;;  %v1485_v53 = vrot.slane %v1383_v37, 5  ;;  %v1489_v54 = vrot.slane %v1385_v31, 5 }
  0xa0   : > { %v1245_v40 = vor.u32 %v1244_v29, %v1240_v28  ;;  %1308 = vrot.lane.b32.xlu0 %v1217_v39, %s9059_s10  ;;  %v1227_v45 = vsel %vm9290_vm10, %v1222_v32, %v1226_v18  ;;  %v1386_v57 = vld [vmem:[#allocation2 + $0x14] sm:$0x1]  ;;  %v1388_v58 = vld [vmem:[#allocation2 + $0x1c] sm:$0xf]  ;;  %v761_v59 = vld [vmem:[#allocation2 + $0x30] sm:$0xf] }
  0xa1   : > { %1310 = vrot.lane.b32.xlu1 %v1227_v45, %s9059_s10  ;;  %v1236_v47 = vrot.slane %v1235_v38, 4  ;;  %v762_v60 = vld [vmem:[#allocation2 + $0x34] sm:$0xf]  ;;  %793 = vst.msk [vmem:[#allocation3 + $0x20] sm:$0xf] %vm224_vm0, %v761_v59  ;;  %v8540_v1 = vrot.slane %v1384_v50, 9  ;;  %v1486_v3 = vsel %vm9554_vm13, %v1484_v52, %v1485_v53 }
  0xa2   : > { %v1246_v26 = vrot.slane %v1245_v40, 4  ;;  %794 = vst.msk [vmem:[#allocation3 + $0x24] sm:$0xf] %vm224_vm0, %v762_v60  ;;  %v1387_v2 = vld [vmem:[#allocation2 + $0x18] sm:$0xe]  ;;  %v1491_v55 = vrot.slane %v1489_v54, 4 }
  0xa3   : > { %v1241_v33 = vsel %vm9290_vm10, %v1236_v47, %v1240_v28  ;;  %v763_v43 = vld [vmem:[#allocation2 + $0x3c] sm:$0xf]  ;;  %v1492_v4 = vrot.slane %v1386_v57, 5  ;;  %v1496_v5 = vrot.slane %v1388_v58, 5  ;;  %v764_v6 = vld [vmem:[#allocation2 + $0x40] sm:$0xf]  ;;  %v1490_v10 = vsel %vm9554_vm13, %v8540_v1, %v1489_v54 }
  0xa4   : > { %v1251_v14 = vsel %vm9290_vm10, %v1246_v26, %v1250_v41  ;;  %1312 = vrot.lane.b32.xlu0 %v1241_v33, %s9059_s10  ;;  %795 = vst.msk [vmem:[#allocation3 + $0x28] sm:$0xf] %vm224_vm0, %v763_v43  ;;  %v1389_v7 = vld [vmem:[#allocation2 + $0x20] sm:$0x1]  ;;  %v1391_v61 = vld [vmem:[#allocation2 + $0x28] sm:$0xf] }
  0xa5   : > { %1314 = vrot.lane.b32.xlu1 %v1251_v14, %s9059_s10  ;;  %796 = vst.msk [vmem:[#allocation3 + $0x2c] sm:$0xf] %vm224_vm0, %v764_v6  ;;  %v765_v9 = vld [vmem:[#allocation2 + $0x48] sm:$0xf]  ;;  %v8541_v42 = vrot.slane %v1387_v2, 9  ;;  %v1493_v11 = vsel %vm9554_vm13, %v1491_v55, %v1492_v4  ;;  %v1498_v48 = vrot.slane %v1496_v5, 4 }
  0xa6   : > { %v1253_v8 = vpop.permute.xlu0 %1252  ;;  %797 = vst.msk [vmem:[#allocation3 + $0x30] sm:$0xf] %vm224_vm0, %v765_v9  ;;  %v766_v56 = vld [vmem:[#allocation2 + $0x4c] sm:$0xf]  ;;  %v1499_v62 = vrot.slane %v1389_v7, 5  ;;  %v1503_v13 = vrot.slane %v1391_v61, 5 }
  0xa7   : > { %v1390_v12 = vld [vmem:[#allocation2 + $0x24] sm:$0xe]  ;;  %798 = vst.msk [vmem:[#allocation3 + $0x34] sm:$0xf] %vm224_vm0, %v766_v56  ;;  %v1392_v15 = vld [vmem:[#allocation2 + $0x2c] sm:$0x1]  ;;  %v1497_v20 = vsel %vm9554_vm13, %v8541_v42, %v1496_v5 }
  0xa8   : > { %1592 = vrot.lane.b32.xlu0 %v1483_v63, %s9060_s11  ;;  %v1394_v16 = vld [vmem:[#allocation2 + $0x34] sm:$0xf]  ;;  %v768_v19 = vld [vmem:[#allocation2 + $0x58] sm:$0xf]  ;;  %v8542_v18 = vrot.slane %v1390_v12, 9  ;;  %v1500_v27 = vsel %vm9554_vm13, %v1498_v48, %v1499_v62  ;;  %v1505_v28 = vrot.slane %v1503_v13, 4 }
  0xa9   : > { %1594 = vrot.lane.b32.xlu1 %v1486_v3, %s9060_s11  ;;  %v767_v17 = vld [vmem:[#allocation2 + $0x54] sm:$0xf]  ;;  %v1393_v22 = vld [vmem:[#allocation2 + $0x30] sm:$0xe]  ;;  %v1395_v24 = vld [vmem:[#allocation2 + $0x38] sm:$0x1] }
  0xaa   : > { %799 = vst.msk [vmem:[#allocation3 + $0x38] sm:$0xf] %vm224_vm0, %v767_v17  ;;  %v1255_v25 = vpop.permute.xlu0 %1254  ;;  %800 = vst.msk [vmem:[#allocation3 + $0x3c] sm:$0xf] %vm224_vm0, %v768_v19  ;;  %v1506_v29 = vrot.slane %v1392_v15, 5  ;;  %v1510_v32 = vrot.slane %v1394_v16, 5  ;;  %v1504_v39 = vsel %vm9554_vm13, %v8542_v18, %v1503_v13 }
  0xab   : > { %v769_v34 = vld [vmem:[#allocation2 + $0x60] sm:$0xf]  ;;  %v770_v37 = vld [vmem:[#allocation2 + $0x64] sm:$0xf]  ;;  %1349 = vst.msk [vmem:[#allocation3] sm:$0xf] %vm1348_vm14, %v1253_v8 }
  0xac   : > { %1596 = vrot.lane.b32.xlu0 %v1490_v10, %s9060_s11  ;;  %v1397_v36 = vld [vmem:[#allocation2 + $0x40] sm:$0xf]  ;;  %801 = vst.msk [vmem:[#allocation3 + $0x40] sm:$0xf] %vm224_vm0, %v769_v34  ;;  %802 = vst.msk [vmem:[#allocation3 + $0x44] sm:$0xf] %vm224_vm0, %v770_v37  ;;  %v1507_v31 = vsel %vm9554_vm13, %v1505_v28, %v1506_v29 }
  0xad   : > { %1598 = vrot.lane.b32.xlu1 %v1493_v11, %s9060_s11  ;;  %1350 = vst.msk [vmem:[#allocation3 + $0x4] sm:$0xf] %vm1348_vm14, %v1255_v25  ;;  %v8543_v38 = vrot.slane %v1393_v22, 9  ;;  %v1396_v40 = vld [vmem:[#allocation2 + $0x3c] sm:$0xe]  ;;  %v1512_v44 = vrot.slane %v1510_v32, 4 }
  0xae   : > { %v771_v41 = vld [vmem:[#allocation2 + $0x6c] sm:$0xf]  ;;  %v1513_v45 = vrot.slane %v1395_v24, 5  ;;  %v1517_v46 = vrot.slane %v1397_v36, 5  ;;  %v772_v47 = vld [vmem:[#allocation2 + $0x70] sm:$0xf] }
  0xaf   : > { %803 = vst.msk [vmem:[#allocation3 + $0x48] sm:$0xf] %vm224_vm0, %v771_v41  ;;  %v1398_v26 = vld [vmem:[#allocation2 + $0x44] sm:$0x1]  ;;  %v1400_v49 = vld [vmem:[#allocation2 + $0x4c] sm:$0xf]  ;;  %v1511_v54 = vsel %vm9554_vm13, %v8543_v38, %v1510_v32 }
  0xb0   : > { %1600 = vrot.lane.b32.xlu0 %v1497_v20, %s9060_s11  ;;  %804 = vst.msk [vmem:[#allocation3 + $0x4c] sm:$0xf] %vm224_vm0, %v772_v47  ;;  %v1399_v50 = vld [vmem:[#allocation2 + $0x48] sm:$0xe]  ;;  %v773_v52 = vld [vmem:[#allocation2 + $0x78] sm:$0xf]  ;;  %v1514_v59 = vsel %vm9554_vm13, %v1512_v44, %v1513_v45 }
  0xb1   : > { %1602 = vrot.lane.b32.xlu1 %v1500_v27, %s9060_s11  ;;  %v774_v53 = vld [vmem:[#allocation2 + $0x7c] sm:$0xf]  ;;  %v8544_v57 = vrot.slane %v1396_v40, 9  ;;  %v9604_v33 = vld [vmem:[#allocation2 + $0x58] sm:$0xf]  ;;  %v1519_v60 = vrot.slane %v1517_v46, 4 }
  0xb2   : > { %805 = vst.msk [vmem:[#allocation3 + $0x50] sm:$0xf] %vm224_vm0, %v773_v52  ;;  %806 = vst.msk [vmem:[#allocation3 + $0x54] sm:$0xf] %vm224_vm0, %v774_v53  ;;  %v775_v58 = vld [vmem:[#allocation2 + $0x84] sm:$0xf] }
  0xb3   : > { %v1520_v63 = vrot.slane %v1398_v26, 5  ;;  %v1524_v1 = vrot.slane %v1400_v49, 5  ;;  %807 = vst.msk [vmem:[#allocation3 + $0x58] sm:$0xf] %vm224_vm0, %v775_v58  ;;  %v776_v2 = vld [vmem:[#allocation2 + $0x88] sm:$0xf]  ;;  %v1518_v6 = vsel %vm9554_vm13, %v8544_v57, %v1517_v46 }
  0xb4   : > { %1604 = vrot.lane.b32.xlu0 %v1504_v39, %s9060_s11  ;;  %v1257_v14 = vpop.permute.xlu1 %1256  ;;  %v1401_v43 = vld [vmem:[#allocation2 + $0x50] sm:$0x1]  ;;  %808 = vst.msk [vmem:[#allocation3 + $0x5c] sm:$0xf] %vm224_vm0, %v776_v2  ;;  %v778_v55 = vld [vmem:[#allocation2 + $0x94] sm:$0xf] }
  0xb5   : > { %1606 = vrot.lane.b32.xlu1 %v1507_v31, %s9060_s11  ;;  %1351 = vst.msk [vmem:[#allocation3 + $0x8] sm:$0xf] %vm1348_vm14, %v1257_v14  ;;  %v777_v3 = vld [vmem:[#allocation2 + $0x90] sm:$0xf]  ;;  %v779_v4 = vld [vmem:[#allocation2 + $0x9c] sm:$0xf]  ;;  %v1521_v56 = vsel %vm9554_vm13, %v1519_v60, %v1520_v63 }
  0xb6   : > { %809 = vst.msk [vmem:[#allocation3 + $0x60] sm:$0xf] %vm224_vm0, %v777_v3  ;;  %810 = vst.msk [vmem:[#allocation3 + $0x64] sm:$0xf] %vm224_vm0, %v778_v55  ;;  %v780_v5 = vld [vmem:[#allocation2 + $0xa0] sm:$0xf] }
  0xb7   : > { %v8545_v7 = vrot.slane %v1399_v50, 9  ;;  %v1402_v61 = vld [vmem:[#allocation2 + $0x54] sm:$0xe]  ;;  %v1531_v8 = vrot.slane %v9604_v33, 5  ;;  %v1261_v10 = vpop.permute.xlu0 %1260  ;;  %811 = vst.msk [vmem:[#allocation3 + $0x68] sm:$0xf] %vm224_vm0, %v779_v4 }
  0xb8   : > { %1608 = vrot.lane.b32.xlu0 %v1511_v54, %s9060_s11  ;;  %v1259_v9 = vpop.permute.xlu1 %1258  ;;  %812 = vst.msk [vmem:[#allocation3 + $0x6c] sm:$0xf] %vm224_vm0, %v780_v5  ;;  %v781_v42 = vld [vmem:[#allocation2 + $0xa8] sm:$0xf]  ;;  %v1526_v11 = vrot.slane %v1524_v1, 4  ;;  %v1527_v48 = vrot.slane %v1401_v43, 5 }
  0xb9   : > { %1610 = vrot.lane.b32.xlu1 %v1514_v59, %s9060_s11  ;;  %v1404_v62 = vld [vmem:[#allocation2 + $0x5c] sm:$0x1]  ;;  %1352 = vst.msk [vmem:[#allocation3 + $0xc] sm:$0xf] %vm1348_vm14, %v1259_v9  ;;  %1353 = vst.msk [vmem:[#allocation3 + $0x10] sm:$0xf] %vm1348_vm14, %v1261_v10  ;;  %v1525_v18 = vsel %vm9554_vm13, %v8545_v7, %v1524_v1 }
  0xba   : > { %813 = vst.msk [vmem:[#allocation3 + $0x70] sm:$0xf] %vm224_vm0, %v781_v42  ;;  %v782_v12 = vld [vmem:[#allocation2 + $0xac] sm:$0xf]  ;;  %v1406_v13 = vld [vmem:[#allocation2 + $0x64] sm:$0xf]  ;;  %v1528_v29 = vsel %vm9554_vm13, %v1526_v11, %v1527_v48 }
  0xbb   : > { %814 = vst.msk [vmem:[#allocation3 + $0x74] sm:$0xf] %vm224_vm0, %v782_v12  ;;  %v783_v15 = vld [vmem:[#allocation2 + $0xb4] sm:$0xf]  ;;  %v784_v16 = vld [vmem:[#allocation2 + $0xb8] sm:$0xf] }
  0xbc   : > { %1612 = vrot.lane.b32.xlu0 %v1518_v6, %s9060_s11  ;;  %v8546_v17 = vrot.slane %v1402_v61, 9  ;;  %v1405_v19 = vld [vmem:[#allocation2 + $0x60] sm:$0xe]  ;;  %v1407_v20 = vld [vmem:[#allocation2 + $0x68] sm:$0x1]  ;;  %v1533_v22 = vrot.slane %v1531_v8, 4  ;;  %v1263_v27 = vpop.permute.xlu1 %1262 }
  0xbd   : > { %815 = vst.msk [vmem:[#allocation3 + $0x78] sm:$0xf] %vm224_vm0, %v783_v15  ;;  %816 = vst.msk [vmem:[#allocation3 + $0x7c] sm:$0xf] %vm224_vm0, %v784_v16  ;;  %1614 = vrot.lane.b32.xlu1 %v1521_v56, %s9060_s11  ;;  %v1534_v24 = vrot.slane %v1404_v62, 5  ;;  %v1538_v32 = vrot.slane %v1406_v13, 5  ;;  %v1265_v34 = vpop.permute.xlu0 %1264 }
  0xbe   : > { %v1409_v25 = vld [vmem:[#allocation2 + $0x70] sm:$0xf]  ;;  %v310_v28 = vld [vmem:[%s9264_s9 + $0x78] sm:$0xf]  ;;  %1354 = vst.msk [vmem:[#allocation3 + $0x14] sm:$0xf] %vm1348_vm14, %v1263_v27  ;;  %v1532_v41 = vsel %vm9554_vm13, %v8546_v17, %v1531_v8 }
  0xbf   : > { %v571_v36 = vshrl.u32 %v310_v28, 16  ;;  %v574_v37 = vshll.u32 %v310_v28, 16  ;;  %v311_v39 = vld [vmem:[%s9264_s9 + $0x7c] sm:$0xf]  ;;  %1355 = vst.msk [vmem:[#allocation3 + $0x18] sm:$0xf] %vm1348_vm14, %v1265_v34  ;;  %v1535_v50 = vsel %vm9554_vm13, %v1533_v22, %v1534_v24 }
  0xc0   : > { %v579_v38 = vshrl.u32 %v311_v39, 16  ;;  %v582_v40 = vshll.u32 %v311_v39, 16  ;;  %1616 = vrot.lane.b32.xlu0 %v1525_v18, %s9060_s11  ;;  %v8547_v44 = vrot.slane %v1405_v19, 9  ;;  %v1541_v45 = vrot.slane %v1407_v20, 5  ;;  %v1267_v47 = vpop.permute.xlu1 %1266  ;;  %v746_v26 = vld [vmem:[#allocation2 + $0xc0] sm:$0xf] }
  0xc1   : > { %v573_v31 = vrot.slane %v571_v36, 7  ;;  %1618 = vrot.lane.b32.xlu1 %v1528_v29, %s9060_s11  ;;  %v1545_v46 = vrot.slane %v1409_v25, 5  ;;  %v1540_v52 = vrot.slane %v1538_v32, 4  ;;  %v1408_v53 = vld [vmem:[#allocation2 + $0x6c] sm:$0xe]  ;;  %v1269_v54 = vpop.permute.xlu0 %1268  ;;  %vm2442_vm2 = vcmask 158848  }
  0xc2   : > { %v9644_v49 = vrot.slane %v579_v38, 7  ;;  %1356 = vst.msk [vmem:[#allocation3 + $0x1c] sm:$0xf] %vm1348_vm14, %v1267_v47  ;;  %v1410_v14 = vld [vmem:[#allocation2 + $0x74] sm:$0x1]  ;;  %v1539_v63 = vsel %vm9554_vm13, %v8547_v44, %v1538_v32  ;;  %v8548_v1 = vrot.slane %v1408_v53, 9 }
  0xc3   : > { %v576_v57 = vor.u32 %v574_v37, %v573_v31  ;;  %v577_v33 = vrot.slane %v573_v31, 4  ;;  %v1412_v58 = vld [vmem:[#allocation2 + $0x7c] sm:$0xf]  ;;  %1357 = vst.msk [vmem:[#allocation3 + $0x20] sm:$0xf] %vm1348_vm14, %v1269_v54  ;;  %v1542_v3 = vsel %vm9554_vm13, %v1540_v52, %v1541_v45  ;;  %v1547_v55 = vrot.slane %v1545_v46, 4 }
  0xc4   : > { %v584_v59 = vor.u32 %v582_v40, %v9644_v49  ;;  %1620 = vrot.lane.b32.xlu0 %v1532_v41, %s9060_s11  ;;  %v1271_v2 = vpop.permute.xlu1 %1270  ;;  %v1548_v4 = vrot.slane %v1410_v14, 5  ;;  %v1411_v5 = vld [vmem:[#allocation2 + $0x78] sm:$0xe]  ;;  %v1552_v6 = vrot.slane %v1412_v58, 5  ;;  %v1413_v21 = vld [vmem:[#allocation2 + $0x80] sm:$0x1]  ;;  %v1546_v61 = vsel %vm9554_vm13, %v8548_v1, %v1545_v46 }
  0xc5   : > { %v747_v60 = vsel %vm9271_vm7, %v576_v57, %v746_v26  ;;  %1622 = vrot.lane.b32.xlu1 %v1535_v50, %s9060_s11  ;;  %1358 = vst.msk [vmem:[#allocation3 + $0x24] sm:$0xf] %vm1348_vm14, %v1271_v2  ;;  %v1415_v7 = vld [vmem:[#allocation2 + $0x88] sm:$0xf]  ;;  %v8549_v8 = vrot.slane %v1411_v5, 9  ;;  %v1555_v42 = vrot.slane %v1413_v21, 5 }
  0xc6   : > { %748 = vst [vmem:[#allocation2 + $0xc0] sm:$0xf] %v747_v60  ;;  %v585_v43 = vsel %vm9277_vm8, %v577_v33, %v584_v59  ;;  %v1549_v9 = vsel %vm9554_vm13, %v1547_v55, %v1548_v4  ;;  %v1554_v10 = vrot.slane %v1552_v6, 4  ;;  %v1414_v56 = vld [vmem:[#allocation2 + $0x84] sm:$0xe]  ;;  %v1559_v11 = vrot.slane %v1415_v7, 5 }
  0xc7   : > { %749 = vst.msk [vmem:[#allocation2 + $0xc4] sm:$0xf] %vm224_vm0, %v585_v43  ;;  %v1416_v48 = vld [vmem:[#allocation2 + $0x8c] sm:$0x1]  ;;  %v1418_v62 = vld [vmem:[#allocation2 + $0x94] sm:$0xf]  ;;  %v1553_v12 = vsel %vm9554_vm13, %v8549_v8, %v1552_v6 }
  0xc8   : > { %1624 = vrot.lane.b32.xlu0 %v1539_v63, %s9060_s11  ;;  %v8550_v13 = vrot.slane %v1414_v56, 9  ;;  %v1556_v15 = vsel %vm9554_vm13, %v1554_v10, %v1555_v42  ;;  %v1561_v16 = vrot.slane %v1559_v11, 4  ;;  %v1562_v17 = vrot.slane %v1416_v48, 5  ;;  %v1417_v19 = vld [vmem:[#allocation2 + $0x90] sm:$0xe]  ;;  %s9070_s10 = smov 64  }
  0xc9   : > { %1626 = vrot.lane.b32.xlu1 %v1542_v3, %s9060_s11  ;;  %v1566_v20 = vrot.slane %v1418_v62, 5  ;;  %v1419_v18 = vld [vmem:[#allocation2 + $0x98] sm:$0x1]  ;;  %v1421_v22 = vld [vmem:[#allocation2 + $0xa0] sm:$0xf]  ;;  %v8551_v25 = vrot.slane %v1417_v19, 9 }
  0xca   : > { %v1560_v24 = vsel %vm9554_vm13, %v8550_v13, %v1559_v11  ;;  %v1563_v27 = vsel %vm9554_vm13, %v1561_v16, %v1562_v17  ;;  %v1569_v29 = vrot.slane %v1419_v18, 5  ;;  %v1420_v32 = vld [vmem:[#allocation2 + $0x9c] sm:$0xe]  ;;  %v1573_v34 = vrot.slane %v1421_v22, 5  ;;  %v1422_v36 = vld [vmem:[#allocation2 + $0xa4] sm:$0x1] }
  0xcb   : > { %v1568_v28 = vrot.slane %v1566_v20, 4  ;;  %v1424_v37 = vld [vmem:[#allocation2 + $0xac] sm:$0xf]  ;;  %v1567_v40 = vsel %vm9554_vm13, %v8551_v25, %v1566_v20  ;;  %v8552_v41 = vrot.slane %v1420_v32, 9  ;;  %v1576_v45 = vrot.slane %v1422_v36, 5  ;;  %s9071_s9 = smov [#allocation6]  }
  0xcc   : > { %1628 = vrot.lane.b32.xlu0 %v1546_v61, %s9060_s11  ;;  %v1575_v44 = vrot.slane %v1573_v34, 4  ;;  %v1423_v46 = vld [vmem:[#allocation2 + $0xa8] sm:$0xe]  ;;  %v1580_v47 = vrot.slane %v1424_v37, 5  ;;  %v1425_v26 = vld [vmem:[#allocation2 + $0xb0] sm:$0x1] }
  0xcd   : > { %1630 = vrot.lane.b32.xlu1 %v1549_v9, %s9060_s11  ;;  %v1570_v31 = vsel %vm9554_vm13, %v1568_v28, %v1569_v29  ;;  %v1427_v50 = vld [vmem:[#allocation2 + $0xb8] sm:$0xf]  ;;  %v1574_v53 = vsel %vm9554_vm13, %v8552_v41, %v1573_v34  ;;  %v8553_v54 = vrot.slane %v1423_v46, 9  ;;  %v1583_v14 = vrot.slane %v1425_v26, 5  ;;  %v1426_v58 = vld [vmem:[#allocation2 + $0xb4] sm:$0xe] }
  0xce   : > { %v1577_v57 = vsel %vm9554_vm13, %v1575_v44, %v1576_v45  ;;  %v1582_v33 = vrot.slane %v1580_v47, 4  ;;  %v1587_v59 = vrot.slane %v1427_v50, 5  ;;  %v1428_v63 = vld [vmem:[#allocation2 + $0xbc] sm:$0x1]  ;;  %v8554_v43 = vrot.slane %v1426_v58, 9 }
  0xcf   : > { %v1581_v2 = vsel %vm9554_vm13, %v8553_v54, %v1580_v47  ;;  %v1590_v4 = vrot.slane %v1428_v63, 5  ;;  %v1721_v8 = vld [vmem:[#allocation2 + $0xc] sm:$0xf]  ;;  %v1722_v9 = vld [vmem:[#allocation2 + $0x10] sm:$0xf]  ;;  %v586_v25 = vrot.slane %v9644_v49, 4 }
  0xd0   : > { %1632 = vrot.lane.b32.xlu0 %v1553_v12, %s9060_s11  ;;  %v1584_v3 = vsel %vm9554_vm13, %v1582_v33, %v1583_v14  ;;  %v1589_v55 = vrot.slane %v1587_v59, 4  ;;  %v1588_v21 = vsel %vm9554_vm13, %v8554_v43, %v1587_v59  ;;  %v1723_v10 = vld [vmem:[#allocation2 + $0x18] sm:$0xf]  ;;  %v1724_v42 = vld [vmem:[#allocation2 + $0x1c] sm:$0xf]  ;;  %vm1881_vm0 = vcmask 126048  }
  0xd1   : > { %1634 = vrot.lane.b32.xlu1 %v1556_v15, %s9060_s11  ;;  %v1725_v56 = vld [vmem:[#allocation2 + $0x24] sm:$0xf]  ;;  %v1726_v11 = vld [vmem:[#allocation2 + $0x28] sm:$0xf]  ;;  %v1727_v62 = vld [vmem:[#allocation2 + $0x30] sm:$0xf] }
  0xd2   : > { %v1273_v39 = vpop.permute.xlu0 %1272  ;;  %v1591_v7 = vsel %vm9554_vm13, %v1589_v55, %v1590_v4  ;;  %v1728_v12 = vld [vmem:[#allocation2 + $0x34] sm:$0xf]  ;;  %v1729_v15 = vld [vmem:[#allocation2 + $0x3c] sm:$0xf]  ;;  %v1730_v16 = vld [vmem:[#allocation2 + $0x40] sm:$0xf] }
  0xd3   : > { %1359 = vst.msk [vmem:[#allocation3 + $0x28] sm:$0xf] %vm1348_vm14, %v1273_v39  ;;  %v1275_v38 = vpop.permute.xlu1 %1274  ;;  %v1731_v20 = vld [vmem:[#allocation2 + $0x48] sm:$0xf]  ;;  %v1732_v18 = vld [vmem:[#allocation2 + $0x4c] sm:$0xf] }
  0xd4   : > { %1636 = vrot.lane.b32.xlu0 %v1560_v24, %s9060_s11  ;;  %1360 = vst.msk [vmem:[#allocation3 + $0x2c] sm:$0xf] %vm1348_vm14, %v1275_v38  ;;  %v1733_v28 = vld [vmem:[#allocation2 + $0x54] sm:$0xf]  ;;  %v1734_v29 = vld [vmem:[#allocation2 + $0x58] sm:$0xf] }
  0xd5   : > { %1638 = vrot.lane.b32.xlu1 %v1563_v27, %s9060_s11  ;;  %v750_v27 = vld [vmem:[#allocation2 + $0xc8] sm:$0x1]  ;;  %v1735_v49 = vld [vmem:[#allocation2 + $0x60] sm:$0xf]  ;;  %v1736_v37 = vld [vmem:[#allocation2 + $0x64] sm:$0xf] }
  0xd6   : > { %v751_v34 = vsel %vm9283_vm9, %v586_v25, %v750_v27  ;;  %v1737_v39 = vld [vmem:[#allocation2 + $0x6c] sm:$0xf]  ;;  %v1738_v38 = vld [vmem:[#allocation2 + $0x70] sm:$0xf]  ;;  %v1739_v30 = vld [vmem:[#allocation2 + $0x78] sm:$0xf] }
  0xd7   : > { %v1277_v52 = vpop.permute.xlu0 %1276  ;;  %752 = vst [vmem:[#allocation2 + $0xc8] sm:$0x1] %v751_v34  ;;  %v1741_v44 = vld [vmem:[#allocation2 + $0x84] sm:$0xf]  ;;  %v1742_v45 = vld [vmem:[#allocation2 + $0x88] sm:$0xf] }
  0xd8   : > { %1640 = vrot.lane.b32.xlu0 %v1567_v40, %s9060_s11  ;;  %1361 = vst.msk [vmem:[#allocation3 + $0x30] sm:$0xf] %vm1348_vm14, %v1277_v52  ;;  %v1740_v40 = vld [vmem:[#allocation2 + $0x7c] sm:$0xf]  ;;  %v1914_v46 = vld [vmem:[#allocation2 + $0xc] sm:$0xf] }
  0xd9   : > { %1642 = vrot.lane.b32.xlu1 %v1570_v31, %s9060_s11  ;;  %v1279_v60 = vpop.permute.xlu1 %1278  ;;  %v1743_v47 = vld [vmem:[#allocation2 + $0x90] sm:$0xf]  ;;  %v1917_v50 = vld [vmem:[#allocation2 + $0x18] sm:$0xf]  ;;  %v1918_v54 = vld [vmem:[#allocation2 + $0x1c] sm:$0xf] }
  0xda   : > { %1362 = vst.msk [vmem:[#allocation3 + $0x34] sm:$0xf] %vm1348_vm14, %v1279_v60  ;;  %v1915_v26 = vld [vmem:[#allocation2 + $0x10] sm:$0xf]  ;;  %v1963_v33 = vshrl.u32 %v1914_v46, 16  ;;  %v1966_v14 = vshll.u32 %v1914_v46, 16 }
  0xdb   : > { %v1972_v58 = vshll.u32 %v1915_v26, 16  ;;  %v1976_v59 = vshrl.u32 %v1915_v26, 16  ;;  %v1987_v60 = vshrl.u32 %v1917_v50, 16  ;;  %v1990_v63 = vshll.u32 %v1917_v50, 16  ;;  %v1746_v55 = vld [vmem:[#allocation2 + $0xa0] sm:$0xf] }
  0xdc   : > { %1644 = vrot.lane.b32.xlu0 %v1574_v53, %s9060_s11  ;;  %v1281_v1 = vpop.permute.xlu0 %1280  ;;  %v1744_v53 = vld [vmem:[#allocation2 + $0x94] sm:$0xf]  ;;  %v2000_v43 = vshrl.u32 %v1918_v54, 16  ;;  %v1920_v4 = vld [vmem:[#allocation2 + $0x24] sm:$0xf]  ;;  %vm2779_vm3 = vcmask 191648  }
  0xdd   : > { %1646 = vrot.lane.b32.xlu1 %v1577_v57, %s9060_s11  ;;  %1363 = vst.msk [vmem:[#allocation3 + $0x38] sm:$0xf] %vm1348_vm14, %v1281_v1  ;;  %v1283_v5 = vpop.permute.xlu1 %1282  ;;  %v1745_v1 = vld [vmem:[#allocation2 + $0x9c] sm:$0xf]  ;;  %vm4092_vm4 = vcmask 1041408   ;;  %vm2973_vm5 = vcmask 224448  }
  0xde   : > { %1364 = vst.msk [vmem:[#allocation3 + $0x3c] sm:$0xf] %vm1348_vm14, %v1283_v5  ;;  %vm3534_vm7 = vcmask 257248   ;;  %vm3871_vm9 = vcmask 290048   ;;  %vm4043_vm11 = vcmask 293888   ;;  %vm4289_vm12 = vcmask 60416  }
  0xdf   : > { %4297 = vst.msk [vmem:[#allocation4 + $0x18] sm:$0xf] %vm4289_vm12, %v9058_v0  ;;  %4290 = vst.msk [vmem:[#allocation4] sm:$0xf] %vm4289_vm12, %v9058_v0 }
  0xe0   : > { %1648 = vrot.lane.b32.xlu0 %v1581_v2, %s9060_s11  ;;  %v1285_v6 = vpop.permute.xlu0 %1284  ;;  %v1996_v2 = vshll.u32 %v1918_v54, 16  ;;  %v1751_v54 = vld [vmem:[#allocation2 + $0xc0] sm:$0xf]  ;;  %4291 = vst.msk [vmem:[#allocation4 + $0x4] sm:$0xf] %vm4289_vm12, %v9058_v0 }
  0xe1   : > { %1650 = vrot.lane.b32.xlu1 %v1584_v3, %s9060_s11  ;;  %1365 = vst.msk [vmem:[#allocation3 + $0x40] sm:$0xf] %vm1348_vm14, %v1285_v6  ;;  %v1287_v61 = vpop.permute.xlu1 %1286  ;;  %v1747_v6 = vld [vmem:[#allocation2 + $0xa8] sm:$0xf] }
  0xe2   : > { %1366 = vst.msk [vmem:[#allocation3 + $0x44] sm:$0xf] %vm1348_vm14, %v1287_v61  ;;  %v1921_v61 = vld [vmem:[#allocation2 + $0x28] sm:$0xf] }
  0xe3   : > { %4294 = vst.msk [vmem:[#allocation4 + $0xc] sm:$0xf] %vm4289_vm12, %v9058_v0  ;;  %4295 = vst.msk [vmem:[#allocation4 + $0x10] sm:$0xf] %vm4289_vm12, %v9058_v0 }
  0xe4   : > { %1652 = vrot.lane.b32.xlu0 %v1588_v21, %s9060_s11  ;;  %v1965_v21 = vrot.slane %v1963_v33, 4  ;;  %4298 = vst.msk [vmem:[#allocation4 + $0x1c] sm:$0xf] %vm4289_vm12, %v9058_v0  ;;  %4300 = vst.msk [vmem:[#allocation4 + $0x24] sm:$0xf] %vm4289_vm12, %v9058_v0 }
  0xe5   : > { %1654 = vrot.lane.b32.xlu1 %v1591_v7, %s9060_s11  ;;  %v1968_v7 = vrot.slane %v1966_v14, 5  ;;  %4301 = vst.msk [vmem:[#allocation4 + $0x28] sm:$0xf] %vm4289_vm12, %v9058_v0  ;;  %4303 = vst.msk [vmem:[#allocation4 + $0x30] sm:$0xf] %vm4289_vm12, %v9058_v0 }
  0xe6   : > { %4304 = vst.msk [vmem:[#allocation4 + $0x34] sm:$0xf] %vm4289_vm12, %v9058_v0  ;;  %4306 = vst.msk [vmem:[#allocation4 + $0x3c] sm:$0xf] %vm4289_vm12, %v9058_v0 }
  0xe7   : > { %4307 = vst.msk [vmem:[#allocation4 + $0x40] sm:$0xf] %vm4289_vm12, %v9058_v0  ;;  %4309 = vst.msk [vmem:[#allocation4 + $0x48] sm:$0xf] %vm4289_vm12, %v9058_v0 }
  0xe8   : > { %1785 = vrot.lane.b32.xlu0 %v1721_v8, %s9061_s12  ;;  %v9757_v8 = vrot.slane %v1972_v58, 5  ;;  %4310 = vst.msk [vmem:[#allocation4 + $0x4c] sm:$0xf] %vm4289_vm12, %v9058_v0  ;;  %4312 = vst.msk [vmem:[#allocation4 + $0x54] sm:$0xf] %vm4289_vm12, %v9058_v0 }
  0xe9   : > { %1787 = vrot.lane.b32.xlu1 %v1722_v9, %s9061_s12  ;;  %v1916_v9 = vld [vmem:[#allocation2 + $0x14] sm:$0x1]  ;;  %4313 = vst.msk [vmem:[#allocation4 + $0x58] sm:$0xf] %vm4289_vm12, %v9058_v0  ;;  %4315 = vst.msk [vmem:[#allocation4 + $0x60] sm:$0xf] %vm4289_vm12, %v9058_v0 }
  0xea   : > { %4316 = vst.msk [vmem:[#allocation4 + $0x64] sm:$0xf] %vm4289_vm12, %v9058_v0  ;;  %4318 = vst.msk [vmem:[#allocation4 + $0x6c] sm:$0xf] %vm4289_vm12, %v9058_v0 }
  0xeb   : > { %4319 = vst.msk [vmem:[#allocation4 + $0x70] sm:$0xf] %vm4289_vm12, %v9058_v0  ;;  %4321 = vst.msk [vmem:[#allocation4 + $0x78] sm:$0xf] %vm4289_vm12, %v9058_v0 }
  0xec   : > { %1789 = vrot.lane.b32.xlu0 %v1723_v10, %s9061_s12  ;;  %v1978_v10 = vrot.slane %v1976_v59, 4  ;;  %4322 = vst.msk [vmem:[#allocation4 + $0x7c] sm:$0xf] %vm4289_vm12, %v9058_v0  ;;  %4324 = vst.msk [vmem:[#allocation4 + $0x84] sm:$0xf] %vm4289_vm12, %v9058_v0 }
  0xed   : > { %1791 = vrot.lane.b32.xlu1 %v1724_v42, %s9061_s12  ;;  %v1989_v42 = vrot.slane %v1987_v60, 4  ;;  %v1752_v60 = vld [vmem:[#allocation2 + $0xc4] sm:$0xf]  ;;  %4325 = vst.msk [vmem:[#allocation4 + $0x88] sm:$0xf] %vm4289_vm12, %v9058_v0 }
  0xee   : > { %v1979_v25 = vor.u32 %v1978_v10, %v9757_v8  ;;  %4327 = vst.msk [vmem:[#allocation4 + $0x90] sm:$0xf] %vm4289_vm12, %v9058_v0  ;;  %4328 = vst.msk [vmem:[#allocation4 + $0x94] sm:$0xf] %vm4289_vm12, %v9058_v0 }
  0xef   : > { %v1289_v48 = vpop.permute.xlu0 %1288  ;;  %4330 = vst.msk [vmem:[#allocation4 + $0x9c] sm:$0xf] %vm4289_vm12, %v9058_v0  ;;  %4331 = vst.msk [vmem:[#allocation4 + $0xa0] sm:$0xf] %vm4289_vm12, %v9058_v0 }
  0xf0   : > { %1793 = vrot.lane.b32.xlu0 %v1725_v56, %s9061_s12  ;;  %1367 = vst.msk [vmem:[#allocation3 + $0x48] sm:$0xf] %vm1348_vm14, %v1289_v48  ;;  %v1992_v56 = vrot.slane %v1990_v63, 5  ;;  %v1919_v48 = vld [vmem:[#allocation2 + $0x20] sm:$0x1]  ;;  %v1980_v50 = vrot.slane %v1979_v25, 4 }
  0xf1   : > { %1795 = vrot.lane.b32.xlu1 %v1726_v11, %s9061_s12  ;;  %v9760_v11 = vrot.slane %v1996_v2, 5  ;;  %v2006_v27 = vshll.u32 %v1919_v48, 16  ;;  %v1929_v48 = vld [vmem:[#allocation2 + $0x48] sm:$0xf]  ;;  %4333 = vst.msk [vmem:[#allocation4 + $0xa8] sm:$0xf] %vm4289_vm12, %v9058_v0 }
  0xf2   : > { %v1993_v34 = vor.u32 %v1992_v56, %v1989_v42  ;;  %4334 = vst.msk [vmem:[#allocation4 + $0xac] sm:$0xf] %vm4289_vm12, %v9058_v0  ;;  %4336 = vst.msk [vmem:[#allocation4 + $0xb4] sm:$0xf] %vm4289_vm12, %v9058_v0 }
  0xf3   : > { %v1291_v13 = vpop.permute.xlu1 %1290  ;;  %v9778_v14 = vrot.slane %v2006_v27, 5  ;;  %v1928_v27 = vld [vmem:[#allocation2 + $0x44] sm:$0x1]  ;;  %4337 = vst.msk [vmem:[#allocation4 + $0xb8] sm:$0xf] %vm4289_vm12, %v9058_v0 }
  0xf4   : > { %1797 = vrot.lane.b32.xlu0 %v1727_v62, %s9061_s12  ;;  %1368 = vst.msk [vmem:[#allocation3 + $0x4c] sm:$0xf] %vm1348_vm14, %v1291_v13  ;;  %v2002_v62 = vrot.slane %v2000_v43, 4  ;;  %v2014_v13 = vshll.u32 %v1920_v4, 16 }
  0xf5   : > { %1799 = vrot.lane.b32.xlu1 %v1728_v12, %s9061_s12  ;;  %v2011_v12 = vshrl.u32 %v1920_v4, 16  ;;  %v1925_v4 = vld [vmem:[#allocation2 + $0x38] sm:$0x1]  ;;  %4339 = vst.msk [vmem:[#allocation4 + $0xc0] sm:$0xf] %vm4289_vm12, %v9058_v0 }
  0xf6   : > { %v1293_v17 = vpop.permute.xlu0 %1292  ;;  %4340 = vst.msk [vmem:[#allocation4 + $0xc4] sm:$0xf] %vm4289_vm12, %v9058_v0  ;;  %4342 = vst.msk [vmem:[#allocation4 + $0xcc] sm:$0xf] %vm4289_vm12, %v9058_v0 }
  0xf7   : > { %1369 = vst.msk [vmem:[#allocation3 + $0x50] sm:$0xf] %vm1348_vm14, %v1293_v17  ;;  %v1295_v19 = vpop.permute.xlu1 %1294  ;;  %v2020_v17 = vshll.u32 %v1921_v61, 16 }
  0xf8   : > { %1801 = vrot.lane.b32.xlu0 %v1729_v15, %s9061_s12  ;;  %1370 = vst.msk [vmem:[#allocation3 + $0x54] sm:$0xf] %vm1348_vm14, %v1295_v19  ;;  %v2024_v19 = vshrl.u32 %v1921_v61, 16 }
  0xf9   : > { %1803 = vrot.lane.b32.xlu1 %v1730_v16, %s9061_s12  ;;  %v1748_v16 = vld [vmem:[#allocation2 + $0xac] sm:$0xf]  ;;  %4343 = vst.msk [vmem:[#allocation4 + $0xd0] sm:$0xf] %vm4289_vm12, %v9058_v0 }
  0xfa   : > { %v1297_v22 = vpop.permute.xlu0 %1296 }
  0xfb   : > { %1371 = vst.msk [vmem:[#allocation3 + $0x58] sm:$0xf] %vm1348_vm14, %v1297_v22  ;;  %v1299_v24 = vpop.permute.xlu1 %1298  ;;  %v1923_v22 = vld [vmem:[#allocation2 + $0x30] sm:$0xf] }
  0xfc   : > { %1805 = vrot.lane.b32.xlu0 %v1731_v20, %s9061_s12  ;;  %1372 = vst.msk [vmem:[#allocation3 + $0x5c] sm:$0xf] %vm1348_vm14, %v1299_v24  ;;  %v1969_v24 = vor.u32 %v1968_v7, %v1965_v21 }
  0xfd   : > { %1807 = vrot.lane.b32.xlu1 %v1732_v18, %s9061_s12  ;;  %v1982_v18 = vshll.u32 %v1916_v9, 16 }
  0xfe   : > { %v1301_v32 = vpop.permute.xlu0 %1300  ;;  %v1970_v26 = vrot.slane %v1969_v24, 4  ;;  %v1933_v24 = vld [vmem:[#allocation2 + $0x58] sm:$0xf] }
  0xff   : > { %1373 = vst.msk [vmem:[#allocation3 + $0x60] sm:$0xf] %vm1348_vm14, %v1301_v32  ;;  %v1750_v32 = vld [vmem:[#allocation2 + $0xb8] sm:$0xf] }
 0x100   : > { %1809 = vrot.lane.b32.xlu0 %v1733_v28, %s9061_s12  ;;  %v1924_v28 = vld [vmem:[#allocation2 + $0x34] sm:$0xf]  ;;  %v1975_v9 = vsel %vm9290_vm10, %v1970_v26, %v9757_v8  ;;  %v2054_v8 = vshll.u32 %v1925_v4, 16  ;;  %v2078_v26 = vshll.u32 %v1928_v27, 16 }
 0x101   : > { %1811 = vrot.lane.b32.xlu1 %v1734_v29, %s9061_s12  ;;  %v1303_v36 = vpop.permute.xlu1 %1302  ;;  %v1749_v29 = vld [vmem:[#allocation2 + $0xb4] sm:$0xf]  ;;  %v2044_v46 = vshll.u32 %v1924_v28, 16 }
 0x102   : > { %1374 = vst.msk [vmem:[#allocation3 + $0x64] sm:$0xf] %vm1348_vm14, %v1303_v36  ;;  %v2013_v36 = vrot.slane %v2011_v12, 4 }
 0x104   : > { %1813 = vrot.lane.b32.xlu0 %v1735_v49, %s9061_s12  ;;  %v2003_v49 = vor.u32 %v2002_v62, %v9760_v11 }
 0x105   : > { %1815 = vrot.lane.b32.xlu1 %v1736_v37, %s9061_s12  ;;  %v2016_v37 = vrot.slane %v2014_v13, 5 }
 0x106   : > { %v9776_v33 = vrot.slane %v2003_v49, 4 }
 0x107   : > { %v2017_v63 = vor.u32 %v2016_v37, %v2013_v36 }
 0x108   : > { %1817 = vrot.lane.b32.xlu0 %v1737_v39, %s9061_s12  ;;  %v2009_v12 = vsel %vm9290_vm10, %v9776_v33, %v9778_v14  ;;  %v1931_v14 = vld [vmem:[#allocation2 + $0x50] sm:$0x1] }
 0x109   : > { %1819 = vrot.lane.b32.xlu1 %v1738_v38, %s9061_s12  ;;  %v9768_v38 = vrot.slane %v2020_v17, 5  ;;  %v2018_v13 = vrot.slane %v2017_v63, 4  ;;  %v1932_v17 = vld [vmem:[#allocation2 + $0x54] sm:$0xf] }
 0x10a   : > { %v1305_v41 = vpop.permute.xlu0 %1304  ;;  %v2107_v36 = vshrl.u32 %v1932_v17, 16  ;;  %v2110_v37 = vshll.u32 %v1932_v17, 16 }
 0x10b   : > { %1375 = vst.msk [vmem:[#allocation3 + $0x68] sm:$0xf] %vm1348_vm14, %v1305_v41  ;;  %v2035_v41 = vshrl.u32 %v1923_v22, 16 }
 0x10c   : > { %1821 = vrot.lane.b32.xlu0 %v1739_v30, %s9061_s12  ;;  %v1922_v30 = vld [vmem:[#allocation2 + $0x2c] sm:$0x1] }
 0x10d   : > { %1823 = vrot.lane.b32.xlu1 %v1740_v40, %s9061_s12  ;;  %v1307_v31 = vpop.permute.xlu1 %1306  ;;  %v2026_v40 = vrot.slane %v2024_v19, 4  ;;  %v2030_v58 = vshll.u32 %v1922_v30, 16  ;;  %v2037_v2 = vrot.slane %v2035_v41, 4  ;;  %v2023_v30 = vsel %vm9290_vm10, %v2018_v13, %v9768_v38  ;;  %v1939_v13 = vld [vmem:[#allocation2 + $0x70] sm:$0xf] }
 0x10e   : > { %1376 = vst.msk [vmem:[#allocation3 + $0x6c] sm:$0xf] %vm1348_vm14, %v1307_v31  ;;  %v2038_v31 = vshll.u32 %v1923_v22, 16  ;;  %v2116_v41 = vshll.u32 %v1933_v24, 16 }
 0x10f   : > { %v9796_v56 = vrot.slane %v2030_v58, 5 }
 0x110   : > { %1825 = vrot.lane.b32.xlu0 %v1741_v44, %s9061_s12  ;;  %v2040_v43 = vrot.slane %v2038_v31, 5  ;;  %v2120_v31 = vshrl.u32 %v1933_v24, 16 }
 0x111   : > { %1827 = vrot.lane.b32.xlu1 %v1742_v45, %s9061_s12  ;;  %v1984_v45 = vrot.slane %v1982_v18, 5 }
 0x112   : > { %v1309_v52 = vpop.permute.xlu0 %1308 }
 0x113   : > { %1377 = vst.msk [vmem:[#allocation3 + $0x70] sm:$0xf] %vm1348_vm14, %v1309_v52  ;;  %v1311_v57 = vpop.permute.xlu1 %1310  ;;  %v1926_v52 = vld [vmem:[#allocation2 + $0x3c] sm:$0xf]  ;;  %v1985_v10 = vsel %vm9290_vm10, %v1980_v50, %v1984_v45  ;;  %v1935_v50 = vld [vmem:[#allocation2 + $0x60] sm:$0xf] }
 0x114   : > { %1378 = vst.msk [vmem:[#allocation3 + $0x74] sm:$0xf] %vm1348_vm14, %v1311_v57  ;;  %1829 = vrot.lane.b32.xlu0 %v1743_v47, %s9061_s12  ;;  %v2048_v47 = vshrl.u32 %v1924_v28, 16  ;;  %v9774_v57 = vrot.slane %v1993_v34, 4  ;;  %v2062_v21 = vshll.u32 %v1926_v52, 16  ;;  %v2134_v4 = vshll.u32 %v1935_v50, 16 }
 0x115   : > { %1831 = vrot.lane.b32.xlu1 %v1744_v53, %s9061_s12  ;;  %v1927_v53 = vld [vmem:[#allocation2 + $0x40] sm:$0xf] }
 0x116   : > { %v1313_v3 = vpop.permute.xlu0 %1312  ;;  %v2068_v7 = vshll.u32 %v1927_v53, 16  ;;  %v2072_v61 = vshrl.u32 %v1927_v53, 16  ;;  %v1999_v42 = vsel %vm9290_vm10, %v9774_v57, %v9760_v11  ;;  %v2064_v22 = vrot.slane %v2062_v21, 5  ;;  %v1936_v57 = vld [vmem:[#allocation2 + $0x64] sm:$0xf] }
 0x117   : > { %1379 = vst.msk [vmem:[#allocation3 + $0x78] sm:$0xf] %vm1348_vm14, %v1313_v3  ;;  %v1315_v5 = vpop.permute.xlu1 %1314  ;;  %v2140_v21 = vshll.u32 %v1936_v57, 16 }
 0x118   : > { %1380 = vst.msk [vmem:[#allocation3 + $0x7c] sm:$0xf] %vm1348_vm14, %v1315_v5  ;;  %1833 = vrot.lane.b32.xlu0 %v1745_v1, %s9061_s12  ;;  %v2027_v1 = vor.u32 %v2026_v40, %v9768_v38  ;;  %v2050_v5 = vrot.slane %v2048_v47, 4  ;;  %v9806_v25 = vrot.slane %v2068_v7, 5  ;;  %v2074_v28 = vrot.slane %v2072_v61, 4 }
 0x119   : > { %1835 = vrot.lane.b32.xlu1 %v1746_v55, %s9061_s12  ;;  %v9782_v55 = vrot.slane %v2044_v46, 5  ;;  %v2056_v47 = vrot.slane %v2054_v8, 5  ;;  %v2144_v7 = vshrl.u32 %v1936_v57, 16  ;;  %vm4292_vm14 = vcmask 57344  }
 0x11a   : > { %v1593_v15 = vpop.permute.xlu0 %1592  ;;  %v2075_v38 = vor.u32 %v2074_v28, %v9806_v25  ;;  %4299 = vst.msk [vmem:[#allocation4 + $0x20] sm:$0x1] %vm4292_vm14, %v9058_v0  ;;  %4293 = vst.msk [vmem:[#allocation4 + $0x8] sm:$0x1] %vm4292_vm14, %v9058_v0 }
 0x11b   : > { %1689 = vst.msk [vmem:[#allocation3] sm:$0xf] %vm1688_vm15, %v1593_v15  ;;  %v1595_v20 = vpop.permute.xlu1 %1594  ;;  %v2041_v15 = vor.u32 %v2040_v43, %v2037_v2  ;;  %v2051_v11 = vor.u32 %v2050_v5, %v9782_v55  ;;  %v1934_v2 = vld [vmem:[#allocation2 + $0x5c] sm:$0x1]  ;;  %v2122_v43 = vrot.slane %v2120_v31, 4 }
 0x11c   : > { %1690 = vst.msk [vmem:[#allocation3 + $0x4] sm:$0xf] %vm1688_vm15, %v1595_v20  ;;  %1837 = vrot.lane.b32.xlu0 %v1747_v6, %s9061_s12  ;;  %v2059_v6 = vshrl.u32 %v1926_v52, 16  ;;  %v2028_v20 = vrot.slane %v2027_v1, 4  ;;  %v9822_v1 = vrot.slane %v2116_v41, 5 }
 0x11d   : > { %1839 = vrot.lane.b32.xlu1 %v1748_v16, %s9061_s12  ;;  %v1930_v16 = vld [vmem:[#allocation2 + $0x4c] sm:$0xf]  ;;  %v2042_v40 = vrot.slane %v2041_v15, 4  ;;  %v2052_v46 = vrot.slane %v2051_v11, 4  ;;  %v9836_v11 = vrot.slane %v2140_v21, 5 }
 0x11e   : > { %v1597_v39 = vpop.permute.xlu0 %1596  ;;  %v2061_v18 = vrot.slane %v2059_v6, 4  ;;  %v2092_v34 = vshll.u32 %v1930_v16, 16  ;;  %v2096_v49 = vshrl.u32 %v1930_v16, 16  ;;  %v2033_v45 = vsel %vm9290_vm10, %v2028_v20, %v9796_v56  ;;  %v1938_v56 = vld [vmem:[#allocation2 + $0x6c] sm:$0xf] }
 0x11f   : > { %1691 = vst.msk [vmem:[#allocation3 + $0x8] sm:$0xf] %vm1688_vm15, %v1597_v39  ;;  %v1599_v44 = vpop.permute.xlu1 %1598  ;;  %v2047_v6 = vsel %vm9290_vm10, %v2042_v40, %v9782_v55  ;;  %v2057_v61 = vsel %vm9290_vm10, %v2052_v46, %v2056_v47  ;;  %v2126_v55 = vshll.u32 %v1934_v2, 16  ;;  %v2123_v16 = vor.u32 %v2122_v43, %v9822_v1 }
 0x120   : > { %1692 = vst.msk [vmem:[#allocation3 + $0xc] sm:$0xf] %vm1688_vm15, %v1599_v44  ;;  %1841 = vrot.lane.b32.xlu0 %v1749_v29, %s9061_s12  ;;  %v2083_v29 = vshrl.u32 %v1929_v48, 16  ;;  %v2065_v52 = vor.u32 %v2064_v22, %v2061_v18  ;;  %v9820_v33 = vrot.slane %v2092_v34, 5  ;;  %v2098_v58 = vrot.slane %v2096_v49, 4 }
 0x121   : > { %1843 = vrot.lane.b32.xlu1 %v1750_v32, %s9061_s12  ;;  %v2086_v32 = vshll.u32 %v1929_v48, 16  ;;  %v2076_v48 = vrot.slane %v2075_v38, 4  ;;  %v1937_v18 = vld [vmem:[#allocation2 + $0x68] sm:$0x1]  ;;  %v2146_v22 = vrot.slane %v2144_v7, 4  ;;  %v2155_v24 = vshrl.u32 %v1938_v56, 16 }
 0x122   : > { %v1601_v59 = vpop.permute.xlu0 %1600  ;;  %v2085_v53 = vrot.slane %v2083_v29, 4  ;;  %v2158_v27 = vshll.u32 %v1938_v56, 16  ;;  %v2164_v29 = vshll.u32 %v1939_v13, 16  ;;  %v9846_v41 = vrot.slane %v2123_v16, 4  ;;  %v1940_v38 = vld [vmem:[#allocation2 + $0x74] sm:$0x1] }
 0x123   : > { %1693 = vst.msk [vmem:[#allocation3 + $0x10] sm:$0xf] %vm1688_vm15, %v1601_v59  ;;  %v1603_v3 = vpop.permute.xlu1 %1602  ;;  %v2109_v59 = vrot.slane %v2107_v36, 4  ;;  %v9848_v31 = vrot.slane %v2126_v55, 5  ;;  %v2147_v47 = vor.u32 %v2146_v22, %v9836_v11  ;;  %v2174_v21 = vshll.u32 %v1940_v38, 16 }
 0x124   : > { %1694 = vst.msk [vmem:[#allocation3 + $0x14] sm:$0xf] %vm1688_vm15, %v1603_v3  ;;  %1845 = vrot.lane.b32.xlu0 %v1751_v54, %s9061_s12  ;;  %v2088_v54 = vrot.slane %v2086_v32, 5  ;;  %v2131_v3 = vshrl.u32 %v1935_v50, 16  ;;  %v2168_v32 = vshrl.u32 %v1939_v13, 16  ;;  %v2160_v50 = vrot.slane %v2158_v27, 5 }
 0x125   : > { %1847 = vrot.lane.b32.xlu1 %v1752_v60, %s9061_s12  ;;  %v2112_v60 = vrot.slane %v2110_v37, 5  ;;  %v1945_v7 = vld [vmem:[#allocation2 + $0x88] sm:$0xf]  ;;  %v1948_v56 = vld [vmem:[#allocation2 + $0x94] sm:$0xf] }
 0x126   : > { %v1605_v62 = vpop.permute.xlu0 %1604  ;;  %v2133_v17 = vrot.slane %v2131_v3, 4  ;;  %v1944_v3 = vld [vmem:[#allocation2 + $0x84] sm:$0xf]  ;;  %v2216_v16 = vshrl.u32 %v1945_v7, 16  ;;  %v2240_v27 = vshrl.u32 %v1948_v56, 16 }
 0x127   : > { %1695 = vst.msk [vmem:[#allocation3 + $0x18] sm:$0xf] %vm1688_vm15, %v1605_v62  ;;  %v1607_v19 = vpop.permute.xlu1 %1606  ;;  %v2089_v62 = vor.u32 %v2088_v54, %v2085_v53  ;;  %v2113_v8 = vor.u32 %v2112_v60, %v2109_v59  ;;  %v2170_v53 = vrot.slane %v2168_v32, 4  ;;  %v2203_v55 = vshrl.u32 %v1944_v3, 16 }
 0x128   : > { %1696 = vst.msk [vmem:[#allocation3 + $0x1c] sm:$0xf] %vm1688_vm15, %v1607_v19  ;;  %2346 = vrot.lane.b32.xlu0 %v1975_v9, %s9062_s13  ;;  %v2066_v9 = vrot.slane %v2065_v52, 4  ;;  %v2136_v19 = vrot.slane %v2134_v4, 5  ;;  %v9854_v52 = vrot.slane %v2164_v29, 5  ;;  %v2206_v13 = vshll.u32 %v1944_v3, 16 }
 0x129   : > { %2348 = vrot.lane.b32.xlu1 %v1985_v10, %s9062_s13  ;;  %v2080_v10 = vrot.slane %v2078_v26, 5  ;;  %v2090_v49 = vrot.slane %v2089_v62, 4  ;;  %v2114_v40 = vrot.slane %v2113_v8, 4  ;;  %v2157_v26 = vrot.slane %v2155_v24, 4  ;;  %v1943_v62 = vld [vmem:[#allocation2 + $0x80] sm:$0x1] }
 0x12a   : > { %v1609_v39 = vpop.permute.xlu0 %1608  ;;  %v2071_v28 = vsel %vm9290_vm10, %v2066_v9, %v9806_v25  ;;  %v2137_v46 = vor.u32 %v2136_v19, %v2133_v17  ;;  %v2171_v9 = vor.u32 %v2170_v53, %v9854_v52  ;;  %v2212_v8 = vshll.u32 %v1945_v7, 16  ;;  %4296 = vst.msk [vmem:[#allocation4 + $0x14] sm:$0x1] %vm4292_vm14, %v9058_v0  ;;  %4302 = vst.msk [vmem:[#allocation4 + $0x2c] sm:$0x1] %vm4292_vm14, %v9058_v0 }
 0x12b   : > { %1697 = vst.msk [vmem:[#allocation3 + $0x20] sm:$0xf] %vm1688_vm15, %v1609_v39  ;;  %v1611_v44 = vpop.permute.xlu1 %1610  ;;  %v2081_v34 = vsel %vm9290_vm10, %v2076_v48, %v2080_v10  ;;  %v1941_v39 = vld [vmem:[#allocation2 + $0x78] sm:$0xf]  ;;  %v2119_v2 = vsel %vm9290_vm10, %v2114_v40, %v9822_v1  ;;  %v2148_v1 = vrot.slane %v2147_v47, 4  ;;  %v2236_v24 = vshll.u32 %v1948_v56, 16 }
 0x12c   : > { %1698 = vst.msk [vmem:[#allocation3 + $0x24] sm:$0xf] %vm1688_vm15, %v1611_v44  ;;  %2350 = vrot.lane.b32.xlu0 %v1999_v42, %s9062_s13  ;;  %v2102_v42 = vshll.u32 %v1931_v14, 16  ;;  %v2150_v44 = vshll.u32 %v1937_v18, 16  ;;  %v2179_v54 = vshrl.u32 %v1941_v39, 16  ;;  %v2182_v57 = vshll.u32 %v1941_v39, 16 }
 0x12d   : > { %2352 = vrot.lane.b32.xlu1 %v2009_v12, %s9062_s13  ;;  %v2099_v12 = vor.u32 %v2098_v58, %v9820_v33  ;;  %v2095_v14 = vsel %vm9290_vm10, %v2090_v49, %v9820_v33  ;;  %v2129_v33 = vsel %vm9290_vm10, %v9846_v41, %v9848_v31  ;;  %v2172_v29 = vrot.slane %v2171_v9, 4  ;;  %v1950_v49 = vld [vmem:[#allocation2 + $0x9c] sm:$0xf]  ;;  %v1946_v31 = vld [vmem:[#allocation2 + $0x8c] sm:$0x1] }
 0x12e   : > { %v1613_v63 = vpop.permute.xlu0 %1612  ;;  %v2104_v37 = vrot.slane %v2102_v42, 5  ;;  %v9865_v43 = vrot.slane %v2150_v44, 5  ;;  %v2181_v10 = vrot.slane %v2179_v54, 4  ;;  %v2184_v42 = vrot.slane %v2182_v57, 5  ;;  %4305 = vst.msk [vmem:[#allocation4 + $0x38] sm:$0x1] %vm4292_vm14, %v9058_v0 }
 0x12f   : > { %1699 = vst.msk [vmem:[#allocation3 + $0x28] sm:$0xf] %vm1688_vm15, %v1613_v63  ;;  %v1615_v5 = vpop.permute.xlu1 %1614  ;;  %v2100_v36 = vrot.slane %v2099_v12, 4  ;;  %v2176_v32 = vrot.slane %v2174_v21, 5  ;;  %v2208_v39 = vrot.slane %v2206_v13, 5  ;;  %v9889_v41 = vrot.slane %v2212_v8, 5 }
 0x130   : > { %1700 = vst.msk [vmem:[#allocation3 + $0x2c] sm:$0xf] %vm1688_vm15, %v1615_v5  ;;  %2354 = vrot.lane.b32.xlu0 %v2023_v30, %s9062_s13  ;;  %v2138_v5 = vrot.slane %v2137_v46, 4  ;;  %v2218_v44 = vrot.slane %v2216_v16, 4  ;;  %v9892_v47 = vrot.slane %v2236_v24, 5  ;;  %v2251_v38 = vshrl.u32 %v1950_v49, 16 }
 0x131   : > { %2356 = vrot.lane.b32.xlu1 %v2033_v45, %s9062_s13  ;;  %v1942_v45 = vld [vmem:[#allocation2 + $0x7c] sm:$0xf]  ;;  %v2105_v63 = vsel %vm9290_vm10, %v2100_v36, %v2104_v37  ;;  %v2185_v36 = vor.u32 %v2184_v42, %v2181_v10  ;;  %v2205_v37 = vrot.slane %v2203_v55, 4  ;;  %v2254_v53 = vshll.u32 %v1950_v49, 16  ;;  %v1952_v10 = vld [vmem:[#allocation2 + $0xa4] sm:$0x1] }
 0x132   : > { %v1617_v15 = vpop.permute.xlu0 %1616  ;;  %v2188_v58 = vshll.u32 %v1942_v45, 16  ;;  %v2192_v59 = vshrl.u32 %v1942_v45, 16  ;;  %v2143_v18 = vsel %vm9290_vm10, %v2138_v5, %v9836_v11  ;;  %v1956_v8 = vld [vmem:[#allocation2 + $0xb4] sm:$0xf]  ;;  %4308 = vst.msk [vmem:[#allocation4 + $0x44] sm:$0x1] %vm4292_vm14, %v9058_v0 }
 0x133   : > { %1701 = vst.msk [vmem:[#allocation3 + $0x30] sm:$0xf] %vm1688_vm15, %v1617_v15  ;;  %v1619_v20 = vpop.permute.xlu1 %1618 }
 0x134   : > { %1702 = vst.msk [vmem:[#allocation3 + $0x34] sm:$0xf] %vm1688_vm15, %v1619_v20  ;;  %2358 = vrot.lane.b32.xlu0 %v2047_v6, %s9062_s13  ;;  %v2161_v6 = vor.u32 %v2160_v50, %v2157_v26  ;;  %v9876_v48 = vrot.slane %v2188_v58, 5  ;;  %v2194_v12 = vrot.slane %v2192_v59, 4  ;;  %v1949_v26 = vld [vmem:[#allocation2 + $0x98] sm:$0x1]  ;;  %v2177_v58 = vsel %vm9290_vm10, %v2172_v29, %v2176_v32 }
 0x135   : > { %2360 = vrot.lane.b32.xlu1 %v2057_v61, %s9062_s13  ;;  %v1947_v61 = vld [vmem:[#allocation2 + $0x90] sm:$0xf]  ;;  %v2242_v50 = vrot.slane %v2240_v27, 4  ;;  %v2186_v59 = vrot.slane %v2185_v36, 4  ;;  %v2246_v5 = vshll.u32 %v1949_v26, 16  ;;  %v2270_v29 = vshll.u32 %v1952_v10, 16 }
 0x136   : > { %v1621_v30 = vpop.permute.xlu0 %1620  ;;  %v2227_v17 = vshrl.u32 %v1947_v61, 16  ;;  %v2230_v19 = vshll.u32 %v1947_v61, 16  ;;  %v2162_v22 = vrot.slane %v2161_v6, 4  ;;  %v2195_v11 = vor.u32 %v2194_v12, %v9876_v48  ;;  %v1954_v6 = vld [vmem:[#allocation2 + $0xac] sm:$0xf] }
 0x137   : > { %1703 = vst.msk [vmem:[#allocation3 + $0x38] sm:$0xf] %vm1688_vm15, %v1621_v30  ;;  %v1623_v25 = vpop.permute.xlu1 %1622  ;;  %v1951_v30 = vld [vmem:[#allocation2 + $0xa0] sm:$0xf]  ;;  %v2243_v7 = vor.u32 %v2242_v50, %v9892_v47  ;;  %v2253_v61 = vrot.slane %v2251_v38, 4  ;;  %v2191_v12 = vsel %vm9290_vm10, %v2186_v59, %v9876_v48  ;;  %v2284_v13 = vshll.u32 %v1954_v6, 16 }
 0x138   : > { %1704 = vst.msk [vmem:[#allocation3 + $0x3c] sm:$0xf] %vm1688_vm15, %v1623_v25  ;;  %2362 = vrot.lane.b32.xlu0 %v2071_v28, %s9062_s13  ;;  %v2153_v28 = vsel %vm9290_vm10, %v2148_v1, %v9865_v43  ;;  %v2229_v45 = vrot.slane %v2227_v17, 4  ;;  %v2232_v25 = vrot.slane %v2230_v19, 5  ;;  %v2167_v54 = vsel %vm9290_vm10, %v2162_v22, %v9854_v52  ;;  %v1957_v32 = vld [vmem:[#allocation2 + $0xb8] sm:$0xf] }
 0x139   : > { %2364 = vrot.lane.b32.xlu1 %v2081_v34, %s9062_s13  ;;  %v2198_v34 = vshll.u32 %v1943_v62, 16  ;;  %v2260_v57 = vshll.u32 %v1951_v30, 16  ;;  %v2196_v3 = vrot.slane %v2195_v11, 4  ;;  %v2256_v1 = vrot.slane %v2254_v53, 5  ;;  %4311 = vst.msk [vmem:[#allocation4 + $0x50] sm:$0x1] %vm4292_vm14, %v9058_v0 }
 0x13a   : > { %v1625_v60 = vpop.permute.xlu0 %1624  ;;  %v2233_v21 = vor.u32 %v2232_v25, %v2229_v45  ;;  %v2244_v27 = vrot.slane %v2243_v7, 4  ;;  %v2299_v36 = vshrl.u32 %v1956_v8, 16  ;;  %v2308_v45 = vshll.u32 %v1957_v32, 16  ;;  %4314 = vst.msk [vmem:[#allocation4 + $0x5c] sm:$0x1] %vm4292_vm14, %v9058_v0 }
 0x13b   : > { %1705 = vst.msk [vmem:[#allocation3 + $0x40] sm:$0xf] %vm1688_vm15, %v1625_v60  ;;  %v1627_v4 = vpop.permute.xlu1 %1626  ;;  %v2200_v60 = vrot.slane %v2198_v34, 5  ;;  %v9907_v9 = vrot.slane %v2260_v57, 5  ;;  %v2312_v25 = vshrl.u32 %v1957_v32, 16  ;;  %v2272_v53 = vrot.slane %v2270_v29, 5 }
 0x13c   : > { %1706 = vst.msk [vmem:[#allocation3 + $0x44] sm:$0xf] %vm1688_vm15, %v1627_v4  ;;  %2366 = vrot.lane.b32.xlu0 %v2095_v14, %s9062_s13  ;;  %v2264_v14 = vshrl.u32 %v1951_v30, 16  ;;  %v2219_v4 = vor.u32 %v2218_v44, %v9889_v41  ;;  %v2234_v24 = vrot.slane %v2233_v21, 4  ;;  %v2301_v59 = vrot.slane %v2299_v36, 4 }
 0x13d   : > { %2368 = vrot.lane.b32.xlu1 %v2105_v63, %s9062_s13  ;;  %v2209_v63 = vor.u32 %v2208_v39, %v2205_v37  ;;  %v2201_v17 = vsel %vm9290_vm10, %v2196_v3, %v2200_v60  ;;  %v9923_v37 = vrot.slane %v2284_v13, 5  ;;  %v1955_v39 = vld [vmem:[#allocation2 + $0xb0] sm:$0x1]  ;;  %v2310_v3 = vrot.slane %v2308_v45, 5  ;;  %v2479_v45 = vld [vmem:[#allocation2 + $0x1c] sm:$0xf] }
 0x13e   : > { %v1629_v15 = vpop.permute.xlu0 %1628  ;;  %v2266_v42 = vrot.slane %v2264_v14, 4  ;;  %v2220_v19 = vrot.slane %v2219_v4, 4  ;;  %v2239_v50 = vsel %vm9290_vm10, %v2234_v24, %v9892_v47  ;;  %v1958_v4 = vld [vmem:[#allocation2 + $0xbc] sm:$0x1]  ;;  %4317 = vst.msk [vmem:[#allocation4 + $0x68] sm:$0x1] %vm4292_vm14, %v9058_v0 }
 0x13f   : > { %1707 = vst.msk [vmem:[#allocation3 + $0x48] sm:$0xf] %vm1688_vm15, %v1629_v15  ;;  %v1631_v20 = vpop.permute.xlu1 %1630  ;;  %v2210_v55 = vrot.slane %v2209_v63, 4  ;;  %v2288_v15 = vshrl.u32 %v1954_v6, 16 }
 0x140   : > { %1708 = vst.msk [vmem:[#allocation3 + $0x4c] sm:$0xf] %vm1688_vm15, %v1631_v20  ;;  %2370 = vrot.lane.b32.xlu0 %v2119_v2, %s9062_s13  ;;  %v1953_v2 = vld [vmem:[#allocation2 + $0xa8] sm:$0xf]  ;;  %v2267_v48 = vor.u32 %v2266_v42, %v9907_v9  ;;  %v2318_v42 = vshll.u32 %v1958_v4, 16 }
 0x141   : > { %2372 = vrot.lane.b32.xlu1 %v2129_v33, %s9062_s13  ;;  %v2222_v33 = vshll.u32 %v1946_v31, 16  ;;  %v2275_v56 = vshrl.u32 %v1953_v2, 16  ;;  %v2278_v62 = vshll.u32 %v1953_v2, 16  ;;  %v2215_v11 = vsel %vm9290_vm10, %v2210_v55, %v9889_v41  ;;  %4320 = vst.msk [vmem:[#allocation4 + $0x74] sm:$0x1] %vm4292_vm14, %v9058_v0 }
 0x142   : > { %v1633_v40 = vpop.permute.xlu0 %1632  ;;  %v2290_v30 = vrot.slane %v2288_v15, 4  ;;  %v2268_v57 = vrot.slane %v2267_v48, 4  ;;  %v2476_v48 = vld [vmem:[#allocation2 + $0x10] sm:$0xf]  ;;  %4323 = vst.msk [vmem:[#allocation4 + $0x80] sm:$0x1] %vm4292_vm14, %v9058_v0 }
 0x143   : > { %1709 = vst.msk [vmem:[#allocation3 + $0x50] sm:$0xf] %vm1688_vm15, %v1633_v40  ;;  %v1635_v46 = vpop.permute.xlu1 %1634  ;;  %v2224_v20 = vrot.slane %v2222_v33, 5  ;;  %v2277_v34 = vrot.slane %v2275_v56, 4  ;;  %v2280_v49 = vrot.slane %v2278_v62, 5  ;;  %v2302_v40 = vshll.u32 %v1956_v8, 16 }
 0x144   : > { %1710 = vst.msk [vmem:[#allocation3 + $0x54] sm:$0xf] %vm1688_vm15, %v1635_v46  ;;  %2374 = vrot.lane.b32.xlu0 %v2143_v18, %s9062_s13  ;;  %v2248_v18 = vrot.slane %v2246_v5, 5  ;;  %v1959_v46 = vld [vmem:[#allocation2 + $0xc0] sm:$0xf]  ;;  %v2291_v60 = vor.u32 %v2290_v30, %v9923_v37  ;;  %v2314_v33 = vrot.slane %v2312_v25, 4  ;;  %v2273_v7 = vsel %vm9290_vm10, %v2268_v57, %v2272_v53 }
 0x145   : > { %2376 = vrot.lane.b32.xlu1 %v2153_v28, %s9062_s13  ;;  %v2257_v28 = vor.u32 %v2256_v1, %v2253_v61  ;;  %v2225_v44 = vsel %vm9290_vm10, %v2220_v19, %v2224_v20  ;;  %v2281_v14 = vor.u32 %v2280_v49, %v2277_v34  ;;  %v2304_v63 = vrot.slane %v2302_v40, 5  ;;  %v2475_v30 = vld [vmem:[#allocation2 + $0xc] sm:$0xe]  ;;  %v2478_v53 = vld [vmem:[#allocation2 + $0x18] sm:$0xe] }
 0x146   : > { %v1637_v43 = vpop.permute.xlu0 %1636  ;;  %v2249_v41 = vsel %vm9290_vm10, %v2244_v27, %v2248_v18  ;;  %v2323_v47 = vshrl.u32 %v1959_v46, 16  ;;  %v2326_v2 = vshll.u32 %v1959_v46, 16  ;;  %v2292_v55 = vrot.slane %v2291_v60, 4  ;;  %4326 = vst.msk [vmem:[#allocation4 + $0x8c] sm:$0x1] %vm4292_vm14, %v9058_v0 }
 0x147   : > { %1711 = vst.msk [vmem:[#allocation3 + $0x58] sm:$0xf] %vm1688_vm15, %v1637_v43  ;;  %v1639_v52 = vpop.permute.xlu1 %1638  ;;  %v2258_v38 = vrot.slane %v2257_v28, 4  ;;  %v2282_v61 = vrot.slane %v2281_v14, 4  ;;  %v2305_v10 = vor.u32 %v2304_v63, %v2301_v59  ;;  %v2315_v13 = vor.u32 %v2314_v33, %v2310_v3  ;;  %v2480_v14 = vld [vmem:[#allocation2 + $0x20] sm:$0x1] }
 0x148   : > { %1712 = vst.msk [vmem:[#allocation3 + $0x5c] sm:$0xf] %vm1688_vm15, %v1639_v52  ;;  %2378 = vrot.lane.b32.xlu0 %v2167_v54, %s9062_s13  ;;  %v1960_v54 = vld [vmem:[#allocation2 + $0xc4] sm:$0xf]  ;;  %v2325_v56 = vrot.slane %v2323_v47, 4  ;;  %v2328_v62 = vrot.slane %v2326_v2, 5 }
 0x149   : > { %2380 = vrot.lane.b32.xlu1 %v2177_v58, %s9062_s13  ;;  %v2294_v58 = vshll.u32 %v1955_v39, 16  ;;  %v2332_v5 = vshll.u32 %v1960_v54, 16  ;;  %v2336_v6 = vshrl.u32 %v1960_v54, 16  ;;  %v2263_v21 = vsel %vm9290_vm10, %v2258_v38, %v9907_v9  ;;  %v1961_v9 = vld [vmem:[#allocation2 + $0xc8] sm:$0x1] }
 0x14a   : > { %v1641_v16 = vpop.permute.xlu0 %1640  ;;  %v2306_v19 = vrot.slane %v2305_v10, 4  ;;  %v2320_v20 = vrot.slane %v2318_v42, 5  ;;  %v2329_v18 = vor.u32 %v2328_v62, %v2325_v56  ;;  %v2316_v27 = vrot.slane %v2315_v13, 4  ;;  %v2484_v42 = vld [vmem:[#allocation2 + $0x30] sm:$0xe] }
 0x14b   : > { %1713 = vst.msk [vmem:[#allocation3 + $0x60] sm:$0xf] %vm1688_vm15, %v1641_v16  ;;  %v1643_v22 = vpop.permute.xlu1 %1642  ;;  %v2296_v1 = vrot.slane %v2294_v58, 5  ;;  %v2334_v15 = vrot.slane %v2332_v5, 5  ;;  %v2338_v8 = vrot.slane %v2336_v6, 4  ;;  %v2342_v29 = vshll.u32 %v1961_v9, 16 }
 0x14c   : > { %1714 = vst.msk [vmem:[#allocation3 + $0x64] sm:$0xf] %vm1688_vm15, %v1643_v22  ;;  %2382 = vrot.lane.b32.xlu0 %v2191_v12, %s9062_s13  ;;  %v2311_v34 = vsel %vm9290_vm10, %v2306_v19, %v2310_v3  ;;  %v2330_v49 = vrot.slane %v2329_v18, 4  ;;  %v2573_v40 = vrot.slane %v2476_v48, 5  ;;  %v8555_v46 = vrot.slane %v2475_v30, 9 }
 0x14d   : > { %2384 = vrot.lane.b32.xlu1 %v2201_v17, %s9062_s13  ;;  %v2287_v17 = vsel %vm9290_vm10, %v2282_v61, %v9923_v37  ;;  %v2297_v24 = vsel %vm9290_vm10, %v2292_v55, %v2296_v1  ;;  %v2339_v28 = vor.u32 %v2338_v8, %v2334_v15  ;;  %v2344_v39 = vrot.slane %v2342_v29, 5  ;;  %v2482_v58 = vld [vmem:[#allocation2 + $0x28] sm:$0xf]  ;;  %v2481_v3 = vld [vmem:[#allocation2 + $0x24] sm:$0xe] }
 0x14e   : > { %v1645_v31 = vpop.permute.xlu0 %1644  ;;  %v2335_v25 = vsel %vm9290_vm10, %v2330_v49, %v2334_v15  ;;  %v2580_v54 = vrot.slane %v2479_v45, 5  ;;  %v2574_v59 = vsel %vm9554_vm13, %v8555_v46, %v2573_v40  ;;  %v8556_v60 = vrot.slane %v2478_v53, 9  ;;  %v2483_v5 = vld [vmem:[#allocation2 + $0x2c] sm:$0x1]  ;;  %v2485_v6 = vld [vmem:[#allocation2 + $0x34] sm:$0xf] }
 0x14f   : > { %1715 = vst.msk [vmem:[#allocation3 + $0x68] sm:$0xf] %vm1688_vm15, %v1645_v31  ;;  %v1647_v26 = vpop.permute.xlu1 %1646  ;;  %v2340_v37 = vrot.slane %v2339_v28, 4  ;;  %v2587_v4 = vrot.slane %v2482_v58, 5  ;;  %v2590_v10 = vrot.slane %v2483_v5, 5  ;;  %v2594_v56 = vrot.slane %v2485_v6, 5 }
 0x150   : > { %1716 = vst.msk [vmem:[#allocation3 + $0x6c] sm:$0xf] %vm1688_vm15, %v1647_v26  ;;  %2386 = vrot.lane.b32.xlu0 %v2215_v11, %s9062_s13  ;;  %v2321_v11 = vsel %vm9290_vm10, %v2316_v27, %v2320_v20  ;;  %v2582_v2 = vrot.slane %v2580_v54, 4  ;;  %v2488_v55 = vld [vmem:[#allocation2 + $0x40] sm:$0xf]  ;;  %v8558_v15 = vrot.slane %v2484_v42, 9 }
 0x151   : > { %2388 = vrot.lane.b32.xlu1 %v2225_v44, %s9062_s13  ;;  %v2477_v44 = vld [vmem:[#allocation2 + $0x14] sm:$0x1]  ;;  %v2589_v1 = vrot.slane %v2587_v4, 4  ;;  %v2596_v9 = vrot.slane %v2594_v56, 4  ;;  %v2487_v19 = vld [vmem:[#allocation2 + $0x3c] sm:$0xe] }
 0x152   : > { %v1649_v43 = vpop.permute.xlu0 %1648  ;;  %v2576_v38 = vrot.slane %v2477_v44, 5  ;;  %v2601_v20 = vrot.slane %v2488_v55, 5  ;;  %v2595_v27 = vsel %vm9554_vm13, %v8558_v15, %v2594_v56  ;;  %v8559_v28 = vrot.slane %v2487_v19, 9  ;;  %v2490_v49 = vld [vmem:[#allocation2 + $0x48] sm:$0xe] }
 0x153   : > { %1717 = vst.msk [vmem:[#allocation3 + $0x70] sm:$0xf] %vm1688_vm15, %v1649_v43  ;;  %v1651_v52 = vpop.permute.xlu1 %1650  ;;  %v2583_v43 = vrot.slane %v2480_v14, 5  ;;  %v2493_v46 = vld [vmem:[#allocation2 + $0x54] sm:$0xe] }
 0x154   : > { %1718 = vst.msk [vmem:[#allocation3 + $0x74] sm:$0xf] %vm1688_vm15, %v1651_v52  ;;  %2390 = vrot.lane.b32.xlu0 %v2239_v50, %s9062_s13  ;;  %v2345_v50 = vsel %vm9290_vm10, %v2340_v37, %v2344_v39  ;;  %v2581_v52 = vsel %vm9554_vm13, %v8556_v60, %v2580_v54  ;;  %v2603_v48 = vrot.slane %v2601_v20, 4  ;;  %v2492_v37 = vld [vmem:[#allocation2 + $0x50] sm:$0x1]  ;;  %v2602_v30 = vsel %vm9554_vm13, %v8559_v28, %v2601_v20 }
 0x155   : > { %2392 = vrot.lane.b32.xlu1 %v2249_v41, %s9062_s13  ;;  %v2575_v41 = vrot.slane %v2573_v40, 4  ;;  %v2584_v61 = vsel %vm9554_vm13, %v2582_v2, %v2583_v43  ;;  %v2494_v39 = vld [vmem:[#allocation2 + $0x58] sm:$0xf]  ;;  %v8560_v40 = vrot.slane %v2490_v49, 9  ;;  %v8561_v54 = vrot.slane %v2493_v46, 9 }
 0x156   : > { %v1653_v12 = vpop.permute.xlu0 %1652  ;;  %v2496_v60 = vld [vmem:[#allocation2 + $0x60] sm:$0xe]  ;;  %v2498_v2 = vld [vmem:[#allocation2 + $0x68] sm:$0x1]  ;;  %v2500_v43 = vld [vmem:[#allocation2 + $0x70] sm:$0xf] }
 0x157   : > { %1719 = vst.msk [vmem:[#allocation3 + $0x78] sm:$0xf] %vm1688_vm15, %v1653_v12  ;;  %v1655_v16 = vpop.permute.xlu1 %1654  ;;  %v2577_v47 = vsel %vm9554_vm13, %v2575_v41, %v2576_v38  ;;  %v2486_v12 = vld [vmem:[#allocation2 + $0x38] sm:$0x1]  ;;  %v2495_v41 = vld [vmem:[#allocation2 + $0x5c] sm:$0x1] }
 0x158   : > { %1720 = vst.msk [vmem:[#allocation3 + $0x7c] sm:$0xf] %vm1688_vm15, %v1655_v16  ;;  %2394 = vrot.lane.b32.xlu0 %v2263_v21, %s9062_s13  ;;  %v8557_v21 = vrot.slane %v2481_v3, 9  ;;  %v2591_v16 = vsel %vm9554_vm13, %v2589_v1, %v2590_v10  ;;  %v2497_v38 = vld [vmem:[#allocation2 + $0x64] sm:$0xf]  ;;  %vm10702_vm15 = vmand %vm4289_vm12, %vm637_vm6 }
 0x159   : > { %2396 = vrot.lane.b32.xlu1 %v2273_v7, %s9062_s13  ;;  %v2501_v1 = vld [vmem:[#allocation2 + $0x74] sm:$0x1]  ;;  %v2503_v10 = vld [vmem:[#allocation2 + $0x7c] sm:$0xf]  ;;  %v2502_v15 = vld [vmem:[#allocation2 + $0x78] sm:$0xe] }
 0x15a   : > { %v1786_v22 = vpop.permute.xlu0 %1785  ;;  %v2588_v13 = vsel %vm9554_vm13, %v8557_v21, %v2587_v4  ;;  %v8562_v4 = vrot.slane %v2496_v60, 9  ;;  %v2499_v21 = vld [vmem:[#allocation2 + $0x6c] sm:$0xe]  ;;  %v8564_v20 = vrot.slane %v2502_v15, 9  ;;  %v2505_v28 = vld [vmem:[#allocation2 + $0x84] sm:$0xe]  ;;  %vm10710_vm6 = vmand %vm4292_vm14, %vm312_vm1 }
 0x15b   : > { %1882 = vst.msk [vmem:[#allocation3] sm:$0xf] %vm1881_vm0, %v1786_v22  ;;  %v1788_v32 = vpop.permute.xlu1 %1787  ;;  %v2489_v22 = vld [vmem:[#allocation2 + $0x44] sm:$0x1]  ;;  %v8563_v56 = vrot.slane %v2499_v21, 9  ;;  %vm5470_vm1 = vcmask 126016  }
 0x15c   : > { %1883 = vst.msk [vmem:[#allocation3 + $0x4] sm:$0xf] %vm1881_vm0, %v1788_v32  ;;  %2398 = vrot.lane.b32.xlu0 %v2287_v17, %s9062_s13  ;;  %v2597_v17 = vrot.slane %v2486_v12, 5 }
 0x15d   : > { %2400 = vrot.lane.b32.xlu1 %v2297_v24, %s9062_s13  ;;  %v2491_v24 = vld [vmem:[#allocation2 + $0x4c] sm:$0xf]  ;;  %4329 = vst.msk [vmem:[#allocation4 + $0x98] sm:$0x1] %vm4292_vm14, %v9058_v0  ;;  %4332 = vst.msk [vmem:[#allocation4 + $0xa4] sm:$0x1] %vm4292_vm14, %v9058_v0 }
 0x15e   : > { %v1790_v36 = vpop.permute.xlu0 %1789  ;;  %v2598_v32 = vsel %vm9554_vm13, %v2596_v9, %v2597_v17  ;;  %v2504_v9 = vld [vmem:[#allocation2 + $0x80] sm:$0x1]  ;;  %v2506_v17 = vld [vmem:[#allocation2 + $0x88] sm:$0xf]  ;;  %4335 = vst.msk [vmem:[#allocation4 + $0xb0] sm:$0x1] %vm4292_vm14, %v9058_v0 }
 0x15f   : > { %1884 = vst.msk [vmem:[#allocation3 + $0x8] sm:$0xf] %vm1881_vm0, %v1790_v36  ;;  %v1792_v31 = vpop.permute.xlu1 %1791  ;;  %v2608_v36 = vrot.slane %v2491_v24, 5 }
 0x160   : > { %1885 = vst.msk [vmem:[#allocation3 + $0xc] sm:$0xf] %vm1881_vm0, %v1792_v31  ;;  %2402 = vrot.lane.b32.xlu0 %v2311_v34, %s9062_s13  ;;  %v2604_v34 = vrot.slane %v2489_v22, 5 }
 0x161   : > { %2404 = vrot.lane.b32.xlu1 %v2321_v11, %s9062_s13  ;;  %v2610_v45 = vrot.slane %v2608_v36, 4  ;;  %v2609_v53 = vsel %vm9554_vm13, %v8560_v40, %v2608_v36  ;;  %v8565_v36 = vrot.slane %v2505_v28, 9  ;;  %v2508_v40 = vld [vmem:[#allocation2 + $0x90] sm:$0xe]  ;;  %4338 = vst.msk [vmem:[#allocation4 + $0xbc] sm:$0x1] %vm4292_vm14, %v9058_v0 }
 0x162   : > { %v1794_v26 = vpop.permute.xlu0 %1793  ;;  %v2605_v44 = vsel %vm9554_vm13, %v2603_v48, %v2604_v34  ;;  %v2507_v48 = vld [vmem:[#allocation2 + $0x8c] sm:$0x1]  ;;  %v2509_v34 = vld [vmem:[#allocation2 + $0x94] sm:$0xf]  ;;  %4341 = vst.msk [vmem:[#allocation4 + $0xc8] sm:$0x1] %vm4292_vm14, %v9058_v0 }
 0x163   : > { %1886 = vst.msk [vmem:[#allocation3 + $0x10] sm:$0xf] %vm1881_vm0, %v1794_v26  ;;  %v1796_v57 = vpop.permute.xlu1 %1795  ;;  %v2615_v26 = vrot.slane %v2494_v39, 5 }
 0x164   : > { %1887 = vst.msk [vmem:[#allocation3 + $0x14] sm:$0xf] %vm1881_vm0, %v1796_v57  ;;  %2406 = vrot.lane.b32.xlu0 %v2335_v25, %s9062_s13  ;;  %v2611_v25 = vrot.slane %v2492_v37, 5 }
 0x165   : > { %2408 = vrot.lane.b32.xlu1 %v2345_v50, %s9062_s13  ;;  %v2617_v58 = vrot.slane %v2615_v26, 4  ;;  %v2616_v3 = vsel %vm9554_vm13, %v8561_v54, %v2615_v26  ;;  %v8566_v26 = vrot.slane %v2508_v40, 9  ;;  %v2511_v54 = vld [vmem:[#allocation2 + $0x9c] sm:$0xe]  ;;  %4344 = vst.msk [vmem:[#allocation4 + $0xd4] sm:$0x1] %vm4292_vm14, %v9058_v0 }
 0x166   : > { %v1798_v63 = vpop.permute.xlu0 %1797  ;;  %v2612_v14 = vsel %vm9554_vm13, %v2610_v45, %v2611_v25  ;;  %v2510_v45 = vld [vmem:[#allocation2 + $0x98] sm:$0x1]  ;;  %v2512_v25 = vld [vmem:[#allocation2 + $0xa0] sm:$0xf] }
 0x167   : > { %1888 = vst.msk [vmem:[#allocation3 + $0x18] sm:$0xf] %vm1881_vm0, %v1798_v63  ;;  %v1800_v33 = vpop.permute.xlu1 %1799  ;;  %v2622_v63 = vrot.slane %v2497_v38, 5 }
 0x168   : > { %1889 = vst.msk [vmem:[#allocation3 + $0x1c] sm:$0xf] %vm1881_vm0, %v1800_v33  ;;  %2683 = vrot.lane.b32.xlu0 %v2574_v59, %s9063_s14  ;;  %v2618_v59 = vrot.slane %v2495_v41, 5 }
 0x169   : > { %2685 = vrot.lane.b32.xlu1 %v2577_v47, %s9063_s14  ;;  %v2624_v6 = vrot.slane %v2622_v63, 4  ;;  %v2623_v42 = vsel %vm9554_vm13, %v8562_v4, %v2622_v63  ;;  %v8567_v63 = vrot.slane %v2511_v54, 9  ;;  %v2514_v4 = vld [vmem:[#allocation2 + $0xa8] sm:$0xe]  ;;  %v2819_v54 = vld [vmem:[#allocation2 + $0x3c] sm:$0xf] }
 0x16a   : > { %v1802_v7 = vpop.permute.xlu0 %1801  ;;  %v2619_v5 = vsel %vm9554_vm13, %v2617_v58, %v2618_v59  ;;  %v2513_v58 = vld [vmem:[#allocation2 + $0xa4] sm:$0x1]  ;;  %v2515_v59 = vld [vmem:[#allocation2 + $0xac] sm:$0xf] }
 0x16b   : > { %1890 = vst.msk [vmem:[#allocation3 + $0x20] sm:$0xf] %vm1881_vm0, %v1802_v7  ;;  %v1804_v62 = vpop.permute.xlu1 %1803  ;;  %v2629_v7 = vrot.slane %v2500_v43, 5 }
 0x16c   : > { %1891 = vst.msk [vmem:[#allocation3 + $0x24] sm:$0xf] %vm1881_vm0, %v1804_v62  ;;  %2687 = vrot.lane.b32.xlu0 %v2581_v52, %s9063_s14  ;;  %v2625_v52 = vrot.slane %v2498_v2, 5 }
 0x16d   : > { %2689 = vrot.lane.b32.xlu1 %v2584_v61, %s9063_s14  ;;  %v2631_v55 = vrot.slane %v2629_v7, 4  ;;  %v2630_v19 = vsel %vm9554_vm13, %v8563_v56, %v2629_v7  ;;  %v8568_v7 = vrot.slane %v2514_v4, 9  ;;  %v2517_v56 = vld [vmem:[#allocation2 + $0xb4] sm:$0xe] }
 0x16e   : > { %v1806_v8 = vpop.permute.xlu0 %1805  ;;  %v2626_v12 = vsel %vm9554_vm13, %v2624_v6, %v2625_v52  ;;  %v2516_v6 = vld [vmem:[#allocation2 + $0xb0] sm:$0x1]  ;;  %v2518_v52 = vld [vmem:[#allocation2 + $0xb8] sm:$0xf] }
 0x16f   : > { %1892 = vst.msk [vmem:[#allocation3 + $0x28] sm:$0xf] %vm1881_vm0, %v1806_v8  ;;  %v1808_v18 = vpop.permute.xlu1 %1807  ;;  %v2636_v8 = vrot.slane %v2503_v10, 5 }
 0x170   : > { %1893 = vst.msk [vmem:[#allocation3 + $0x2c] sm:$0xf] %vm1881_vm0, %v1808_v18  ;;  %2691 = vrot.lane.b32.xlu0 %v2588_v13, %s9063_s14  ;;  %v2632_v13 = vrot.slane %v2501_v1, 5 }
 0x171   : > { %2693 = vrot.lane.b32.xlu1 %v2591_v16, %s9063_s14  ;;  %v2638_v24 = vrot.slane %v2636_v8, 4  ;;  %v2637_v49 = vsel %vm9554_vm13, %v8564_v20, %v2636_v8  ;;  %v8569_v8 = vrot.slane %v2517_v56, 9  ;;  %v2520_v20 = vld [vmem:[#allocation2 + $0xc0] sm:$0xe]  ;;  %v2830_v56 = vld [vmem:[#allocation2 + $0x7c] sm:$0xf] }
 0x172   : > { %v1810_v29 = vpop.permute.xlu0 %1809  ;;  %v2633_v22 = vsel %vm9554_vm13, %v2631_v55, %v2632_v13  ;;  %v2519_v55 = vld [vmem:[#allocation2 + $0xbc] sm:$0x1]  ;;  %v2521_v13 = vld [vmem:[#allocation2 + $0xc4] sm:$0xf]  ;;  %v8570_v28 = vrot.slane %v2520_v20, 9 }
 0x173   : > { %1894 = vst.msk [vmem:[#allocation3 + $0x30] sm:$0xf] %vm1881_vm0, %v1810_v29  ;;  %v1812_v11 = vpop.permute.xlu1 %1811  ;;  %v2643_v29 = vrot.slane %v2506_v17, 5  ;;  %v3006_v20 = vld [vmem:[#allocation2 + $0x18] sm:$0xf] }
 0x174   : > { %1895 = vst.msk [vmem:[#allocation3 + $0x34] sm:$0xf] %vm1881_vm0, %v1812_v11  ;;  %2695 = vrot.lane.b32.xlu0 %v2595_v27, %s9063_s14  ;;  %v2639_v27 = vrot.slane %v2504_v9, 5 }
 0x175   : > { %2697 = vrot.lane.b32.xlu1 %v2598_v32, %s9063_s14  ;;  %v2645_v39 = vrot.slane %v2643_v29, 4  ;;  %v2644_v46 = vsel %vm9554_vm13, %v8565_v36, %v2643_v29 }
 0x176   : > { %v1814_v31 = vpop.permute.xlu0 %1813  ;;  %v2640_v37 = vsel %vm9554_vm13, %v2638_v24, %v2639_v27  ;;  %v2522_v24 = vld [vmem:[#allocation2 + $0xc8] sm:$0x1] }
 0x177   : > { %1896 = vst.msk [vmem:[#allocation3 + $0x38] sm:$0xf] %vm1881_vm0, %v1814_v31  ;;  %v1816_v50 = vpop.permute.xlu1 %1815  ;;  %v2650_v31 = vrot.slane %v2509_v34, 5  ;;  %v2681_v34 = vrot.slane %v2522_v24, 5 }
 0x178   : > { %1897 = vst.msk [vmem:[#allocation3 + $0x3c] sm:$0xf] %vm1881_vm0, %v1816_v50  ;;  %2699 = vrot.lane.b32.xlu0 %v2602_v30, %s9063_s14  ;;  %v2646_v30 = vrot.slane %v2507_v48, 5 }
 0x179   : > { %2701 = vrot.lane.b32.xlu1 %v2605_v44, %s9063_s14  ;;  %v2652_v38 = vrot.slane %v2650_v31, 4  ;;  %v2651_v60 = vsel %vm9554_vm13, %v8566_v26, %v2650_v31  ;;  %v2814_v31 = vld [vmem:[#allocation2 + $0x1c] sm:$0xf] }
 0x17a   : > { %v1818_v57 = vpop.permute.xlu0 %1817  ;;  %v2647_v41 = vsel %vm9554_vm13, %v2645_v39, %v2646_v30  ;;  %v2813_v30 = vld [vmem:[#allocation2 + $0x18] sm:$0xf] }
 0x17b   : > { %1898 = vst.msk [vmem:[#allocation3 + $0x40] sm:$0xf] %vm1881_vm0, %v1818_v57  ;;  %v1820_v47 = vpop.permute.xlu1 %1819  ;;  %v2657_v57 = vrot.slane %v2512_v25, 5 }
 0x17c   : > { %1899 = vst.msk [vmem:[#allocation3 + $0x44] sm:$0xf] %vm1881_vm0, %v1820_v47  ;;  %2703 = vrot.lane.b32.xlu0 %v2609_v53, %s9063_s14  ;;  %v2653_v53 = vrot.slane %v2510_v45, 5  ;;  %v2815_v45 = vld [vmem:[#allocation2 + $0x24] sm:$0xf] }
 0x17d   : > { %2705 = vrot.lane.b32.xlu1 %v2612_v14, %s9063_s14  ;;  %v2659_v43 = vrot.slane %v2657_v57, 4  ;;  %v2658_v21 = vsel %vm9554_vm13, %v8567_v63, %v2657_v57  ;;  %v2822_v63 = vld [vmem:[#allocation2 + $0x4c] sm:$0xf] }
 0x17e   : > { %v1822_v33 = vpop.permute.xlu0 %1821  ;;  %v2654_v2 = vsel %vm9554_vm13, %v2652_v38, %v2653_v53  ;;  %v2818_v38 = vld [vmem:[#allocation2 + $0x34] sm:$0xf] }
 0x17f   : > { %1900 = vst.msk [vmem:[#allocation3 + $0x48] sm:$0xf] %vm1881_vm0, %v1822_v33  ;;  %v1824_v61 = vpop.permute.xlu1 %1823  ;;  %v2664_v33 = vrot.slane %v2515_v59, 5  ;;  %v2821_v59 = vld [vmem:[#allocation2 + $0x48] sm:$0xf] }
 0x180   : > { %1901 = vst.msk [vmem:[#allocation3 + $0x4c] sm:$0xf] %vm1881_vm0, %v1824_v61  ;;  %2707 = vrot.lane.b32.xlu0 %v2616_v3, %s9063_s14  ;;  %v2660_v3 = vrot.slane %v2513_v58, 5 }
 0x181   : > { %2709 = vrot.lane.b32.xlu1 %v2619_v5, %s9063_s14  ;;  %v2666_v10 = vrot.slane %v2664_v33, 4  ;;  %v2665_v15 = vsel %vm9554_vm13, %v8568_v7, %v2664_v33  ;;  %v2825_v33 = vld [vmem:[#allocation2 + $0x60] sm:$0xf] }
 0x182   : > { %v1826_v62 = vpop.permute.xlu0 %1825  ;;  %v2661_v1 = vsel %vm9554_vm13, %v2659_v43, %v2660_v3  ;;  %v2824_v3 = vld [vmem:[#allocation2 + $0x58] sm:$0xf] }
 0x183   : > { %1902 = vst.msk [vmem:[#allocation3 + $0x50] sm:$0xf] %vm1881_vm0, %v1826_v62  ;;  %v1828_v16 = vpop.permute.xlu1 %1827  ;;  %v2671_v62 = vrot.slane %v2518_v52, 5 }
 0x184   : > { %1903 = vst.msk [vmem:[#allocation3 + $0x54] sm:$0xf] %vm1881_vm0, %v1828_v16  ;;  %2711 = vrot.lane.b32.xlu0 %v2623_v42, %s9063_s14  ;;  %v2667_v42 = vrot.slane %v2516_v6, 5  ;;  %v2826_v6 = vld [vmem:[#allocation2 + $0x64] sm:$0xf] }
 0x185   : > { %2713 = vrot.lane.b32.xlu1 %v2626_v12, %s9063_s14  ;;  %v2673_v17 = vrot.slane %v2671_v62, 4  ;;  %v2672_v27 = vsel %vm9554_vm13, %v8569_v8, %v2671_v62  ;;  %v2833_v8 = vld [vmem:[#allocation2 + $0x90] sm:$0xf] }
 0x186   : > { %v1830_v18 = vpop.permute.xlu0 %1829  ;;  %v2668_v9 = vsel %vm9554_vm13, %v2666_v10, %v2667_v42  ;;  %v2829_v10 = vld [vmem:[#allocation2 + $0x78] sm:$0xf] }
 0x187   : > { %1904 = vst.msk [vmem:[#allocation3 + $0x58] sm:$0xf] %vm1881_vm0, %v1830_v18  ;;  %v1832_v32 = vpop.permute.xlu1 %1831  ;;  %v2678_v18 = vrot.slane %v2521_v13, 5  ;;  %v2832_v13 = vld [vmem:[#allocation2 + $0x88] sm:$0xf] }
 0x188   : > { %1905 = vst.msk [vmem:[#allocation3 + $0x5c] sm:$0xf] %vm1881_vm0, %v1832_v32  ;;  %2715 = vrot.lane.b32.xlu0 %v2630_v19, %s9063_s14  ;;  %v2674_v19 = vrot.slane %v2519_v55, 5 }
 0x189   : > { %2717 = vrot.lane.b32.xlu1 %v2633_v22, %s9063_s14  ;;  %v2680_v48 = vrot.slane %v2678_v18, 4  ;;  %v2679_v36 = vsel %vm9554_vm13, %v8570_v28, %v2678_v18  ;;  %v3055_v28 = vshrl.u32 %v3006_v20, 16 }
 0x18a   : > { %v1834_v11 = vpop.permute.xlu0 %1833  ;;  %v2675_v32 = vsel %vm9554_vm13, %v2673_v17, %v2674_v19  ;;  %v2835_v19 = vld [vmem:[#allocation2 + $0x9c] sm:$0xf] }
 0x18b   : > { %1906 = vst.msk [vmem:[#allocation3 + $0x60] sm:$0xf] %vm1881_vm0, %v1834_v11  ;;  %v1836_v44 = vpop.permute.xlu1 %1835 }
 0x18c   : > { %1907 = vst.msk [vmem:[#allocation3 + $0x64] sm:$0xf] %vm1881_vm0, %v1836_v44  ;;  %2719 = vrot.lane.b32.xlu0 %v2637_v49, %s9063_s14 }
 0x18d   : > { %2721 = vrot.lane.b32.xlu1 %v2640_v37, %s9063_s14  ;;  %v2682_v37 = vsel %vm9554_vm13, %v2680_v48, %v2681_v34  ;;  %v2837_v48 = vld [vmem:[#allocation2 + $0xa8] sm:$0xf] }
 0x18e   : > { %v1838_v50 = vpop.permute.xlu0 %1837 }
 0x18f   : > { %1908 = vst.msk [vmem:[#allocation3 + $0x68] sm:$0xf] %vm1881_vm0, %v1838_v50  ;;  %v1840_v14 = vpop.permute.xlu1 %1839  ;;  %v2817_v50 = vld [vmem:[#allocation2 + $0x30] sm:$0xf] }
 0x190   : > { %1909 = vst.msk [vmem:[#allocation3 + $0x6c] sm:$0xf] %vm1881_vm0, %v1840_v14  ;;  %2723 = vrot.lane.b32.xlu0 %v2644_v46, %s9063_s14  ;;  %v2816_v46 = vld [vmem:[#allocation2 + $0x28] sm:$0xf]  ;;  %v2820_v14 = vld [vmem:[#allocation2 + $0x40] sm:$0xf] }
 0x191   : > { %2725 = vrot.lane.b32.xlu1 %v2647_v41, %s9063_s14 }
 0x192   : > { %v1842_v47 = vpop.permute.xlu0 %1841 }
 0x193   : > { %1910 = vst.msk [vmem:[#allocation3 + $0x70] sm:$0xf] %vm1881_vm0, %v1842_v47  ;;  %v1844_v5 = vpop.permute.xlu1 %1843 }
 0x194   : > { %1911 = vst.msk [vmem:[#allocation3 + $0x74] sm:$0xf] %vm1881_vm0, %v1844_v5  ;;  %2727 = vrot.lane.b32.xlu0 %v2651_v60, %s9063_s14 }
 0x195   : > { %2729 = vrot.lane.b32.xlu1 %v2654_v2, %s9063_s14  ;;  %v2823_v2 = vld [vmem:[#allocation2 + $0x54] sm:$0xf] }
 0x196   : > { %v1846_v61 = vpop.permute.xlu0 %1845 }
 0x197   : > { %1912 = vst.msk [vmem:[#allocation3 + $0x78] sm:$0xf] %vm1881_vm0, %v1846_v61  ;;  %v1848_v12 = vpop.permute.xlu1 %1847  ;;  %v2828_v61 = vld [vmem:[#allocation2 + $0x70] sm:$0xf] }
 0x198   : > { %1913 = vst.msk [vmem:[#allocation3 + $0x7c] sm:$0xf] %vm1881_vm0, %v1848_v12  ;;  %2731 = vrot.lane.b32.xlu0 %v2658_v21, %s9063_s14  ;;  %v2827_v21 = vld [vmem:[#allocation2 + $0x6c] sm:$0xf]  ;;  %v2831_v12 = vld [vmem:[#allocation2 + $0x84] sm:$0xf] }
 0x199   : > { %2733 = vrot.lane.b32.xlu1 %v2661_v1, %s9063_s14  ;;  %vm8227_vm0 = vcmask 1043456  }
 0x19a   : > { %v2347_v16 = vpop.permute.xlu0 %2346 }
 0x19b   : > { %2443 = vst.msk [vmem:[#allocation3] sm:$0xf] %vm2442_vm2, %v2347_v16  ;;  %v2349_v22 = vpop.permute.xlu1 %2348 }
 0x19c   : > { %2444 = vst.msk [vmem:[#allocation3 + $0x4] sm:$0xf] %vm2442_vm2, %v2349_v22  ;;  %2735 = vrot.lane.b32.xlu0 %v2665_v15, %s9063_s14  ;;  %v2836_v22 = vld [vmem:[#allocation2 + $0xa0] sm:$0xf] }
 0x19d   : > { %2737 = vrot.lane.b32.xlu1 %v2668_v9, %s9063_s14  ;;  %v2834_v9 = vld [vmem:[#allocation2 + $0x94] sm:$0xf] }
 0x19e   : > { %v2351_v29 = vpop.permute.xlu0 %2350 }
 0x19f   : > { %2445 = vst.msk [vmem:[#allocation3 + $0x8] sm:$0xf] %vm2442_vm2, %v2351_v29  ;;  %v2353_v49 = vpop.permute.xlu1 %2352  ;;  %v3058_v29 = vshll.u32 %v3006_v20, 16 }
 0x1a0   : > { %2446 = vst.msk [vmem:[#allocation3 + $0xc] sm:$0xf] %vm2442_vm2, %v2353_v49  ;;  %2739 = vrot.lane.b32.xlu0 %v2672_v27, %s9063_s14  ;;  %v3007_v27 = vld [vmem:[#allocation2 + $0x1c] sm:$0xf]  ;;  %v2838_v49 = vld [vmem:[#allocation2 + $0xac] sm:$0xf] }
 0x1a1   : > { %2741 = vrot.lane.b32.xlu1 %v2675_v32, %s9063_s14  ;;  %v3009_v32 = vld [vmem:[#allocation2 + $0x24] sm:$0xf] }
 0x1a2   : > { %v2355_v11 = vpop.permute.xlu0 %2354 }
 0x1a3   : > { %2447 = vst.msk [vmem:[#allocation3 + $0x10] sm:$0xf] %vm2442_vm2, %v2355_v11  ;;  %v2357_v39 = vpop.permute.xlu1 %2356  ;;  %v3068_v11 = vshrl.u32 %v3007_v27, 16 }
 0x1a4   : > { %2448 = vst.msk [vmem:[#allocation3 + $0x14] sm:$0xf] %vm2442_vm2, %v2357_v39  ;;  %2743 = vrot.lane.b32.xlu0 %v2679_v36, %s9063_s14  ;;  %v3064_v36 = vshll.u32 %v3007_v27, 16 }
 0x1a5   : > { %2745 = vrot.lane.b32.xlu1 %v2682_v37, %s9063_s14  ;;  %v3010_v37 = vld [vmem:[#allocation2 + $0x28] sm:$0xf]  ;;  %s9068_s14 = smov 48  }
 0x1a6   : > { %v2359_v40 = vpop.permute.xlu0 %2358 }
 0x1a7   : > { %2449 = vst.msk [vmem:[#allocation3 + $0x18] sm:$0xf] %vm2442_vm2, %v2359_v40  ;;  %v2361_v44 = vpop.permute.xlu1 %2360  ;;  %v3082_v40 = vshll.u32 %v3009_v32, 16 }
 0x1a8   : > { %2450 = vst.msk [vmem:[#allocation3 + $0x1c] sm:$0xf] %vm2442_vm2, %v2361_v44  ;;  %2877 = vrot.lane.b32.xlu0 %v2813_v30, %s9064_s15  ;;  %v3079_v30 = vshrl.u32 %v3009_v32, 16  ;;  %v3060_v44 = vrot.slane %v3058_v29, 5  ;;  %v10186_v32 = vld [vmem:[#allocation2 + $0x28] sm:$0xf] }
 0x1a9   : > { %2879 = vrot.lane.b32.xlu1 %v2814_v31, %s9064_s15  ;;  %v3057_v31 = vrot.slane %v3055_v28, 4 }
 0x1aa   : > { %v2363_v25 = vpop.permute.xlu0 %2362 }
 0x1ab   : > { %2451 = vst.msk [vmem:[#allocation3 + $0x20] sm:$0xf] %vm2442_vm2, %v2363_v25  ;;  %v2365_v26 = vpop.permute.xlu1 %2364  ;;  %v3088_v25 = vshll.u32 %v3010_v37, 16 }
 0x1ac   : > { %2452 = vst.msk [vmem:[#allocation3 + $0x24] sm:$0xf] %vm2442_vm2, %v2365_v26  ;;  %2881 = vrot.lane.b32.xlu0 %v2815_v45, %s9064_s15  ;;  %v2839_v45 = vld [vmem:[#allocation2 + $0xb4] sm:$0xf] }
 0x1ad   : > { %2883 = vrot.lane.b32.xlu1 %v2816_v46, %s9064_s15  ;;  %v3092_v46 = vshrl.u32 %v3010_v37, 16  ;;  %v3016_v37 = vld [vmem:[#allocation2 + $0x40] sm:$0xf] }
 0x1ae   : > { %v2367_v41 = vpop.permute.xlu0 %2366 }
 0x1af   : > { %2453 = vst.msk [vmem:[#allocation3 + $0x28] sm:$0xf] %vm2442_vm2, %v2367_v41  ;;  %v2369_v53 = vpop.permute.xlu1 %2368  ;;  %v10155_v41 = vrot.slane %v3064_v36, 5 }
 0x1b0   : > { %2454 = vst.msk [vmem:[#allocation3 + $0x2c] sm:$0xf] %vm2442_vm2, %v2369_v53  ;;  %2885 = vrot.lane.b32.xlu0 %v2817_v50, %s9064_s15  ;;  %v2840_v50 = vld [vmem:[#allocation2 + $0xb8] sm:$0xf] }
 0x1b1   : > { %2887 = vrot.lane.b32.xlu1 %v2818_v38, %s9064_s15  ;;  %v3070_v38 = vrot.slane %v3068_v11, 4 }
 0x1b2   : > { %v2371_v57 = vpop.permute.xlu0 %2370 }
 0x1b3   : > { %2455 = vst.msk [vmem:[#allocation3 + $0x30] sm:$0xf] %vm2442_vm2, %v2371_v57  ;;  %v2373_v58 = vpop.permute.xlu1 %2372  ;;  %v3081_v57 = vrot.slane %v3079_v30, 4 }
 0x1b4   : > { %2456 = vst.msk [vmem:[#allocation3 + $0x34] sm:$0xf] %vm2442_vm2, %v2373_v58  ;;  %2889 = vrot.lane.b32.xlu0 %v2819_v54, %s9064_s15  ;;  %v3008_v54 = vld [vmem:[#allocation2 + $0x20] sm:$0x1]  ;;  %v3011_v58 = vld [vmem:[#allocation2 + $0x2c] sm:$0x1] }
 0x1b5   : > { %2891 = vrot.lane.b32.xlu1 %v2820_v14, %s9064_s15  ;;  %v3084_v14 = vrot.slane %v3082_v40, 5 }
 0x1b6   : > { %v2375_v60 = vpop.permute.xlu0 %2374 }
 0x1b7   : > { %2457 = vst.msk [vmem:[#allocation3 + $0x38] sm:$0xf] %vm2442_vm2, %v2375_v60  ;;  %v2377_v47 = vpop.permute.xlu1 %2376  ;;  %v2841_v60 = vld [vmem:[#allocation2 + $0xc0] sm:$0xf] }
 0x1b8   : > { %2458 = vst.msk [vmem:[#allocation3 + $0x3c] sm:$0xf] %vm2442_vm2, %v2377_v47  ;;  %2893 = vrot.lane.b32.xlu0 %v2821_v59, %s9064_s15  ;;  %v3061_v59 = vor.u32 %v3060_v44, %v3057_v31  ;;  %v3094_v47 = vrot.slane %v3092_v46, 4  ;;  %v3672_v46 = vrot.slane %v10186_v32, 5 }
 0x1b9   : > { %2895 = vrot.lane.b32.xlu1 %v2822_v63, %s9064_s15  ;;  %v10161_v63 = vrot.slane %v3088_v25, 5  ;;  %v3570_v25 = vld [vmem:[#allocation2 + $0x24] sm:$0xe] }
 0x1ba   : > { %v2379_v43 = vpop.permute.xlu0 %2378 }
 0x1bb   : > { %2459 = vst.msk [vmem:[#allocation3 + $0x40] sm:$0xf] %vm2442_vm2, %v2379_v43  ;;  %v2381_v4 = vpop.permute.xlu1 %2380  ;;  %v2842_v43 = vld [vmem:[#allocation2 + $0xc4] sm:$0xf] }
 0x1bc   : > { %2460 = vst.msk [vmem:[#allocation3 + $0x44] sm:$0xf] %vm2442_vm2, %v2381_v4  ;;  %2897 = vrot.lane.b32.xlu0 %v2823_v2, %s9064_s15  ;;  %v3074_v4 = vshll.u32 %v3008_v54, 16 }
 0x1bd   : > { %2899 = vrot.lane.b32.xlu1 %v2824_v3, %s9064_s15  ;;  %v3071_v3 = vor.u32 %v3070_v38, %v10155_v41  ;;  %v3572_v38 = vld [vmem:[#allocation2 + $0x2c] sm:$0x1] }
 0x1be   : > { %v2383_v5 = vpop.permute.xlu0 %2382 }
 0x1bf   : > { %2461 = vst.msk [vmem:[#allocation3 + $0x48] sm:$0xf] %vm2442_vm2, %v2383_v5  ;;  %v2385_v52 = vpop.permute.xlu1 %2384 }
 0x1c0   : > { %2462 = vst.msk [vmem:[#allocation3 + $0x4c] sm:$0xf] %vm2442_vm2, %v2385_v52  ;;  %2901 = vrot.lane.b32.xlu0 %v2825_v33, %s9064_s15  ;;  %v3098_v33 = vshll.u32 %v3011_v58, 16  ;;  %v3062_v52 = vrot.slane %v3061_v59, 4  ;;  %v3014_v59 = vld [vmem:[#allocation2 + $0x38] sm:$0x1] }
 0x1c1   : > { %2903 = vrot.lane.b32.xlu1 %v2826_v6, %s9064_s15  ;;  %v3085_v6 = vor.u32 %v3084_v14, %v3081_v57  ;;  %v3136_v57 = vshll.u32 %v3016_v37, 16  ;;  %v3140_v14 = vshrl.u32 %v3016_v37, 16  ;;  %v3575_v37 = vld [vmem:[#allocation2 + $0x38] sm:$0x1] }
 0x1c2   : > { %v2387_v7 = vpop.permute.xlu0 %2386 }
 0x1c3   : > { %2463 = vst.msk [vmem:[#allocation3 + $0x50] sm:$0xf] %vm2442_vm2, %v2387_v7  ;;  %v2389_v1 = vpop.permute.xlu1 %2388  ;;  %v2844_v7 = vld [vmem:[#allocation2 + $0xd0] sm:$0xf] }
 0x1c4   : > { %2464 = vst.msk [vmem:[#allocation3 + $0x54] sm:$0xf] %vm2442_vm2, %v2389_v1  ;;  %2905 = vrot.lane.b32.xlu0 %v2827_v21, %s9064_s15  ;;  %v2843_v21 = vld [vmem:[#allocation2 + $0xcc] sm:$0xf]  ;;  %v10169_v1 = vld [vmem:[#allocation2 + $0x1c] sm:$0xf] }
 0x1c5   : > { %2907 = vrot.lane.b32.xlu1 %v2828_v61, %s9064_s15  ;;  %v3095_v61 = vor.u32 %v3094_v47, %v10161_v63 }
 0x1c6   : > { %v2391_v42 = vpop.permute.xlu0 %2390 }
 0x1c7   : > { %2465 = vst.msk [vmem:[#allocation3 + $0x58] sm:$0xf] %vm2442_vm2, %v2391_v42  ;;  %v2393_v62 = vpop.permute.xlu1 %2392  ;;  %v3072_v42 = vrot.slane %v3071_v3, 4  ;;  %v3096_v20 = vrot.slane %v3095_v61, 4  ;;  %v8572_v3 = vrot.slane %v3570_v25, 9  ;;  %v10216_v61 = vrot.slane %v3136_v57, 5 }
 0x1c8   : > { %2466 = vst.msk [vmem:[#allocation3 + $0x5c] sm:$0xf] %vm2442_vm2, %v2393_v62  ;;  %2909 = vrot.lane.b32.xlu0 %v2829_v10, %s9064_s15  ;;  %v10171_v62 = vrot.slane %v3098_v33, 5  ;;  %v3675_v33 = vrot.slane %v3572_v38, 5  ;;  %v3682_v38 = vrot.slane %v3575_v37, 5 }
 0x1c9   : > { %2911 = vrot.lane.b32.xlu1 %v2830_v56, %s9064_s15  ;;  %v3076_v56 = vrot.slane %v3074_v4, 5  ;;  %v3674_v4 = vrot.slane %v3672_v46, 4 }
 0x1ca   : > { %v2395_v55 = vpop.permute.xlu0 %2394 }
 0x1cb   : > { %2467 = vst.msk [vmem:[#allocation3 + $0x60] sm:$0xf] %vm2442_vm2, %v2395_v55  ;;  %v2397_v15 = vpop.permute.xlu1 %2396  ;;  %v3077_v29 = vsel %vm9290_vm10, %v3072_v42, %v3076_v56 }
 0x1cc   : > { %2468 = vst.msk [vmem:[#allocation3 + $0x64] sm:$0xf] %vm2442_vm2, %v2397_v15  ;;  %2913 = vrot.lane.b32.xlu0 %v2831_v12, %s9064_s15  ;;  %v3012_v12 = vld [vmem:[#allocation2 + $0x30] sm:$0xf]  ;;  %v3013_v15 = vld [vmem:[#allocation2 + $0x34] sm:$0xf] }
 0x1cd   : > { %2915 = vrot.lane.b32.xlu1 %v2832_v13, %s9064_s15  ;;  %v3086_v13 = vrot.slane %v3085_v6, 4  ;;  %v3017_v6 = vld [vmem:[#allocation2 + $0x44] sm:$0x1] }
 0x1ce   : > { %v2399_v16 = vpop.permute.xlu0 %2398  ;;  %v3146_v56 = vshll.u32 %v3017_v6, 16 }
 0x1cf   : > { %2469 = vst.msk [vmem:[#allocation3 + $0x68] sm:$0xf] %vm2442_vm2, %v2399_v16  ;;  %v2401_v17 = vpop.permute.xlu1 %2400  ;;  %v3067_v16 = vsel %vm9290_vm10, %v3062_v52, %v10155_v41  ;;  %v3091_v36 = vsel %vm9290_vm10, %v3086_v13, %v10161_v63 }
 0x1d0   : > { %2470 = vst.msk [vmem:[#allocation3 + $0x6c] sm:$0xf] %vm2442_vm2, %v2401_v17  ;;  %2917 = vrot.lane.b32.xlu0 %v2833_v8, %s9064_s15  ;;  %v8955_v8 = vld [vmem:[%s11967_s1 + $0x10] ss:$0 sps:$4 sm:$0x33]   ;;  %v3665_v17 = vrot.slane %v10169_v1, 5 }
 0x1d1   : > { %2919 = vrot.lane.b32.xlu1 %v2834_v9, %s9064_s15  ;;  %v3567_v9 = vld [vmem:[#allocation2 + $0x18] sm:$0xe]  ;;  %8900 = vmatprep.subr.msk.bf16.mxu0 %vm4092_vm4, %v8955_v8  ;;  %v4094_v27 = vsel %vm4092_vm4, %v8955_v8, 0  ;;  %v3142_v1 = vrot.slane %v3140_v14, 4  ;;  %vm6898_vm4 = vcmask 388416  }
 0x1d2   : > { %v2403_v18 = vpop.permute.xlu0 %2402  ;;  %8821 = vmatpush3.bf16.msra.mxu0 %v4094_v27  ;;  %v8571_v11 = vrot.slane %v3567_v9, 9  ;;  %v3667_v30 = vrot.slane %v3665_v17, 4  ;;  %v3021_v27 = vld [vmem:[#allocation2 + $0x54] sm:$0xf] }
 0x1d3   : > { %2471 = vst.msk [vmem:[#allocation3 + $0x70] sm:$0xf] %vm2442_vm2, %v2403_v18  ;;  %v2405_v24 = vpop.permute.xlu1 %2404  ;;  %v3103_v18 = vshrl.u32 %v3012_v12, 16  ;;  %v3143_v9 = vor.u32 %v3142_v1, %v10216_v61 }
 0x1d4   : > { %2472 = vst.msk [vmem:[#allocation3 + $0x74] sm:$0xf] %vm2442_vm2, %v2405_v24  ;;  %2921 = vrot.lane.b32.xlu0 %v2835_v19, %s9064_s15  ;;  %v3569_v19 = vld [vmem:[#allocation2 + $0x20] sm:$0x1]  ;;  %v3015_v24 = vld [vmem:[#allocation2 + $0x3c] sm:$0xf]  ;;  %v3666_v63 = vsel %vm9554_vm13, %v8571_v11, %v3665_v17 }
 0x1d5   : > { %2923 = vrot.lane.b32.xlu1 %v2836_v22, %s9064_s15  ;;  %v3106_v22 = vshll.u32 %v3012_v12, 16  ;;  %v3668_v40 = vrot.slane %v3569_v19, 5  ;;  %v3127_v31 = vshrl.u32 %v3015_v24, 16  ;;  %v3130_v44 = vshll.u32 %v3015_v24, 16  ;;  %v3018_v17 = vld [vmem:[#allocation2 + $0x48] sm:$0xf] }
 0x1d6   : > { %v2407_v34 = vpop.permute.xlu0 %2406  ;;  %v3151_v32 = vshrl.u32 %v3018_v17, 16  ;;  %v3144_v11 = vrot.slane %v3143_v9, 4  ;;  %v3580_v9 = vld [vmem:[#allocation2 + $0x4c] sm:$0xf] }
 0x1d7   : > { %2473 = vst.msk [vmem:[#allocation3 + $0x78] sm:$0xf] %vm2442_vm2, %v2407_v34  ;;  %v2409_v39 = vpop.permute.xlu1 %2408  ;;  %v3116_v34 = vshrl.u32 %v3013_v15, 16  ;;  %v3669_v47 = vsel %vm9554_vm13, %v3667_v30, %v3668_v40 }
 0x1d8   : > { %2474 = vst.msk [vmem:[#allocation3 + $0x7c] sm:$0xf] %vm2442_vm2, %v2409_v39  ;;  %2925 = vrot.lane.b32.xlu0 %v2837_v48, %s9064_s15  ;;  %v3112_v48 = vshll.u32 %v3013_v15, 16  ;;  %v8956_v39 = vld [vmem:[%s11967_s1 + $0x8] sm:$0xff]   ;;  %v3676_v15 = vsel %vm9554_vm13, %v3674_v4, %v3675_v33  ;;  %vm6000_vm2 = vcmask 257216  }
 0x1d9   : > { %2927 = vrot.lane.b32.xlu1 %v2838_v49, %s9064_s15  ;;  %8822 = vmatprep.subr.bf16.mxu0 %v8956_v39  ;;  %v3118_v54 = vrot.slane %v3116_v34, 4  ;;  %v3022_v34 = vld [vmem:[#allocation2 + $0x58] sm:$0xf] }
 0x1da   : > { %v2684_v26 = vpop.permute.xlu0 %2683  ;;  %8823 = vmatpush3.bf16.msra.mxu0 %v8956_v39 }
 0x1db   : > { %2780 = vst.msk [vmem:[#allocation3] sm:$0xf] %vm2779_vm3, %v2684_v26  ;;  %v2686_v53 = vpop.permute.xlu1 %2685  ;;  %v3105_v26 = vrot.slane %v3103_v18, 4 }
 0x1dc   : > { %2781 = vst.msk [vmem:[#allocation3 + $0x4] sm:$0xf] %vm2779_vm3, %v2686_v53  ;;  %2929 = vrot.lane.b32.xlu0 %v2839_v45, %s9064_s15  ;;  %v3101_v45 = vsel %vm9290_vm10, %v3096_v20, %v10171_v62  ;;  %v10202_v53 = vrot.slane %v3112_v48, 5  ;;  %v3673_v62 = vsel %vm9554_vm13, %v8572_v3, %v3672_v46  ;;  %v3019_v20 = vld [vmem:[#allocation2 + $0x4c] sm:$0xf]  ;;  %v3154_v48 = vshll.u32 %v3018_v17, 16 }
 0x1dd   : > { %2931 = vrot.lane.b32.xlu1 %v2840_v50, %s9064_s15  ;;  %v3108_v50 = vrot.slane %v3106_v22, 5  ;;  %v3148_v22 = vrot.slane %v3146_v56, 5  ;;  %v3160_v39 = vshll.u32 %v3019_v20, 16  ;;  %v3164_v30 = vshrl.u32 %v3019_v20, 16 }
 0x1de   : > { %v2688_v2 = vpop.permute.xlu0 %2687 }
 0x1df   : > { %2782 = vst.msk [vmem:[#allocation3 + $0x8] sm:$0xf] %vm2779_vm3, %v2688_v2  ;;  %v2690_v5 = vpop.permute.xlu1 %2689  ;;  %v3129_v2 = vrot.slane %v3127_v31, 4  ;;  %v3577_v31 = vld [vmem:[#allocation2 + $0x40] sm:$0xf]  ;;  %v3149_v14 = vsel %vm9290_vm10, %v3144_v11, %v3148_v22 }
 0x1e0   : > { %2783 = vst.msk [vmem:[#allocation3 + $0xc] sm:$0xf] %vm2779_vm3, %v2690_v5  ;;  %2933 = vrot.lane.b32.xlu0 %v2841_v60, %s9064_s15  ;;  %v8957_v60 = vld [vmem:[%s11967_s1] sm:$0xff]   ;;  %v3109_v5 = vor.u32 %v3108_v50, %v3105_v26  ;;  %v3184_v26 = vshll.u32 %v3022_v34, 16  ;;  %v3188_v50 = vshrl.u32 %v3022_v34, 16  ;;  %v3693_v34 = vrot.slane %v3580_v9, 5 }
 0x1e1   : > { %2935 = vrot.lane.b32.xlu1 %v2842_v43, %s9064_s15  ;;  %v3132_v43 = vrot.slane %v3130_v44, 5  ;;  %8824 = vmatprep.subr.bf16.mxu0 %v8957_v60  ;;  %v3175_v44 = vshrl.u32 %v3021_v27, 16  ;;  %v3024_v22 = vld [vmem:[#allocation2 + $0x60] sm:$0xf] }
 0x1e2   : > { %v2692_v10 = vpop.permute.xlu0 %2691  ;;  %8825 = vmatpush3.bf16.msra.mxu0 %v8957_v60  ;;  %v3110_v12 = vrot.slane %v3109_v5, 4  ;;  %v10248_v60 = vrot.slane %v3160_v39, 5  ;;  %v10253_v33 = vrot.slane %v3184_v26, 5  ;;  %v3190_v5 = vrot.slane %v3188_v50, 4  ;;  %v3027_v39 = vld [vmem:[#allocation2 + $0x6c] sm:$0xf] }
 0x1e3   : > { %2784 = vst.msk [vmem:[#allocation3 + $0x10] sm:$0xf] %vm2779_vm3, %v2692_v10  ;;  %v2694_v55 = vpop.permute.xlu1 %2693  ;;  %v3133_v42 = vor.u32 %v3132_v43, %v3129_v2  ;;  %v3578_v2 = vld [vmem:[#allocation2 + $0x44] sm:$0x1]  ;;  %v3020_v43 = vld [vmem:[#allocation2 + $0x50] sm:$0x1] }
 0x1e4   : > { %2785 = vst.msk [vmem:[#allocation3 + $0x14] sm:$0xf] %vm2779_vm3, %v2694_v55  ;;  %2937 = vrot.lane.b32.xlu0 %v2843_v21, %s9064_s15  ;;  %v3119_v21 = vor.u32 %v3118_v54, %v10202_v53  ;;  %v10224_v55 = vld [vmem:[#allocation2 + $0x34] sm:$0xf]  ;;  %v3156_v54 = vrot.slane %v3154_v48, 5  ;;  %v3177_v3 = vrot.slane %v3175_v44, 4 }
 0x1e5   : > { %2939 = vrot.lane.b32.xlu1 %v2844_v7, %s9064_s15  ;;  %v3122_v7 = vshll.u32 %v3014_v59, 16  ;;  %v3134_v18 = vrot.slane %v3133_v42, 4  ;;  %v3679_v24 = vrot.slane %v10224_v55, 5  ;;  %v3686_v59 = vrot.slane %v3577_v31, 5  ;;  %v3579_v48 = vld [vmem:[#allocation2 + $0x48] sm:$0xe] }
 0x1e6   : > { %v2696_v28 = vpop.permute.xlu0 %2695  ;;  %v3120_v8 = vrot.slane %v3119_v21, 4  ;;  %v3689_v42 = vrot.slane %v3578_v2, 5  ;;  %v3199_v11 = vshrl.u32 %v3024_v22, 16  ;;  %v3202_v37 = vshll.u32 %v3024_v22, 16  ;;  %v3583_v31 = vld [vmem:[#allocation2 + $0x58] sm:$0xf] }
 0x1e7   : > { %2786 = vst.msk [vmem:[#allocation3 + $0x18] sm:$0xf] %vm2779_vm3, %v2696_v28  ;;  %v2698_v49 = vpop.permute.xlu1 %2697  ;;  %v3115_v28 = vsel %vm9290_vm10, %v3110_v12, %v10202_v53  ;;  %v3139_v25 = vsel %vm9290_vm10, %v3134_v18, %v10216_v61  ;;  %v3153_v53 = vrot.slane %v3151_v32, 4  ;;  %v3023_v61 = vld [vmem:[#allocation2 + $0x5c] sm:$0x1]  ;;  %v8575_v26 = vrot.slane %v3579_v48, 9 }
 0x1e8   : > { %2787 = vst.msk [vmem:[#allocation3 + $0x1c] sm:$0xf] %vm2779_vm3, %v2698_v49  ;;  %3438 = vrot.lane.b32.xlu0 %v3067_v16, %s9065_s26  ;;  %v3124_v16 = vrot.slane %v3122_v7, 5  ;;  %v3028_v50 = vld [vmem:[#allocation2 + $0x70] sm:$0xf] }
 0x1e9   : > { %3440 = vrot.lane.b32.xlu1 %v3077_v29, %s9065_s26  ;;  %v3573_v29 = vld [vmem:[#allocation2 + $0x30] sm:$0xe]  ;;  %v3157_v7 = vor.u32 %v3156_v54, %v3153_v53  ;;  %v3223_v53 = vshrl.u32 %v3027_v39, 16  ;;  %v3226_v54 = vshll.u32 %v3027_v39, 16  ;;  %v3031_v48 = vld [vmem:[#allocation2 + $0x7c] sm:$0xf] }
 0x1ea   : > { %v2700_v41 = vpop.permute.xlu0 %2699  ;;  %v8573_v46 = vrot.slane %v3573_v29, 9  ;;  %v3585_v39 = vld [vmem:[#allocation2 + $0x60] sm:$0xe] }
 0x1eb   : > { %2788 = vst.msk [vmem:[#allocation3 + $0x20] sm:$0xf] %vm2779_vm3, %v2700_v41  ;;  %v2702_v58 = vpop.permute.xlu1 %2701  ;;  %v3681_v41 = vrot.slane %v3679_v24, 4 }
 0x1ec   : > { %2789 = vst.msk [vmem:[#allocation3 + $0x24] sm:$0xf] %vm2779_vm3, %v2702_v58  ;;  %3442 = vrot.lane.b32.xlu0 %v3091_v36, %s9065_s26  ;;  %v3125_v36 = vsel %vm9290_vm10, %v3120_v8, %v3124_v16  ;;  %v3576_v58 = vld [vmem:[#allocation2 + $0x3c] sm:$0xe]  ;;  %v3680_v6 = vsel %vm9554_vm13, %v8573_v46, %v3679_v24  ;;  %v3158_v16 = vrot.slane %v3157_v7, 4  ;;  %v3228_v7 = vrot.slane %v3226_v54, 5 }
 0x1ed   : > { %3444 = vrot.lane.b32.xlu1 %v3101_v45, %s9065_s26  ;;  %v3178_v45 = vshll.u32 %v3021_v27, 16  ;;  %v8574_v21 = vrot.slane %v3576_v58, 9  ;;  %v3700_v58 = vrot.slane %v3583_v31, 5 }
 0x1ee   : > { %v2704_v52 = vpop.permute.xlu0 %2703 }
 0x1ef   : > { %2790 = vst.msk [vmem:[#allocation3 + $0x28] sm:$0xf] %vm2779_vm3, %v2704_v52  ;;  %v2706_v10 = vpop.permute.xlu1 %2705  ;;  %v3180_v4 = vrot.slane %v3178_v45, 5  ;;  %v3683_v52 = vsel %vm9554_vm13, %v3681_v41, %v3682_v38  ;;  %v3687_v8 = vsel %vm9554_vm13, %v8574_v21, %v3686_v59  ;;  %v3695_v41 = vrot.slane %v3693_v34, 4 }
 0x1f0   : > { %2791 = vst.msk [vmem:[#allocation3 + $0x2c] sm:$0xf] %vm2779_vm3, %v2706_v10  ;;  %3775 = vrot.lane.b32.xlu0 %v3666_v63, %s9066_s7  ;;  %v3166_v63 = vrot.slane %v3164_v30, 4  ;;  %v3688_v10 = vrot.slane %v3686_v59, 4  ;;  %v3201_v59 = vrot.slane %v3199_v11, 4  ;;  %v3225_v21 = vrot.slane %v3223_v53, 4 }
 0x1f1   : > { %3777 = vrot.lane.b32.xlu1 %v3669_v47, %s9066_s7  ;;  %v3181_v55 = vor.u32 %v3180_v4, %v3177_v3  ;;  %v3232_v3 = vshll.u32 %v3028_v50, 16  ;;  %v3236_v4 = vshrl.u32 %v3028_v50, 16  ;;  %v3033_v11 = vld [vmem:[#allocation2 + $0x84] sm:$0xf]  ;;  %v3034_v50 = vld [vmem:[#allocation2 + $0x88] sm:$0xf] }
 0x1f2   : > { %v2708_v13 = vpop.permute.xlu0 %2707  ;;  %v3167_v56 = vor.u32 %v3166_v63, %v10248_v60  ;;  %v3271_v53 = vshrl.u32 %v3033_v11, 16  ;;  %v3274_v54 = vshll.u32 %v3033_v11, 16 }
 0x1f3   : > { %2792 = vst.msk [vmem:[#allocation3 + $0x30] sm:$0xf] %vm2779_vm3, %v2708_v13  ;;  %v2710_v19 = vpop.permute.xlu1 %2709  ;;  %v3191_v13 = vor.u32 %v3190_v5, %v10253_v33  ;;  %v3182_v27 = vrot.slane %v3181_v55, 4  ;;  %v3026_v5 = vld [vmem:[#allocation2 + $0x68] sm:$0x1] }
 0x1f4   : > { %2793 = vst.msk [vmem:[#allocation3 + $0x34] sm:$0xf] %vm2779_vm3, %v2710_v19  ;;  %3779 = vrot.lane.b32.xlu0 %v3673_v62, %s9066_s7  ;;  %v3170_v62 = vshll.u32 %v3020_v43, 16  ;;  %v3690_v19 = vsel %vm9554_vm13, %v3688_v10, %v3689_v42  ;;  %v3168_v20 = vrot.slane %v3167_v56, 4  ;;  %v3029_v56 = vld [vmem:[#allocation2 + $0x74] sm:$0x1] }
 0x1f5   : > { %3781 = vrot.lane.b32.xlu1 %v3676_v15, %s9066_s7  ;;  %v3194_v15 = vshll.u32 %v3023_v61, 16  ;;  %v3192_v29 = vrot.slane %v3191_v13, 4  ;;  %v3187_v46 = vsel %vm9290_vm10, %v3182_v27, %v10253_v33  ;;  %v3218_v55 = vshll.u32 %v3026_v5, 16 }
 0x1f6   : > { %v2712_v49 = vpop.permute.xlu0 %2711  ;;  %v3172_v18 = vrot.slane %v3170_v62, 5  ;;  %v10299_v13 = vrot.slane %v3232_v3, 5  ;;  %v3242_v9 = vshll.u32 %v3029_v56, 16 }
 0x1f7   : > { %2794 = vst.msk [vmem:[#allocation3 + $0x38] sm:$0xf] %vm2779_vm3, %v2712_v49  ;;  %v2714_v40 = vpop.permute.xlu1 %2713  ;;  %v3196_v32 = vrot.slane %v3194_v15, 5  ;;  %v3163_v49 = vsel %vm9290_vm10, %v3158_v16, %v10248_v60  ;;  %v3204_v60 = vrot.slane %v3202_v37, 5  ;;  %v3238_v15 = vrot.slane %v3236_v4, 4 }
 0x1f8   : > { %2795 = vst.msk [vmem:[#allocation3 + $0x3c] sm:$0xf] %vm2779_vm3, %v2714_v40  ;;  %3446 = vrot.lane.b32.xlu0 %v3115_v28, %s9065_s26  ;;  %v3025_v28 = vld [vmem:[#allocation2 + $0x64] sm:$0xf]  ;;  %v3173_v40 = vsel %vm9290_vm10, %v3168_v20, %v3172_v18  ;;  %v3229_v16 = vor.u32 %v3228_v7, %v3225_v21  ;;  %v3220_v27 = vrot.slane %v3218_v55, 5 }
 0x1f9   : > { %3448 = vrot.lane.b32.xlu1 %v3125_v36, %s9065_s26  ;;  %v3581_v36 = vld [vmem:[#allocation2 + $0x50] sm:$0x1]  ;;  %v3208_v44 = vshll.u32 %v3025_v28, 16  ;;  %v3212_v45 = vshrl.u32 %v3025_v28, 16  ;;  %v3205_v42 = vor.u32 %v3204_v60, %v3201_v59  ;;  %v3586_v20 = vld [vmem:[#allocation2 + $0x64] sm:$0xf]  ;;  %v3239_v28 = vor.u32 %v3238_v15, %v10299_v13 }
 0x1fa   : > { %v2716_v57 = vpop.permute.xlu0 %2715  ;;  %v3696_v38 = vrot.slane %v3581_v36, 5  ;;  %v3707_v36 = vrot.slane %v3586_v20, 5  ;;  %v3588_v4 = vld [vmem:[#allocation2 + $0x6c] sm:$0xe]  ;;  %v3590_v21 = vld [vmem:[#allocation2 + $0x74] sm:$0x1] }
 0x1fb   : > { %2796 = vst.msk [vmem:[#allocation3 + $0x40] sm:$0xf] %vm2779_vm3, %v2716_v57  ;;  %v2718_v47 = vpop.permute.xlu1 %2717  ;;  %v3197_v57 = vsel %vm9290_vm10, %v3192_v29, %v3196_v32  ;;  %v10288_v2 = vrot.slane %v3208_v44, 5  ;;  %v3214_v43 = vrot.slane %v3212_v45, 4  ;;  %v3030_v29 = vld [vmem:[#allocation2 + $0x78] sm:$0xf] }
 0x1fc   : > { %2797 = vst.msk [vmem:[#allocation3 + $0x44] sm:$0xf] %vm2779_vm3, %v2718_v47  ;;  %3450 = vrot.lane.b32.xlu0 %v3139_v25, %s9065_s26  ;;  %v3584_v47 = vld [vmem:[#allocation2 + $0x5c] sm:$0x1]  ;;  %v3250_v31 = vshll.u32 %v3030_v29, 16  ;;  %v8578_v56 = vrot.slane %v3588_v4, 9 }
 0x1fd   : > { %3452 = vrot.lane.b32.xlu1 %v3149_v14, %s9065_s26  ;;  %v3582_v14 = vld [vmem:[#allocation2 + $0x54] sm:$0xe]  ;;  %v3703_v10 = vrot.slane %v3584_v47, 5  ;;  %v3280_v47 = vshll.u32 %v3034_v50, 16  ;;  %v3032_v7 = vld [vmem:[#allocation2 + $0x80] sm:$0x1] }
 0x1fe   : > { %v2720_v1 = vpop.permute.xlu0 %2719  ;;  %v8576_v61 = vrot.slane %v3582_v14, 9  ;;  %v8577_v14 = vrot.slane %v3585_v39, 9  ;;  %v3591_v39 = vld [vmem:[#allocation2 + $0x78] sm:$0xe] }
 0x1ff   : > { %2798 = vst.msk [vmem:[#allocation3 + $0x48] sm:$0xf] %vm2779_vm3, %v2720_v1  ;;  %v2722_v12 = vpop.permute.xlu1 %2721  ;;  %v3702_v1 = vrot.slane %v3700_v58, 4 }
 0x200   : > { %2799 = vst.msk [vmem:[#allocation3 + $0x4c] sm:$0xf] %vm2779_vm3, %v2722_v12  ;;  %3783 = vrot.lane.b32.xlu0 %v3680_v6, %s9066_s7  ;;  %v3694_v6 = vsel %vm9554_vm13, %v8575_v26, %v3693_v34  ;;  %v3215_v12 = vor.u32 %v3214_v43, %v10288_v2  ;;  %v3230_v34 = vrot.slane %v3229_v16, 4  ;;  %v3260_v26 = vshrl.u32 %v3031_v48, 16 }
 0x201   : > { %3785 = vrot.lane.b32.xlu1 %v3683_v52, %s9066_s7  ;;  %v3697_v52 = vsel %vm9554_vm13, %v3695_v41, %v3696_v38  ;;  %v3704_v22 = vsel %vm9554_vm13, %v3702_v1, %v3703_v10  ;;  %v3589_v38 = vld [vmem:[#allocation2 + $0x70] sm:$0xf]  ;;  %v3276_v1 = vrot.slane %v3274_v54, 5  ;;  %v3708_v10 = vsel %vm9554_vm13, %v8577_v14, %v3707_v36  ;;  %v3040_v54 = vld [vmem:[#allocation2 + $0xa0] sm:$0xf] }
 0x202   : > { %v2724_v17 = vpop.permute.xlu0 %2723  ;;  %v3328_v4 = vshll.u32 %v3040_v54, 16 }
 0x203   : > { %2800 = vst.msk [vmem:[#allocation3 + $0x50] sm:$0xf] %vm2779_vm3, %v2724_v17  ;;  %v2726_v24 = vpop.permute.xlu1 %2725  ;;  %v3701_v17 = vsel %vm9554_vm13, %v8576_v61, %v3700_v58  ;;  %v3709_v58 = vrot.slane %v3707_v36, 4  ;;  %v3273_v61 = vrot.slane %v3271_v53, 4 }
 0x204   : > { %2801 = vst.msk [vmem:[#allocation3 + $0x54] sm:$0xf] %vm2779_vm3, %v2726_v24  ;;  %3787 = vrot.lane.b32.xlu0 %v3687_v8, %s9066_s7  ;;  %v3216_v24 = vrot.slane %v3215_v12, 4  ;;  %v10338_v12 = vrot.slane %v3280_v47, 5 }
 0x205   : > { %3789 = vrot.lane.b32.xlu1 %v3690_v19, %s9066_s7  ;;  %v3206_v19 = vrot.slane %v3205_v42, 4  ;;  %v3277_v20 = vor.u32 %v3276_v1, %v3273_v61 }
 0x206   : > { %v2728_v30 = vpop.permute.xlu0 %2727  ;;  %v3221_v45 = vsel %vm9290_vm10, %v3216_v24, %v3220_v27 }
 0x207   : > { %2802 = vst.msk [vmem:[#allocation3 + $0x58] sm:$0xf] %vm2779_vm3, %v2728_v30  ;;  %v2730_v25 = vpop.permute.xlu1 %2729  ;;  %v3211_v37 = vsel %vm9290_vm10, %v3206_v19, %v10288_v2  ;;  %v3587_v30 = vld [vmem:[#allocation2 + $0x68] sm:$0x1]  ;;  %v3284_v2 = vshrl.u32 %v3034_v50, 16  ;;  %v3278_v11 = vrot.slane %v3277_v20, 4 }
 0x208   : > { %2803 = vst.msk [vmem:[#allocation3 + $0x5c] sm:$0xf] %vm2779_vm3, %v2730_v25  ;;  %3454 = vrot.lane.b32.xlu0 %v3163_v49, %s9065_s26  ;;  %v3244_v49 = vrot.slane %v3242_v9, 5  ;;  %v3240_v25 = vrot.slane %v3239_v28, 4  ;;  %v3710_v59 = vrot.slane %v3587_v30, 5  ;;  %v3266_v9 = vshll.u32 %v3032_v7, 16 }
 0x209   : > { %3456 = vrot.lane.b32.xlu1 %v3173_v40, %s9065_s26  ;;  %v3247_v40 = vshrl.u32 %v3030_v29, 16  ;;  %v3286_v55 = vrot.slane %v3284_v2, 4  ;;  %v3036_v28 = vld [vmem:[#allocation2 + $0x90] sm:$0xf]  ;;  %v3283_v14 = vsel %vm9290_vm10, %v3278_v11, %v10338_v12 }
 0x20a   : > { %v2732_v63 = vpop.permute.xlu0 %2731  ;;  %v3245_v3 = vsel %vm9290_vm10, %v3240_v25, %v3244_v49  ;;  %v3711_v42 = vsel %vm9554_vm13, %v3709_v58, %v3710_v59  ;;  %v3592_v49 = vld [vmem:[#allocation2 + $0x7c] sm:$0xf]  ;;  %v3295_v30 = vshrl.u32 %v3036_v28, 16  ;;  %v8579_v58 = vrot.slane %v3591_v39, 9  ;;  %v3595_v59 = vld [vmem:[#allocation2 + $0x88] sm:$0xf] }
 0x20b   : > { %2804 = vst.msk [vmem:[#allocation3 + $0x60] sm:$0xf] %vm2779_vm3, %v2732_v63  ;;  %v2734_v33 = vpop.permute.xlu1 %2733  ;;  %v3249_v60 = vrot.slane %v3247_v40, 4  ;;  %v3252_v63 = vrot.slane %v3250_v31, 5  ;;  %v3287_v24 = vor.u32 %v3286_v55, %v10338_v12  ;;  %v3298_v40 = vshll.u32 %v3036_v28, 16 }
 0x20c   : > { %2805 = vst.msk [vmem:[#allocation3 + $0x64] sm:$0xf] %vm2779_vm3, %v2734_v33  ;;  %3458 = vrot.lane.b32.xlu0 %v3187_v46, %s9065_s26  ;;  %v3256_v46 = vshll.u32 %v3031_v48, 16  ;;  %v3714_v33 = vrot.slane %v3589_v38, 5  ;;  %v3721_v25 = vrot.slane %v3592_v49, 5 }
 0x20d   : > { %3460 = vrot.lane.b32.xlu1 %v3197_v57, %s9065_s26  ;;  %v3235_v57 = vsel %vm9290_vm10, %v3230_v34, %v10299_v13  ;;  %v3268_v34 = vrot.slane %v3266_v9, 5  ;;  %v3042_v39 = vld [vmem:[#allocation2 + $0xa8] sm:$0xf] }
 0x20e   : > { %v2736_v62 = vpop.permute.xlu0 %2735  ;;  %v10328_v5 = vrot.slane %v3256_v46, 5  ;;  %v3716_v15 = vrot.slane %v3714_v33, 4  ;;  %v3039_v46 = vld [vmem:[#allocation2 + $0x9c] sm:$0xf] }
 0x20f   : > { %2806 = vst.msk [vmem:[#allocation3 + $0x68] sm:$0xf] %vm2779_vm3, %v2736_v62  ;;  %v2738_v8 = vpop.permute.xlu1 %2737  ;;  %v3253_v62 = vor.u32 %v3252_v63, %v3249_v60  ;;  %v3297_v60 = vrot.slane %v3295_v30, 4  ;;  %v3300_v63 = vrot.slane %v3298_v40, 5  ;;  %v3319_v47 = vshrl.u32 %v3039_v46, 16 }
 0x210   : > { %2807 = vst.msk [vmem:[#allocation3 + $0x6c] sm:$0xf] %vm2779_vm3, %v2738_v8  ;;  %3791 = vrot.lane.b32.xlu0 %v3694_v6, %s9066_s7  ;;  %v3262_v6 = vrot.slane %v3260_v26, 4  ;;  %v3717_v8 = vrot.slane %v3590_v21, 5  ;;  %v3322_v2 = vshll.u32 %v3039_v46, 16  ;;  %v3728_v21 = vrot.slane %v3595_v59, 5 }
 0x211   : > { %3793 = vrot.lane.b32.xlu1 %v3697_v52, %s9066_s7  ;;  %v3321_v12 = vrot.slane %v3319_v47, 4  ;;  %v3043_v40 = vld [vmem:[#allocation2 + $0xac] sm:$0xf]  ;;  %v3046_v46 = vld [vmem:[#allocation2 + $0xb8] sm:$0xf] }
 0x212   : > { %v2740_v18 = vpop.permute.xlu0 %2739  ;;  %v3263_v16 = vor.u32 %v3262_v6, %v10328_v5  ;;  %v3324_v55 = vrot.slane %v3322_v2, 5  ;;  %v3352_v59 = vshll.u32 %v3043_v40, 16 }
 0x213   : > { %2808 = vst.msk [vmem:[#allocation3 + $0x70] sm:$0xf] %vm2779_vm3, %v2740_v18  ;;  %v2742_v32 = vpop.permute.xlu1 %2741  ;;  %v3715_v18 = vsel %vm9554_vm13, %v8578_v56, %v3714_v33  ;;  %v3332_v33 = vshrl.u32 %v3040_v54, 16  ;;  %v3722_v56 = vsel %vm9554_vm13, %v8579_v58, %v3721_v25  ;;  %v3601_v58 = vld [vmem:[#allocation2 + $0xa0] sm:$0xf] }
 0x214   : > { %2809 = vst.msk [vmem:[#allocation3 + $0x74] sm:$0xf] %vm2779_vm3, %v2742_v32  ;;  %3795 = vrot.lane.b32.xlu0 %v3701_v17, %s9066_s7  ;;  %v3035_v17 = vld [vmem:[#allocation2 + $0x8c] sm:$0x1]  ;;  %v3718_v32 = vsel %vm9554_vm13, %v3716_v15, %v3717_v8  ;;  %v3264_v48 = vrot.slane %v3263_v16, 4  ;;  %v10378_v8 = vrot.slane %v3328_v4, 5  ;;  %v3325_v28 = vor.u32 %v3324_v55, %v3321_v12 }
 0x215   : > { %3797 = vrot.lane.b32.xlu1 %v3704_v22, %s9066_s7  ;;  %v3254_v22 = vrot.slane %v3253_v62, 4  ;;  %v3290_v27 = vshll.u32 %v3035_v17, 16  ;;  %v3301_v62 = vor.u32 %v3300_v63, %v3297_v60  ;;  %v3334_v16 = vrot.slane %v3332_v33, 4  ;;  %v3044_v55 = vld [vmem:[#allocation2 + $0xb0] sm:$0x1] }
 0x216   : > { %v2744_v44 = vpop.permute.xlu0 %2743  ;;  %v3269_v50 = vsel %vm9290_vm10, %v3264_v48, %v3268_v34  ;;  %v3730_v17 = vrot.slane %v3728_v21, 4  ;;  %v10388_v34 = vld [vmem:[#allocation2 + $0x94] sm:$0xf]  ;;  %v3356_v60 = vshrl.u32 %v3043_v40, 16 }
 0x217   : > { %2810 = vst.msk [vmem:[#allocation3 + $0x78] sm:$0xf] %vm2779_vm3, %v2744_v44  ;;  %v2746_v41 = vpop.permute.xlu1 %2745  ;;  %v3259_v31 = vsel %vm9290_vm10, %v3254_v22, %v10328_v5  ;;  %v3288_v44 = vrot.slane %v3287_v24, 4  ;;  %v3041_v22 = vld [vmem:[#allocation2 + $0xa4] sm:$0x1] }
 0x218   : > { %2811 = vst.msk [vmem:[#allocation3 + $0x7c] sm:$0xf] %vm2779_vm3, %v2746_v41  ;;  %3462 = vrot.lane.b32.xlu0 %v3211_v37, %s9065_s26  ;;  %v3037_v37 = vld [vmem:[#allocation2 + $0x94] sm:$0xf]  ;;  %v3593_v41 = vld [vmem:[#allocation2 + $0x80] sm:$0x1] }
 0x219   : > { %3464 = vrot.lane.b32.xlu1 %v3221_v45, %s9065_s26  ;;  %v3292_v45 = vrot.slane %v3290_v27, 5  ;;  %v3304_v38 = vshll.u32 %v3037_v37, 16  ;;  %v3308_v53 = vshrl.u32 %v3037_v37, 16  ;;  %v3302_v27 = vrot.slane %v3301_v62, 4 }
 0x21a   : > { %v2878_v43 = vpop.permute.xlu0 %2877  ;;  %v3338_v48 = vshll.u32 %v3041_v22, 16  ;;  %v3358_v62 = vrot.slane %v3356_v60, 4  ;;  %vm6561_vm3 = vcmask 322816  }
 0x21b   : > { %2974 = vst.msk [vmem:[#allocation3] sm:$0xf] %vm2973_vm5, %v2878_v43  ;;  %v2880_v52 = vpop.permute.xlu1 %2879  ;;  %v3723_v43 = vrot.slane %v3721_v25, 4  ;;  %v3293_v6 = vsel %vm9290_vm10, %v3288_v44, %v3292_v45  ;;  %v10368_v7 = vrot.slane %v3304_v38, 5  ;;  %v3310_v61 = vrot.slane %v3308_v53, 4 }
 0x21c   : > { %2975 = vst.msk [vmem:[#allocation3 + $0x4] sm:$0xf] %vm2973_vm5, %v2880_v52  ;;  %3466 = vrot.lane.b32.xlu0 %v3235_v57, %s9065_s26  ;;  %v3594_v52 = vld [vmem:[#allocation2 + $0x84] sm:$0xe]  ;;  %v3326_v44 = vrot.slane %v3325_v28, 4  ;;  %v3735_v45 = vrot.slane %v10388_v34, 5 }
 0x21d   : > { %3468 = vrot.lane.b32.xlu1 %v3245_v3, %s9065_s26  ;;  %v3724_v3 = vrot.slane %v3593_v41, 5  ;;  %v8580_v15 = vrot.slane %v3594_v52, 9  ;;  %v3311_v20 = vor.u32 %v3310_v61, %v10368_v7  ;;  %v3045_v25 = vld [vmem:[#allocation2 + $0xb4] sm:$0xf]  ;;  %v3597_v41 = vld [vmem:[#allocation2 + $0x90] sm:$0xe] }
 0x21e   : > { %v2882_v13 = vpop.permute.xlu0 %2881  ;;  %v3343_v38 = vshrl.u32 %v3042_v39, 16  ;;  %v3346_v53 = vshll.u32 %v3042_v39, 16  ;;  %v3367_v47 = vshrl.u32 %v3045_v25, 16  ;;  %v3370_v2 = vshll.u32 %v3045_v25, 16 }
 0x21f   : > { %2976 = vst.msk [vmem:[#allocation3 + $0x8] sm:$0xf] %vm2973_vm5, %v2882_v13  ;;  %v2884_v19 = vpop.permute.xlu1 %2883  ;;  %v3725_v13 = vsel %vm9554_vm13, %v3723_v43, %v3724_v3  ;;  %v3312_v11 = vrot.slane %v3311_v20, 4  ;;  %v3376_v43 = vshll.u32 %v3046_v46, 16  ;;  %v3380_v3 = vshrl.u32 %v3046_v46, 16 }
 0x220   : > { %2977 = vst.msk [vmem:[#allocation3 + $0xc] sm:$0xf] %vm2973_vm5, %v2884_v19  ;;  %3799 = vrot.lane.b32.xlu0 %v3708_v10, %s9066_s7  ;;  %v3596_v10 = vld [vmem:[#allocation2 + $0x8c] sm:$0x1]  ;;  %v3331_v4 = vsel %vm9290_vm10, %v3326_v44, %v10378_v8  ;;  %v8581_v33 = vrot.slane %v3597_v41, 9  ;;  %v3742_v52 = vrot.slane %v3601_v58, 5 }
 0x221   : > { %3801 = vrot.lane.b32.xlu1 %v3711_v42, %s9066_s7  ;;  %v3038_v42 = vld [vmem:[#allocation2 + $0x98] sm:$0x1]  ;;  %v3731_v19 = vrot.slane %v3596_v10, 5  ;;  %v3600_v10 = vld [vmem:[#allocation2 + $0x9c] sm:$0xe] }
 0x222   : > { %v2886_v29 = vpop.permute.xlu0 %2885  ;;  %v8582_v20 = vrot.slane %v3600_v10, 9  ;;  %v3048_v44 = vld [vmem:[#allocation2 + $0xc0] sm:$0xf]  ;;  %v3603_v41 = vld [vmem:[#allocation2 + $0xa8] sm:$0xe] }
 0x223   : > { %2978 = vst.msk [vmem:[#allocation3 + $0x10] sm:$0xf] %vm2973_vm5, %v2886_v29  ;;  %v2888_v36 = vpop.permute.xlu1 %2887  ;;  %v3729_v29 = vsel %vm9554_vm13, %v8580_v15, %v3728_v21  ;;  %v3345_v21 = vrot.slane %v3343_v38, 4  ;;  %v3372_v15 = vrot.slane %v3370_v2, 5  ;;  %v3394_v58 = vshll.u32 %v3048_v44, 16 }
 0x224   : > { %2979 = vst.msk [vmem:[#allocation3 + $0x14] sm:$0xf] %vm2973_vm5, %v2888_v36  ;;  %3803 = vrot.lane.b32.xlu0 %v3715_v18, %s9066_s7  ;;  %v3314_v18 = vshll.u32 %v3038_v42, 16  ;;  %v3732_v36 = vsel %vm9554_vm13, %v3730_v17, %v3731_v19  ;;  %v3602_v42 = vld [vmem:[#allocation2 + $0xa4] sm:$0x1]  ;;  %v3736_v17 = vsel %vm9554_vm13, %v8581_v33, %v3735_v45 }
 0x225   : > { %3805 = vrot.lane.b32.xlu1 %v3718_v32, %s9066_s7  ;;  %v3335_v32 = vor.u32 %v3334_v16, %v10378_v8  ;;  %v10414_v8 = vrot.slane %v3376_v43, 5  ;;  %v3382_v16 = vrot.slane %v3380_v3, 4  ;;  %v3051_v2 = vld [vmem:[#allocation2 + $0xcc] sm:$0xf]  ;;  %v3052_v33 = vld [vmem:[#allocation2 + $0xd0] sm:$0xf] }
 0x226   : > { %v2890_v26 = vpop.permute.xlu0 %2889  ;;  %v3316_v37 = vrot.slane %v3314_v18, 5  ;;  %v3415_v10 = vshrl.u32 %v3051_v2, 16 }
 0x227   : > { %2980 = vst.msk [vmem:[#allocation3 + $0x18] sm:$0xf] %vm2973_vm5, %v2890_v26  ;;  %v2892_v57 = vpop.permute.xlu1 %2891  ;;  %v3336_v26 = vrot.slane %v3335_v32, 4  ;;  %v3383_v34 = vor.u32 %v3382_v16, %v10414_v8  ;;  %v3050_v16 = vld [vmem:[#allocation2 + $0xc8] sm:$0x1] }
 0x228   : > { %2981 = vst.msk [vmem:[#allocation3 + $0x1c] sm:$0xf] %vm2973_vm5, %v2892_v57  ;;  %3470 = vrot.lane.b32.xlu0 %v3259_v31, %s9065_s26  ;;  %v3307_v31 = vsel %vm9290_vm10, %v3302_v27, %v10368_v7  ;;  %v3317_v57 = vsel %vm9290_vm10, %v3312_v11, %v3316_v37  ;;  %v3348_v7 = vrot.slane %v3346_v53, 5  ;;  %v3745_v27 = vrot.slane %v3602_v42, 5  ;;  %v3604_v37 = vld [vmem:[#allocation2 + $0xac] sm:$0xf] }
 0x229   : > { %3472 = vrot.lane.b32.xlu1 %v3269_v50, %s9065_s26  ;;  %v3340_v50 = vrot.slane %v3338_v48, 5  ;;  %v3384_v46 = vrot.slane %v3383_v34, 4  ;;  %v3749_v38 = vrot.slane %v3604_v37, 5  ;;  %v3418_v42 = vshll.u32 %v3051_v2, 16 }
 0x22a   : > { %v2894_v5 = vpop.permute.xlu0 %2893  ;;  %v3349_v18 = vor.u32 %v3348_v7, %v3345_v21  ;;  %v3606_v7 = vld [vmem:[#allocation2 + $0xb4] sm:$0xe] }
 0x22b   : > { %2982 = vst.msk [vmem:[#allocation3 + $0x20] sm:$0xf] %vm2973_vm5, %v2894_v5  ;;  %v2896_v1 = vpop.permute.xlu1 %2895  ;;  %v3737_v5 = vrot.slane %v3735_v45, 4 }
 0x22c   : > { %2983 = vst.msk [vmem:[#allocation3 + $0x24] sm:$0xf] %vm2973_vm5, %v2896_v1  ;;  %3474 = vrot.lane.b32.xlu0 %v3283_v14, %s9065_s26  ;;  %v3599_v14 = vld [vmem:[#allocation2 + $0x98] sm:$0x1]  ;;  %v3341_v1 = vsel %vm9290_vm10, %v3336_v26, %v3340_v50  ;;  %v3350_v11 = vrot.slane %v3349_v18, 4 }
 0x22d   : > { %3476 = vrot.lane.b32.xlu1 %v3293_v6, %s9065_s26  ;;  %v3738_v6 = vrot.slane %v3599_v14, 5  ;;  %v3049_v50 = vld [vmem:[#allocation2 + $0xc4] sm:$0xf]  ;;  %v3391_v14 = vshrl.u32 %v3048_v44, 16 }
 0x22e   : > { %v2898_v9 = vpop.permute.xlu0 %2897 }
 0x22f   : > { %2984 = vst.msk [vmem:[#allocation3 + $0x28] sm:$0xf] %vm2973_vm5, %v2898_v9  ;;  %v2900_v24 = vpop.permute.xlu1 %2899  ;;  %v3047_v9 = vld [vmem:[#allocation2 + $0xbc] sm:$0x1]  ;;  %v3739_v19 = vsel %vm9554_vm13, %v3737_v5, %v3738_v6  ;;  %v8583_v5 = vrot.slane %v3603_v41, 9  ;;  %v3751_v6 = vrot.slane %v3749_v38, 4 }
 0x230   : > { %2985 = vst.msk [vmem:[#allocation3 + $0x2c] sm:$0xf] %vm2973_vm5, %v2900_v24  ;;  %3807 = vrot.lane.b32.xlu0 %v3722_v56, %s9066_s7  ;;  %v10411_v56 = vrot.slane %v3352_v59, 5  ;;  %v3744_v24 = vrot.slane %v3742_v52, 4 }
 0x231   : > { %3809 = vrot.lane.b32.xlu1 %v3725_v13, %s9066_s7  ;;  %v3369_v13 = vrot.slane %v3367_v47, 4  ;;  %v3404_v47 = vshrl.u32 %v3049_v50, 16 }
 0x232   : > { %v2902_v49 = vpop.permute.xlu0 %2901  ;;  %v3359_v28 = vor.u32 %v3358_v62, %v10411_v56  ;;  %v3355_v53 = vsel %vm9290_vm10, %v3350_v11, %v10411_v56  ;;  %v3608_v62 = vld [vmem:[#allocation2 + $0xbc] sm:$0x1] }
 0x233   : > { %2986 = vst.msk [vmem:[#allocation3 + $0x30] sm:$0xf] %vm2973_vm5, %v2902_v49  ;;  %v2904_v30 = vpop.permute.xlu1 %2903  ;;  %v3373_v48 = vor.u32 %v3372_v15, %v3369_v13  ;;  %v3386_v49 = vshll.u32 %v3047_v9, 16  ;;  %v3424_v13 = vshll.u32 %v3052_v33, 16  ;;  %v3428_v15 = vshrl.u32 %v3052_v33, 16 }
 0x234   : > { %2987 = vst.msk [vmem:[#allocation3 + $0x34] sm:$0xf] %vm2973_vm5, %v2904_v30  ;;  %3811 = vrot.lane.b32.xlu0 %v3729_v29, %s9066_s7  ;;  %v3362_v29 = vshll.u32 %v3044_v55, 16  ;;  %v3746_v30 = vsel %vm9554_vm13, %v3744_v24, %v3745_v27  ;;  %v3360_v40 = vrot.slane %v3359_v28, 4  ;;  %v3406_v55 = vrot.slane %v3404_v47, 4 }
 0x235   : > { %3813 = vrot.lane.b32.xlu1 %v3732_v36, %s9066_s7  ;;  %v3743_v36 = vsel %vm9554_vm13, %v8582_v20, %v3742_v52  ;;  %v3374_v25 = vrot.slane %v3373_v48, 4  ;;  %v3388_v26 = vrot.slane %v3386_v49, 5  ;;  %v3750_v9 = vsel %vm9554_vm13, %v8583_v5, %v3749_v38  ;;  %v3612_v5 = vld [vmem:[#allocation2 + $0xcc] sm:$0xe] }
 0x236   : > { %v2906_v54 = vpop.permute.xlu0 %2905  ;;  %v3759_v18 = vrot.slane %v3608_v62, 5  ;;  %v3417_v24 = vrot.slane %v3415_v10, 4  ;;  %v3420_v27 = vrot.slane %v3418_v42, 5  ;;  %v3426_v48 = vrot.slane %v3424_v13, 5 }
 0x237   : > { %2988 = vst.msk [vmem:[#allocation3 + $0x38] sm:$0xf] %vm2973_vm5, %v2906_v54  ;;  %v2908_v63 = vpop.permute.xlu1 %2907  ;;  %v3605_v54 = vld [vmem:[#allocation2 + $0xb0] sm:$0x1]  ;;  %v3379_v3 = vsel %vm9290_vm10, %v3374_v25, %v10414_v8  ;;  %v3430_v34 = vrot.slane %v3428_v15, 4 }
 0x238   : > { %2989 = vst.msk [vmem:[#allocation3 + $0x3c] sm:$0xf] %vm2973_vm5, %v2908_v63  ;;  %3478 = vrot.lane.b32.xlu0 %v3307_v31, %s9065_s26  ;;  %v3364_v31 = vrot.slane %v3362_v29, 5  ;;  %v3400_v63 = vshll.u32 %v3049_v50, 16  ;;  %v3752_v52 = vrot.slane %v3605_v54, 5 }
 0x239   : > { %3480 = vrot.lane.b32.xlu1 %v3317_v57, %s9065_s26  ;;  %v3607_v57 = vld [vmem:[#allocation2 + $0xb8] sm:$0xf] }
 0x23a   : > { %v2910_v61 = vpop.permute.xlu0 %2909  ;;  %v3365_v60 = vsel %vm9290_vm10, %v3360_v40, %v3364_v31  ;;  %v3756_v21 = vrot.slane %v3607_v57, 5 }
 0x23b   : > { %2990 = vst.msk [vmem:[#allocation3 + $0x40] sm:$0xf] %vm2973_vm5, %v2910_v61  ;;  %v2912_v12 = vpop.permute.xlu1 %2911  ;;  %v3393_v61 = vrot.slane %v3391_v14, 4  ;;  %v3609_v14 = vld [vmem:[#allocation2 + $0xc0] sm:$0xe] }
 0x23c   : > { %2991 = vst.msk [vmem:[#allocation3 + $0x44] sm:$0xf] %vm2973_vm5, %v2912_v12  ;;  %3482 = vrot.lane.b32.xlu0 %v3331_v4, %s9065_s26  ;;  %v3389_v4 = vsel %vm9290_vm10, %v3384_v46, %v3388_v26  ;;  %v3402_v12 = vrot.slane %v3400_v63, 5  ;;  %v3758_v20 = vrot.slane %v3756_v21, 4  ;;  %v3610_v26 = vld [vmem:[#allocation2 + $0xc4] sm:$0xf] }
 0x23d   : > { %3484 = vrot.lane.b32.xlu1 %v3341_v1, %s9065_s26  ;;  %v3396_v1 = vrot.slane %v3394_v58, 5  ;;  %v3763_v58 = vrot.slane %v3610_v26, 5  ;;  %v3613_v63 = vld [vmem:[#allocation2 + $0xd0] sm:$0xf]  ;;  %v8585_v2 = vrot.slane %v3609_v14, 9 }
 0x23e   : > { %v2914_v22 = vpop.permute.xlu0 %2913  ;;  %v3407_v29 = vor.u32 %v3406_v55, %v3402_v12  ;;  %v3760_v37 = vsel %vm9554_vm13, %v3758_v20, %v3759_v18 }
 0x23f   : > { %2992 = vst.msk [vmem:[#allocation3 + $0x48] sm:$0xf] %vm2973_vm5, %v2914_v22  ;;  %v2916_v32 = vpop.permute.xlu1 %2915  ;;  %v3397_v22 = vor.u32 %v3396_v1, %v3393_v61  ;;  %v8586_v61 = vrot.slane %v3612_v5, 9 }
 0x240   : > { %2993 = vst.msk [vmem:[#allocation3 + $0x4c] sm:$0xf] %vm2973_vm5, %v2916_v32  ;;  %3815 = vrot.lane.b32.xlu0 %v3736_v17, %s9066_s7  ;;  %v3753_v17 = vsel %vm9554_vm13, %v3751_v6, %v3752_v52  ;;  %v3410_v32 = vshll.u32 %v3050_v16, 16  ;;  %v3408_v31 = vrot.slane %v3407_v29, 4  ;;  %v3770_v6 = vrot.slane %v3613_v63, 5 }
 0x241   : > { %3817 = vrot.lane.b32.xlu1 %v3739_v19, %s9066_s7  ;;  %v8584_v19 = vrot.slane %v3606_v7, 9  ;;  %v3764_v7 = vsel %vm9554_vm13, %v8585_v2, %v3763_v58 }
 0x242   : > { %v2918_v39 = vpop.permute.xlu0 %2917  ;;  %v3412_v44 = vrot.slane %v3410_v32, 5  ;;  %v3772_v42 = vrot.slane %v3770_v6, 4 }
 0x243   : > { %2994 = vst.msk [vmem:[#allocation3 + $0x50] sm:$0xf] %vm2973_vm5, %v2918_v39  ;;  %v2920_v45 = vpop.permute.xlu1 %2919  ;;  %v3757_v11 = vsel %vm9554_vm13, %v8584_v19, %v3756_v21  ;;  %v3398_v39 = vrot.slane %v3397_v22, 4  ;;  %v3614_v21 = vld [vmem:[#allocation2 + $0xd4] sm:$0x1] }
 0x244   : > { %2995 = vst.msk [vmem:[#allocation3 + $0x54] sm:$0xf] %vm2973_vm5, %v2920_v45  ;;  %3819 = vrot.lane.b32.xlu0 %v3743_v36, %s9066_s7  ;;  %v3053_v36 = vld [vmem:[#allocation2 + $0xd4] sm:$0x1]  ;;  %v3431_v45 = vor.u32 %v3430_v34, %v3426_v48 }
 0x245   : > { %3821 = vrot.lane.b32.xlu1 %v3746_v30, %s9066_s7  ;;  %v3421_v30 = vor.u32 %v3420_v27, %v3417_v24  ;;  %v3434_v25 = vshll.u32 %v3053_v36, 16  ;;  %v3403_v50 = vsel %vm9290_vm10, %v3398_v39, %v3402_v12  ;;  %v3771_v12 = vsel %vm9554_vm13, %v8586_v61, %v3770_v6 }
 0x246   : > { %v2922_v59 = vpop.permute.xlu0 %2921  ;;  %v3432_v54 = vrot.slane %v3431_v45, 4 }
 0x247   : > { %2996 = vst.msk [vmem:[#allocation3 + $0x58] sm:$0xf] %vm2973_vm5, %v2922_v59  ;;  %v2924_v43 = vpop.permute.xlu1 %2923  ;;  %v3422_v41 = vrot.slane %v3421_v30, 4  ;;  %v3436_v57 = vrot.slane %v3434_v25, 5 }
 0x248   : > { %2997 = vst.msk [vmem:[#allocation3 + $0x5c] sm:$0xf] %vm2973_vm5, %v2924_v43  ;;  %3486 = vrot.lane.b32.xlu0 %v3355_v53, %s9065_s26  ;;  %v3413_v53 = vsel %vm9290_vm10, %v3408_v31, %v3412_v44 }
 0x249   : > { %3488 = vrot.lane.b32.xlu1 %v3365_v60, %s9065_s26  ;;  %v3611_v60 = vld [vmem:[#allocation2 + $0xc8] sm:$0x1]  ;;  %v3427_v47 = vsel %vm9290_vm10, %v3422_v41, %v3426_v48 }
 0x24a   : > { %v2926_v56 = vpop.permute.xlu0 %2925  ;;  %v3766_v33 = vrot.slane %v3611_v60, 5 }
 0x24b   : > { %2998 = vst.msk [vmem:[#allocation3 + $0x60] sm:$0xf] %vm2973_vm5, %v2926_v56  ;;  %v2928_v8 = vpop.permute.xlu1 %2927  ;;  %v3773_v56 = vrot.slane %v3614_v21, 5 }
 0x24c   : > { %2999 = vst.msk [vmem:[#allocation3 + $0x64] sm:$0xf] %vm2973_vm5, %v2928_v8  ;;  %3490 = vrot.lane.b32.xlu0 %v3379_v3, %s9065_s26  ;;  %v3437_v3 = vsel %vm9290_vm10, %v3432_v54, %v3436_v57 }
 0x24d   : > { %3492 = vrot.lane.b32.xlu1 %v3389_v4, %s9065_s26  ;;  %v3765_v4 = vrot.slane %v3763_v58, 4  ;;  %v3774_v13 = vsel %vm9554_vm13, %v3772_v42, %v3773_v56 }
 0x24e   : > { %v2930_v28 = vpop.permute.xlu0 %2929 }
 0x24f   : > { %3000 = vst.msk [vmem:[#allocation3 + $0x68] sm:$0xf] %vm2973_vm5, %v2930_v28  ;;  %v2932_v49 = vpop.permute.xlu1 %2931  ;;  %v3767_v10 = vsel %vm9554_vm13, %v3765_v4, %v3766_v33 }
 0x250   : > { %3001 = vst.msk [vmem:[#allocation3 + $0x6c] sm:$0xf] %vm2973_vm5, %v2932_v49  ;;  %3823 = vrot.lane.b32.xlu0 %v3750_v9, %s9066_s7 }
 0x251   : > { %3825 = vrot.lane.b32.xlu1 %v3753_v17, %s9066_s7 }
 0x252   : > { %v2934_v40 = vpop.permute.xlu0 %2933 }
 0x253   : > { %3002 = vst.msk [vmem:[#allocation3 + $0x70] sm:$0xf] %vm2973_vm5, %v2934_v40  ;;  %v2936_v46 = vpop.permute.xlu1 %2935 }
 0x254   : > { %3003 = vst.msk [vmem:[#allocation3 + $0x74] sm:$0xf] %vm2973_vm5, %v2936_v46  ;;  %3827 = vrot.lane.b32.xlu0 %v3757_v11, %s9066_s7 }
 0x255   : > { %3829 = vrot.lane.b32.xlu1 %v3760_v37, %s9066_s7 }
 0x256   : > { %v2938_v38 = vpop.permute.xlu0 %2937 }
 0x257   : > { %3004 = vst.msk [vmem:[#allocation3 + $0x78] sm:$0xf] %vm2973_vm5, %v2938_v38  ;;  %v2940_v59 = vpop.permute.xlu1 %2939 }
 0x258   : > { %3005 = vst.msk [vmem:[#allocation3 + $0x7c] sm:$0xf] %vm2973_vm5, %v2940_v59  ;;  %3494 = vrot.lane.b32.xlu0 %v3403_v50, %s9065_s26  ;;  %vm7092_vm5 = vcmask 454016  }
 0x259   : > { %3496 = vrot.lane.b32.xlu1 %v3413_v53, %s9065_s26 }
 0x25a   : > { %v3439_v43 = vpop.permute.xlu0 %3438 }
 0x25b   : > { %3535 = vst.msk [vmem:[#allocation3] sm:$0xf] %vm3534_vm7, %v3439_v43  ;;  %v3441_v52 = vpop.permute.xlu1 %3440 }
 0x25c   : > { %3536 = vst.msk [vmem:[#allocation3 + $0x4] sm:$0xf] %vm3534_vm7, %v3441_v52  ;;  %3498 = vrot.lane.b32.xlu0 %v3427_v47, %s9065_s26 }
 0x25d   : > { %3500 = vrot.lane.b32.xlu1 %v3437_v3, %s9065_s26  ;;  %s9069_s26 = smov 56  }
 0x25e   : > { %v3443_v1 = vpop.permute.xlu0 %3442 }
 0x25f   : > { %3537 = vst.msk [vmem:[#allocation3 + $0x8] sm:$0xf] %vm3534_vm7, %v3443_v1  ;;  %v3445_v62 = vpop.permute.xlu1 %3444 }
 0x260   : > { %3538 = vst.msk [vmem:[#allocation3 + $0xc] sm:$0xf] %vm3534_vm7, %v3445_v62  ;;  %3831 = vrot.lane.b32.xlu0 %v3764_v7, %s9066_s7 }
 0x261   : > { %3833 = vrot.lane.b32.xlu1 %v3767_v10, %s9066_s7 }
 0x262   : > { %v3776_v55 = vpop.permute.xlu0 %3775 }
 0x263   : > { %3872 = vst.msk [vmem:[#allocation3] sm:$0xf] %vm3871_vm9, %v3776_v55  ;;  %v3778_v15 = vpop.permute.xlu1 %3777 }
 0x264   : > { %3873 = vst.msk [vmem:[#allocation3 + $0x4] sm:$0xf] %vm3871_vm9, %v3778_v15  ;;  %3835 = vrot.lane.b32.xlu0 %v3771_v12, %s9066_s7  ;;  %v4942_v15 = vld [vmem:[#allocation4] sm:$0xf] }
 0x265   : > { %3837 = vrot.lane.b32.xlu1 %v3774_v13, %s9066_s7 }
 0x266   : > { %v3780_v8 = vpop.permute.xlu0 %3779 }
 0x267   : > { %3874 = vst.msk [vmem:[#allocation3 + $0x8] sm:$0xf] %vm3871_vm9, %v3780_v8  ;;  %v3782_v16 = vpop.permute.xlu1 %3781 }
 0x268   : > { %3875 = vst.msk [vmem:[#allocation3 + $0xc] sm:$0xf] %vm3871_vm9, %v3782_v16  ;;  %v4991_v16 = vshrl.u32 %v4942_v15, 16 }
 0x26a   : > { %v3447_v9 = vpop.permute.xlu0 %3446 }
 0x26b   : > { %3539 = vst.msk [vmem:[#allocation3 + $0x10] sm:$0xf] %vm3534_vm7, %v3447_v9  ;;  %v3449_v17 = vpop.permute.xlu1 %3448  ;;  %v8958_v19 = vld [vmem:[#allocation3] sm:$0xff]   ;;  %v4994_v9 = vshll.u32 %v4942_v15, 16 }
 0x26c   : > { %3540 = vst.msk [vmem:[#allocation3 + $0x14] sm:$0xf] %vm3534_vm7, %v3449_v17  ;;  %8826 = vmatprep.mubr.msk.bf16.mxu0 %vm4043_vm11, %v8958_v19  ;;  %v4993_v19 = vrot.slane %v4991_v16, 4 }
 0x26e   : > { %v3451_v20 = vpop.permute.xlu0 %3450 }
 0x26f   : > { %3541 = vst.msk [vmem:[#allocation3 + $0x18] sm:$0xf] %vm3534_vm7, %v3451_v20  ;;  %v3453_v18 = vpop.permute.xlu1 %3452  ;;  %v8959_v22 = vld [vmem:[#allocation3 + $0x8] sm:$0xff]   ;;  %v4996_v20 = vrot.slane %v4994_v9, 5 }
 0x270   : > { %3542 = vst.msk [vmem:[#allocation3 + $0x1c] sm:$0xf] %vm3534_vm7, %v3453_v18  ;;  %8827 = vmatmul.mubr.msk.bf16.vlgmr.msra.gmra.mxu0 %vm4043_vm11, %v8959_v22  ;;  %v4943_v18 = vld [vmem:[#allocation4 + $0x4] sm:$0xf] }
 0x272   : > { %v3784_v24 = vpop.permute.xlu0 %3783 }
 0x273   : > { %3876 = vst.msk [vmem:[#allocation3 + $0x10] sm:$0xf] %vm3871_vm9, %v3784_v24  ;;  %v3786_v27 = vpop.permute.xlu1 %3785  ;;  %v4997_v24 = vor.u32 %v4996_v20, %v4993_v19  ;;  %v4777_v19 = vld [vmem:[#allocation4 + $0x20] sm:$0x1] }
 0x274   : > { %3877 = vst.msk [vmem:[#allocation3 + $0x14] sm:$0xf] %vm3871_vm9, %v3786_v27  ;;  %v5000_v27 = vshll.u32 %v4943_v18, 16 }
 0x276   : > { %v3788_v28 = vpop.permute.xlu0 %3787 }
 0x277   : > { %3878 = vst.msk [vmem:[#allocation3 + $0x18] sm:$0xf] %vm3871_vm9, %v3788_v28  ;;  %v3790_v29 = vpop.permute.xlu1 %3789  ;;  %v5004_v28 = vshrl.u32 %v4943_v18, 16 }
 0x278   : > { %3879 = vst.msk [vmem:[#allocation3 + $0x1c] sm:$0xf] %vm3871_vm9, %v3790_v29 }
 0x27a   : > { %v3455_v32 = vpop.permute.xlu0 %3454 }
 0x27b   : > { %3543 = vst.msk [vmem:[#allocation3 + $0x20] sm:$0xf] %vm3534_vm7, %v3455_v32  ;;  %v3457_v48 = vpop.permute.xlu1 %3456  ;;  %v8960_v34 = vld [vmem:[#allocation3 + $0x10] sm:$0xff]  }
 0x27c   : > { %3544 = vst.msk [vmem:[#allocation3 + $0x24] sm:$0xf] %vm3534_vm7, %v3457_v48  ;;  %8830 = vmatprep.mubr.msk.bf16.mxu0 %vm4043_vm11, %v8960_v34  ;;  %v4998_v48 = vrot.slane %v4997_v24, 4  ;;  %v5002_v34 = vrot.slane %v5000_v27, 5 }
 0x27e   : > { %v3459_v49 = vpop.permute.xlu0 %3458 }
 0x27f   : > { %3545 = vst.msk [vmem:[#allocation3 + $0x28] sm:$0xf] %vm3534_vm7, %v3459_v49  ;;  %v3461_v36 = vpop.permute.xlu1 %3460  ;;  %v8961_v11 = vld [vmem:[#allocation3 + $0x18] sm:$0xff]   ;;  %v5006_v49 = vrot.slane %v5004_v28, 4 }
 0x280   : > { %3546 = vst.msk [vmem:[#allocation3 + $0x2c] sm:$0xf] %vm3534_vm7, %v3461_v36  ;;  %8831 = vmatmul.mubr.msk.bf16.gmra.mxu0 %vm4043_vm11, %v8961_v11  ;;  %v4944_v36 = vld [vmem:[#allocation4 + $0x8] sm:$0x1] }
 0x282   : > { %v3792_v37 = vpop.permute.xlu0 %3791 }
 0x283   : > { %3880 = vst.msk [vmem:[#allocation3 + $0x20] sm:$0xf] %vm3871_vm9, %v3792_v37  ;;  %v3794_v39 = vpop.permute.xlu1 %3793  ;;  %v5003_v37 = vsel %vm9290_vm10, %v4998_v48, %v5002_v34 }
 0x284   : > { %3881 = vst.msk [vmem:[#allocation3 + $0x24] sm:$0xf] %vm3871_vm9, %v3794_v39  ;;  %v5007_v39 = vor.u32 %v5006_v49, %v5002_v34  ;;  %5374 = vrot.lane.b32.xlu0 %v5003_v37, %s9060_s11  ;;  %v4770_v49 = vld [vmem:[#allocation4 + $0x14] sm:$0x1] }
 0x286   : > { %v3796_v30 = vpop.permute.xlu0 %3795 }
 0x287   : > { %3882 = vst.msk [vmem:[#allocation3 + $0x28] sm:$0xf] %vm3871_vm9, %v3796_v30  ;;  %v3798_v40 = vpop.permute.xlu1 %3797  ;;  %v5010_v30 = vshll.u32 %v4944_v36, 16 }
 0x288   : > { %3883 = vst.msk [vmem:[#allocation3 + $0x2c] sm:$0xf] %vm3871_vm9, %v3798_v40 }
 0x28a   : > { %v3463_v31 = vpop.permute.xlu0 %3462 }
 0x28b   : > { %3547 = vst.msk [vmem:[#allocation3 + $0x30] sm:$0xf] %vm3534_vm7, %v3463_v31  ;;  %v3465_v44 = vpop.permute.xlu1 %3464  ;;  %v8962_v45 = vld [vmem:[#allocation3 + $0x20] sm:$0xff]  }
 0x28c   : > { %3548 = vst.msk [vmem:[#allocation3 + $0x34] sm:$0xf] %vm3534_vm7, %v3465_v44  ;;  %8834 = vmatprep.mubr.msk.bf16.mxu0 %vm4043_vm11, %v8962_v45  ;;  %v5008_v44 = vrot.slane %v5007_v39, 4  ;;  %v5012_v45 = vrot.slane %v5010_v30, 5 }
 0x28e   : > { %v3467_v25 = vpop.permute.xlu0 %3466 }
 0x28f   : > { %3549 = vst.msk [vmem:[#allocation3 + $0x38] sm:$0xf] %vm3534_vm7, %v3467_v25  ;;  %v3469_v46 = vpop.permute.xlu1 %3468  ;;  %v8963_v26 = vld [vmem:[#allocation3 + $0x28] sm:$0xff]  }
 0x290   : > { %3550 = vst.msk [vmem:[#allocation3 + $0x3c] sm:$0xf] %vm3534_vm7, %v3469_v46  ;;  %8835 = vmatmul.mubr.msk.bf16.gmra.mxu0 %vm4043_vm11, %v8963_v26  ;;  %v5013_v46 = vsel %vm9290_vm10, %v5008_v44, %v5012_v45 }
 0x291   : > { %5376 = vrot.lane.b32.xlu1 %v5013_v46, %s9060_s11  ;;  %v4878_v46 = vld [vmem:[#allocation4] sm:$0xf] }
 0x292   : > { %v3800_v50 = vpop.permute.xlu0 %3799  ;;  %4910 = vst.msk [vmem:[#allocation5] sm:$0xf] %vm4289_vm12, %v4878_v46 }
 0x293   : > { %3884 = vst.msk [vmem:[#allocation3 + $0x30] sm:$0xf] %vm3871_vm9, %v3800_v50  ;;  %v3802_v41 = vpop.permute.xlu1 %3801 }
 0x294   : > { %3885 = vst.msk [vmem:[#allocation3 + $0x34] sm:$0xf] %vm3871_vm9, %v3802_v41 }
 0x296   : > { %v3804_v38 = vpop.permute.xlu0 %3803 }
 0x297   : > { %3886 = vst.msk [vmem:[#allocation3 + $0x38] sm:$0xf] %vm3871_vm9, %v3804_v38  ;;  %v3806_v53 = vpop.permute.xlu1 %3805 }
 0x298   : > { %3887 = vst.msk [vmem:[#allocation3 + $0x3c] sm:$0xf] %vm3871_vm9, %v3806_v53 }
 0x29a   : > { %v3471_v54 = vpop.permute.xlu0 %3470 }
 0x29b   : > { %3551 = vst.msk [vmem:[#allocation3 + $0x40] sm:$0xf] %vm3534_vm7, %v3471_v54  ;;  %v3473_v57 = vpop.permute.xlu1 %3472  ;;  %v8964_v14 = vld [vmem:[#allocation3 + $0x30] sm:$0xff]   ;;  %v10694_v54 = vld [vmem:[%s11968_s2] ss:$0 sm:$0xff] }
 0x29c   : > { %3552 = vst.msk [vmem:[#allocation3 + $0x44] sm:$0xf] %vm3534_vm7, %v3473_v57  ;;  %8838 = vmatprep.mubr.msk.bf16.mxu0 %vm4043_vm11, %v8964_v14 }
 0x29e   : > { %v3475_v58 = vpop.permute.xlu0 %3474 }
 0x29f   : > { %3553 = vst.msk [vmem:[#allocation3 + $0x48] sm:$0xf] %vm3534_vm7, %v3475_v58  ;;  %v3477_v59 = vpop.permute.xlu1 %3476  ;;  %v8965_v60 = vld [vmem:[#allocation3 + $0x38] sm:$0xff]  }
 0x2a0   : > { %3554 = vst.msk [vmem:[#allocation3 + $0x4c] sm:$0xf] %vm3534_vm7, %v3477_v59  ;;  %8839 = vmatmul.mubr.msk.bf16.gmra.mxu0 %vm4043_vm11, %v8965_v60 }
 0x2a2   : > { %v3808_v63 = vpop.permute.xlu0 %3807 }
 0x2a3   : > { %3888 = vst.msk [vmem:[#allocation3 + $0x40] sm:$0xf] %vm3871_vm9, %v3808_v63  ;;  %v3810_v47 = vpop.permute.xlu1 %3809 }
 0x2a4   : > { %3889 = vst.msk [vmem:[#allocation3 + $0x44] sm:$0xf] %vm3871_vm9, %v3810_v47 }
 0x2a6   : > { %v3812_v2 = vpop.permute.xlu0 %3811 }
 0x2a7   : > { %3890 = vst.msk [vmem:[#allocation3 + $0x48] sm:$0xf] %vm3871_vm9, %v3812_v2  ;;  %v3814_v43 = vpop.permute.xlu1 %3813 }
 0x2a8   : > { %3891 = vst.msk [vmem:[#allocation3 + $0x4c] sm:$0xf] %vm3871_vm9, %v3814_v43 }
 0x2aa   : > { %v3479_v3 = vpop.permute.xlu0 %3478 }
 0x2ab   : > { %3555 = vst.msk [vmem:[#allocation3 + $0x50] sm:$0xf] %vm3534_vm7, %v3479_v3  ;;  %v3481_v4 = vpop.permute.xlu1 %3480  ;;  %v8966_v33 = vld [vmem:[#allocation3 + $0x40] sm:$0xff]  }
 0x2ac   : > { %3556 = vst.msk [vmem:[#allocation3 + $0x54] sm:$0xf] %vm3534_vm7, %v3481_v4  ;;  %8842 = vmatprep.mubr.msk.bf16.mxu0 %vm4043_vm11, %v8966_v33 }
 0x2ae   : > { %v3483_v5 = vpop.permute.xlu0 %3482 }
 0x2af   : > { %3557 = vst.msk [vmem:[#allocation3 + $0x58] sm:$0xf] %vm3534_vm7, %v3483_v5  ;;  %v3485_v6 = vpop.permute.xlu1 %3484  ;;  %v8967_v52 = vld [vmem:[#allocation3 + $0x48] sm:$0xff]  }
 0x2b0   : > { %3558 = vst.msk [vmem:[#allocation3 + $0x5c] sm:$0xf] %vm3534_vm7, %v3485_v6  ;;  %8843 = vmatmul.mubr.msk.bf16.gmra.mxu0 %vm4043_vm11, %v8967_v52 }
 0x2b2   : > { %v3816_v21 = vpop.permute.xlu0 %3815 }
 0x2b3   : > { %3892 = vst.msk [vmem:[#allocation3 + $0x50] sm:$0xf] %vm3871_vm9, %v3816_v21  ;;  %v3818_v7 = vpop.permute.xlu1 %3817 }
 0x2b4   : > { %3893 = vst.msk [vmem:[#allocation3 + $0x54] sm:$0xf] %vm3871_vm9, %v3818_v7 }
 0x2b6   : > { %v3820_v61 = vpop.permute.xlu0 %3819 }
 0x2b7   : > { %3894 = vst.msk [vmem:[#allocation3 + $0x58] sm:$0xf] %vm3871_vm9, %v3820_v61  ;;  %v3822_v1 = vpop.permute.xlu1 %3821 }
 0x2b8   : > { %3895 = vst.msk [vmem:[#allocation3 + $0x5c] sm:$0xf] %vm3871_vm9, %v3822_v1 }
 0x2ba   : > { %v3487_v10 = vpop.permute.xlu0 %3486 }
 0x2bb   : > { %3559 = vst.msk [vmem:[#allocation3 + $0x60] sm:$0xf] %vm3534_vm7, %v3487_v10  ;;  %v3489_v42 = vpop.permute.xlu1 %3488  ;;  %v8968_v56 = vld [vmem:[#allocation3 + $0x50] sm:$0xff]   ;;  %v4773_v10 = vld [vmem:[#allocation4 + $0x18] sm:$0xf] }
 0x2bc   : > { %3560 = vst.msk [vmem:[#allocation3 + $0x64] sm:$0xf] %vm3534_vm7, %v3489_v42  ;;  %8846 = vmatprep.mubr.msk.bf16.mxu0 %vm4043_vm11, %v8968_v56 }
 0x2be   : > { %v3491_v62 = vpop.permute.xlu0 %3490 }
 0x2bf   : > { %3561 = vst.msk [vmem:[#allocation3 + $0x68] sm:$0xf] %vm3534_vm7, %v3491_v62  ;;  %v3493_v12 = vpop.permute.xlu1 %3492  ;;  %v8969_v55 = vld [vmem:[#allocation3 + $0x58] sm:$0xff]  }
 0x2c0   : > { %3562 = vst.msk [vmem:[#allocation3 + $0x6c] sm:$0xf] %vm3534_vm7, %v3493_v12  ;;  %8847 = vmatmul.mubr.msk.bf16.gmra.mxu0 %vm4043_vm11, %v8969_v55 }
 0x2c2   : > { %v3824_v13 = vpop.permute.xlu0 %3823 }
 0x2c3   : > { %3896 = vst.msk [vmem:[#allocation3 + $0x60] sm:$0xf] %vm3871_vm9, %v3824_v13  ;;  %v3826_v0 = vpop.permute.xlu1 %3825  ;;  %v4764_v13 = vld [vmem:[#allocation4 + $0xc] sm:$0xf] }
 0x2c4   : > { %3897 = vst.msk [vmem:[#allocation3 + $0x64] sm:$0xf] %vm3871_vm9, %v3826_v0 }
 0x2c6   : > { %v3828_v8 = vpop.permute.xlu0 %3827 }
 0x2c7   : > { %3898 = vst.msk [vmem:[#allocation3 + $0x68] sm:$0xf] %vm3871_vm9, %v3828_v8  ;;  %v3830_v17 = vpop.permute.xlu1 %3829 }
 0x2c8   : > { %3899 = vst.msk [vmem:[#allocation3 + $0x6c] sm:$0xf] %vm3871_vm9, %v3830_v17 }
 0x2ca   : > { %v3495_v22 = vpop.permute.xlu0 %3494 }
 0x2cb   : > { %3563 = vst.msk [vmem:[#allocation3 + $0x70] sm:$0xf] %vm3534_vm7, %v3495_v22  ;;  %v3497_v29 = vpop.permute.xlu1 %3496  ;;  %v8970_v32 = vld [vmem:[#allocation3 + $0x60] sm:$0xff]  }
 0x2cc   : > { %3564 = vst.msk [vmem:[#allocation3 + $0x74] sm:$0xf] %vm3534_vm7, %v3497_v29  ;;  %8850 = vmatprep.mubr.msk.bf16.mxu0 %vm4043_vm11, %v8970_v32 }
 0x2ce   : > { %v3499_v11 = vpop.permute.xlu0 %3498 }
 0x2cf   : > { %3565 = vst.msk [vmem:[#allocation3 + $0x78] sm:$0xf] %vm3534_vm7, %v3499_v11  ;;  %v3501_v40 = vpop.permute.xlu1 %3500  ;;  %v8971_v31 = vld [vmem:[#allocation3 + $0x68] sm:$0xff]  }
 0x2d0   : > { %3566 = vst.msk [vmem:[#allocation3 + $0x7c] sm:$0xf] %vm3534_vm7, %v3501_v40  ;;  %8851 = vmatmul.mubr.msk.bf16.gmra.mxu0 %vm4043_vm11, %v8971_v31  ;;  %vm7653_vm7 = vcmask 519616  }
 0x2d2   : > { %v3832_v25 = vpop.permute.xlu0 %3831 }
 0x2d3   : > { %3900 = vst.msk [vmem:[#allocation3 + $0x70] sm:$0xf] %vm3871_vm9, %v3832_v25  ;;  %v3834_v26 = vpop.permute.xlu1 %3833 }
 0x2d4   : > { %3901 = vst.msk [vmem:[#allocation3 + $0x74] sm:$0xf] %vm3871_vm9, %v3834_v26 }
 0x2d6   : > { %v3836_v50 = vpop.permute.xlu0 %3835 }
 0x2d7   : > { %3902 = vst.msk [vmem:[#allocation3 + $0x78] sm:$0xf] %vm3871_vm9, %v3836_v50  ;;  %v3838_v41 = vpop.permute.xlu1 %3837 }
 0x2d8   : > { %3903 = vst.msk [vmem:[#allocation3 + $0x7c] sm:$0xf] %vm3871_vm9, %v3838_v41  ;;  %vm7990_vm9 = vcmask 585216  }
 0x2db   : > { %v8972_v38 = vld [vmem:[#allocation3 + $0x70] sm:$0xff]  }
 0x2dc   : > { %8854 = vmatprep.mubr.msk.bf16.mxu0 %vm4043_vm11, %v8972_v38 }
 0x2df   : > { %v8973_v53 = vld [vmem:[#allocation3 + $0x78] sm:$0xff]  }
 0x2e0   : > { %8855 = vmatmul.mubr.msk.bf16.gmra.mxu0 %vm4043_vm11, %v8973_v53  ;;  %vm8178_vm11 = vcmask 588800  }
 0x2f6   : > { %v5375_v53 = vpop.permute.xlu0 %5374 }
 0x2f7   : > { %5471 = vst.msk [vmem:[#allocation5] sm:$0xf] %vm5470_vm1, %v5375_v53 }
 0x330   : > { %v8828_v57 = vpop.f32.mrf.mxu0 }
 0x331   : > { %v4139_v14 = vadd.f32 %v8828_v57, %v10694_v54 }
 0x332   : > { %v4130_v58 = vpop.f32.mrf.mxu0 }
 0x333   : > { %v4259_v59 = vmax.f32 %v4139_v14, 0.0  ;;  %v4131_v60 = vadd.f32 %v10694_v54, %v4130_v58 }
 0x334   : > { %v8829_v63 = vpop.f32.mrf.mxu0 }
 0x335   : > { %v8749_v47 = vpack.c.bf16 %v4259_v59, %v4259_v59  ;;  %v4257_v2 = vmax.f32 %v4131_v60, 0.0  ;;  %v4142_v43 = vadd.f32 %v8829_v63, %v10694_v54 }
 0x336   : > { %v4133_v3 = vpop.f32.mrf.mxu0 }
 0x337   : > { %v4459_v4 = vshrl.u32 %v8749_v47, 16  ;;  %v8747_v33 = vpack.c.bf16 %v4257_v2, %v4257_v2  ;;  %v4260_v5 = vmax.f32 %v4142_v43, 0.0  ;;  %v4134_v6 = vadd.f32 %v10694_v54, %v4133_v3 }
 0x338   : > { %v4462_v21 = vshll.u32 %v8749_v47, 16 }
 0x339   : > { %v4461_v52 = vrot.slane %v4459_v4, 7  ;;  %v4442_v7 = vshrl.u32 %v8747_v33, 16  ;;  %v8750_v61 = vpack.c.bf16 %v4260_v5, %v4260_v5  ;;  %v4258_v42 = vmax.f32 %v4134_v6, 0.0 }
 0x33a   : > { %v4445_v12 = vshll.u32 %v8747_v33, 16 }
 0x33b   : > { %v4464_v56 = vor.u32 %v4462_v21, %v4461_v52  ;;  %v4444_v62 = vrot.slane %v4442_v7, 7  ;;  %v4467_v55 = vshrl.u32 %v8750_v61, 16  ;;  %v8748_v0 = vpack.c.bf16 %v4258_v42, %v4258_v42 }
 0x33c   : > { %v4470_v9 = vshll.u32 %v8750_v61, 16  ;;  %v4465_v18 = vrot.slane %v4461_v52, 4 }
 0x33d   : > { %v4774_v15 = vsel %vm10702_vm15, %v4464_v56, %v4773_v10  ;;  %v4447_v8 = vor.u32 %v4445_v12, %v4444_v62  ;;  %v4469_v16 = vrot.slane %v4467_v55, 7  ;;  %v4450_v20 = vshrl.u32 %v8748_v0, 16  ;;  %v4787_v10 = vld [vmem:[#allocation4 + $0x30] sm:$0xf] }
 0x33e   : > { %4775 = vst [vmem:[#allocation4 + $0x18] sm:$0xf] %v4774_v15  ;;  %v4453_v29 = vshll.u32 %v8748_v0, 16  ;;  %v4448_v11 = vrot.slane %v4444_v62, 4  ;;  %v4780_v15 = vld [vmem:[#allocation4 + $0x24] sm:$0xf] }
 0x33f   : > { %v4765_v22 = vsel %vm10702_vm15, %v4447_v8, %v4764_v13  ;;  %v4472_v24 = vor.u32 %v4470_v9, %v4469_v16  ;;  %v4474_v27 = vrot.slane %v4469_v16, 4  ;;  %v4452_v28 = vrot.slane %v4450_v20, 7 }
 0x340   : > { %4766 = vst [vmem:[#allocation4 + $0xc] sm:$0xf] %v4765_v22  ;;  %v8832_v32 = vpop.f32.mrf.mxu0 }
 0x341   : > { %v4473_v48 = vsel %vm9277_vm8, %v4465_v18, %v4472_v24  ;;  %v4778_v34 = vsel %vm10710_vm6, %v4474_v27, %v4777_v19  ;;  %v4155_v36 = vadd.f32 %v8832_v32, %v10694_v54  ;;  %v4455_v37 = vor.u32 %v4453_v29, %v4452_v28  ;;  %v4879_v32 = vld [vmem:[#allocation4 + $0x4] sm:$0xf] }
 0x342   : > { %4776 = vst.msk [vmem:[#allocation4 + $0x1c] sm:$0xf] %vm4289_vm12, %v4473_v48  ;;  %4779 = vst [vmem:[#allocation4 + $0x20] sm:$0x1] %v4778_v34  ;;  %v4457_v39 = vrot.slane %v4452_v28, 4  ;;  %v4146_v30 = vpop.f32.mrf.mxu0 }
 0x343   : > { %v4263_v40 = vmax.f32 %v4155_v36, 0.0  ;;  %v4147_v31 = vadd.f32 %v10694_v54, %v4146_v30  ;;  %v4456_v44 = vsel %vm9277_vm8, %v4448_v11, %v4455_v37  ;;  %v4791_v34 = vld [vmem:[#allocation4 + $0x38] sm:$0x1]  ;;  %4911 = vst.msk [vmem:[#allocation5 + $0x4] sm:$0xf] %vm4289_vm12, %v4879_v32 }
 0x344   : > { %v4771_v45 = vsel %vm10710_vm6, %v4457_v39, %v4770_v49  ;;  %v8833_v25 = vpop.f32.mrf.mxu0  ;;  %4767 = vst.msk [vmem:[#allocation4 + $0x10] sm:$0xf] %vm4289_vm12, %v4456_v44  ;;  %v5377_v39 = vpop.permute.xlu1 %5376 }
 0x345   : > { %4772 = vst [vmem:[#allocation4 + $0x14] sm:$0x1] %v4771_v45  ;;  %v8753_v26 = vpack.c.bf16 %v4263_v40, %v4263_v40  ;;  %v4261_v50 = vmax.f32 %v4147_v31, 0.0  ;;  %v4158_v41 = vadd.f32 %v8833_v25, %v10694_v54  ;;  %v4948_v38 = vld [vmem:[#allocation4 + $0x18] sm:$0xf] }
 0x346   : > { %v4882_v57 = vld [vmem:[#allocation4 + $0x18] sm:$0xf]  ;;  %v4149_v14 = vpop.f32.mrf.mxu0  ;;  %v5039_v58 = vshrl.u32 %v4948_v38, 16  ;;  %v5042_v59 = vshll.u32 %v4948_v38, 16  ;;  %5472 = vst.msk [vmem:[#allocation5 + $0x4] sm:$0xf] %vm5470_vm1, %v5377_v39 }
 0x347   : > { %4914 = vst.msk [vmem:[#allocation5 + $0x10] sm:$0xf] %vm4289_vm12, %v4882_v57  ;;  %v4493_v60 = vshrl.u32 %v8753_v26, 16  ;;  %v4496_v63 = vshll.u32 %v8753_v26, 16  ;;  %v8751_v47 = vpack.c.bf16 %v4261_v50, %v4261_v50  ;;  %v4264_v2 = vmax.f32 %v4158_v41, 0.0 }
 0x348   : > { %v4945_v43 = vld [vmem:[#allocation4 + $0xc] sm:$0xf]  ;;  %v4150_v3 = vadd.f32 %v10694_v54, %v4149_v14  ;;  %v5041_v5 = vrot.slane %v5039_v58, 4  ;;  %v5044_v12 = vrot.slane %v5042_v59, 5 }
 0x349   : > { %v5015_v4 = vshrl.u32 %v4945_v43, 16  ;;  %v5018_v33 = vshll.u32 %v4945_v43, 16  ;;  %v4880_v6 = vld [vmem:[#allocation4 + $0xc] sm:$0xf]  ;;  %v4495_v52 = vrot.slane %v4493_v60, 7  ;;  %v4476_v21 = vshrl.u32 %v8751_v47, 16 }
 0x34a   : > { %v4479_v7 = vshll.u32 %v8751_v47, 16  ;;  %v8754_v61 = vpack.c.bf16 %v4264_v2, %v4264_v2  ;;  %4912 = vst.msk [vmem:[#allocation5 + $0x8] sm:$0xf] %vm4289_vm12, %v4880_v6  ;;  %v4262_v42 = vmax.f32 %v4150_v3, 0.0  ;;  %v5045_v22 = vor.u32 %v5044_v12, %v5041_v5  ;;  %v4883_v45 = vld [vmem:[#allocation4 + $0x1c] sm:$0xf] }
 0x34b   : > { %v5017_v56 = vrot.slane %v5015_v4, 4  ;;  %v5020_v62 = vrot.slane %v5018_v33, 5  ;;  %v4498_v55 = vor.u32 %v4496_v63, %v4495_v52  ;;  %v4499_v13 = vrot.slane %v4495_v52, 4  ;;  %v4946_v19 = vld [vmem:[#allocation4 + $0x10] sm:$0xf] }
 0x34c   : > { %v4478_v0 = vrot.slane %v4476_v21, 7  ;;  %v4501_v8 = vshrl.u32 %v8754_v61, 16  ;;  %v4504_v16 = vshll.u32 %v8754_v61, 16  ;;  %v8752_v9 = vpack.c.bf16 %v4262_v42, %v4262_v42  ;;  %v4947_v18 = vld [vmem:[#allocation4 + $0x14] sm:$0x1] }
 0x34d   : > { %v5021_v20 = vor.u32 %v5020_v62, %v5017_v56  ;;  %v4788_v24 = vsel %vm10702_vm15, %v4498_v55, %v4787_v10  ;;  %v4881_v48 = vld [vmem:[#allocation4 + $0x10] sm:$0xf]  ;;  %v5024_v37 = vshll.u32 %v4946_v19, 16  ;;  %v5028_v44 = vshrl.u32 %v4946_v19, 16  ;;  %v4949_v41 = vld [vmem:[#allocation4 + $0x1c] sm:$0xf] }
 0x34e   : > { %v4481_v27 = vor.u32 %v4479_v7, %v4478_v0  ;;  %v4482_v28 = vrot.slane %v4478_v0, 4  ;;  %v4503_v29 = vrot.slane %v4501_v8, 7  ;;  %4789 = vst [vmem:[#allocation4 + $0x30] sm:$0xf] %v4788_v24  ;;  %v4484_v49 = vshrl.u32 %v8752_v9, 16 }
 0x34f   : > { %v4487_v36 = vshll.u32 %v8752_v9, 16  ;;  %v5022_v11 = vrot.slane %v5021_v20, 4  ;;  %4913 = vst.msk [vmem:[#allocation5 + $0xc] sm:$0xf] %vm4289_vm12, %v4881_v48  ;;  %v5026_v26 = vrot.slane %v5024_v37, 5  ;;  %v5034_v50 = vshll.u32 %v4947_v18, 16 }
 0x350   : > { %v4781_v30 = vsel %vm10702_vm15, %v4481_v27, %v4780_v15  ;;  %v4506_v40 = vor.u32 %v4504_v16, %v4503_v29  ;;  %v4508_v31 = vrot.slane %v4503_v29, 4  ;;  %v4486_v25 = vrot.slane %v4484_v49, 7  ;;  %v8836_v46 = vpop.f32.mrf.mxu0  ;;  %4915 = vst.msk [vmem:[#allocation5 + $0x14] sm:$0xf] %vm4289_vm12, %v4883_v45  ;;  %v4784_v14 = vld [vmem:[#allocation4 + $0x2c] sm:$0x1] }
 0x351   : > { %4782 = vst [vmem:[#allocation4 + $0x24] sm:$0xf] %v4781_v30  ;;  %v5046_v38 = vrot.slane %v5045_v22, 4  ;;  %v4171_v58 = vadd.f32 %v8836_v46, %v10694_v54  ;;  %v5030_v59 = vrot.slane %v5028_v44, 4  ;;  %v4950_v60 = vld [vmem:[#allocation4 + $0x20] sm:$0x1]  ;;  %v5027_v2 = vsel %vm9290_vm10, %v5022_v11, %v5026_v26 }
 0x352   : > { %v4507_v53 = vsel %vm9277_vm8, %v4499_v13, %v4506_v40  ;;  %v4792_v57 = vsel %vm10710_vm6, %v4508_v31, %v4791_v34  ;;  %v4489_v63 = vor.u32 %v4487_v36, %v4486_v25  ;;  %v4491_v47 = vrot.slane %v4486_v25, 4  ;;  %v4162_v43 = vpop.f32.mrf.mxu0  ;;  %5378 = vrot.lane.b32.xlu0 %v5027_v2, %s9060_s11  ;;  %v4801_v37 = vld [vmem:[#allocation4 + $0x48] sm:$0xf] }
 0x353   : > { %4790 = vst.msk [vmem:[#allocation4 + $0x34] sm:$0xf] %vm4289_vm12, %v4507_v53  ;;  %4793 = vst [vmem:[#allocation4 + $0x38] sm:$0x1] %v4792_v57  ;;  %v5036_v3 = vrot.slane %v5034_v50, 5  ;;  %v4267_v4 = vmax.f32 %v4171_v58, 0.0  ;;  %v4163_v33 = vadd.f32 %v10694_v54, %v4162_v43  ;;  %v5031_v5 = vor.u32 %v5030_v59, %v5026_v26 }
 0x354   : > { %v5048_v6 = vshll.u32 %v4949_v41, 16  ;;  %v4490_v52 = vsel %vm9277_vm8, %v4482_v28, %v4489_v63  ;;  %v4785_v21 = vsel %vm10710_vm6, %v4491_v47, %v4784_v14  ;;  %v8837_v7 = vpop.f32.mrf.mxu0  ;;  %v5052_v61 = vshrl.u32 %v4949_v41, 16  ;;  %v4794_v26 = vld [vmem:[#allocation4 + $0x3c] sm:$0xf]  ;;  %v4805_v63 = vld [vmem:[#allocation4 + $0x50] sm:$0x1] }
 0x355   : > { %v5058_v10 = vshll.u32 %v4950_v60, 16  ;;  %4783 = vst.msk [vmem:[#allocation4 + $0x28] sm:$0xf] %vm4289_vm12, %v4490_v52  ;;  %4786 = vst [vmem:[#allocation4 + $0x2c] sm:$0x1] %v4785_v21  ;;  %v8757_v42 = vpack.c.bf16 %v4267_v4, %v4267_v4  ;;  %v4265_v56 = vmax.f32 %v4163_v33, 0.0  ;;  %v4174_v62 = vadd.f32 %v8837_v7, %v10694_v54 }
 0x356   : > { %v5032_v12 = vrot.slane %v5031_v5, 4  ;;  %v10758_v55 = vld [vmem:[#allocation4 + $0x30] sm:$0xf]  ;;  %v5050_v13 = vrot.slane %v5048_v6, 5  ;;  %v4165_v0 = vpop.f32.mrf.mxu0  ;;  %v5054_v15 = vrot.slane %v5052_v61, 4 }
 0x357   : > { %v5060_v8 = vrot.slane %v5058_v10, 5  ;;  %v5087_v16 = vshrl.u32 %v10758_v55, 16  ;;  %v4886_v9 = vld [vmem:[#allocation4 + $0x30] sm:$0xf]  ;;  %v4527_v19 = vshrl.u32 %v8757_v42, 16  ;;  %v4530_v20 = vshll.u32 %v8757_v42, 16 }
 0x358   : > { %v8755_v18 = vpack.c.bf16 %v4265_v56, %v4265_v56  ;;  %v4268_v22 = vmax.f32 %v4174_v62, 0.0  ;;  %v4951_v24 = vld [vmem:[#allocation4 + $0x24] sm:$0xf]  ;;  %4918 = vst.msk [vmem:[#allocation5 + $0x20] sm:$0xf] %vm4289_vm12, %v4886_v9  ;;  %v5037_v27 = vsel %vm9290_vm10, %v5032_v12, %v5036_v3  ;;  %v5051_v28 = vsel %vm9290_vm10, %v5046_v38, %v5050_v13 }
 0x359   : > { %v4166_v29 = vadd.f32 %v10694_v54, %v4165_v0  ;;  %v5055_v32 = vor.u32 %v5054_v15, %v5050_v13  ;;  %v4884_v48 = vld [vmem:[#allocation4 + $0x24] sm:$0xf]  ;;  %v4529_v34 = vrot.slane %v4527_v19, 7  ;;  %5380 = vrot.lane.b32.xlu1 %v5037_v27, %s9060_s11  ;;  %5382 = vrot.lane.b32.xlu0 %v5051_v28, %s9060_s11  ;;  %v5063_v40 = vshrl.u32 %v4951_v24, 16 }
 0x35a   : > { %v4510_v49 = vshrl.u32 %v8755_v18, 16  ;;  %v4513_v36 = vshll.u32 %v8755_v18, 16  ;;  %v8758_v11 = vpack.c.bf16 %v4268_v22, %v4268_v22  ;;  %4916 = vst.msk [vmem:[#allocation5 + $0x18] sm:$0xf] %vm4289_vm12, %v4884_v48  ;;  %v5066_v31 = vshll.u32 %v4951_v24, 16 }
 0x35b   : > { %v4266_v39 = vmax.f32 %v4166_v29, 0.0  ;;  %v5056_v30 = vrot.slane %v5055_v32, 4  ;;  %v4532_v44 = vor.u32 %v4530_v20, %v4529_v34  ;;  %v4533_v45 = vrot.slane %v4529_v34, 4  ;;  %v4887_v7 = vld [vmem:[#allocation4 + $0x34] sm:$0xf] }
 0x35c   : > { %v4512_v25 = vrot.slane %v4510_v49, 7  ;;  %v4535_v46 = vshrl.u32 %v8758_v11, 16  ;;  %v4538_v50 = vshll.u32 %v8758_v11, 16  ;;  %v4952_v53 = vld [vmem:[#allocation4 + $0x28] sm:$0xf]  ;;  %v5065_v57 = vrot.slane %v5063_v40, 4 }
 0x35d   : > { %v8756_v41 = vpack.c.bf16 %v4266_v39, %v4266_v39  ;;  %v5061_v38 = vsel %vm9290_vm10, %v5056_v30, %v5060_v8  ;;  %v4802_v14 = vsel %vm10702_vm15, %v4532_v44, %v4801_v37  ;;  %v4953_v47 = vld [vmem:[#allocation4 + $0x2c] sm:$0x1]  ;;  %v5068_v3 = vrot.slane %v5066_v31, 5  ;;  %v4885_v33 = vld [vmem:[#allocation4 + $0x28] sm:$0xf] }
 0x35e   : > { %v4515_v58 = vor.u32 %v4513_v36, %v4512_v25  ;;  %v4516_v59 = vrot.slane %v4512_v25, 4  ;;  %v4537_v60 = vrot.slane %v4535_v46, 7  ;;  %5384 = vrot.lane.b32.xlu1 %v5061_v38, %s9060_s11  ;;  %4803 = vst [vmem:[#allocation4 + $0x48] sm:$0xf] %v4802_v14  ;;  %v5072_v4 = vshll.u32 %v4952_v53, 16 }
 0x35f   : > { %v4518_v2 = vshrl.u32 %v8756_v41, 16  ;;  %v4521_v43 = vshll.u32 %v8756_v41, 16  ;;  %v5076_v21 = vshrl.u32 %v4952_v53, 16  ;;  %4917 = vst.msk [vmem:[#allocation5 + $0x1c] sm:$0xf] %vm4289_vm12, %v4885_v33  ;;  %v5069_v42 = vor.u32 %v5068_v3, %v5065_v57 }
 0x360   : > { %v4795_v5 = vsel %vm10702_vm15, %v4515_v58, %v4794_v26  ;;  %v4540_v6 = vor.u32 %v4538_v50, %v4537_v60  ;;  %v4542_v52 = vrot.slane %v4537_v60, 4  ;;  %v8840_v10 = vpop.f32.mrf.mxu0  ;;  %v5074_v56 = vrot.slane %v5072_v4, 5  ;;  %4919 = vst.msk [vmem:[#allocation5 + $0x24] sm:$0xf] %vm4289_vm12, %v4887_v7  ;;  %v4798_v0 = vld [vmem:[#allocation4 + $0x44] sm:$0x1] }
 0x361   : > { %4796 = vst [vmem:[#allocation4 + $0x3c] sm:$0xf] %v4795_v5  ;;  %v4520_v61 = vrot.slane %v4518_v2, 7  ;;  %v5082_v62 = vshll.u32 %v4953_v47, 16  ;;  %v4187_v15 = vadd.f32 %v8840_v10, %v10694_v54  ;;  %v5078_v8 = vrot.slane %v5076_v21, 4 }
 0x362   : > { %v4541_v12 = vsel %vm9277_vm8, %v4533_v45, %v4540_v6  ;;  %v4806_v13 = vsel %vm10710_vm6, %v4542_v52, %v4805_v63  ;;  %v5070_v20 = vrot.slane %v5069_v42, 4  ;;  %v4178_v18 = vpop.f32.mrf.mxu0  ;;  %v4955_v29 = vld [vmem:[#allocation4 + $0x34] sm:$0xf]  ;;  %v5089_v32 = vrot.slane %v5087_v16, 4  ;;  %v4956_v48 = vld [vmem:[#allocation4 + $0x38] sm:$0x1] }
 0x363   : > { %4804 = vst.msk [vmem:[#allocation4 + $0x4c] sm:$0xf] %vm4289_vm12, %v4541_v12  ;;  %4807 = vst [vmem:[#allocation4 + $0x50] sm:$0x1] %v4806_v13  ;;  %v4523_v9 = vor.u32 %v4521_v43, %v4520_v61  ;;  %v4525_v19 = vrot.slane %v4520_v61, 4  ;;  %v5084_v22 = vrot.slane %v5082_v62, 5  ;;  %v4179_v27 = vadd.f32 %v10694_v54, %v4178_v18 }
 0x364   : > { %v4271_v24 = vmax.f32 %v4187_v15, 0.0  ;;  %v5079_v28 = vor.u32 %v5078_v8, %v5074_v56  ;;  %v5075_v36 = vsel %vm9290_vm10, %v5070_v20, %v5074_v56  ;;  %v8841_v11 = vpop.f32.mrf.mxu0  ;;  %v5090_v37 = vshll.u32 %v10758_v55, 16  ;;  %v4815_v43 = vld [vmem:[#allocation4 + $0x60] sm:$0xf]  ;;  %v4808_v10 = vld [vmem:[#allocation4 + $0x54] sm:$0xf] }
 0x365   : > { %v4524_v34 = vsel %vm9277_vm8, %v4516_v59, %v4523_v9  ;;  %v4799_v49 = vsel %vm10710_vm6, %v4525_v19, %v4798_v0  ;;  %5386 = vrot.lane.b32.xlu0 %v5075_v36, %s9060_s11  ;;  %v4269_v16 = vmax.f32 %v4179_v27, 0.0  ;;  %v4190_v30 = vadd.f32 %v8841_v11, %v10694_v54  ;;  %v4890_v26 = vld [vmem:[#allocation4 + $0x48] sm:$0xf] }
 0x366   : > { %4797 = vst.msk [vmem:[#allocation4 + $0x40] sm:$0xf] %vm4289_vm12, %v4524_v34  ;;  %4800 = vst [vmem:[#allocation4 + $0x44] sm:$0x1] %v4799_v49  ;;  %v8761_v39 = vpack.c.bf16 %v4271_v24, %v4271_v24  ;;  %v5080_v40 = vrot.slane %v5079_v28, 4  ;;  %v5092_v31 = vrot.slane %v5090_v37, 5  ;;  %v4181_v25 = vpop.f32.mrf.mxu0 }
 0x367   : > { %v5096_v44 = vshll.u32 %v4955_v29, 16  ;;  %v5100_v45 = vshrl.u32 %v4955_v29, 16  ;;  %v5106_v46 = vshll.u32 %v4956_v48, 16  ;;  %v8759_v38 = vpack.c.bf16 %v4269_v16, %v4269_v16  ;;  %4922 = vst.msk [vmem:[#allocation5 + $0x30] sm:$0xf] %vm4289_vm12, %v4890_v26 }
 0x368   : > { %v4561_v50 = vshrl.u32 %v8761_v39, 16  ;;  %v4564_v41 = vshll.u32 %v8761_v39, 16  ;;  %v4272_v55 = vmax.f32 %v4190_v30, 0.0  ;;  %v5085_v53 = vsel %vm9290_vm10, %v5080_v40, %v5084_v22  ;;  %v4888_v59 = vld [vmem:[#allocation4 + $0x3c] sm:$0xf] }
 0x369   : > { %v5093_v57 = vor.u32 %v5092_v31, %v5089_v32  ;;  %v5098_v14 = vrot.slane %v5096_v44, 5  ;;  %v4182_v58 = vadd.f32 %v10694_v54, %v4181_v25  ;;  %v4544_v63 = vshrl.u32 %v8759_v38, 16  ;;  %5388 = vrot.lane.b32.xlu1 %v5085_v53, %s9060_s11  ;;  %4920 = vst.msk [vmem:[#allocation5 + $0x28] sm:$0xf] %vm4289_vm12, %v4888_v59  ;;  %v4957_v61 = vld [vmem:[#allocation4 + $0x3c] sm:$0xf] }
 0x36a   : > { %v4563_v60 = vrot.slane %v4561_v50, 7  ;;  %v4547_v47 = vshll.u32 %v8759_v38, 16  ;;  %v8762_v2 = vpack.c.bf16 %v4272_v55, %v4272_v55  ;;  %v5102_v33 = vrot.slane %v5100_v45, 4  ;;  %v4819_v19 = vld [vmem:[#allocation4 + $0x68] sm:$0x1] }
 0x36b   : > { %v5094_v3 = vrot.slane %v5093_v57, 4  ;;  %v4270_v4 = vmax.f32 %v4182_v58, 0.0  ;;  %v5108_v5 = vrot.slane %v5106_v46, 5  ;;  %v4546_v21 = vrot.slane %v4544_v63, 7  ;;  %v4891_v34 = vld [vmem:[#allocation4 + $0x4c] sm:$0xf] }
 0x36c   : > { %v4566_v6 = vor.u32 %v4564_v41, %v4563_v60  ;;  %v4567_v52 = vrot.slane %v4563_v60, 4  ;;  %v4569_v7 = vshrl.u32 %v8762_v2, 16  ;;  %v4572_v42 = vshll.u32 %v8762_v2, 16  ;;  %4923 = vst.msk [vmem:[#allocation5 + $0x34] sm:$0xf] %vm4289_vm12, %v4891_v34 }
 0x36d   : > { %v5099_v56 = vsel %vm9290_vm10, %v5094_v3, %v5098_v14  ;;  %v8760_v62 = vpack.c.bf16 %v4270_v4, %v4270_v4  ;;  %v5103_v12 = vor.u32 %v5102_v33, %v5098_v14  ;;  %v4549_v0 = vor.u32 %v4547_v47, %v4546_v21  ;;  %v4958_v9 = vld [vmem:[#allocation4 + $0x40] sm:$0xf]  ;;  %v4959_v16 = vld [vmem:[#allocation4 + $0x44] sm:$0x1]  ;;  %v4812_v31 = vld [vmem:[#allocation4 + $0x5c] sm:$0x1] }
 0x36e   : > { %v4816_v13 = vsel %vm10702_vm15, %v4566_v6, %v4815_v43  ;;  %v4550_v15 = vrot.slane %v4546_v21, 4  ;;  %v4571_v8 = vrot.slane %v4569_v7, 7  ;;  %5390 = vrot.lane.b32.xlu0 %v5099_v56, %s9060_s11  ;;  %v5111_v24 = vshrl.u32 %v4957_v61, 16  ;;  %v4889_v48 = vld [vmem:[#allocation4 + $0x40] sm:$0xf] }
 0x36f   : > { %4817 = vst [vmem:[#allocation4 + $0x60] sm:$0xf] %v4816_v13  ;;  %v4552_v20 = vshrl.u32 %v8760_v62, 16  ;;  %v4555_v18 = vshll.u32 %v8760_v62, 16  ;;  %v5104_v22 = vrot.slane %v5103_v12, 4  ;;  %v4809_v27 = vsel %vm10702_vm15, %v4549_v0, %v4808_v10 }
 0x370   : > { %v4574_v28 = vor.u32 %v4572_v42, %v4571_v8  ;;  %v4576_v29 = vrot.slane %v4571_v8, 4  ;;  %v5114_v32 = vshll.u32 %v4957_v61, 16  ;;  %4810 = vst [vmem:[#allocation4 + $0x54] sm:$0xf] %v4809_v27  ;;  %v8844_v11 = vpop.f32.mrf.mxu0  ;;  %v5113_v37 = vrot.slane %v5111_v24, 4 }
 0x371   : > { %v4554_v49 = vrot.slane %v4552_v20, 7  ;;  %v5109_v36 = vsel %vm9290_vm10, %v5104_v22, %v5108_v5  ;;  %v5120_v39 = vshll.u32 %v4958_v9, 16  ;;  %4921 = vst.msk [vmem:[#allocation5 + $0x2c] sm:$0xf] %vm4289_vm12, %v4889_v48  ;;  %v4203_v44 = vadd.f32 %v8844_v11, %v10694_v54  ;;  %v4960_v25 = vld [vmem:[#allocation4 + $0x48] sm:$0xf] }
 0x372   : > { %v4575_v30 = vsel %vm9277_vm8, %v4567_v52, %v4574_v28  ;;  %v4820_v40 = vsel %vm10710_vm6, %v4576_v29, %v4819_v19  ;;  %5392 = vrot.lane.b32.xlu1 %v5109_v36, %s9060_s11  ;;  %v5116_v45 = vrot.slane %v5114_v32, 5  ;;  %v5124_v41 = vshrl.u32 %v4958_v9, 16  ;;  %v4194_v38 = vpop.f32.mrf.mxu0  ;;  %v4961_v33 = vld [vmem:[#allocation4 + $0x4c] sm:$0xf]  ;;  %v4829_v22 = vld [vmem:[#allocation4 + $0x78] sm:$0xf] }
 0x373   : > { %4818 = vst.msk [vmem:[#allocation4 + $0x64] sm:$0xf] %vm4289_vm12, %v4575_v30  ;;  %4821 = vst [vmem:[#allocation4 + $0x68] sm:$0x1] %v4820_v40  ;;  %v4557_v46 = vor.u32 %v4555_v18, %v4554_v49  ;;  %v4559_v26 = vrot.slane %v4554_v49, 4  ;;  %v5122_v50 = vrot.slane %v5120_v39, 5  ;;  %v4195_v57 = vadd.f32 %v10694_v54, %v4194_v38 }
 0x374   : > { %v4275_v55 = vmax.f32 %v4203_v44, 0.0  ;;  %v5117_v53 = vor.u32 %v5116_v45, %v5113_v37  ;;  %v5130_v14 = vshll.u32 %v4959_v16, 16  ;;  %v8845_v60 = vpop.f32.mrf.mxu0  ;;  %v5126_v63 = vrot.slane %v5124_v41, 4  ;;  %v4822_v24 = vld [vmem:[#allocation4 + $0x6c] sm:$0xf] }
 0x375   : > { %v4558_v58 = vsel %vm9277_vm8, %v4550_v15, %v4557_v46  ;;  %v4813_v59 = vsel %vm10710_vm6, %v4559_v26, %v4812_v31  ;;  %v5135_v47 = vshrl.u32 %v4960_v25, 16  ;;  %v4273_v3 = vmax.f32 %v4195_v57, 0.0  ;;  %v4962_v11 = vld [vmem:[#allocation4 + $0x50] sm:$0x1]  ;;  %v4833_v57 = vld [vmem:[#allocation4 + $0x80] sm:$0x1] }
 0x376   : > { %4811 = vst.msk [vmem:[#allocation4 + $0x58] sm:$0xf] %vm4289_vm12, %v4558_v58  ;;  %4814 = vst [vmem:[#allocation4 + $0x5c] sm:$0x1] %v4813_v59  ;;  %v8765_v2 = vpack.c.bf16 %v4275_v55, %v4275_v55  ;;  %v5118_v43 = vrot.slane %v5117_v53, 4  ;;  %v4206_v4 = vadd.f32 %v8845_v60, %v10694_v54  ;;  %v5127_v5 = vor.u32 %v5126_v63, %v5122_v50  ;;  %v4197_v15 = vpop.f32.mrf.mxu0 }
 0x377   : > { %v5132_v6 = vrot.slane %v5130_v14, 5  ;;  %v5137_v52 = vrot.slane %v5135_v47, 4  ;;  %v5138_v21 = vshll.u32 %v4960_v25, 16  ;;  %v4894_v7 = vld [vmem:[#allocation4 + $0x60] sm:$0xf]  ;;  %v8763_v56 = vpack.c.bf16 %v4273_v3, %v4273_v3 }
 0x378   : > { %v4595_v61 = vshrl.u32 %v8765_v2, 16  ;;  %v4598_v10 = vshll.u32 %v8765_v2, 16  ;;  %v5123_v42 = vsel %vm9290_vm10, %v5118_v43, %v5122_v50  ;;  %4926 = vst.msk [vmem:[#allocation5 + $0x40] sm:$0xf] %vm4289_vm12, %v4894_v7  ;;  %v4276_v62 = vmax.f32 %v4206_v4, 0.0 }
 0x379   : > { %5394 = vrot.lane.b32.xlu0 %v5123_v42, %s9060_s11  ;;  %v5128_v12 = vrot.slane %v5127_v5, 4  ;;  %v5140_v13 = vrot.slane %v5138_v21, 5  ;;  %v5144_v0 = vshll.u32 %v4961_v33, 16  ;;  %v4892_v8 = vld [vmem:[#allocation4 + $0x54] sm:$0xf]  ;;  %v4578_v19 = vshrl.u32 %v8763_v56, 16 }
 0x37a   : > { %v4597_v9 = vrot.slane %v4595_v61, 7  ;;  %v4581_v20 = vshll.u32 %v8763_v56, 16  ;;  %v5148_v18 = vshrl.u32 %v4961_v33, 16  ;;  %4924 = vst.msk [vmem:[#allocation5 + $0x38] sm:$0xf] %vm4289_vm12, %v4892_v8  ;;  %v8766_v27 = vpack.c.bf16 %v4276_v62, %v4276_v62 }
 0x37b   : > { %v5133_v28 = vsel %vm9290_vm10, %v5128_v12, %v5132_v6  ;;  %v5141_v29 = vor.u32 %v5140_v13, %v5137_v52  ;;  %v5146_v32 = vrot.slane %v5144_v0, 5  ;;  %v10836_v49 = vrot.slane %v4578_v19, 7  ;;  %v4895_v37 = vld [vmem:[#allocation4 + $0x64] sm:$0xf]  ;;  %v4963_v31 = vld [vmem:[#allocation4 + $0x54] sm:$0xf] }
 0x37c   : > { %v4600_v48 = vor.u32 %v4598_v10, %v4597_v9  ;;  %v4601_v34 = vrot.slane %v4597_v9, 4  ;;  %5396 = vrot.lane.b32.xlu1 %v5133_v28, %s9060_s11  ;;  %v4198_v36 = vadd.f32 %v10694_v54, %v4197_v15  ;;  %v4603_v39 = vshrl.u32 %v8766_v27, 16  ;;  %4927 = vst.msk [vmem:[#allocation5 + $0x44] sm:$0xf] %vm4289_vm12, %v4895_v37  ;;  %v10850_v60 = vld [vmem:[#allocation4 + $0x60] sm:$0xf] }
 0x37d   : > { %v4606_v16 = vshll.u32 %v8766_v27, 16  ;;  %v5142_v30 = vrot.slane %v5141_v29, 4  ;;  %v5150_v40 = vrot.slane %v5148_v18, 4  ;;  %v4583_v45 = vor.u32 %v4581_v20, %v10836_v49  ;;  %v4893_v55 = vld [vmem:[#allocation4 + $0x58] sm:$0xf] }
 0x37e   : > { %v4830_v44 = vsel %vm10702_vm15, %v4600_v48, %v4829_v22  ;;  %v4584_v25 = vrot.slane %v10836_v49, 4  ;;  %v4274_v46 = vmax.f32 %v4198_v36, 0.0  ;;  %v4605_v26 = vrot.slane %v4603_v39, 7  ;;  %4925 = vst.msk [vmem:[#allocation5 + $0x3c] sm:$0xf] %vm4289_vm12, %v4893_v55 }
 0x37f   : > { %4831 = vst [vmem:[#allocation4 + $0x78] sm:$0xf] %v4830_v44  ;;  %v5147_v50 = vsel %vm9290_vm10, %v5142_v30, %v5146_v32  ;;  %v5151_v41 = vor.u32 %v5150_v40, %v5146_v32  ;;  %v5154_v38 = vshll.u32 %v4962_v11, 16  ;;  %v4823_v53 = vsel %vm10702_vm15, %v4583_v45, %v4822_v24  ;;  %v4964_v4 = vld [vmem:[#allocation4 + $0x58] sm:$0xf] }
 0x380   : > { %5398 = vrot.lane.b32.xlu0 %v5147_v50, %s9060_s11  ;;  %v8764_v14 = vpack.c.bf16 %v4274_v46, %v4274_v46  ;;  %v5159_v58 = vshrl.u32 %v4963_v31, 16  ;;  %v5162_v59 = vshll.u32 %v4963_v31, 16  ;;  %4824 = vst [vmem:[#allocation4 + $0x6c] sm:$0xf] %v4823_v53  ;;  %v4608_v63 = vor.u32 %v4606_v16, %v4605_v26  ;;  %v8848_v3 = vpop.f32.mrf.mxu0  ;;  %v4965_v21 = vld [vmem:[#allocation4 + $0x5c] sm:$0x1] }
 0x381   : > { %v4610_v47 = vrot.slane %v4605_v26, 4  ;;  %v5152_v2 = vrot.slane %v5151_v41, 4  ;;  %v5156_v43 = vrot.slane %v5154_v38, 5  ;;  %v4219_v6 = vadd.f32 %v8848_v3, %v10694_v54  ;;  %v4826_v15 = vld [vmem:[#allocation4 + $0x74] sm:$0x1] }
 0x382   : > { %v4586_v33 = vshrl.u32 %v8764_v14, 16  ;;  %v4589_v5 = vshll.u32 %v8764_v14, 16  ;;  %v5161_v52 = vrot.slane %v5159_v58, 4  ;;  %v4609_v7 = vsel %vm9277_vm8, %v4601_v34, %v4608_v63  ;;  %v4210_v56 = vpop.f32.mrf.mxu0  ;;  %v4967_v44 = vld [vmem:[#allocation4 + $0x64] sm:$0xf] }
 0x383   : > { %v4834_v61 = vsel %vm10710_vm6, %v4610_v47, %v4833_v57  ;;  %v5157_v10 = vsel %vm9290_vm10, %v5152_v2, %v5156_v43  ;;  %v5164_v42 = vrot.slane %v5162_v59, 5  ;;  %4832 = vst.msk [vmem:[#allocation4 + $0x7c] sm:$0xf] %vm4289_vm12, %v4609_v7  ;;  %v4279_v12 = vmax.f32 %v4219_v6, 0.0  ;;  %v4843_v41 = vld [vmem:[#allocation4 + $0x90] sm:$0xf] }
 0x384   : > { %4835 = vst [vmem:[#allocation4 + $0x80] sm:$0x1] %v4834_v61  ;;  %v4588_v62 = vrot.slane %v4586_v33, 7  ;;  %5400 = vrot.lane.b32.xlu1 %v5157_v10, %s9060_s11  ;;  %v5168_v13 = vshll.u32 %v4964_v4, 16  ;;  %v5172_v0 = vshrl.u32 %v4964_v4, 16  ;;  %v4211_v9 = vadd.f32 %v10694_v54, %v4210_v56  ;;  %v8849_v19 = vpop.f32.mrf.mxu0 }
 0x385   : > { %v5165_v8 = vor.u32 %v5164_v42, %v5161_v52  ;;  %v5178_v20 = vshll.u32 %v4965_v21, 16  ;;  %v5183_v18 = vshrl.u32 %v10850_v60, 16  ;;  %v8769_v27 = vpack.c.bf16 %v4279_v12, %v4279_v12  ;;  %v4968_v2 = vld [vmem:[#allocation4 + $0x68] sm:$0x1]  ;;  %v4836_v6 = vld [vmem:[#allocation4 + $0x84] sm:$0xf] }
 0x386   : > { %v4591_v22 = vor.u32 %v4589_v5, %v4588_v62  ;;  %v4593_v24 = vrot.slane %v4588_v62, 4  ;;  %v5170_v28 = vrot.slane %v5168_v13, 5  ;;  %v4277_v32 = vmax.f32 %v4211_v9, 0.0  ;;  %v4898_v49 = vld [vmem:[#allocation4 + $0x78] sm:$0xf]  ;;  %v4213_v47 = vpop.f32.mrf.mxu0 }
 0x387   : > { %v5166_v29 = vrot.slane %v5165_v8, 4  ;;  %v4222_v48 = vadd.f32 %v8849_v19, %v10694_v54  ;;  %v5174_v34 = vrot.slane %v5172_v0, 4  ;;  %v4629_v37 = vshrl.u32 %v8769_v27, 16  ;;  %4930 = vst.msk [vmem:[#allocation5 + $0x50] sm:$0xf] %vm4289_vm12, %v4898_v49 }
 0x388   : > { %v4592_v36 = vsel %vm9277_vm8, %v4584_v25, %v4591_v22  ;;  %v4827_v11 = vsel %vm10710_vm6, %v4593_v24, %v4826_v15  ;;  %v4632_v39 = vshll.u32 %v8769_v27, 16  ;;  %v8767_v30 = vpack.c.bf16 %v4277_v32, %v4277_v32  ;;  %v4896_v45 = vld [vmem:[#allocation4 + $0x6c] sm:$0xf]  ;;  %v4847_v12 = vld [vmem:[#allocation4 + $0x98] sm:$0x1] }
 0x389   : > { %4825 = vst.msk [vmem:[#allocation4 + $0x70] sm:$0xf] %vm4289_vm12, %v4592_v36  ;;  %4828 = vst [vmem:[#allocation4 + $0x74] sm:$0x1] %v4827_v11  ;;  %v5171_v16 = vsel %vm9290_vm10, %v5166_v29, %v5170_v28  ;;  %v4280_v40 = vmax.f32 %v4222_v48, 0.0  ;;  %v5175_v31 = vor.u32 %v5174_v34, %v5170_v28  ;;  %v4631_v46 = vrot.slane %v4629_v37, 7 }
 0x38a   : > { %5402 = vrot.lane.b32.xlu0 %v5171_v16, %s9060_s11  ;;  %v5180_v25 = vrot.slane %v5178_v20, 5  ;;  %v5185_v26 = vrot.slane %v5183_v18, 4  ;;  %v5186_v50 = vshll.u32 %v10850_v60, 16  ;;  %4928 = vst.msk [vmem:[#allocation5 + $0x48] sm:$0xf] %vm4289_vm12, %v4896_v45  ;;  %v4612_v38 = vshrl.u32 %v8767_v30, 16 }
 0x38b   : > { %v4615_v55 = vshll.u32 %v8767_v30, 16  ;;  %v8770_v53 = vpack.c.bf16 %v4280_v40, %v4280_v40  ;;  %v5176_v57 = vrot.slane %v5175_v31, 4  ;;  %v4634_v14 = vor.u32 %v4632_v39, %v4631_v46  ;;  %v4969_v33 = vld [vmem:[#allocation4 + $0x6c] sm:$0xf]  ;;  %v4899_v61 = vld [vmem:[#allocation4 + $0x7c] sm:$0xf] }
 0x38c   : > { %v4635_v58 = vrot.slane %v4631_v46, 4  ;;  %v5188_v59 = vrot.slane %v5186_v50, 5  ;;  %v5192_v63 = vshll.u32 %v4967_v44, 16  ;;  %v10876_v43 = vrot.slane %v4612_v38, 7  ;;  %4931 = vst.msk [vmem:[#allocation5 + $0x54] sm:$0xf] %vm4289_vm12, %v4899_v61 }
 0x38d   : > { %v4637_v3 = vshrl.u32 %v8770_v53, 16  ;;  %v4640_v4 = vshll.u32 %v8770_v53, 16  ;;  %v5181_v60 = vsel %vm9290_vm10, %v5176_v57, %v5180_v25  ;;  %v4844_v5 = vsel %vm10702_vm15, %v4634_v14, %v4843_v41  ;;  %v10894_v29 = vld [vmem:[%s11968_s2] ss:$0 sm:$0xff] }
 0x38e   : > { %5404 = vrot.lane.b32.xlu1 %v5181_v60, %s9060_s11  ;;  %v5189_v52 = vor.u32 %v5188_v59, %v5185_v26  ;;  %v5194_v21 = vrot.slane %v5192_v63, 5  ;;  %v5196_v7 = vshrl.u32 %v4967_v44, 16  ;;  %4845 = vst [vmem:[#allocation4 + $0x90] sm:$0xf] %v4844_v5  ;;  %v4617_v10 = vor.u32 %v4615_v55, %v10876_v43  ;;  %v4840_v63 = vld [vmem:[#allocation4 + $0x8c] sm:$0x1] }
 0x38f   : > { %v4618_v42 = vrot.slane %v10876_v43, 4  ;;  %v4639_v56 = vrot.slane %v4637_v3, 7  ;;  %v4214_v62 = vadd.f32 %v10694_v54, %v4213_v47  ;;  %v5202_v15 = vshll.u32 %v4968_v2, 16 }
 0x390   : > { %v5190_v13 = vrot.slane %v5189_v52, 4  ;;  %v5198_v0 = vrot.slane %v5196_v7, 4  ;;  %v5207_v8 = vshrl.u32 %v4969_v33, 16  ;;  %v4837_v9 = vsel %vm10702_vm15, %v4617_v10, %v4836_v6  ;;  %v8852_v22 = vpop.f32.mrf.mxu0  ;;  %v4970_v24 = vld [vmem:[#allocation4 + $0x70] sm:$0xf] }
 0x391   : > { %v4642_v19 = vor.u32 %v4640_v4, %v4639_v56  ;;  %v4644_v20 = vrot.slane %v4639_v56, 4  ;;  %v4278_v18 = vmax.f32 %v4214_v62, 0.0  ;;  %4838 = vst [vmem:[#allocation4 + $0x84] sm:$0xf] %v4837_v9  ;;  %v5204_v28 = vrot.slane %v5202_v15, 5 }
 0x392   : > { %v5195_v27 = vsel %vm9290_vm10, %v5190_v13, %v5194_v21  ;;  %v5199_v54 = vor.u32 %v5198_v0, %v5194_v21  ;;  %v4235_v32 = vadd.f32 %v10894_v29, %v8852_v22  ;;  %v4897_v48 = vld [vmem:[#allocation4 + $0x70] sm:$0xf]  ;;  %v5209_v11 = vrot.slane %v5207_v8, 4  ;;  %v4226_v37 = vpop.f32.mrf.mxu0  ;;  %v4971_v26 = vld [vmem:[#allocation4 + $0x74] sm:$0x1] }
 0x393   : > { %v4643_v34 = vsel %vm9277_vm8, %v4635_v58, %v4642_v19  ;;  %v4848_v49 = vsel %vm10710_vm6, %v4644_v20, %v4847_v12  ;;  %5406 = vrot.lane.b32.xlu0 %v5195_v27, %s9060_s11  ;;  %v8768_v36 = vpack.c.bf16 %v4278_v18, %v4278_v18  ;;  %4929 = vst.msk [vmem:[#allocation5 + $0x4c] sm:$0xf] %vm4289_vm12, %v4897_v48  ;;  %v5210_v30 = vshll.u32 %v4969_v33, 16  ;;  %v4972_v52 = vld [vmem:[#allocation4 + $0x78] sm:$0xf] }
 0x394   : > { %4846 = vst.msk [vmem:[#allocation4 + $0x94] sm:$0xf] %vm4289_vm12, %v4643_v34  ;;  %4849 = vst [vmem:[#allocation4 + $0x98] sm:$0x1] %v4848_v49  ;;  %v5200_v39 = vrot.slane %v5199_v54, 4  ;;  %v4283_v16 = vmax.f32 %v4235_v32, 0.0  ;;  %v4227_v46 = vadd.f32 %v10894_v29, %v4226_v37  ;;  %v8853_v25 = vpop.f32.mrf.mxu0 }
 0x395   : > { %v5216_v40 = vshll.u32 %v4970_v24, 16  ;;  %v4620_v31 = vshrl.u32 %v8768_v36, 16  ;;  %v4623_v44 = vshll.u32 %v8768_v36, 16  ;;  %v5220_v45 = vshrl.u32 %v4970_v24, 16  ;;  %v4902_v59 = vld [vmem:[#allocation4 + $0x90] sm:$0xf] }
 0x396   : > { %v5205_v50 = vsel %vm9290_vm10, %v5200_v39, %v5204_v28  ;;  %v8773_v41 = vpack.c.bf16 %v4283_v16, %v4283_v16  ;;  %v5212_v38 = vrot.slane %v5210_v30, 5  ;;  %v4281_v57 = vmax.f32 %v4227_v46, 0.0  ;;  %4934 = vst.msk [vmem:[#allocation5 + $0x60] sm:$0xf] %vm4289_vm12, %v4902_v59  ;;  %v4857_v13 = vld [vmem:[#allocation4 + $0xa8] sm:$0xf]  ;;  %v4229_v36 = vpop.f32.mrf.mxu0 }
 0x397   : > { %v5218_v55 = vrot.slane %v5216_v40, 5  ;;  %v4622_v53 = vrot.slane %v4620_v31, 7  ;;  %5408 = vrot.lane.b32.xlu1 %v5205_v50, %s9060_s11  ;;  %v4238_v14 = vadd.f32 %v10894_v29, %v8853_v25  ;;  %v5222_v58 = vrot.slane %v5220_v45, 4  ;;  %v4973_v8 = vld [vmem:[#allocation4 + $0x7c] sm:$0xf] }
 0x398   : > { %v4663_v47 = vshrl.u32 %v8773_v41, 16  ;;  %v4666_v2 = vshll.u32 %v8773_v41, 16  ;;  %v5213_v3 = vor.u32 %v5212_v38, %v5209_v11  ;;  %v5226_v4 = vshll.u32 %v4971_v26, 16  ;;  %v4900_v56 = vld [vmem:[#allocation4 + $0x84] sm:$0xf] }
 0x399   : > { %v4625_v60 = vor.u32 %v4623_v44, %v4622_v53  ;;  %v4627_v33 = vrot.slane %v4622_v53, 4  ;;  %v8771_v5 = vpack.c.bf16 %v4281_v57, %v4281_v57  ;;  %v4284_v6 = vmax.f32 %v4238_v14, 0.0  ;;  %4932 = vst.msk [vmem:[#allocation5 + $0x58] sm:$0xf] %vm4289_vm12, %v4900_v56  ;;  %v4850_v20 = vld [vmem:[#allocation4 + $0x9c] sm:$0xf] }
 0x39a   : > { %v4665_v21 = vrot.slane %v4663_v47, 7  ;;  %v5214_v7 = vrot.slane %v5213_v3, 4  ;;  %v5223_v61 = vor.u32 %v5222_v58, %v5218_v55  ;;  %v5228_v10 = vrot.slane %v5226_v4, 5  ;;  %v4975_v11 = vld [vmem:[#allocation4 + $0x84] sm:$0xf] }
 0x39b   : > { %v4626_v62 = vsel %vm9277_vm8, %v4618_v42, %v4625_v60  ;;  %v4841_v12 = vsel %vm10710_vm6, %v4627_v33, %v4840_v63  ;;  %v4646_v0 = vshrl.u32 %v8771_v5, 16  ;;  %v4649_v15 = vshll.u32 %v8771_v5, 16  ;;  %v4974_v42 = vld [vmem:[#allocation4 + $0x80] sm:$0x1]  ;;  %v4903_v28 = vld [vmem:[#allocation4 + $0x94] sm:$0xf] }
 0x39c   : > { %4839 = vst.msk [vmem:[#allocation4 + $0x88] sm:$0xf] %vm4289_vm12, %v4626_v62  ;;  %4842 = vst [vmem:[#allocation4 + $0x8c] sm:$0x1] %v4841_v12  ;;  %v4668_v9 = vor.u32 %v4666_v2, %v4665_v21  ;;  %v4669_v19 = vrot.slane %v4665_v21, 4  ;;  %v5219_v43 = vsel %vm9290_vm10, %v5214_v7, %v5218_v55  ;;  %v8774_v18 = vpack.c.bf16 %v4284_v6, %v4284_v6 }
 0x39d   : > { %5410 = vrot.lane.b32.xlu0 %v5219_v43, %s9060_s11  ;;  %v10921_v22 = vrot.slane %v4646_v0, 7  ;;  %v5224_v24 = vrot.slane %v5223_v61, 4  ;;  %v5231_v27 = vshrl.u32 %v4972_v52, 16  ;;  %v5234_v54 = vshll.u32 %v4972_v52, 16  ;;  %4935 = vst.msk [vmem:[#allocation5 + $0x64] sm:$0xf] %vm4289_vm12, %v4903_v28 }
 0x39e   : > { %v4858_v32 = vsel %vm10702_vm15, %v4668_v9, %v4857_v13  ;;  %v4671_v48 = vshrl.u32 %v8774_v18, 16  ;;  %v4674_v34 = vshll.u32 %v8774_v18, 16  ;;  %v5240_v49 = vshll.u32 %v4973_v8, 16  ;;  %v4861_v25 = vld [vmem:[#allocation4 + $0xb0] sm:$0x1] }
 0x39f   : > { %4859 = vst [vmem:[#allocation4 + $0xa8] sm:$0xf] %v4858_v32  ;;  %v4651_v37 = vor.u32 %v4649_v15, %v10921_v22  ;;  %v4652_v39 = vrot.slane %v10921_v22, 4  ;;  %v5229_v16 = vsel %vm9290_vm10, %v5224_v24, %v5228_v10  ;;  %v5233_v30 = vrot.slane %v5231_v27, 4 }
 0x3a0   : > { %v4673_v40 = vrot.slane %v4671_v48, 7  ;;  %5412 = vrot.lane.b32.xlu1 %v5229_v16, %s9060_s11  ;;  %v5236_v31 = vrot.slane %v5234_v54, 5  ;;  %v5242_v44 = vrot.slane %v5240_v49, 5  ;;  %v5244_v45 = vshrl.u32 %v4973_v8, 16  ;;  %v8856_v41 = vpop.f32.mrf.mxu0  ;;  %v4854_v48 = vld [vmem:[#allocation4 + $0xa4] sm:$0x1] }
 0x3a1   : > { %v4851_v46 = vsel %vm10702_vm15, %v4651_v37, %v4850_v20  ;;  %v4230_v26 = vadd.f32 %v10894_v29, %v4229_v36  ;;  %v5250_v50 = vshll.u32 %v4974_v42, 16  ;;  %v5255_v38 = vshrl.u32 %v4975_v11, 16 }
 0x3a2   : > { %4852 = vst [vmem:[#allocation4 + $0x9c] sm:$0xf] %v4851_v46  ;;  %v4676_v55 = vor.u32 %v4674_v34, %v4673_v40  ;;  %v4678_v53 = vrot.slane %v4673_v40, 4  ;;  %v5237_v57 = vor.u32 %v5236_v31, %v5233_v30  ;;  %v5246_v14 = vrot.slane %v5244_v45, 4  ;;  %v4242_v3 = vpop.f32.mrf.mxu0 }
 0x3a3   : > { %v4282_v58 = vmax.f32 %v4230_v26, 0.0  ;;  %v5252_v59 = vrot.slane %v5250_v50, 5  ;;  %v4251_v63 = vadd.f32 %v10894_v29, %v8856_v41  ;;  %v4976_v47 = vld [vmem:[#allocation4 + $0x88] sm:$0xf]  ;;  %v5257_v2 = vrot.slane %v5255_v38, 4 }
 0x3a4   : > { %v4677_v4 = vsel %vm9277_vm8, %v4669_v19, %v4676_v55  ;;  %v4862_v60 = vsel %vm10710_vm6, %v4678_v53, %v4861_v25  ;;  %v5238_v33 = vrot.slane %v5237_v57, 4  ;;  %v5247_v5 = vor.u32 %v5246_v14, %v5242_v44  ;;  %v8857_v61 = vpop.f32.mrf.mxu0  ;;  %v4977_v13 = vld [vmem:[#allocation4 + $0x8c] sm:$0x1]  ;;  %v4901_v19 = vld [vmem:[#allocation4 + $0x88] sm:$0xf] }
 0x3a5   : > { %4860 = vst.msk [vmem:[#allocation4 + $0xac] sm:$0xf] %vm4289_vm12, %v4677_v4  ;;  %4863 = vst [vmem:[#allocation4 + $0xb0] sm:$0x1] %v4862_v60  ;;  %v8772_v6 = vpack.c.bf16 %v4282_v58, %v4282_v58  ;;  %v4287_v52 = vmax.f32 %v4251_v63, 0.0  ;;  %v5258_v21 = vshll.u32 %v4975_v11, 16  ;;  %v4243_v12 = vadd.f32 %v10894_v29, %v4242_v3 }
 0x3a6   : > { %v5264_v7 = vshll.u32 %v4976_v47, 16  ;;  %v5243_v10 = vsel %vm9290_vm10, %v5238_v33, %v5242_v44  ;;  %v5248_v56 = vrot.slane %v5247_v5, 4  ;;  %v5268_v62 = vshrl.u32 %v4976_v47, 16  ;;  %4933 = vst.msk [vmem:[#allocation5 + $0x5c] sm:$0xf] %vm4289_vm12, %v4901_v19 }
 0x3a7   : > { %5414 = vrot.lane.b32.xlu0 %v5243_v10, %s9060_s11  ;;  %v4654_v0 = vshrl.u32 %v8772_v6, 16  ;;  %v4657_v15 = vshll.u32 %v8772_v6, 16  ;;  %v8777_v8 = vpack.c.bf16 %v4287_v52, %v4287_v52  ;;  %v5260_v9 = vrot.slane %v5258_v21, 5  ;;  %v4906_v24 = vld [vmem:[#allocation4 + $0xa8] sm:$0xf]  ;;  %v4245_v52 = vpop.f32.mrf.mxu0 }
 0x3a8   : > { %v5253_v43 = vsel %vm9290_vm10, %v5248_v56, %v5252_v59  ;;  %v5266_v20 = vrot.slane %v5264_v7, 5  ;;  %v4285_v18 = vmax.f32 %v4243_v12, 0.0  ;;  %v4254_v42 = vadd.f32 %v10894_v29, %v8857_v61  ;;  %4938 = vst.msk [vmem:[#allocation5 + $0x70] sm:$0xf] %vm4289_vm12, %v4906_v24  ;;  %v4871_v44 = vld [vmem:[#allocation4 + $0xc0] sm:$0xf] }
 0x3a9   : > { %v4656_v27 = vrot.slane %v4654_v0, 7  ;;  %5416 = vrot.lane.b32.xlu1 %v5253_v43, %s9060_s11  ;;  %v4697_v54 = vshrl.u32 %v8777_v8, 16  ;;  %v4700_v28 = vshll.u32 %v8777_v8, 16  ;;  %v5261_v32 = vor.u32 %v5260_v9, %v5257_v2  ;;  %v4904_v31 = vld [vmem:[#allocation4 + $0x9c] sm:$0xf] }
 0x3aa   : > { %v8775_v34 = vpack.c.bf16 %v4285_v18, %v4285_v18  ;;  %v4288_v49 = vmax.f32 %v4254_v42, 0.0  ;;  %v5270_v36 = vrot.slane %v5268_v62, 4  ;;  %v5274_v11 = vshll.u32 %v4977_v13, 16  ;;  %v4978_v26 = vld [vmem:[#allocation4 + $0x90] sm:$0xf] }
 0x3ab   : > { %v4659_v37 = vor.u32 %v4657_v15, %v4656_v27  ;;  %v4661_v16 = vrot.slane %v4656_v27, 4  ;;  %v4699_v30 = vrot.slane %v4697_v54, 7  ;;  %v5262_v40 = vrot.slane %v5261_v32, 4  ;;  %4936 = vst.msk [vmem:[#allocation5 + $0x68] sm:$0xf] %vm4289_vm12, %v4904_v31 }
 0x3ac   : > { %v4680_v45 = vshrl.u32 %v8775_v34, 16  ;;  %v8778_v46 = vpack.c.bf16 %v4288_v49, %v4288_v49  ;;  %v5271_v25 = vor.u32 %v5270_v36, %v5266_v20  ;;  %v4683_v55 = vshll.u32 %v8775_v34, 16  ;;  %v4864_v53 = vld [vmem:[#allocation4 + $0xb4] sm:$0xf]  ;;  %v4907_v63 = vld [vmem:[#allocation4 + $0xac] sm:$0xf] }
 0x3ad   : > { %v4660_v50 = vsel %vm9277_vm8, %v4652_v39, %v4659_v37  ;;  %v4855_v41 = vsel %vm10710_vm6, %v4661_v16, %v4854_v48  ;;  %v4702_v38 = vor.u32 %v4700_v28, %v4699_v30  ;;  %v4979_v57 = vld [vmem:[#allocation4 + $0x94] sm:$0xf]  ;;  %v4703_v14 = vrot.slane %v4699_v30, 4  ;;  %v4875_v47 = vld [vmem:[#allocation4 + $0xc8] sm:$0x1] }
 0x3ae   : > { %4853 = vst.msk [vmem:[#allocation4 + $0xa0] sm:$0xf] %vm4289_vm12, %v4660_v50  ;;  %4856 = vst [vmem:[#allocation4 + $0xa4] sm:$0x1] %v4855_v41  ;;  %v5267_v58 = vsel %vm9290_vm10, %v5262_v40, %v5266_v20  ;;  %v10960_v59 = vrot.slane %v4680_v45, 7  ;;  %v4705_v22 = vshrl.u32 %v8778_v46, 16  ;;  %v4246_v9 = vadd.f32 %v10894_v29, %v4245_v52 }
 0x3af   : > { %v4872_v39 = vsel %vm10702_vm15, %v4702_v38, %v4871_v44  ;;  %5418 = vrot.lane.b32.xlu0 %v5267_v58, %s9060_s11  ;;  %v5272_v2 = vrot.slane %v5271_v25, 4  ;;  %v5276_v3 = vrot.slane %v5274_v11, 5  ;;  %v5279_v4 = vshrl.u32 %v4978_v26, 16  ;;  %4939 = vst.msk [vmem:[#allocation5 + $0x74] sm:$0xf] %vm4289_vm12, %v4907_v63 }
 0x3b0   : > { %4873 = vst [vmem:[#allocation4 + $0xc0] sm:$0xf] %v4872_v39  ;;  %v4685_v60 = vor.u32 %v4683_v55, %v10960_v59  ;;  %v4707_v33 = vrot.slane %v4705_v22, 7  ;;  %v4708_v5 = vshll.u32 %v8778_v46, 16  ;;  %v5282_v6 = vshll.u32 %v4978_v26, 16 }
 0x3b1   : > { %v4980_v21 = vld [vmem:[#allocation4 + $0x98] sm:$0x1]  ;;  %v5277_v7 = vsel %vm9290_vm10, %v5272_v2, %v5276_v3  ;;  %v5281_v61 = vrot.slane %v5279_v4, 4  ;;  %v5288_v10 = vshll.u32 %v4979_v57, 16  ;;  %v5292_v56 = vshrl.u32 %v4979_v57, 16 }
 0x3b2   : > { %v4981_v62 = vld [vmem:[#allocation4 + $0x9c] sm:$0xf]  ;;  %v4865_v12 = vsel %vm10702_vm15, %v4685_v60, %v4864_v53  ;;  %v4710_v13 = vor.u32 %v4708_v5, %v4707_v33  ;;  %v4712_v0 = vrot.slane %v4707_v33, 4  ;;  %5420 = vrot.lane.b32.xlu1 %v5277_v7, %s9060_s11  ;;  %v5284_v15 = vrot.slane %v5282_v6, 5  ;;  %v4984_v24 = vld [vmem:[#allocation4 + $0xa8] sm:$0xf] }
 0x3b3   : > { %4866 = vst [vmem:[#allocation4 + $0xb4] sm:$0xf] %v4865_v12  ;;  %v5290_v8 = vrot.slane %v5288_v10, 5  ;;  %v5294_v19 = vrot.slane %v5292_v56, 4  ;;  %v5298_v43 = vshll.u32 %v4980_v21, 16  ;;  %v5303_v1 = vshrl.u32 %v4981_v62, 16 }
 0x3b4   : > { %v4711_v20 = vsel %vm9277_vm8, %v4703_v14, %v4710_v13  ;;  %v4876_v18 = vsel %vm10710_vm6, %v4712_v0, %v4875_v47  ;;  %v5285_v42 = vor.u32 %v5284_v15, %v5281_v61  ;;  %v4286_v27 = vmax.f32 %v4246_v9, 0.0  ;;  %v4985_v46 = vld [vmem:[#allocation4 + $0xac] sm:$0xf]  ;;  %v4868_v57 = vld [vmem:[#allocation4 + $0xbc] sm:$0x1] }
 0x3b5   : > { %4874 = vst.msk [vmem:[#allocation4 + $0xc4] sm:$0xf] %vm4289_vm12, %v4711_v20  ;;  %4877 = vst [vmem:[#allocation4 + $0xc8] sm:$0x1] %v4876_v18  ;;  %v5295_v54 = vor.u32 %v5294_v19, %v5290_v8  ;;  %v5300_v28 = vrot.slane %v5298_v43, 5  ;;  %v5306_v48 = vshll.u32 %v4981_v62, 16 }
 0x3b6   : > { %v4982_v32 = vld [vmem:[#allocation4 + $0xa0] sm:$0xf]  ;;  %v5286_v29 = vrot.slane %v5285_v42, 4  ;;  %v5305_v34 = vrot.slane %v5303_v1, 4  ;;  %v4983_v11 = vld [vmem:[#allocation4 + $0xa4] sm:$0x1]  ;;  %v8776_v37 = vpack.c.bf16 %v4286_v27, %v4286_v27 }
 0x3b7   : > { %v5312_v49 = vshll.u32 %v4982_v32, 16  ;;  %v5316_v36 = vshrl.u32 %v4982_v32, 16  ;;  %v5296_v16 = vrot.slane %v5295_v54, 4  ;;  %v5308_v30 = vrot.slane %v5306_v48, 5  ;;  %v4905_v55 = vld [vmem:[#allocation4 + $0xa0] sm:$0xf] }
 0x3b8   : > { %v5322_v40 = vshll.u32 %v4983_v11, 16  ;;  %v5291_v31 = vsel %vm9290_vm10, %v5286_v29, %v5290_v8  ;;  %v5327_v25 = vshrl.u32 %v4984_v24, 16  ;;  %v4686_v26 = vrot.slane %v10960_v59, 4  ;;  %4937 = vst.msk [vmem:[#allocation5 + $0x6c] sm:$0xf] %vm4289_vm12, %v4905_v55 }
 0x3b9   : > { %v5314_v44 = vrot.slane %v5312_v49, 5  ;;  %v5318_v45 = vrot.slane %v5316_v36, 4  ;;  %5422 = vrot.lane.b32.xlu0 %v5291_v31, %s9060_s11  ;;  %v4688_v50 = vshrl.u32 %v8776_v37, 16  ;;  %v5301_v41 = vsel %vm9290_vm10, %v5296_v16, %v5300_v28  ;;  %v4986_v3 = vld [vmem:[#allocation4 + $0xb0] sm:$0x1] }
 0x3ba   : > { %v5309_v38 = vor.u32 %v5308_v30, %v5305_v34  ;;  %v4691_v53 = vshll.u32 %v8776_v37, 16  ;;  %5424 = vrot.lane.b32.xlu1 %v5301_v41, %s9060_s11  ;;  %v5329_v58 = vrot.slane %v5327_v25, 4  ;;  %v5330_v22 = vshll.u32 %v4984_v24, 16  ;;  %v4987_v63 = vld [vmem:[#allocation4 + $0xb4] sm:$0xf] }
 0x3bb   : > { %v5319_v14 = vor.u32 %v5318_v45, %v5314_v44  ;;  %v4690_v39 = vrot.slane %v4688_v50, 7  ;;  %v5336_v47 = vshll.u32 %v4985_v46, 16  ;;  %v5340_v2 = vshrl.u32 %v4985_v46, 16  ;;  %v4908_v6 = vld [vmem:[#allocation4 + $0xb4] sm:$0xf] }
 0x3bc   : > { %v5310_v59 = vrot.slane %v5309_v38, 4  ;;  %v5324_v60 = vrot.slane %v5322_v40, 5  ;;  %v5332_v33 = vrot.slane %v5330_v22, 5  ;;  %v5351_v5 = vshrl.u32 %v4987_v63, 16  ;;  %4940 = vst.msk [vmem:[#allocation5 + $0x78] sm:$0xf] %vm4289_vm12, %v4908_v6 }
 0x3bd   : > { %v5320_v4 = vrot.slane %v5319_v14, 4  ;;  %v4693_v52 = vor.u32 %v4691_v53, %v4690_v39  ;;  %v4695_v21 = vrot.slane %v4690_v39, 4  ;;  %v5338_v61 = vrot.slane %v5336_v47, 5  ;;  %v5503_v24 = vld [vmem:[#allocation4] sm:$0xe] }
 0x3be   : > { %v5315_v7 = vsel %vm9290_vm10, %v5310_v59, %v5314_v44  ;;  %v5333_v56 = vor.u32 %v5332_v33, %v5329_v58  ;;  %v5342_v62 = vrot.slane %v5340_v2, 4  ;;  %v5346_v12 = vshll.u32 %v4986_v3, 16  ;;  %v5504_v28 = vld [vmem:[#allocation4 + $0x4] sm:$0xf]  ;;  %v5505_v30 = vld [vmem:[#allocation4 + $0x8] sm:$0x1] }
 0x3bf   : > { %5426 = vrot.lane.b32.xlu0 %v5315_v7, %s9060_s11  ;;  %v5325_v10 = vsel %vm9290_vm10, %v5320_v4, %v5324_v60  ;;  %v4694_v13 = vsel %vm9277_vm8, %v4686_v26, %v4693_v52  ;;  %v4869_v0 = vsel %vm10710_vm6, %v4695_v21, %v4868_v57  ;;  %v5354_v15 = vshll.u32 %v4987_v63, 16  ;;  %v5507_v25 = vld [vmem:[#allocation4 + $0x10] sm:$0xf]  ;;  %v5506_v55 = vld [vmem:[#allocation4 + $0xc] sm:$0xe] }
 0x3c0   : > { %5428 = vrot.lane.b32.xlu1 %v5325_v10, %s9060_s11  ;;  %4867 = vst.msk [vmem:[#allocation4 + $0xb8] sm:$0xf] %vm4289_vm12, %v4694_v13  ;;  %4870 = vst [vmem:[#allocation4 + $0xbc] sm:$0x1] %v4869_v0  ;;  %v5334_v8 = vrot.slane %v5333_v56, 4  ;;  %v5343_v9 = vor.u32 %v5342_v62, %v5338_v61  ;;  %v5353_v19 = vrot.slane %v5351_v5, 4 }
 0x3c1   : > { %v5356_v43 = vrot.slane %v5354_v15, 5  ;;  %v5348_v42 = vrot.slane %v5346_v12, 5  ;;  %v8655_v34 = vrot.slane %v5503_v24, 9  ;;  %v5601_v16 = vrot.slane %v5504_v28, 5  ;;  %v5510_v58 = vld [vmem:[#allocation4 + $0x1c] sm:$0xf] }
 0x3c2   : > { %v5339_v20 = vsel %vm9290_vm10, %v5334_v8, %v5338_v61  ;;  %v5344_v18 = vrot.slane %v5343_v9, 4  ;;  %v5604_v46 = vrot.slane %v5505_v30, 5  ;;  %v5608_v57 = vrot.slane %v5507_v25, 5  ;;  %v5508_v39 = vld [vmem:[#allocation4 + $0x14] sm:$0x1] }
 0x3c3   : > { %5430 = vrot.lane.b32.xlu0 %v5339_v20, %s9060_s11  ;;  %v5357_v17 = vor.u32 %v5356_v43, %v5353_v19  ;;  %v5602_v41 = vsel %vm9554_vm13, %v8655_v34, %v5601_v16  ;;  %v5603_v38 = vrot.slane %v5601_v16, 4  ;;  %v8656_v63 = vrot.slane %v5506_v55, 9  ;;  %v5509_v59 = vld [vmem:[#allocation4 + $0x18] sm:$0xe]  ;;  %v5513_v4 = vld [vmem:[#allocation4 + $0x28] sm:$0xf] }
 0x3c4   : > { %v5349_v23 = vsel %vm9290_vm10, %v5344_v18, %v5348_v42  ;;  %v5379_v1 = vpop.permute.xlu0 %5378  ;;  %v5610_v2 = vrot.slane %v5608_v57, 4  ;;  %v5615_v3 = vrot.slane %v5510_v58, 5  ;;  %v5611_v60 = vrot.slane %v5508_v39, 5  ;;  %v5511_v5 = vld [vmem:[#allocation4 + $0x20] sm:$0x1] }
 0x3c5   : > { %5432 = vrot.lane.b32.xlu1 %v5349_v23, %s9060_s11  ;;  %5473 = vst.msk [vmem:[#allocation5 + $0x8] sm:$0xf] %vm5470_vm1, %v5379_v1  ;;  %v5358_v32 = vrot.slane %v5357_v17, 4  ;;  %v5605_v22 = vsel %vm9554_vm13, %v5603_v38, %v5604_v46  ;;  %v5609_v47 = vsel %vm9554_vm13, %v8656_v63, %v5608_v57  ;;  %v8657_v33 = vrot.slane %v5509_v59, 9  ;;  %v5512_v6 = vld [vmem:[#allocation4 + $0x24] sm:$0xe] }
 0x3c6   : > { %v5612_v52 = vsel %vm9554_vm13, %v5610_v2, %v5611_v60  ;;  %v5617_v7 = vrot.slane %v5615_v3, 4  ;;  %v5622_v61 = vrot.slane %v5513_v4, 5  ;;  %v5516_v56 = vld [vmem:[#allocation4 + $0x34] sm:$0xf]  ;;  %v5618_v62 = vrot.slane %v5511_v5, 5 }
 0x3c7   : > { %v4988_v27 = vld [vmem:[#allocation4 + $0xb8] sm:$0xf]  ;;  %v4989_v54 = vld [vmem:[#allocation4 + $0xbc] sm:$0x1]  ;;  %v5616_v21 = vsel %vm9554_vm13, %v8657_v33, %v5615_v3  ;;  %v8658_v12 = vrot.slane %v5512_v6, 9  ;;  %v5629_v19 = vrot.slane %v5516_v56, 5 }
 0x3c8   : > { %v5360_v48 = vshll.u32 %v4988_v27, 16  ;;  %v5364_v29 = vshrl.u32 %v4988_v27, 16  ;;  %v4909_v49 = vld [vmem:[#allocation4 + $0xb8] sm:$0xf]  ;;  %v5370_v37 = vshll.u32 %v4989_v54, 16  ;;  %v5619_v15 = vsel %vm9554_vm13, %v5617_v7, %v5618_v62 }
 0x3c9   : > { %4941 = vst.msk [vmem:[#allocation5 + $0x7c] sm:$0xf] %vm4289_vm12, %v4909_v49  ;;  %v5514_v13 = vld [vmem:[#allocation4 + $0x2c] sm:$0x1]  ;;  %v5515_v0 = vld [vmem:[#allocation4 + $0x30] sm:$0xe]  ;;  %v5623_v8 = vsel %vm9554_vm13, %v8658_v12, %v5622_v61 }
 0x3ca   : > { %v5362_v36 = vrot.slane %v5360_v48, 5  ;;  %v5366_v11 = vrot.slane %v5364_v29, 4  ;;  %v5372_v50 = vrot.slane %v5370_v37, 5  ;;  %v5624_v9 = vrot.slane %v5622_v61, 4  ;;  %v5519_v20 = vld [vmem:[#allocation4 + $0x40] sm:$0xf] }
 0x3cb   : > { %v5381_v44 = vpop.permute.xlu1 %5380  ;;  %v5383_v45 = vpop.permute.xlu0 %5382  ;;  %v5625_v18 = vrot.slane %v5514_v13, 5  ;;  %v8659_v42 = vrot.slane %v5515_v0, 9  ;;  %v5517_v23 = vld [vmem:[#allocation4 + $0x38] sm:$0x1]  ;;  %v5518_v17 = vld [vmem:[#allocation4 + $0x3c] sm:$0xe] }
 0x3cc   : > { %v5363_v40 = vsel %vm9290_vm10, %v5358_v32, %v5362_v36  ;;  %v5367_v31 = vor.u32 %v5366_v11, %v5362_v36  ;;  %5474 = vst.msk [vmem:[#allocation5 + $0xc] sm:$0xf] %vm5470_vm1, %v5381_v44  ;;  %5475 = vst.msk [vmem:[#allocation5 + $0x10] sm:$0xf] %vm5470_vm1, %v5383_v45  ;;  %v5631_v54 = vrot.slane %v5629_v19, 4  ;;  %v5636_v28 = vrot.slane %v5519_v20, 5 }
 0x3cd   : > { %5434 = vrot.lane.b32.xlu0 %v5363_v40, %s9060_s11  ;;  %v5626_v1 = vsel %vm9554_vm13, %v5624_v9, %v5625_v18  ;;  %v5630_v24 = vsel %vm9554_vm13, %v8659_v42, %v5629_v19  ;;  %v5522_v32 = vld [vmem:[#allocation4 + $0x4c] sm:$0xf]  ;;  %v5632_v48 = vrot.slane %v5517_v23, 5  ;;  %v8660_v29 = vrot.slane %v5518_v17, 9  ;;  %v5520_v34 = vld [vmem:[#allocation4 + $0x44] sm:$0x1] }
 0x3ce   : > { %v5368_v26 = vrot.slane %v5367_v31, 4  ;;  %v5521_v49 = vld [vmem:[#allocation4 + $0x48] sm:$0xe]  ;;  %v5638_v16 = vrot.slane %v5636_v28, 4  ;;  %v5643_v30 = vrot.slane %v5522_v32, 5  ;;  %v5639_v31 = vrot.slane %v5520_v34, 5 }
 0x3cf   : > { %v5633_v36 = vsel %vm9554_vm13, %v5631_v54, %v5632_v48  ;;  %v5637_v11 = vsel %vm9554_vm13, %v8660_v29, %v5636_v28  ;;  %v5525_v40 = vld [vmem:[#allocation4 + $0x58] sm:$0xf]  ;;  %v8661_v44 = vrot.slane %v5521_v49, 9  ;;  %v5523_v45 = vld [vmem:[#allocation4 + $0x50] sm:$0x1]  ;;  %vm5807_vm8 = vcmask 191616  }
 0x3d0   : > { %v5373_v53 = vsel %vm9290_vm10, %v5368_v26, %v5372_v50  ;;  %v5385_v14 = vpop.permute.xlu1 %5384  ;;  %v5524_v46 = vld [vmem:[#allocation4 + $0x54] sm:$0xe]  ;;  %v5640_v25 = vsel %vm9554_vm13, %v5638_v16, %v5639_v31  ;;  %v5645_v50 = vrot.slane %v5643_v30, 4  ;;  %v5528_v38 = vld [vmem:[#allocation4 + $0x64] sm:$0xf]  ;;  %v5646_v55 = vrot.slane %v5523_v45, 5 }
 0x3d1   : > { %5436 = vrot.lane.b32.xlu1 %v5373_v53, %s9060_s11  ;;  %5711 = vrot.lane.b32.xlu0 %v5602_v41, %s9062_s13  ;;  %5476 = vst.msk [vmem:[#allocation5 + $0x14] sm:$0xf] %vm5470_vm1, %v5385_v14  ;;  %v5644_v26 = vsel %vm9554_vm13, %v8661_v44, %v5643_v30  ;;  %v5650_v41 = vrot.slane %v5525_v40, 5  ;;  %v8662_v53 = vrot.slane %v5524_v46, 9  ;;  %v5526_v14 = vld [vmem:[#allocation4 + $0x5c] sm:$0x1] }
 0x3d2   : > { %v5527_v58 = vld [vmem:[#allocation4 + $0x60] sm:$0xe]  ;;  %v5657_v59 = vrot.slane %v5528_v38, 5  ;;  %v5653_v2 = vrot.slane %v5526_v14, 5  ;;  %v5529_v60 = vld [vmem:[#allocation4 + $0x68] sm:$0x1] }
 0x3d3   : > { %v5651_v63 = vsel %vm9554_vm13, %v8662_v53, %v5650_v41  ;;  %v5652_v39 = vrot.slane %v5650_v41, 4  ;;  %v8663_v3 = vrot.slane %v5527_v58, 9  ;;  %v5530_v33 = vld [vmem:[#allocation4 + $0x6c] sm:$0xe]  ;;  %v5534_v7 = vld [vmem:[#allocation4 + $0x7c] sm:$0xf] }
 0x3d4   : > { %v8664_v56 = vrot.slane %v5530_v33, 9  ;;  %v5532_v62 = vld [vmem:[#allocation4 + $0x74] sm:$0x1]  ;;  %v5533_v12 = vld [vmem:[#allocation4 + $0x78] sm:$0xe] }
 0x3d5   : > { %5713 = vrot.lane.b32.xlu1 %v5605_v22, %s9062_s13  ;;  %5715 = vrot.lane.b32.xlu0 %v5609_v47, %s9062_s13  ;;  %v5647_v22 = vsel %vm9554_vm13, %v5645_v50, %v5646_v55  ;;  %v5531_v47 = vld [vmem:[#allocation4 + $0x70] sm:$0xf]  ;;  %v5654_v5 = vsel %vm9554_vm13, %v5652_v39, %v5653_v2  ;;  %v5658_v6 = vsel %vm9554_vm13, %v8663_v3, %v5657_v59  ;;  %v5537_v9 = vld [vmem:[#allocation4 + $0x88] sm:$0xf]  ;;  %v8665_v20 = vrot.slane %v5533_v12, 9 }
 0x3d6   : > { %v5535_v18 = vld [vmem:[#allocation4 + $0x80] sm:$0x1]  ;;  %v5536_v42 = vld [vmem:[#allocation4 + $0x84] sm:$0xe]  ;;  %v5538_v32 = vld [vmem:[#allocation4 + $0x8c] sm:$0x1] }
 0x3d7   : > { %v5387_v10 = vpop.permute.xlu0 %5386  ;;  %v5674_v54 = vrot.slane %v5535_v18, 5  ;;  %v8666_v28 = vrot.slane %v5536_v42, 9  ;;  %v5539_v48 = vld [vmem:[#allocation4 + $0x90] sm:$0xe]  ;;  %v5681_v16 = vrot.slane %v5538_v32, 5 }
 0x3d8   : > { %5477 = vst.msk [vmem:[#allocation5 + $0x18] sm:$0xf] %vm5470_vm1, %v5387_v10  ;;  %v5660_v10 = vrot.slane %v5529_v60, 5  ;;  %v8667_v30 = vrot.slane %v5539_v48, 9  ;;  %v5541_v40 = vld [vmem:[#allocation4 + $0x98] sm:$0x1] }
 0x3d9   : > { %5717 = vrot.lane.b32.xlu1 %v5612_v52, %s9062_s13  ;;  %5719 = vrot.lane.b32.xlu0 %v5616_v21, %s9062_s13  ;;  %v5659_v52 = vrot.slane %v5657_v59, 4  ;;  %v5664_v21 = vrot.slane %v5531_v47, 5  ;;  %v5542_v31 = vld [vmem:[#allocation4 + $0x9c] sm:$0xe]  ;;  %v5546_v50 = vld [vmem:[#allocation4 + $0xac] sm:$0xf] }
 0x3da   : > { %v5688_v41 = vrot.slane %v5541_v40, 5  ;;  %v8668_v38 = vrot.slane %v5542_v31, 9  ;;  %v5544_v55 = vld [vmem:[#allocation4 + $0xa4] sm:$0x1]  ;;  %v5545_v53 = vld [vmem:[#allocation4 + $0xa8] sm:$0xe] }
 0x3db   : > { %v5389_v43 = vpop.permute.xlu1 %5388  ;;  %v5661_v13 = vsel %vm9554_vm13, %v5659_v52, %v5660_v10  ;;  %v5665_v0 = vsel %vm9554_vm13, %v8664_v56, %v5664_v21  ;;  %v5549_v39 = vld [vmem:[#allocation4 + $0xb8] sm:$0xf]  ;;  %v5695_v59 = vrot.slane %v5544_v55, 5  ;;  %v8669_v47 = vrot.slane %v5545_v53, 9  ;;  %v5547_v2 = vld [vmem:[#allocation4 + $0xb0] sm:$0x1] }
 0x3dc   : > { %5478 = vst.msk [vmem:[#allocation5 + $0x1c] sm:$0xf] %vm5470_vm1, %v5389_v43  ;;  %v5667_v43 = vrot.slane %v5532_v62, 5  ;;  %v5548_v3 = vld [vmem:[#allocation4 + $0xb4] sm:$0xe]  ;;  %v5702_v52 = vrot.slane %v5547_v2, 5 }
 0x3dd   : > { %5721 = vrot.lane.b32.xlu1 %v5619_v15, %s9062_s13  ;;  %5723 = vrot.lane.b32.xlu0 %v5623_v8, %s9062_s13  ;;  %v5666_v15 = vrot.slane %v5664_v21, 4  ;;  %v5671_v8 = vrot.slane %v5534_v7, 5  ;;  %v8670_v21 = vrot.slane %v5548_v3, 9  ;;  %v5550_v7 = vld [vmem:[#allocation4 + $0xbc] sm:$0x1] }
 0x3de   : > { %v5709_v62 = vrot.slane %v5550_v7, 5  ;;  %v5845_v42 = vld [vmem:[#allocation4 + $0x28] sm:$0xf]  ;;  %v5851_v32 = vld [vmem:[#allocation4 + $0x4c] sm:$0xf] }
 0x3df   : > { %v5668_v23 = vsel %vm9554_vm13, %v5666_v15, %v5667_v43  ;;  %v5672_v17 = vsel %vm9554_vm13, %v8665_v20, %v5671_v8  ;;  %v5844_v43 = vld [vmem:[#allocation4 + $0x24] sm:$0xf]  ;;  %v5852_v48 = vld [vmem:[#allocation4 + $0x54] sm:$0xf]  ;;  %v6033_v40 = vld [vmem:[#allocation4 + $0xc] sm:$0xf] }
 0x3e0   : > { %v5391_v27 = vpop.permute.xlu0 %5390  ;;  %v6034_v31 = vld [vmem:[#allocation4 + $0x10] sm:$0xf]  ;;  %v6035_v7 = vld [vmem:[#allocation4 + $0x14] sm:$0x1] }
 0x3e1   : > { %5725 = vrot.lane.b32.xlu1 %v5626_v1, %s9062_s13  ;;  %5727 = vrot.lane.b32.xlu0 %v5630_v24, %s9062_s13  ;;  %5479 = vst.msk [vmem:[#allocation5 + $0x20] sm:$0xf] %vm5470_vm1, %v5391_v27  ;;  %v5673_v1 = vrot.slane %v5671_v8, 4  ;;  %v5678_v24 = vrot.slane %v5537_v9, 5  ;;  %v5540_v27 = vld [vmem:[#allocation4 + $0x94] sm:$0xf] }
 0x3e2   : > { %v5841_v8 = vld [vmem:[#allocation4 + $0x10] sm:$0xf]  ;;  %v5842_v9 = vld [vmem:[#allocation4 + $0x18] sm:$0xf]  ;;  %v6091_v55 = vshll.u32 %v6034_v31, 16  ;;  %v6095_v53 = vshrl.u32 %v6034_v31, 16 }
 0x3e3   : > { %v5675_v29 = vsel %vm9554_vm13, %v5673_v1, %v5674_v54  ;;  %v5679_v34 = vsel %vm9554_vm13, %v8666_v28, %v5678_v24  ;;  %v5848_v1 = vld [vmem:[#allocation4 + $0x3c] sm:$0xf]  ;;  %v5849_v54 = vld [vmem:[#allocation4 + $0x40] sm:$0xf]  ;;  %v5850_v28 = vld [vmem:[#allocation4 + $0x48] sm:$0xf] }
 0x3e4   : > { %v5393_v37 = vpop.permute.xlu1 %5392  ;;  %v6097_v2 = vrot.slane %v6095_v53, 4 }
 0x3e5   : > { %5729 = vrot.lane.b32.xlu1 %v5633_v36, %s9062_s13  ;;  %5731 = vrot.lane.b32.xlu0 %v5637_v11, %s9062_s13  ;;  %5480 = vst.msk [vmem:[#allocation5 + $0x24] sm:$0xf] %vm5470_vm1, %v5393_v37  ;;  %v5680_v36 = vrot.slane %v5678_v24, 4  ;;  %v5685_v11 = vrot.slane %v5540_v27, 5  ;;  %v5543_v37 = vld [vmem:[#allocation4 + $0xa0] sm:$0xf] }
 0x3e7   : > { %v5682_v44 = vsel %vm9554_vm13, %v5680_v36, %v5681_v16  ;;  %v5686_v45 = vsel %vm9554_vm13, %v8667_v30, %v5685_v11  ;;  %v5854_v36 = vld [vmem:[#allocation4 + $0x60] sm:$0xf]  ;;  %v5856_v16 = vld [vmem:[#allocation4 + $0x6c] sm:$0xf] }
 0x3e9   : > { %5733 = vrot.lane.b32.xlu1 %v5640_v25, %s9062_s13  ;;  %5735 = vrot.lane.b32.xlu0 %v5644_v26, %s9062_s13  ;;  %v5687_v25 = vrot.slane %v5685_v11, 4  ;;  %v5692_v26 = vrot.slane %v5543_v37, 5  ;;  %v5855_v37 = vld [vmem:[#allocation4 + $0x64] sm:$0xf] }
 0x3eb   : > { %v5395_v57 = vpop.permute.xlu0 %5394  ;;  %v5693_v14 = vsel %vm9554_vm13, %v8668_v38, %v5692_v26  ;;  %v5694_v58 = vrot.slane %v5692_v26, 4  ;;  %v6085_v26 = vshll.u32 %v6033_v40, 16  ;;  %v5859_v38 = vld [vmem:[#allocation4 + $0x7c] sm:$0xf] }
 0x3ec   : > { %5481 = vst.msk [vmem:[#allocation5 + $0x28] sm:$0xf] %vm5470_vm1, %v5395_v57  ;;  %v5689_v57 = vsel %vm9554_vm13, %v5687_v25, %v5688_v41  ;;  %v6082_v25 = vshrl.u32 %v6033_v40, 16 }
 0x3ed   : > { %5737 = vrot.lane.b32.xlu1 %v5647_v22, %s9062_s13  ;;  %5739 = vrot.lane.b32.xlu0 %v5651_v63, %s9062_s13  ;;  %v5699_v22 = vrot.slane %v5546_v50, 5 }
 0x3ee   : > { %v5397_v4 = vpop.permute.xlu1 %5396 }
 0x3ef   : > { %5482 = vst.msk [vmem:[#allocation5 + $0x2c] sm:$0xf] %vm5470_vm1, %v5397_v4  ;;  %v5696_v4 = vsel %vm9554_vm13, %v5694_v58, %v5695_v59  ;;  %v5700_v60 = vsel %vm9554_vm13, %v8669_v47, %v5699_v22  ;;  %v5701_v33 = vrot.slane %v5699_v22, 4  ;;  %v6084_v58 = vrot.slane %v6082_v25, 4  ;;  %v5862_v59 = vld [vmem:[#allocation4 + $0x90] sm:$0xf] }
 0x3f0   : > { %v6087_v22 = vrot.slane %v6085_v26, 5  ;;  %v6093_v47 = vrot.slane %v6091_v55, 5  ;;  %v7128_v55 = vld [vmem:[#allocation4 + $0x24] sm:$0xf] }
 0x3f1   : > { %5741 = vrot.lane.b32.xlu1 %v5654_v5, %s9062_s13  ;;  %5743 = vrot.lane.b32.xlu0 %v5658_v6, %s9062_s13  ;;  %v5706_v5 = vrot.slane %v5549_v39, 5  ;;  %v6037_v39 = vld [vmem:[#allocation4 + $0x1c] sm:$0xf] }
 0x3f2   : > { %v5399_v61 = vpop.permute.xlu0 %5398 }
 0x3f3   : > { %5483 = vst.msk [vmem:[#allocation5 + $0x30] sm:$0xf] %vm5470_vm1, %v5399_v61  ;;  %v5703_v61 = vsel %vm9554_vm13, %v5701_v33, %v5702_v52  ;;  %v5707_v10 = vsel %vm9554_vm13, %v8670_v21, %v5706_v5  ;;  %v5708_v56 = vrot.slane %v5706_v5, 4  ;;  %v6115_v5 = vshll.u32 %v6037_v39, 16  ;;  %v5863_v21 = vld [vmem:[#allocation4 + $0x94] sm:$0xf] }
 0x3f5   : > { %5745 = vrot.lane.b32.xlu1 %v5661_v13, %s9062_s13  ;;  %5747 = vrot.lane.b32.xlu0 %v5665_v0, %s9062_s13  ;;  %v5710_v13 = vsel %vm9554_vm13, %v5708_v56, %v5709_v62  ;;  %v5840_v0 = vld [vmem:[#allocation4 + $0xc] sm:$0xf] }
 0x3f6   : > { %v5401_v19 = vpop.permute.xlu1 %5400 }
 0x3f7   : > { %5484 = vst.msk [vmem:[#allocation5 + $0x34] sm:$0xf] %vm5470_vm1, %v5401_v19  ;;  %v5843_v19 = vld [vmem:[#allocation4 + $0x1c] sm:$0xf] }
 0x3f9   : > { %5749 = vrot.lane.b32.xlu1 %v5668_v23, %s9062_s13  ;;  %5751 = vrot.lane.b32.xlu0 %v5672_v17, %s9062_s13  ;;  %v5846_v23 = vld [vmem:[#allocation4 + $0x30] sm:$0xf]  ;;  %v5847_v17 = vld [vmem:[#allocation4 + $0x34] sm:$0xf] }
 0x3fc   : > { %v5403_v49 = vpop.permute.xlu0 %5402 }
 0x3fd   : > { %5753 = vrot.lane.b32.xlu1 %v5675_v29, %s9062_s13  ;;  %5755 = vrot.lane.b32.xlu0 %v5679_v34, %s9062_s13  ;;  %5485 = vst.msk [vmem:[#allocation5 + $0x38] sm:$0xf] %vm5470_vm1, %v5403_v49  ;;  %v5853_v49 = vld [vmem:[#allocation4 + $0x58] sm:$0xf] }
 0x400   : > { %v5405_v46 = vpop.permute.xlu1 %5404 }
 0x401   : > { %5757 = vrot.lane.b32.xlu1 %v5682_v44, %s9062_s13  ;;  %5759 = vrot.lane.b32.xlu0 %v5686_v45, %s9062_s13  ;;  %5486 = vst.msk [vmem:[#allocation5 + $0x3c] sm:$0xf] %vm5470_vm1, %v5405_v46  ;;  %v6036_v44 = vld [vmem:[#allocation4 + $0x18] sm:$0xf]  ;;  %v5857_v45 = vld [vmem:[#allocation4 + $0x70] sm:$0xf] }
 0x402   : > { %v5858_v46 = vld [vmem:[#allocation4 + $0x78] sm:$0xf] }
 0x405   : > { %v5407_v63 = vpop.permute.xlu0 %5406  ;;  %5761 = vrot.lane.b32.xlu1 %v5689_v57, %s9062_s13  ;;  %5763 = vrot.lane.b32.xlu0 %v5693_v14, %s9062_s13  ;;  %v6106_v57 = vshrl.u32 %v6036_v44, 16  ;;  %v5860_v14 = vld [vmem:[#allocation4 + $0x84] sm:$0xf] }
 0x406   : > { %5487 = vst.msk [vmem:[#allocation5 + $0x40] sm:$0xf] %vm5470_vm1, %v5407_v63  ;;  %v6109_v63 = vshll.u32 %v6036_v44, 16 }
 0x407   : > { %v6108_v3 = vrot.slane %v6106_v57, 4 }
 0x408   : > { %v6111_v33 = vrot.slane %v6109_v63, 5 }
 0x409   : > { %v5409_v6 = vpop.permute.xlu1 %5408  ;;  %5765 = vrot.lane.b32.xlu1 %v5696_v4, %s9062_s13  ;;  %5767 = vrot.lane.b32.xlu0 %v5700_v60, %s9062_s13  ;;  %v5861_v4 = vld [vmem:[#allocation4 + $0x88] sm:$0xf]  ;;  %v6088_v60 = vor.u32 %v6087_v22, %v6084_v58 }
 0x40a   : > { %5488 = vst.msk [vmem:[#allocation5 + $0x44] sm:$0xf] %vm5470_vm1, %v5409_v6  ;;  %v6119_v6 = vshrl.u32 %v6037_v39, 16  ;;  %v6112_v62 = vor.u32 %v6111_v33, %v6108_v3  ;;  %v6599_v39 = vld [vmem:[#allocation4 + $0x20] sm:$0x1] }
 0x40b   : > { %v6089_v56 = vrot.slane %v6088_v60, 4  ;;  %v7129_v3 = vld [vmem:[#allocation4 + $0x28] sm:$0xf]  ;;  %v7201_v60 = vshll.u32 %v7128_v55, 16  ;;  %v6702_v33 = vrot.slane %v6599_v39, 5 }
 0x40d   : > { %5769 = vrot.lane.b32.xlu1 %v5703_v61, %s9062_s13  ;;  %5771 = vrot.lane.b32.xlu0 %v5707_v10, %s9062_s13  ;;  %v6098_v61 = vor.u32 %v6097_v2, %v6093_v47  ;;  %v5864_v10 = vld [vmem:[#allocation4 + $0x9c] sm:$0xf] }
 0x40f   : > { %v5411_v12 = vpop.permute.xlu0 %5410 }
 0x410   : > { %5489 = vst.msk [vmem:[#allocation5 + $0x48] sm:$0xf] %vm5470_vm1, %v5411_v12  ;;  %v6117_v12 = vrot.slane %v6115_v5, 5 }
 0x411   : > { %5773 = vrot.lane.b32.xlu1 %v5710_v13, %s9062_s13  ;;  %5904 = vrot.lane.b32.xlu0 %v5840_v0, %s9064_s15  ;;  %v6121_v13 = vrot.slane %v6119_v6, 4  ;;  %v6101_v0 = vshll.u32 %v6035_v7, 16  ;;  %s9067_s13 = smov 40   ;;  %v7207_v7 = vshll.u32 %v7129_v3, 16 }
 0x412   : > { %v5413_v15 = vpop.permute.xlu1 %5412 }
 0x413   : > { %5490 = vst.msk [vmem:[#allocation5 + $0x4c] sm:$0xf] %vm5470_vm1, %v5413_v15 }
 0x415   : > { %5906 = vrot.lane.b32.xlu1 %v5841_v8, %s9064_s15  ;;  %5908 = vrot.lane.b32.xlu0 %v5842_v9, %s9064_s15  ;;  %v6038_v9 = vld [vmem:[#allocation4 + $0x20] sm:$0x1] }
 0x419   : > { %v5415_v20 = vpop.permute.xlu0 %5414  ;;  %5910 = vrot.lane.b32.xlu1 %v5843_v19, %s9064_s15  ;;  %5912 = vrot.lane.b32.xlu0 %v5844_v43, %s9064_s15  ;;  %v5865_v19 = vld [vmem:[#allocation4 + $0xa0] sm:$0xf]  ;;  %v6094_v43 = vsel %vm9290_vm10, %v6089_v56, %v6093_v47  ;;  %v6932_v56 = vld [vmem:[#allocation4 + $0x18] sm:$0xf] }
 0x41a   : > { %5491 = vst.msk [vmem:[#allocation5 + $0x50] sm:$0xf] %vm5470_vm1, %v5415_v20  ;;  %v6099_v20 = vrot.slane %v6098_v61, 4  ;;  %v7211_v61 = vshrl.u32 %v7129_v3, 16 }
 0x41b   : > { %v5417_v18 = vpop.permute.xlu1 %5416 }
 0x41c   : > { %5492 = vst.msk [vmem:[#allocation5 + $0x54] sm:$0xf] %vm5470_vm1, %v5417_v18  ;;  %v6113_v18 = vrot.slane %v6112_v62, 4 }
 0x41d   : > { %5914 = vrot.lane.b32.xlu1 %v5845_v42, %s9064_s15  ;;  %5916 = vrot.lane.b32.xlu0 %v5846_v23, %s9064_s15  ;;  %v6122_v42 = vor.u32 %v6121_v13, %v6117_v12  ;;  %v6595_v23 = vld [vmem:[#allocation4 + $0x10] sm:$0xf]  ;;  %v7203_v13 = vrot.slane %v7201_v60, 5 }
 0x41e   : > { %v8977_v60 = vld [vmem:[%s11969_s3 + $0x8] sm:$0xff]  }
 0x421   : > { %v5419_v24 = vpop.permute.xlu0 %5418  ;;  %5918 = vrot.lane.b32.xlu1 %v5847_v17, %s9064_s15  ;;  %5920 = vrot.lane.b32.xlu0 %v5848_v1, %s9064_s15  ;;  %v6103_v17 = vrot.slane %v6101_v0, 5  ;;  %v6125_v1 = vshll.u32 %v6038_v9, 16  ;;  %v7127_v0 = vld [vmem:[#allocation4 + $0x20] sm:$0x1] }
 0x422   : > { %5493 = vst.msk [vmem:[#allocation5 + $0x58] sm:$0xf] %vm5470_vm1, %v5419_v24 }
 0x424   : > { %v5421_v27 = vpop.permute.xlu1 %5420 }
 0x425   : > { %5494 = vst.msk [vmem:[#allocation5 + $0x5c] sm:$0xf] %vm5470_vm1, %v5421_v27  ;;  %5922 = vrot.lane.b32.xlu1 %v5849_v54, %s9064_s15  ;;  %5924 = vrot.lane.b32.xlu0 %v5850_v28, %s9064_s15  ;;  %v6594_v54 = vld [vmem:[#allocation4 + $0xc] sm:$0xe]  ;;  %v6692_v28 = vrot.slane %v6595_v23, 5 }
 0x426   : > { %v6934_v23 = vld [vmem:[#allocation4 + $0x24] sm:$0xf] }
 0x427   : > { %v6694_v31 = vrot.slane %v6692_v28, 4 }
 0x429   : > { %5926 = vrot.lane.b32.xlu1 %v5851_v32, %s9064_s15  ;;  %5928 = vrot.lane.b32.xlu0 %v5852_v48, %s9064_s15  ;;  %v6104_v32 = vsel %vm9290_vm10, %v6099_v20, %v6103_v17  ;;  %v6118_v48 = vsel %vm9290_vm10, %v6113_v18, %v6117_v12  ;;  %v7209_v20 = vrot.slane %v7207_v7, 5  ;;  %v7213_v18 = vrot.slane %v7211_v61, 4 }
 0x42b   : > { %v5423_v29 = vpop.permute.xlu0 %5422 }
 0x42c   : > { %5495 = vst.msk [vmem:[#allocation5 + $0x60] sm:$0xf] %vm5470_vm1, %v5423_v29  ;;  %v5425_v34 = vpop.permute.xlu1 %5424  ;;  %v6123_v29 = vrot.slane %v6122_v42, 4 }
 0x42d   : > { %5496 = vst.msk [vmem:[#allocation5 + $0x64] sm:$0xf] %vm5470_vm1, %v5425_v34  ;;  %5930 = vrot.lane.b32.xlu1 %v5853_v49, %s9064_s15  ;;  %5932 = vrot.lane.b32.xlu0 %v5854_v36, %s9064_s15  ;;  %v6598_v34 = vld [vmem:[#allocation4 + $0x1c] sm:$0xf]  ;;  %v6596_v49 = vld [vmem:[#allocation4 + $0x14] sm:$0x1] }
 0x42e   : > { %v7125_v36 = vld [vmem:[#allocation4 + $0x18] sm:$0xf]  ;;  %v6699_v44 = vrot.slane %v6598_v34, 5  ;;  %v7214_v34 = vor.u32 %v7213_v18, %v7209_v20 }
 0x42f   : > { %v7174_v26 = vshrl.u32 %v7125_v36, 16 }
 0x431   : > { %v5427_v11 = vpop.permute.xlu0 %5426  ;;  %5934 = vrot.lane.b32.xlu1 %v5855_v37, %s9064_s15  ;;  %5936 = vrot.lane.b32.xlu0 %v5856_v16, %s9064_s15  ;;  %v8671_v37 = vrot.slane %v6594_v54, 9  ;;  %v6597_v16 = vld [vmem:[#allocation4 + $0x18] sm:$0xe]  ;;  %v7176_v47 = vrot.slane %v7174_v26, 4  ;;  %v8975_v54 = vld [vmem:[%s11969_s3 + $0x18] sm:$0xff]  }
 0x432   : > { %5497 = vst.msk [vmem:[#allocation5 + $0x68] sm:$0xf] %vm5470_vm1, %v5427_v11  ;;  %v5429_v30 = vpop.permute.xlu1 %5428  ;;  %v6127_v11 = vrot.slane %v6125_v1, 5  ;;  %v7193_v1 = vshll.u32 %v7127_v0, 16 }
 0x433   : > { %5498 = vst.msk [vmem:[#allocation5 + $0x6c] sm:$0xf] %vm5470_vm1, %v5429_v30  ;;  %v6693_v25 = vsel %vm9554_vm13, %v8671_v37, %v6692_v28 }
 0x435   : > { %v5431_v50 = vpop.permute.xlu0 %5430  ;;  %5938 = vrot.lane.b32.xlu1 %v5857_v45, %s9064_s15  ;;  %5940 = vrot.lane.b32.xlu0 %v5858_v46, %s9064_s15  ;;  %v7126_v45 = vld [vmem:[#allocation4 + $0x1c] sm:$0xf]  ;;  %v6128_v46 = vsel %vm9290_vm10, %v6123_v29, %v6127_v11 }
 0x436   : > { %5499 = vst.msk [vmem:[#allocation5 + $0x70] sm:$0xf] %vm5470_vm1, %v5431_v50  ;;  %v7177_v50 = vshll.u32 %v7125_v36, 16  ;;  %v7183_v53 = vshll.u32 %v7126_v45, 16  ;;  %v7187_v57 = vshrl.u32 %v7126_v45, 16 }
 0x437   : > { %v5433_v41 = vpop.permute.xlu1 %5432  ;;  %v7687_v36 = vld [vmem:[#allocation4 + $0x1c] sm:$0xf] }
 0x438   : > { %5500 = vst.msk [vmem:[#allocation5 + $0x74] sm:$0xf] %vm5470_vm1, %v5433_v41  ;;  %v6695_v41 = vrot.slane %v6596_v49, 5  ;;  %v7179_v2 = vrot.slane %v7177_v50, 5  ;;  %v7185_v5 = vrot.slane %v7183_v53, 5  ;;  %v7189_v6 = vrot.slane %v7187_v57, 4 }
 0x439   : > { %5942 = vrot.lane.b32.xlu1 %v5859_v38, %s9064_s15  ;;  %5944 = vrot.lane.b32.xlu0 %v5860_v14, %s9064_s15  ;;  %v8672_v38 = vrot.slane %v6597_v16, 9  ;;  %v7686_v49 = vld [vmem:[#allocation4 + $0x18] sm:$0xe]  ;;  %v6935_v16 = vld [vmem:[#allocation4 + $0x28] sm:$0xf]  ;;  %v7215_v53 = vrot.slane %v7214_v34, 4 }
 0x43a   : > { %v6696_v22 = vsel %vm9554_vm13, %v6694_v31, %v6695_v41  ;;  %v7180_v62 = vor.u32 %v7179_v2, %v7176_v47  ;;  %v8687_v50 = vrot.slane %v7686_v49, 9  ;;  %v7784_v41 = vrot.slane %v7687_v36, 5  ;;  %v7690_v57 = vld [vmem:[#allocation4 + $0x28] sm:$0xf] }
 0x43b   : > { %v6700_v63 = vsel %vm9554_vm13, %v8672_v38, %v6699_v44 }
 0x43c   : > { %v7181_v17 = vrot.slane %v7180_v62, 4 }
 0x43d   : > { %5946 = vrot.lane.b32.xlu1 %v5861_v4, %s9064_s15  ;;  %5948 = vrot.lane.b32.xlu0 %v5862_v59, %s9064_s15  ;;  %v6701_v59 = vrot.slane %v6699_v44, 4  ;;  %v7198_v4 = vshrl.u32 %v7128_v55, 16  ;;  %v6040_v44 = vld [vmem:[#allocation4 + $0x28] sm:$0xf] }
 0x43e   : > { %v6143_v39 = vshrl.u32 %v6040_v44, 16 }
 0x43f   : > { %v5435_v52 = vpop.permute.xlu0 %5434  ;;  %v7200_v12 = vrot.slane %v7198_v4, 4  ;;  %v7688_v4 = vld [vmem:[#allocation4 + $0x20] sm:$0x1] }
 0x440   : > { %5501 = vst.msk [vmem:[#allocation5 + $0x78] sm:$0xf] %vm5470_vm1, %v5435_v52 }
 0x441   : > { %5950 = vrot.lane.b32.xlu1 %v5863_v21, %s9064_s15  ;;  %5952 = vrot.lane.b32.xlu0 %v5864_v10, %s9064_s15  ;;  %v6703_v10 = vsel %vm9554_vm13, %v6701_v59, %v6702_v33  ;;  %v6043_v59 = vld [vmem:[#allocation4 + $0x34] sm:$0xf]  ;;  %v7785_v33 = vsel %vm9554_vm13, %v8687_v50, %v7784_v41  ;;  %v6600_v50 = vld [vmem:[#allocation4 + $0x24] sm:$0xe] }
 0x442   : > { %v6163_v62 = vshll.u32 %v6043_v59, 16 }
 0x443   : > { %v5437_v15 = vpop.permute.xlu1 %5436  ;;  %v5712_v8 = vpop.permute.xlu0 %5711 }
 0x444   : > { %5502 = vst.msk [vmem:[#allocation5 + $0x7c] sm:$0xf] %vm5470_vm1, %v5437_v15  ;;  %v8974_v15 = vld [vmem:[%s11969_s3 + $0x20] ss:$0 sps:$4 sm:$0xff]  }
 0x445   : > { %5808 = vst.msk [vmem:[#allocation5] sm:$0xf] %vm5807_vm8, %v5712_v8  ;;  %5954 = vrot.lane.b32.xlu1 %v5865_v19, %s9064_s15  ;;  %6465 = vrot.lane.b32.xlu0 %v6094_v43, %s9066_s7  ;;  %v7190_v8 = vor.u32 %v7189_v6, %v7185_v5  ;;  %v6933_v43 = vld [vmem:[#allocation4 + $0x1c] sm:$0xf]  ;;  %v8229_v42 = vsel %vm8227_vm0, %v8974_v15, 0 }
 0x446   : > { %8901 = vmatprep.subr.msk.bf16.mxu1 %vm8227_vm0, %v8974_v15  ;;  %v7689_v6 = vld [vmem:[#allocation4 + $0x24] sm:$0xe]  ;;  %v6167_v15 = vshrl.u32 %v6043_v59, 16 }
 0x447   : > { %v5714_v24 = vpop.permute.xlu1 %5713  ;;  %v5716_v27 = vpop.permute.xlu0 %5715  ;;  %8859 = vmatpush3.bf16.msra.mxu1 %v8229_v42  ;;  %v7191_v28 = vrot.slane %v7190_v8, 4  ;;  %v7787_v8 = vrot.slane %v7688_v4, 5 }
 0x448   : > { %5809 = vst.msk [vmem:[#allocation5 + $0x4] sm:$0xf] %vm5807_vm8, %v5714_v24  ;;  %5810 = vst.msk [vmem:[#allocation5 + $0x8] sm:$0xf] %vm5807_vm8, %v5716_v27  ;;  %v7204_v24 = vor.u32 %v7203_v13, %v7200_v12  ;;  %v6039_v27 = vld [vmem:[#allocation4 + $0x24] sm:$0xf]  ;;  %8860 = vmatprep.subr.bf16.mxu1 %v8975_v54 }
 0x449   : > { %6467 = vrot.lane.b32.xlu1 %v6104_v32, %s9066_s7  ;;  %6469 = vrot.lane.b32.xlu0 %v6118_v48, %s9066_s7  ;;  %v7130_v32 = vld [vmem:[#allocation4 + $0x2c] sm:$0x1]  ;;  %v6130_v11 = vshrl.u32 %v6039_v27, 16  ;;  %v6133_v37 = vshll.u32 %v6039_v27, 16  ;;  %v6145_v12 = vrot.slane %v6143_v39, 4 }
 0x44a   : > { %v7205_v31 = vrot.slane %v7204_v24, 4  ;;  %v7217_v45 = vshll.u32 %v7130_v32, 16  ;;  %v6165_v24 = vrot.slane %v6163_v62, 5  ;;  %v6169_v32 = vrot.slane %v6167_v15, 4  ;;  %v6603_v39 = vld [vmem:[#allocation4 + $0x30] sm:$0xe] }
 0x44b   : > { %v5718_v30 = vpop.permute.xlu1 %5717  ;;  %v5720_v40 = vpop.permute.xlu0 %5719  ;;  %8861 = vmatpush3.bf16.msra.mxu1 %v8975_v54  ;;  %v7135_v15 = vld [vmem:[#allocation4 + $0x40] sm:$0xf] }
 0x44c   : > { %5811 = vst.msk [vmem:[#allocation5 + $0xc] sm:$0xf] %vm5807_vm8, %v5718_v30  ;;  %5812 = vst.msk [vmem:[#allocation5 + $0x10] sm:$0xf] %vm5807_vm8, %v5720_v40  ;;  %v7186_v30 = vsel %vm9290_vm10, %v7181_v17, %v7185_v5  ;;  %v7195_v40 = vrot.slane %v7193_v1, 5  ;;  %v7219_v3 = vrot.slane %v7217_v45, 5 }
 0x44d   : > { %6471 = vrot.lane.b32.xlu1 %v6128_v46, %s9066_s7  ;;  %6802 = vrot.lane.b32.xlu0 %v6693_v25, %s9067_s13  ;;  %v6042_v46 = vld [vmem:[#allocation4 + $0x30] sm:$0xf]  ;;  %v8976_v25 = vld [vmem:[%s11969_s3 + $0x10] sm:$0xff]   ;;  %v7786_v5 = vrot.slane %v7784_v41, 4  ;;  %v6041_v1 = vld [vmem:[#allocation4 + $0x2c] sm:$0x1] }
 0x44e   : > { %v7196_v26 = vsel %vm9290_vm10, %v7191_v28, %v7195_v40  ;;  %8862 = vmatprep.subr.bf16.mxu1 %v8976_v25  ;;  %v6154_v47 = vshrl.u32 %v6042_v46, 16  ;;  %v6157_v2 = vshll.u32 %v6042_v46, 16  ;;  %v7220_v61 = vsel %vm9290_vm10, %v7215_v53, %v7219_v3  ;;  %v6604_v53 = vld [vmem:[#allocation4 + $0x34] sm:$0xf] }
 0x44f   : > { %v5722_v14 = vpop.permute.xlu1 %5721  ;;  %v5724_v58 = vpop.permute.xlu0 %5723  ;;  %8863 = vmatpush3.bf16.msra.mxu1 %v8976_v25  ;;  %v7788_v42 = vsel %vm9554_vm13, %v7786_v5, %v7787_v8  ;;  %v7132_v5 = vld [vmem:[#allocation4 + $0x34] sm:$0xf] }
 0x450   : > { %5813 = vst.msk [vmem:[#allocation5 + $0x14] sm:$0xf] %vm5807_vm8, %v5722_v14  ;;  %5814 = vst.msk [vmem:[#allocation5 + $0x18] sm:$0xf] %vm5807_vm8, %v5724_v58  ;;  %v6132_v14 = vrot.slane %v6130_v11, 4  ;;  %v6135_v58 = vrot.slane %v6133_v37, 5  ;;  %8864 = vmatprep.subr.bf16.mxu1 %v8977_v60 }
 0x451   : > { %6804 = vrot.lane.b32.xlu1 %v6696_v22, %s9067_s13  ;;  %6806 = vrot.lane.b32.xlu0 %v6700_v63, %s9067_s13  ;;  %v6139_v22 = vshll.u32 %v6040_v44, 16  ;;  %v7210_v63 = vsel %vm9290_vm10, %v7205_v31, %v7209_v20  ;;  %v6156_v13 = vrot.slane %v6154_v47, 4  ;;  %v6159_v0 = vrot.slane %v6157_v2, 5  ;;  %v6044_v11 = vld [vmem:[#allocation4 + $0x38] sm:$0x1] }
 0x452   : > { %v6601_v37 = vld [vmem:[#allocation4 + $0x28] sm:$0xf]  ;;  %v6170_v31 = vor.u32 %v6169_v32, %v6165_v24  ;;  %v6173_v45 = vshll.u32 %v6044_v11, 16  ;;  %v6713_v2 = vrot.slane %v6604_v53, 5  ;;  %v6937_v11 = vld [vmem:[#allocation4 + $0x34] sm:$0xf] }
 0x453   : > { %v5726_v52 = vpop.permute.xlu1 %5725  ;;  %v5728_v21 = vpop.permute.xlu0 %5727  ;;  %8865 = vmatpush3.bf16.msra.mxu1 %v8977_v60  ;;  %v6160_v28 = vor.u32 %v6159_v0, %v6156_v13  ;;  %v6706_v46 = vrot.slane %v6601_v37, 5  ;;  %v7231_v0 = vshll.u32 %v7132_v5, 16  ;;  %v7133_v37 = vld [vmem:[#allocation4 + $0x38] sm:$0x1] }
 0x454   : > { %5815 = vst.msk [vmem:[#allocation5 + $0x1c] sm:$0xf] %vm5807_vm8, %v5726_v52  ;;  %5816 = vst.msk [vmem:[#allocation5 + $0x20] sm:$0xf] %vm5807_vm8, %v5728_v21  ;;  %v7791_v52 = vrot.slane %v7690_v57, 5 }
 0x455   : > { %6808 = vrot.lane.b32.xlu1 %v6703_v10, %s9067_s13  ;;  %6996 = vrot.lane.b32.xlu0 %v6932_v56, %s9068_s14  ;;  %v6136_v10 = vor.u32 %v6135_v58, %v6132_v14  ;;  %v6141_v56 = vrot.slane %v6139_v22, 5  ;;  %v6161_v40 = vrot.slane %v6160_v28, 4  ;;  %v7131_v57 = vld [vmem:[#allocation4 + $0x30] sm:$0xf]  ;;  %v6602_v14 = vld [vmem:[#allocation4 + $0x2c] sm:$0x1] }
 0x456   : > { %v7793_v17 = vrot.slane %v7791_v52, 4  ;;  %v6175_v58 = vrot.slane %v6173_v45, 5  ;;  %v8673_v22 = vrot.slane %v6600_v50, 9  ;;  %v7222_v3 = vshrl.u32 %v7131_v57, 16 }
 0x457   : > { %v5730_v9 = vpop.permute.xlu1 %5729  ;;  %v5732_v19 = vpop.permute.xlu0 %5731  ;;  %v6137_v27 = vrot.slane %v6136_v10, 4  ;;  %v6146_v54 = vor.u32 %v6145_v12, %v6141_v56  ;;  %v6715_v12 = vrot.slane %v6713_v2, 4  ;;  %v7241_v45 = vshll.u32 %v7133_v37, 16 }
 0x458   : > { %5817 = vst.msk [vmem:[#allocation5 + $0x24] sm:$0xf] %vm5807_vm8, %v5730_v9  ;;  %5818 = vst.msk [vmem:[#allocation5 + $0x28] sm:$0xf] %vm5807_vm8, %v5732_v19  ;;  %v8688_v9 = vrot.slane %v7689_v6, 9  ;;  %v8978_v19 = vld [vmem:[%s11969_s3] sm:$0xff]   ;;  %v6707_v60 = vsel %vm9554_vm13, %v8673_v22, %v6706_v46 }
 0x459   : > { %6998 = vrot.lane.b32.xlu1 %v6933_v43, %s9068_s14  ;;  %7000 = vrot.lane.b32.xlu0 %v6934_v23, %s9068_s14  ;;  %v7691_v43 = vld [vmem:[#allocation4 + $0x2c] sm:$0x1]  ;;  %v7225_v6 = vshll.u32 %v7131_v57, 16  ;;  %v7224_v13 = vrot.slane %v7222_v3, 4  ;;  %v6939_v57 = vld [vmem:[#allocation4 + $0x40] sm:$0xf] }
 0x45a   : > { %v7792_v23 = vsel %vm9554_vm13, %v8688_v9, %v7791_v52  ;;  %8866 = vmatprep.subr.bf16.mxu1 %v8978_v19  ;;  %v8674_v52 = vrot.slane %v6603_v39, 9  ;;  %v7235_v9 = vshrl.u32 %v7132_v5, 16  ;;  %v7696_v5 = vld [vmem:[#allocation4 + $0x40] sm:$0xf] }
 0x45b   : > { %v5734_v48 = vpop.permute.xlu1 %5733  ;;  %v5736_v29 = vpop.permute.xlu0 %5735  ;;  %8867 = vmatpush3.bf16.msra.mxu1 %v8978_v19  ;;  %v7227_v8 = vrot.slane %v7225_v6, 5 }
 0x45c   : > { %5819 = vst.msk [vmem:[#allocation5 + $0x2c] sm:$0xf] %vm5807_vm8, %v5734_v48  ;;  %5820 = vst.msk [vmem:[#allocation5 + $0x30] sm:$0xf] %vm5807_vm8, %v5736_v29  ;;  %v7794_v48 = vrot.slane %v7691_v43, 5  ;;  %v6149_v29 = vshll.u32 %v6041_v1, 16  ;;  %v6714_v62 = vsel %vm9554_vm13, %v8674_v52, %v6713_v2 }
 0x45d   : > { %7002 = vrot.lane.b32.xlu1 %v6935_v16, %s9068_s14  ;;  %7557 = vrot.lane.b32.xlu0 %v7186_v30, %s9069_s26  ;;  %v6142_v16 = vsel %vm9290_vm10, %v6137_v27, %v6141_v56  ;;  %v6147_v30 = vrot.slane %v6146_v54, 4  ;;  %v6936_v27 = vld [vmem:[#allocation4 + $0x30] sm:$0xf]  ;;  %v7228_v54 = vor.u32 %v7227_v8, %v7224_v13  ;;  %v7237_v28 = vrot.slane %v7235_v9, 4  ;;  %v6049_v13 = vld [vmem:[#allocation4 + $0x4c] sm:$0xf] }
 0x45e   : > { %v7795_v36 = vsel %vm9554_vm13, %v7793_v17, %v7794_v48  ;;  %v6151_v44 = vrot.slane %v6149_v29, 5  ;;  %v7695_v9 = vld [vmem:[#allocation4 + $0x3c] sm:$0xe] }
 0x45f   : > { %v5738_v38 = vpop.permute.xlu1 %5737  ;;  %v5740_v55 = vpop.permute.xlu0 %5739 }
 0x460   : > { %5821 = vst.msk [vmem:[#allocation5 + $0x34] sm:$0xf] %vm5807_vm8, %v5738_v38  ;;  %5822 = vst.msk [vmem:[#allocation5 + $0x38] sm:$0xf] %vm5807_vm8, %v5740_v55  ;;  %v6152_v41 = vsel %vm9290_vm10, %v6147_v30, %v6151_v44  ;;  %v6166_v38 = vsel %vm9290_vm10, %v6161_v40, %v6165_v24  ;;  %v6171_v55 = vrot.slane %v6170_v31, 4  ;;  %v7233_v24 = vrot.slane %v7231_v0, 5 }
 0x461   : > { %7559 = vrot.lane.b32.xlu1 %v7196_v26, %s9069_s26  ;;  %7561 = vrot.lane.b32.xlu0 %v7210_v63, %s9069_s26  ;;  %v6708_v63 = vrot.slane %v6706_v46, 4  ;;  %v7229_v30 = vrot.slane %v7228_v54, 4  ;;  %v6045_v44 = vld [vmem:[#allocation4 + $0x3c] sm:$0xf]  ;;  %v7136_v46 = vld [vmem:[#allocation4 + $0x44] sm:$0x1] }
 0x462   : > { %v6176_v4 = vsel %vm9290_vm10, %v6171_v55, %v6175_v58  ;;  %v7238_v40 = vor.u32 %v7237_v28, %v7233_v24  ;;  %v6178_v55 = vshrl.u32 %v6045_v44, 16  ;;  %v6181_v53 = vshll.u32 %v6045_v44, 16 }
 0x463   : > { %v5742_v21 = vpop.permute.xlu1 %5741  ;;  %v5744_v7 = vpop.permute.xlu0 %5743  ;;  %v7265_v39 = vshll.u32 %v7136_v46, 16  ;;  %v6215_v54 = vshrl.u32 %v6049_v13, 16 }
 0x464   : > { %5823 = vst.msk [vmem:[#allocation5 + $0x3c] sm:$0xf] %vm5807_vm8, %v5742_v21  ;;  %5824 = vst.msk [vmem:[#allocation5 + $0x40] sm:$0xf] %vm5807_vm8, %v5744_v7  ;;  %v7134_v21 = vld [vmem:[#allocation4 + $0x3c] sm:$0xf] }
 0x465   : > { %7563 = vrot.lane.b32.xlu1 %v7220_v61, %s9069_s26  ;;  %7894 = vrot.lane.b32.xlu0 %v7785_v33, %s9070_s10  ;;  %v6709_v33 = vrot.slane %v6602_v14, 5  ;;  %v6605_v61 = vld [vmem:[#allocation4 + $0x38] sm:$0x1]  ;;  %v7246_v19 = vshrl.u32 %v7134_v21, 16  ;;  %v7249_v43 = vshll.u32 %v7134_v21, 16  ;;  %v7234_v14 = vsel %vm9290_vm10, %v7229_v30, %v7233_v24 }
 0x466   : > { %v7239_v58 = vrot.slane %v7238_v40, 4  ;;  %v6180_v6 = vrot.slane %v6178_v55, 4  ;;  %v6183_v52 = vrot.slane %v6181_v53, 5  ;;  %v6217_v44 = vrot.slane %v6215_v54, 4 }
 0x467   : > { %v5746_v20 = vpop.permute.xlu1 %5745  ;;  %v5748_v18 = vpop.permute.xlu0 %5747  ;;  %v6710_v7 = vsel %vm9554_vm13, %v6708_v63, %v6709_v33  ;;  %v7248_v32 = vrot.slane %v7246_v19, 4  ;;  %v7251_v48 = vrot.slane %v7249_v43, 5  ;;  %v6046_v63 = vld [vmem:[#allocation4 + $0x40] sm:$0xf]  ;;  %v7805_v19 = vrot.slane %v7696_v5, 5 }
 0x468   : > { %5825 = vst.msk [vmem:[#allocation5 + $0x44] sm:$0xf] %vm5807_vm8, %v5746_v20  ;;  %5826 = vst.msk [vmem:[#allocation5 + $0x48] sm:$0xf] %vm5807_vm8, %v5748_v18  ;;  %v6716_v20 = vrot.slane %v6605_v61, 5  ;;  %v7255_v18 = vshll.u32 %v7135_v15, 16 }
 0x469   : > { %7896 = vrot.lane.b32.xlu1 %v7788_v42, %s9070_s10  ;;  %7898 = vrot.lane.b32.xlu0 %v7792_v23, %s9070_s10  ;;  %v7259_v42 = vshrl.u32 %v7135_v15, 16  ;;  %v7252_v31 = vor.u32 %v7251_v48, %v7248_v32  ;;  %v6187_v21 = vshll.u32 %v6046_v63, 16  ;;  %v7694_v15 = vld [vmem:[#allocation4 + $0x38] sm:$0x1]  ;;  %v8690_v32 = vrot.slane %v7695_v9, 9 }
 0x46a   : > { %v6717_v1 = vsel %vm9554_vm13, %v6715_v12, %v6716_v20  ;;  %v7257_v29 = vrot.slane %v7255_v18, 5  ;;  %v7267_v12 = vrot.slane %v7265_v39, 5  ;;  %v7801_v28 = vrot.slane %v7694_v15, 5  ;;  %v7697_v48 = vld [vmem:[#allocation4 + $0x44] sm:$0x1] }
 0x46b   : > { %v5750_v34 = vpop.permute.xlu1 %5749  ;;  %v5752_v49 = vpop.permute.xlu0 %5751  ;;  %v7253_v22 = vrot.slane %v7252_v31, 4  ;;  %v6608_v5 = vld [vmem:[#allocation4 + $0x44] sm:$0x1]  ;;  %v7138_v15 = vld [vmem:[#allocation4 + $0x4c] sm:$0xf] }
 0x46c   : > { %5827 = vst.msk [vmem:[#allocation5 + $0x4c] sm:$0xf] %vm5807_vm8, %v5750_v34  ;;  %5828 = vst.msk [vmem:[#allocation5 + $0x50] sm:$0xf] %vm5807_vm8, %v5752_v49  ;;  %v7261_v34 = vrot.slane %v7259_v42, 4  ;;  %v6184_v42 = vor.u32 %v6183_v52, %v6180_v6 }
 0x46d   : > { %7900 = vrot.lane.b32.xlu1 %v7795_v36, %s9070_s10  ;;  %6473 = vrot.lane.b32.xlu0 %v6142_v16, %s9066_s7  ;;  %v6938_v16 = vld [vmem:[#allocation4 + $0x3c] sm:$0xf] }
 0x46e   : > { %v6185_v37 = vrot.slane %v6184_v42, 4 }
 0x46f   : > { %v5754_v25 = vpop.permute.xlu1 %5753  ;;  %v5756_v26 = vpop.permute.xlu0 %5755 }
 0x470   : > { %5829 = vst.msk [vmem:[#allocation5 + $0x54] sm:$0xf] %vm5807_vm8, %v5754_v25  ;;  %5830 = vst.msk [vmem:[#allocation5 + $0x58] sm:$0xf] %vm5807_vm8, %v5756_v26  ;;  %v7262_v25 = vor.u32 %v7261_v34, %v7257_v29 }
 0x471   : > { %6475 = vrot.lane.b32.xlu1 %v6152_v41, %s9066_s7  ;;  %6477 = vrot.lane.b32.xlu0 %v6166_v38, %s9066_s7  ;;  %v7692_v41 = vld [vmem:[#allocation4 + $0x30] sm:$0xe]  ;;  %v7693_v38 = vld [vmem:[#allocation4 + $0x34] sm:$0xf] }
 0x472   : > { %v7263_v2 = vrot.slane %v7262_v25, 4  ;;  %v8689_v3 = vrot.slane %v7692_v41, 9  ;;  %v6050_v41 = vld [vmem:[#allocation4 + $0x50] sm:$0x1] }
 0x473   : > { %v5758_v59 = vpop.permute.xlu1 %5757  ;;  %v5760_v47 = vpop.permute.xlu0 %5759 }
 0x474   : > { %5831 = vst.msk [vmem:[#allocation5 + $0x5c] sm:$0xf] %vm5807_vm8, %v5758_v59  ;;  %5832 = vst.msk [vmem:[#allocation5 + $0x60] sm:$0xf] %vm5807_vm8, %v5760_v47  ;;  %v6048_v59 = vld [vmem:[#allocation4 + $0x48] sm:$0xf]  ;;  %v7268_v18 = vsel %vm9290_vm10, %v7263_v2, %v7267_v12 }
 0x475   : > { %6479 = vrot.lane.b32.xlu1 %v6176_v4, %s9066_s7  ;;  %6810 = vrot.lane.b32.xlu0 %v6707_v60, %s9067_s13  ;;  %v7243_v47 = vrot.slane %v7241_v45, 5  ;;  %v7798_v4 = vrot.slane %v7693_v38, 5  ;;  %v7808_v45 = vrot.slane %v7697_v48, 5  ;;  %v6607_v38 = vld [vmem:[#allocation4 + $0x40] sm:$0xf] }
 0x477   : > { %v5762_v10 = vpop.permute.xlu1 %5761  ;;  %v5764_v56 = vpop.permute.xlu0 %5763  ;;  %v7244_v61 = vsel %vm9290_vm10, %v7239_v58, %v7243_v47  ;;  %v7799_v0 = vsel %vm9554_vm13, %v8689_v3, %v7798_v4  ;;  %v7800_v8 = vrot.slane %v7798_v4, 4  ;;  %v6606_v47 = vld [vmem:[#allocation4 + $0x3c] sm:$0xe] }
 0x478   : > { %5833 = vst.msk [vmem:[#allocation5 + $0x64] sm:$0xf] %vm5807_vm8, %v5762_v10  ;;  %5834 = vst.msk [vmem:[#allocation5 + $0x68] sm:$0xf] %vm5807_vm8, %v5764_v56  ;;  %v7258_v10 = vsel %vm9290_vm10, %v7253_v22, %v7257_v29  ;;  %v6202_v56 = vshrl.u32 %v6048_v59, 16  ;;  %v6221_v22 = vshll.u32 %v6050_v41, 16 }
 0x479   : > { %6812 = vrot.lane.b32.xlu1 %v6710_v7, %s9067_s13  ;;  %6814 = vrot.lane.b32.xlu0 %v6714_v62, %s9067_s13  ;;  %v6191_v7 = vshrl.u32 %v6046_v63, 16  ;;  %v6205_v62 = vshll.u32 %v6048_v59, 16  ;;  %v6720_v63 = vrot.slane %v6607_v38, 5  ;;  %v8675_v52 = vrot.slane %v6606_v47, 9  ;;  %v6941_v41 = vld [vmem:[#allocation4 + $0x4c] sm:$0xf] }
 0x47a   : > { %v6223_v6 = vrot.slane %v6221_v22, 5  ;;  %v7139_v38 = vld [vmem:[#allocation4 + $0x50] sm:$0x1] }
 0x47b   : > { %v5766_v23 = vpop.permute.xlu1 %5765  ;;  %v5768_v17 = vpop.permute.xlu0 %5767  ;;  %v6207_v24 = vrot.slane %v6205_v62, 5  ;;  %v7289_v22 = vshll.u32 %v7139_v38, 16 }
 0x47c   : > { %5835 = vst.msk [vmem:[#allocation5 + $0x6c] sm:$0xf] %vm5807_vm8, %v5766_v23  ;;  %5836 = vst.msk [vmem:[#allocation5 + $0x70] sm:$0xf] %vm5807_vm8, %v5768_v17  ;;  %v6189_v23 = vrot.slane %v6187_v21, 5  ;;  %v6193_v17 = vrot.slane %v6191_v7, 4 }
 0x47d   : > { %6816 = vrot.lane.b32.xlu1 %v6717_v1, %s9067_s13  ;;  %7004 = vrot.lane.b32.xlu0 %v6936_v27, %s9068_s14  ;;  %v6204_v1 = vrot.slane %v6202_v56, 4  ;;  %v6211_v27 = vshll.u32 %v6049_v13, 16  ;;  %v6722_v21 = vrot.slane %v6720_v63, 4  ;;  %v6609_v7 = vld [vmem:[#allocation4 + $0x48] sm:$0xe]  ;;  %v6721_v13 = vsel %vm9554_vm13, %v8675_v52, %v6720_v63 }
 0x47e   : > { %v6194_v30 = vor.u32 %v6193_v17, %v6189_v23  ;;  %v6190_v55 = vsel %vm9290_vm10, %v6185_v37, %v6189_v23  ;;  %v8676_v9 = vrot.slane %v6609_v7, 9  ;;  %v7142_v63 = vld [vmem:[#allocation4 + $0x5c] sm:$0x1] }
 0x47f   : > { %v5770_v49 = vpop.permute.xlu1 %5769  ;;  %v5772_v36 = vpop.permute.xlu0 %5771  ;;  %v6208_v40 = vor.u32 %v6207_v24, %v6204_v1  ;;  %v6213_v31 = vrot.slane %v6211_v27, 5  ;;  %v7279_v24 = vshll.u32 %v7138_v15, 16  ;;  %v7141_v27 = vld [vmem:[#allocation4 + $0x58] sm:$0xf]  ;;  %v7313_v7 = vshll.u32 %v7142_v63, 16 }
 0x480   : > { %5837 = vst.msk [vmem:[#allocation5 + $0x74] sm:$0xf] %vm5807_vm8, %v5770_v49  ;;  %5838 = vst.msk [vmem:[#allocation5 + $0x78] sm:$0xf] %vm5807_vm8, %v5772_v36  ;;  %v7802_v49 = vsel %vm9554_vm13, %v7800_v8, %v7801_v28  ;;  %v7806_v36 = vsel %vm9554_vm13, %v8690_v32, %v7805_v19  ;;  %v6195_v53 = vrot.slane %v6194_v30, 4  ;;  %v7283_v28 = vshrl.u32 %v7138_v15, 16 }
 0x481   : > { %7006 = vrot.lane.b32.xlu1 %v6937_v11, %s9068_s14  ;;  %7008 = vrot.lane.b32.xlu0 %v6938_v16, %s9068_s14  ;;  %v7807_v11 = vrot.slane %v7805_v19, 4  ;;  %v6047_v16 = vld [vmem:[#allocation4 + $0x44] sm:$0x1]  ;;  %v7140_v19 = vld [vmem:[#allocation4 + $0x54] sm:$0xf] }
 0x482   : > { %v6197_v46 = vshll.u32 %v6047_v16, 16  ;;  %v7294_v32 = vshrl.u32 %v7140_v19, 16  ;;  %v7297_v48 = vshll.u32 %v7140_v19, 16  ;;  %v7281_v16 = vrot.slane %v7279_v24, 5  ;;  %v6940_v30 = vld [vmem:[#allocation4 + $0x48] sm:$0xf] }
 0x483   : > { %v5774_v26 = vpop.permute.xlu1 %5773  ;;  %v5905_v50 = vpop.permute.xlu0 %5904  ;;  %v7702_v15 = vld [vmem:[#allocation4 + $0x58] sm:$0xf] }
 0x484   : > { %5839 = vst.msk [vmem:[#allocation5 + $0x7c] sm:$0xf] %vm5807_vm8, %v5774_v26  ;;  %v6199_v58 = vrot.slane %v6197_v46, 5 }
 0x485   : > { %6001 = vst.msk [vmem:[#allocation5] sm:$0xf] %vm6000_vm2, %v5905_v50  ;;  %7010 = vrot.lane.b32.xlu1 %v6939_v57, %s9068_s14  ;;  %7565 = vrot.lane.b32.xlu0 %v7234_v14, %s9069_s26  ;;  %v7809_v50 = vsel %vm9554_vm13, %v7807_v11, %v7808_v45  ;;  %v6209_v57 = vrot.slane %v6208_v40, 4  ;;  %v6218_v14 = vor.u32 %v6217_v44, %v6213_v31  ;;  %v7296_v44 = vrot.slane %v7294_v32, 4 }
 0x486   : > { %v6200_v2 = vsel %vm9290_vm10, %v6195_v53, %v6199_v58  ;;  %v7299_v45 = vrot.slane %v7297_v48, 5  ;;  %v6051_v58 = vld [vmem:[#allocation4 + $0x54] sm:$0xf]  ;;  %v7819_v32 = vrot.slane %v7702_v15, 5  ;;  %v6614_v15 = vld [vmem:[#allocation4 + $0x5c] sm:$0x1] }
 0x487   : > { %v5907_v60 = vpop.permute.xlu1 %5906  ;;  %v5909_v33 = vpop.permute.xlu0 %5908  ;;  %v6214_v3 = vsel %vm9290_vm10, %v6209_v57, %v6213_v31  ;;  %v6219_v4 = vrot.slane %v6218_v14, 4  ;;  %v7285_v31 = vrot.slane %v7283_v28, 4  ;;  %v7701_v28 = vld [vmem:[#allocation4 + $0x54] sm:$0xe] }
 0x488   : > { %6002 = vst.msk [vmem:[#allocation5 + $0x4] sm:$0xf] %vm6000_vm2, %v5907_v60  ;;  %6003 = vst.msk [vmem:[#allocation5 + $0x8] sm:$0xf] %vm6000_vm2, %v5909_v33  ;;  %v6610_v60 = vld [vmem:[#allocation4 + $0x4c] sm:$0xf]  ;;  %v7300_v14 = vor.u32 %v7299_v45, %v7296_v44 }
 0x489   : > { %7567 = vrot.lane.b32.xlu1 %v7244_v61, %s9069_s26  ;;  %7569 = vrot.lane.b32.xlu0 %v7258_v10, %s9069_s26  ;;  %v7137_v33 = vld [vmem:[#allocation4 + $0x48] sm:$0xf]  ;;  %v6727_v56 = vrot.slane %v6610_v60, 5  ;;  %v6224_v12 = vsel %vm9290_vm10, %v6219_v4, %v6223_v6  ;;  %v7286_v57 = vor.u32 %v7285_v31, %v7281_v16  ;;  %v6226_v4 = vshrl.u32 %v6051_v58, 16  ;;  %v7703_v45 = vld [vmem:[#allocation4 + $0x5c] sm:$0x1] }
 0x48a   : > { %v7270_v62 = vshrl.u32 %v7137_v33, 16  ;;  %v7273_v8 = vshll.u32 %v7137_v33, 16  ;;  %v6229_v60 = vshll.u32 %v6051_v58, 16  ;;  %v6943_v33 = vld [vmem:[#allocation4 + $0x58] sm:$0xf]  ;;  %v7301_v52 = vrot.slane %v7300_v14, 4 }
 0x48b   : > { %v5911_v43 = vpop.permute.xlu1 %5910  ;;  %v5913_v20 = vpop.permute.xlu0 %5912  ;;  %v6728_v23 = vsel %vm9554_vm13, %v8676_v9, %v6727_v56  ;;  %v6729_v17 = vrot.slane %v6727_v56, 4  ;;  %v7287_v6 = vrot.slane %v7286_v57, 4  ;;  %v8692_v44 = vrot.slane %v7701_v28, 9 }
 0x48c   : > { %6004 = vst.msk [vmem:[#allocation5 + $0xc] sm:$0xf] %vm6000_vm2, %v5911_v43  ;;  %6005 = vst.msk [vmem:[#allocation5 + $0x10] sm:$0xf] %vm6000_vm2, %v5913_v20  ;;  %v6611_v20 = vld [vmem:[#allocation4 + $0x50] sm:$0x1] }
 0x48d   : > { %7571 = vrot.lane.b32.xlu1 %v7268_v18, %s9069_s26  ;;  %7902 = vrot.lane.b32.xlu0 %v7799_v0, %s9070_s10  ;;  %v6723_v0 = vrot.slane %v6608_v5, 5  ;;  %v7272_v1 = vrot.slane %v7270_v62, 4  ;;  %v7275_v54 = vrot.slane %v7273_v8, 5  ;;  %v6228_v8 = vrot.slane %v6226_v4, 4 }
 0x48e   : > { %v6231_v9 = vrot.slane %v6229_v60, 5 }
 0x48f   : > { %v5915_v29 = vpop.permute.xlu1 %5914  ;;  %v5917_v34 = vpop.permute.xlu0 %5916  ;;  %v6724_v43 = vsel %vm9554_vm13, %v6722_v21, %v6723_v0  ;;  %v7276_v40 = vor.u32 %v7275_v54, %v7272_v1  ;;  %v6052_v21 = vld [vmem:[#allocation4 + $0x58] sm:$0xf]  ;;  %v6055_v1 = vld [vmem:[#allocation4 + $0x64] sm:$0xf] }
 0x490   : > { %6006 = vst.msk [vmem:[#allocation5 + $0x14] sm:$0xf] %vm6000_vm2, %v5915_v29  ;;  %6007 = vst.msk [vmem:[#allocation5 + $0x18] sm:$0xf] %vm6000_vm2, %v5917_v34  ;;  %v6730_v29 = vrot.slane %v6611_v20, 5  ;;  %v7303_v34 = vshll.u32 %v7141_v27, 16 }
 0x491   : > { %7904 = vrot.lane.b32.xlu1 %v7802_v49, %s9070_s10  ;;  %7906 = vrot.lane.b32.xlu0 %v7806_v36, %s9070_s10  ;;  %v7307_v49 = vshrl.u32 %v7141_v27, 16  ;;  %v7277_v53 = vrot.slane %v7276_v40, 4  ;;  %v6235_v19 = vshll.u32 %v6052_v21, 16  ;;  %v7700_v27 = vld [vmem:[#allocation4 + $0x50] sm:$0x1]  ;;  %v6263_v40 = vshrl.u32 %v6055_v1, 16 }
 0x492   : > { %v6731_v37 = vsel %vm9554_vm13, %v6729_v17, %v6730_v29  ;;  %v7305_v46 = vrot.slane %v7303_v34, 5  ;;  %v7315_v17 = vrot.slane %v7313_v7, 5  ;;  %v7815_v31 = vrot.slane %v7700_v27, 5  ;;  %v7144_v27 = vld [vmem:[#allocation4 + $0x64] sm:$0xf] }
 0x493   : > { %v5919_v25 = vpop.permute.xlu1 %5918  ;;  %v5921_v26 = vpop.permute.xlu0 %5920  ;;  %v7282_v5 = vsel %vm9290_vm10, %v7277_v53, %v7281_v16  ;;  %v6265_v58 = vrot.slane %v6263_v40, 4 }
 0x494   : > { %6008 = vst.msk [vmem:[#allocation5 + $0x1c] sm:$0xf] %vm6000_vm2, %v5919_v25  ;;  %6009 = vst.msk [vmem:[#allocation5 + $0x20] sm:$0xf] %vm6000_vm2, %v5921_v26  ;;  %v7309_v25 = vrot.slane %v7307_v49, 4  ;;  %v6232_v49 = vor.u32 %v6231_v9, %v6228_v8 }
 0x495   : > { %7908 = vrot.lane.b32.xlu1 %v7809_v50, %s9070_s10  ;;  %6481 = vrot.lane.b32.xlu0 %v6190_v55, %s9066_s7  ;;  %v6942_v55 = vld [vmem:[#allocation4 + $0x54] sm:$0xf] }
 0x496   : > { %v6233_v38 = vrot.slane %v6232_v49, 4 }
 0x497   : > { %v5923_v39 = vpop.permute.xlu1 %5922  ;;  %v5925_v59 = vpop.permute.xlu0 %5924 }
 0x498   : > { %6010 = vst.msk [vmem:[#allocation5 + $0x24] sm:$0xf] %vm6000_vm2, %v5923_v39  ;;  %6011 = vst.msk [vmem:[#allocation5 + $0x28] sm:$0xf] %vm6000_vm2, %v5925_v59  ;;  %v7310_v39 = vor.u32 %v7309_v25, %v7305_v46 }
 0x499   : > { %6483 = vrot.lane.b32.xlu1 %v6200_v2, %s9066_s7  ;;  %6485 = vrot.lane.b32.xlu0 %v6214_v3, %s9066_s7  ;;  %v7698_v2 = vld [vmem:[#allocation4 + $0x48] sm:$0xe]  ;;  %v7699_v3 = vld [vmem:[#allocation4 + $0x4c] sm:$0xf] }
 0x49a   : > { %v7311_v56 = vrot.slane %v7310_v39, 4  ;;  %v8691_v62 = vrot.slane %v7698_v2, 9  ;;  %v6056_v2 = vld [vmem:[#allocation4 + $0x68] sm:$0x1] }
 0x49b   : > { %v5927_v61 = vpop.permute.xlu1 %5926  ;;  %v5929_v10 = vpop.permute.xlu0 %5928 }
 0x49c   : > { %6012 = vst.msk [vmem:[#allocation5 + $0x2c] sm:$0xf] %vm6000_vm2, %v5927_v61  ;;  %6013 = vst.msk [vmem:[#allocation5 + $0x30] sm:$0xf] %vm6000_vm2, %v5929_v10  ;;  %v6054_v61 = vld [vmem:[#allocation4 + $0x60] sm:$0xf]  ;;  %v7316_v34 = vsel %vm9290_vm10, %v7311_v56, %v7315_v17 }
 0x49d   : > { %6487 = vrot.lane.b32.xlu1 %v6224_v12, %s9066_s7  ;;  %6818 = vrot.lane.b32.xlu0 %v6721_v13, %s9067_s13  ;;  %v7291_v10 = vrot.slane %v7289_v22, 5  ;;  %v7812_v12 = vrot.slane %v7699_v3, 5  ;;  %v7822_v22 = vrot.slane %v7703_v45, 5  ;;  %v6613_v3 = vld [vmem:[#allocation4 + $0x58] sm:$0xf] }
 0x49f   : > { %v5931_v18 = vpop.permute.xlu1 %5930  ;;  %v5933_v42 = vpop.permute.xlu0 %5932  ;;  %v7292_v20 = vsel %vm9290_vm10, %v7287_v6, %v7291_v10  ;;  %v7813_v24 = vsel %vm9554_vm13, %v8691_v62, %v7812_v12  ;;  %v7814_v54 = vrot.slane %v7812_v12, 4  ;;  %v6612_v10 = vld [vmem:[#allocation4 + $0x54] sm:$0xe] }
 0x4a0   : > { %6014 = vst.msk [vmem:[#allocation5 + $0x34] sm:$0xf] %vm6000_vm2, %v5931_v18  ;;  %6015 = vst.msk [vmem:[#allocation5 + $0x38] sm:$0xf] %vm6000_vm2, %v5933_v42  ;;  %v7306_v18 = vsel %vm9290_vm10, %v7301_v52, %v7305_v46  ;;  %v6250_v42 = vshrl.u32 %v6054_v61, 16  ;;  %v6269_v52 = vshll.u32 %v6056_v2, 16 }
 0x4a1   : > { %6820 = vrot.lane.b32.xlu1 %v6724_v43, %s9067_s13  ;;  %6822 = vrot.lane.b32.xlu0 %v6728_v23, %s9067_s13  ;;  %v6239_v43 = vshrl.u32 %v6052_v21, 16  ;;  %v6253_v23 = vshll.u32 %v6054_v61, 16  ;;  %v6734_v21 = vrot.slane %v6613_v3, 5  ;;  %v8677_v9 = vrot.slane %v6612_v10, 9  ;;  %v6945_v2 = vld [vmem:[#allocation4 + $0x64] sm:$0xf] }
 0x4a2   : > { %v6271_v8 = vrot.slane %v6269_v52, 5  ;;  %v7145_v3 = vld [vmem:[#allocation4 + $0x68] sm:$0x1] }
 0x4a3   : > { %v5935_v36 = vpop.permute.xlu1 %5934  ;;  %v5937_v11 = vpop.permute.xlu0 %5936  ;;  %v6255_v16 = vrot.slane %v6253_v23, 5  ;;  %v7337_v52 = vshll.u32 %v7145_v3, 16 }
 0x4a4   : > { %6016 = vst.msk [vmem:[#allocation5 + $0x3c] sm:$0xf] %vm6000_vm2, %v5935_v36  ;;  %6017 = vst.msk [vmem:[#allocation5 + $0x40] sm:$0xf] %vm6000_vm2, %v5937_v11  ;;  %v6237_v36 = vrot.slane %v6235_v19, 5  ;;  %v6241_v11 = vrot.slane %v6239_v43, 4 }
 0x4a5   : > { %6824 = vrot.lane.b32.xlu1 %v6731_v37, %s9067_s13  ;;  %7012 = vrot.lane.b32.xlu0 %v6940_v30, %s9068_s14  ;;  %v6252_v37 = vrot.slane %v6250_v42, 4  ;;  %v6259_v30 = vshll.u32 %v6055_v1, 16  ;;  %v6736_v19 = vrot.slane %v6734_v21, 4  ;;  %v6615_v43 = vld [vmem:[#allocation4 + $0x60] sm:$0xe]  ;;  %v6735_v1 = vsel %vm9554_vm13, %v8677_v9, %v6734_v21 }
 0x4a6   : > { %v6242_v53 = vor.u32 %v6241_v11, %v6237_v36  ;;  %v6238_v4 = vsel %vm9290_vm10, %v6233_v38, %v6237_v36  ;;  %v8678_v28 = vrot.slane %v6615_v43, 9  ;;  %v7148_v21 = vld [vmem:[#allocation4 + $0x74] sm:$0x1] }
 0x4a7   : > { %v5939_v26 = vpop.permute.xlu1 %5938  ;;  %v5941_v50 = vpop.permute.xlu0 %5940  ;;  %v6256_v57 = vor.u32 %v6255_v16, %v6252_v37  ;;  %v6261_v14 = vrot.slane %v6259_v30, 5  ;;  %v7327_v16 = vshll.u32 %v7144_v27, 16  ;;  %v7147_v30 = vld [vmem:[#allocation4 + $0x70] sm:$0xf]  ;;  %v7361_v43 = vshll.u32 %v7148_v21, 16 }
 0x4a8   : > { %6018 = vst.msk [vmem:[#allocation5 + $0x44] sm:$0xf] %vm6000_vm2, %v5939_v26  ;;  %6019 = vst.msk [vmem:[#allocation5 + $0x48] sm:$0xf] %vm6000_vm2, %v5941_v50  ;;  %v7816_v26 = vsel %vm9554_vm13, %v7814_v54, %v7815_v31  ;;  %v7820_v50 = vsel %vm9554_vm13, %v8692_v44, %v7819_v32  ;;  %v6243_v60 = vrot.slane %v6242_v53, 4  ;;  %v7331_v31 = vshrl.u32 %v7144_v27, 16 }
 0x4a9   : > { %7014 = vrot.lane.b32.xlu1 %v6941_v41, %s9068_s14  ;;  %7016 = vrot.lane.b32.xlu0 %v6942_v55, %s9068_s14  ;;  %v7821_v41 = vrot.slane %v7819_v32, 4  ;;  %v6053_v55 = vld [vmem:[#allocation4 + $0x5c] sm:$0x1]  ;;  %v7146_v32 = vld [vmem:[#allocation4 + $0x6c] sm:$0xf] }
 0x4aa   : > { %v6245_v63 = vshll.u32 %v6053_v55, 16  ;;  %v7342_v44 = vshrl.u32 %v7146_v32, 16  ;;  %v7345_v45 = vshll.u32 %v7146_v32, 16  ;;  %v7329_v55 = vrot.slane %v7327_v16, 5  ;;  %v6944_v53 = vld [vmem:[#allocation4 + $0x60] sm:$0xf] }
 0x4ab   : > { %v5943_v59 = vpop.permute.xlu1 %5942  ;;  %v5945_v47 = vpop.permute.xlu0 %5944  ;;  %v7708_v27 = vld [vmem:[#allocation4 + $0x70] sm:$0xf] }
 0x4ac   : > { %6020 = vst.msk [vmem:[#allocation5 + $0x4c] sm:$0xf] %vm6000_vm2, %v5943_v59  ;;  %6021 = vst.msk [vmem:[#allocation5 + $0x50] sm:$0xf] %vm6000_vm2, %v5945_v47  ;;  %v7823_v47 = vsel %vm9554_vm13, %v7821_v41, %v7822_v22  ;;  %v6247_v6 = vrot.slane %v6245_v63, 5  ;;  %v7347_v22 = vrot.slane %v7345_v45, 5 }
 0x4ad   : > { %7018 = vrot.lane.b32.xlu1 %v6943_v33, %s9068_s14  ;;  %7573 = vrot.lane.b32.xlu0 %v7282_v5, %s9069_s26  ;;  %v6257_v33 = vrot.slane %v6256_v57, 4  ;;  %v6266_v5 = vor.u32 %v6265_v58, %v6261_v14  ;;  %v7344_v58 = vrot.slane %v7342_v44, 4  ;;  %v7833_v44 = vrot.slane %v7708_v27, 5  ;;  %v6622_v27 = vld [vmem:[#allocation4 + $0x7c] sm:$0xf] }
 0x4ae   : > { %v6248_v56 = vsel %vm9290_vm10, %v6243_v60, %v6247_v6  ;;  %v6057_v6 = vld [vmem:[#allocation4 + $0x6c] sm:$0xf] }
 0x4af   : > { %v5947_v13 = vpop.permute.xlu1 %5946  ;;  %v5949_v0 = vpop.permute.xlu0 %5948  ;;  %v6262_v62 = vsel %vm9290_vm10, %v6257_v33, %v6261_v14  ;;  %v6267_v12 = vrot.slane %v6266_v5, 4  ;;  %v7333_v14 = vrot.slane %v7331_v31, 4  ;;  %v7348_v5 = vor.u32 %v7347_v22, %v7344_v58  ;;  %v7707_v31 = vld [vmem:[#allocation4 + $0x6c] sm:$0xe]  ;;  %v7709_v22 = vld [vmem:[#allocation4 + $0x74] sm:$0x1] }
 0x4b0   : > { %6022 = vst.msk [vmem:[#allocation5 + $0x54] sm:$0xf] %vm6000_vm2, %v5947_v13  ;;  %6023 = vst.msk [vmem:[#allocation5 + $0x58] sm:$0xf] %vm6000_vm2, %v5949_v0  ;;  %v6616_v13 = vld [vmem:[#allocation4 + $0x64] sm:$0xf] }
 0x4b1   : > { %7575 = vrot.lane.b32.xlu1 %v7292_v20, %s9069_s26  ;;  %7577 = vrot.lane.b32.xlu0 %v7306_v18, %s9069_s26  ;;  %v7143_v0 = vld [vmem:[#allocation4 + $0x60] sm:$0xf]  ;;  %v6741_v42 = vrot.slane %v6616_v13, 5  ;;  %v6272_v17 = vsel %vm9290_vm10, %v6267_v12, %v6271_v8  ;;  %v7334_v33 = vor.u32 %v7333_v14, %v7329_v55  ;;  %v6274_v12 = vshrl.u32 %v6057_v6, 16 }
 0x4b2   : > { %v7318_v23 = vshrl.u32 %v7143_v0, 16  ;;  %v7321_v54 = vshll.u32 %v7143_v0, 16  ;;  %v6277_v13 = vshll.u32 %v6057_v6, 16  ;;  %v6947_v0 = vld [vmem:[#allocation4 + $0x70] sm:$0xf]  ;;  %v7349_v9 = vrot.slane %v7348_v5, 4 }
 0x4b3   : > { %v5951_v48 = vpop.permute.xlu1 %5950  ;;  %v5953_v29 = vpop.permute.xlu0 %5952  ;;  %v6742_v36 = vsel %vm9554_vm13, %v8678_v28, %v6741_v42  ;;  %v6743_v11 = vrot.slane %v6741_v42, 4  ;;  %v7335_v8 = vrot.slane %v7334_v33, 4  ;;  %v8694_v58 = vrot.slane %v7707_v31, 9 }
 0x4b4   : > { %6024 = vst.msk [vmem:[#allocation5 + $0x5c] sm:$0xf] %vm6000_vm2, %v5951_v48  ;;  %6025 = vst.msk [vmem:[#allocation5 + $0x60] sm:$0xf] %vm6000_vm2, %v5953_v29  ;;  %v6617_v29 = vld [vmem:[#allocation4 + $0x68] sm:$0x1] }
 0x4b5   : > { %7579 = vrot.lane.b32.xlu1 %v7316_v34, %s9069_s26  ;;  %7910 = vrot.lane.b32.xlu0 %v7813_v24, %s9070_s10  ;;  %v6737_v24 = vrot.slane %v6614_v15, 5  ;;  %v7320_v37 = vrot.slane %v7318_v23, 4  ;;  %v7323_v40 = vrot.slane %v7321_v54, 5  ;;  %v6276_v54 = vrot.slane %v6274_v12, 4 }
 0x4b6   : > { %v6279_v28 = vrot.slane %v6277_v13, 5 }
 0x4b7   : > { %v5955_v46 = vpop.permute.xlu1 %5954  ;;  %v6466_v25 = vpop.permute.xlu0 %6465  ;;  %v6738_v48 = vsel %vm9554_vm13, %v6736_v19, %v6737_v24  ;;  %v7324_v57 = vor.u32 %v7323_v40, %v7320_v37  ;;  %v6058_v19 = vld [vmem:[#allocation4 + $0x70] sm:$0xf]  ;;  %v6061_v37 = vld [vmem:[#allocation4 + $0x7c] sm:$0xf] }
 0x4b8   : > { %6026 = vst.msk [vmem:[#allocation5 + $0x64] sm:$0xf] %vm6000_vm2, %v5955_v46  ;;  %v6744_v46 = vrot.slane %v6617_v29, 5  ;;  %v6283_v32 = vshll.u32 %v6058_v19, 16 }
 0x4b9   : > { %6562 = vst.msk [vmem:[#allocation5] sm:$0xf] %vm6561_vm3, %v6466_v25  ;;  %7912 = vrot.lane.b32.xlu1 %v7816_v26, %s9070_s10  ;;  %7914 = vrot.lane.b32.xlu0 %v7820_v50, %s9070_s10  ;;  %v7351_v25 = vshll.u32 %v7147_v30, 16  ;;  %v7355_v26 = vshrl.u32 %v7147_v30, 16  ;;  %v7325_v60 = vrot.slane %v7324_v57, 4  ;;  %v6311_v57 = vshrl.u32 %v6061_v37, 16 }
 0x4ba   : > { %v6745_v38 = vsel %vm9554_vm13, %v6743_v11, %v6744_v46  ;;  %v7363_v11 = vrot.slane %v7361_v43, 5  ;;  %v7706_v30 = vld [vmem:[#allocation4 + $0x68] sm:$0x1] }
 0x4bb   : > { %v6468_v39 = vpop.permute.xlu1 %6467  ;;  %v6470_v59 = vpop.permute.xlu0 %6469  ;;  %v7353_v63 = vrot.slane %v7351_v25, 5  ;;  %v7330_v15 = vsel %vm9290_vm10, %v7325_v60, %v7329_v55  ;;  %v7829_v14 = vrot.slane %v7706_v30, 5  ;;  %v6313_v6 = vrot.slane %v6311_v57, 4 }
 0x4bc   : > { %6563 = vst.msk [vmem:[#allocation5 + $0x4] sm:$0xf] %vm6561_vm3, %v6468_v39  ;;  %6564 = vst.msk [vmem:[#allocation5 + $0x8] sm:$0xf] %vm6561_vm3, %v6470_v59  ;;  %v7357_v39 = vrot.slane %v7355_v26, 4  ;;  %v6280_v26 = vor.u32 %v6279_v28, %v6276_v54 }
 0x4bd   : > { %7916 = vrot.lane.b32.xlu1 %v7823_v47, %s9070_s10  ;;  %6489 = vrot.lane.b32.xlu0 %v6238_v4, %s9066_s7  ;;  %v6946_v4 = vld [vmem:[#allocation4 + $0x6c] sm:$0xf]  ;;  %v7149_v54 = vld [vmem:[#allocation4 + $0x78] sm:$0xf] }
 0x4be   : > { %v6281_v3 = vrot.slane %v6280_v26, 4  ;;  %v7369_v31 = vshll.u32 %v7149_v54, 16 }
 0x4bf   : > { %v6472_v7 = vpop.permute.xlu1 %6471  ;;  %v6803_v61 = vpop.permute.xlu0 %6802 }
 0x4c0   : > { %6565 = vst.msk [vmem:[#allocation5 + $0xc] sm:$0xf] %vm6561_vm3, %v6472_v7  ;;  %v7358_v7 = vor.u32 %v7357_v39, %v7353_v63 }
 0x4c1   : > { %6899 = vst.msk [vmem:[#allocation5] sm:$0xf] %vm6898_vm4, %v6803_v61  ;;  %6491 = vrot.lane.b32.xlu1 %v6248_v56, %s9066_s7  ;;  %6493 = vrot.lane.b32.xlu0 %v6262_v62, %s9066_s7  ;;  %v7704_v56 = vld [vmem:[#allocation4 + $0x60] sm:$0xe]  ;;  %v7705_v62 = vld [vmem:[#allocation4 + $0x64] sm:$0xf] }
 0x4c2   : > { %v7359_v42 = vrot.slane %v7358_v7, 4  ;;  %v8693_v23 = vrot.slane %v7704_v56, 9  ;;  %v6062_v7 = vld [vmem:[#allocation4 + $0x80] sm:$0x1] }
 0x4c3   : > { %v6805_v20 = vpop.permute.xlu1 %6804  ;;  %v6807_v18 = vpop.permute.xlu0 %6806 }
 0x4c4   : > { %6900 = vst.msk [vmem:[#allocation5 + $0x4] sm:$0xf] %vm6898_vm4, %v6805_v20  ;;  %6901 = vst.msk [vmem:[#allocation5 + $0x8] sm:$0xf] %vm6898_vm4, %v6807_v18  ;;  %v6060_v20 = vld [vmem:[#allocation4 + $0x78] sm:$0xf]  ;;  %v7364_v25 = vsel %vm9290_vm10, %v7359_v42, %v7363_v11 }
 0x4c5   : > { %6495 = vrot.lane.b32.xlu1 %v6272_v17, %s9066_s7  ;;  %6826 = vrot.lane.b32.xlu0 %v6735_v1, %s9067_s13  ;;  %v7339_v18 = vrot.slane %v7337_v52, 5  ;;  %v7826_v17 = vrot.slane %v7705_v62, 5  ;;  %v7836_v52 = vrot.slane %v7709_v22, 5  ;;  %v6618_v42 = vld [vmem:[#allocation4 + $0x6c] sm:$0xe]  ;;  %v6755_v11 = vrot.slane %v6622_v27, 5 }
 0x4c6   : > { %v7153_v22 = vld [vmem:[#allocation4 + $0x88] sm:$0xf] }
 0x4c7   : > { %v6809_v34 = vpop.permute.xlu1 %6808  ;;  %v6997_v49 = vpop.permute.xlu0 %6996  ;;  %v7340_v29 = vsel %vm9290_vm10, %v7335_v8, %v7339_v18  ;;  %v7827_v16 = vsel %vm9554_vm13, %v8693_v23, %v7826_v17  ;;  %v7828_v40 = vrot.slane %v7826_v17, 4  ;;  %v6619_v8 = vld [vmem:[#allocation4 + $0x70] sm:$0xf]  ;;  %v6757_v57 = vrot.slane %v6755_v11, 4 }
 0x4c8   : > { %6902 = vst.msk [vmem:[#allocation5 + $0xc] sm:$0xf] %vm6898_vm4, %v6809_v34  ;;  %v7354_v34 = vsel %vm9290_vm10, %v7349_v9, %v7353_v63  ;;  %v6748_v23 = vrot.slane %v6619_v8, 5 }
 0x4c9   : > { %7093 = vst.msk [vmem:[#allocation5] sm:$0xf] %vm7092_vm5, %v6997_v49  ;;  %6828 = vrot.lane.b32.xlu1 %v6738_v48, %s9067_s13  ;;  %6830 = vrot.lane.b32.xlu0 %v6742_v36, %s9067_s13  ;;  %v6287_v48 = vshrl.u32 %v6058_v19, 16  ;;  %v6298_v49 = vshrl.u32 %v6060_v20, 16  ;;  %v6301_v36 = vshll.u32 %v6060_v20, 16  ;;  %v6317_v19 = vshll.u32 %v6062_v7, 16 }
 0x4cb   : > { %v6999_v50 = vpop.permute.xlu1 %6998  ;;  %v7001_v41 = vpop.permute.xlu0 %7000  ;;  %v6303_v55 = vrot.slane %v6301_v36, 5  ;;  %v6319_v28 = vrot.slane %v6317_v19, 5  ;;  %v6750_v36 = vrot.slane %v6748_v23, 4 }
 0x4cc   : > { %7094 = vst.msk [vmem:[#allocation5 + $0x4] sm:$0xf] %vm7092_vm5, %v6999_v50  ;;  %7095 = vst.msk [vmem:[#allocation5 + $0x8] sm:$0xf] %vm7092_vm5, %v7001_v41  ;;  %v6285_v50 = vrot.slane %v6283_v32, 5  ;;  %v6289_v41 = vrot.slane %v6287_v48, 4 }
 0x4cd   : > { %6832 = vrot.lane.b32.xlu1 %v6745_v38, %s9067_s13  ;;  %7020 = vrot.lane.b32.xlu0 %v6944_v53, %s9068_s14  ;;  %v6300_v38 = vrot.slane %v6298_v49, 4  ;;  %v6307_v53 = vshll.u32 %v6061_v37, 16  ;;  %v8679_v32 = vrot.slane %v6618_v42, 9  ;;  %v6620_v48 = vld [vmem:[#allocation4 + $0x74] sm:$0x1] }
 0x4ce   : > { %v6290_v60 = vor.u32 %v6289_v41, %v6285_v50  ;;  %v6286_v12 = vsel %vm9290_vm10, %v6281_v3, %v6285_v50  ;;  %v7150_v37 = vld [vmem:[#allocation4 + $0x7c] sm:$0xf] }
 0x4cf   : > { %v7003_v59 = vpop.permute.xlu1 %7002  ;;  %v7558_v47 = vpop.permute.xlu0 %7557  ;;  %v6304_v33 = vor.u32 %v6303_v55, %v6300_v38  ;;  %v6309_v5 = vrot.slane %v6307_v53, 5  ;;  %v6749_v30 = vsel %vm9554_vm13, %v8679_v32, %v6748_v23  ;;  %v7379_v26 = vshrl.u32 %v7150_v37, 16  ;;  %v6623_v53 = vld [vmem:[#allocation4 + $0x80] sm:$0x1] }
 0x4d0   : > { %7096 = vst.msk [vmem:[#allocation5 + $0xc] sm:$0xf] %vm7092_vm5, %v7003_v59  ;;  %v7830_v59 = vsel %vm9554_vm13, %v7828_v40, %v7829_v14  ;;  %v6291_v13 = vrot.slane %v6290_v60, 4  ;;  %v7366_v40 = vshrl.u32 %v7149_v54, 16  ;;  %v7399_v60 = vshll.u32 %v7153_v22, 16 }
 0x4d1   : > { %7654 = vst.msk [vmem:[#allocation5] sm:$0xf] %vm7653_vm7, %v7558_v47  ;;  %7022 = vrot.lane.b32.xlu1 %v6945_v2, %s9068_s14  ;;  %7024 = vrot.lane.b32.xlu0 %v6946_v4, %s9068_s14  ;;  %v7834_v47 = vsel %vm9554_vm13, %v8694_v58, %v7833_v44  ;;  %v7835_v2 = vrot.slane %v7833_v44, 4  ;;  %v6059_v4 = vld [vmem:[#allocation4 + $0x74] sm:$0x1]  ;;  %v6751_v44 = vrot.slane %v6620_v48, 5 }
 0x4d2   : > { %v6293_v21 = vshll.u32 %v6059_v4, 16  ;;  %v7368_v14 = vrot.slane %v7366_v40, 4  ;;  %v7371_v58 = vrot.slane %v7369_v31, 5 }
 0x4d3   : > { %v7560_v61 = vpop.permute.xlu1 %7559  ;;  %v7562_v10 = vpop.permute.xlu0 %7561  ;;  %v7837_v56 = vsel %vm9554_vm13, %v7835_v2, %v7836_v52  ;;  %v6752_v38 = vsel %vm9554_vm13, %v6750_v36, %v6751_v44  ;;  %v7381_v2 = vrot.slane %v7379_v26, 4  ;;  %v6066_v36 = vld [vmem:[#allocation4 + $0x90] sm:$0xf]  ;;  %v7714_v44 = vld [vmem:[#allocation4 + $0x88] sm:$0xf] }
 0x4d4   : > { %7655 = vst.msk [vmem:[#allocation5 + $0x4] sm:$0xf] %vm7653_vm7, %v7560_v61  ;;  %7656 = vst.msk [vmem:[#allocation5 + $0x8] sm:$0xf] %vm7653_vm7, %v7562_v10  ;;  %v6295_v9 = vrot.slane %v6293_v21, 5  ;;  %v7372_v52 = vor.u32 %v7371_v58, %v7368_v14 }
 0x4d5   : > { %7026 = vrot.lane.b32.xlu1 %v6947_v0, %s9068_s14  ;;  %7581 = vrot.lane.b32.xlu0 %v7330_v15, %s9069_s26  ;;  %v6305_v0 = vrot.slane %v6304_v33, 4  ;;  %v6314_v15 = vor.u32 %v6313_v6, %v6309_v5  ;;  %v7403_v33 = vshrl.u32 %v7153_v22, 16  ;;  %v6948_v6 = vld [vmem:[#allocation4 + $0x78] sm:$0xf]  ;;  %v7712_v14 = vld [vmem:[#allocation4 + $0x80] sm:$0x1] }
 0x4d6   : > { %v6296_v17 = vsel %vm9290_vm10, %v6291_v13, %v6295_v9  ;;  %v7401_v13 = vrot.slane %v7399_v60, 5  ;;  %v7373_v8 = vrot.slane %v7372_v52, 4  ;;  %v7713_v22 = vld [vmem:[#allocation4 + $0x84] sm:$0xe]  ;;  %v7843_v52 = vrot.slane %v7712_v14, 5 }
 0x4d7   : > { %v7564_v1 = vpop.permute.xlu1 %7563  ;;  %v7895_v24 = vpop.permute.xlu0 %7894 }
 0x4d8   : > { %7657 = vst.msk [vmem:[#allocation5 + $0xc] sm:$0xf] %vm7653_vm7, %v7564_v1  ;;  %v6310_v1 = vsel %vm9290_vm10, %v6305_v0, %v6309_v5  ;;  %v7405_v0 = vrot.slane %v7403_v33, 4 }
 0x4d9   : > { %7991 = vst.msk [vmem:[#allocation5] sm:$0xf] %vm7990_vm9, %v7895_v24  ;;  %7583 = vrot.lane.b32.xlu1 %v7340_v29, %s9069_s26  ;;  %7585 = vrot.lane.b32.xlu0 %v7354_v34, %s9069_s26  ;;  %v6315_v24 = vrot.slane %v6314_v15, 4  ;;  %v6621_v29 = vld [vmem:[#allocation4 + $0x78] sm:$0xe] }
 0x4da   : > { %v6950_v15 = vld [vmem:[#allocation4 + $0x84] sm:$0xf] }
 0x4db   : > { %v7897_v45 = vpop.permute.xlu1 %7896  ;;  %v7899_v46 = vpop.permute.xlu0 %7898 }
 0x4dc   : > { %7992 = vst.msk [vmem:[#allocation5 + $0x4] sm:$0xf] %vm7990_vm9, %v7897_v45  ;;  %7993 = vst.msk [vmem:[#allocation5 + $0x8] sm:$0xf] %vm7990_vm9, %v7899_v46  ;;  %v8680_v45 = vrot.slane %v6621_v29, 9 }
 0x4dd   : > { %7587 = vrot.lane.b32.xlu1 %v7364_v25, %s9069_s26  ;;  %7918 = vrot.lane.b32.xlu0 %v7827_v16, %s9070_s10  ;;  %v6320_v16 = vsel %vm9290_vm10, %v6315_v24, %v6319_v28  ;;  %v7152_v46 = vld [vmem:[#allocation4 + $0x84] sm:$0xf]  ;;  %v7375_v25 = vshll.u32 %v7150_v37, 16  ;;  %v7711_v24 = vld [vmem:[#allocation4 + $0x7c] sm:$0xf] }
 0x4de   : > { %v6756_v55 = vsel %vm9554_vm13, %v8680_v45, %v6755_v11  ;;  %v6951_v28 = vld [vmem:[#allocation4 + $0x88] sm:$0xf] }
 0x4df   : > { %v7901_v63 = vpop.permute.xlu1 %7900  ;;  %v6474_v39 = vpop.permute.xlu0 %6473 }
 0x4e0   : > { %7994 = vst.msk [vmem:[#allocation5 + $0xc] sm:$0xf] %vm7990_vm9, %v7901_v63  ;;  %v7390_v63 = vshrl.u32 %v7152_v46, 16 }
 0x4e1   : > { %6566 = vst.msk [vmem:[#allocation5 + $0x10] sm:$0xf] %vm6561_vm3, %v6474_v39  ;;  %7920 = vrot.lane.b32.xlu1 %v7830_v59, %s9070_s10  ;;  %7922 = vrot.lane.b32.xlu0 %v7834_v47, %s9070_s10  ;;  %v7393_v39 = vshll.u32 %v7152_v46, 16  ;;  %v6758_v59 = vrot.slane %v6623_v53, 5  ;;  %v7377_v47 = vrot.slane %v7375_v25, 5 }
 0x4e2   : > { %v7392_v21 = vrot.slane %v7390_v63, 4  ;;  %v7847_v63 = vrot.slane %v7714_v44, 5  ;;  %v6628_v44 = vld [vmem:[#allocation4 + $0x94] sm:$0xf] }
 0x4e3   : > { %v6476_v61 = vpop.permute.xlu1 %6475  ;;  %v6478_v10 = vpop.permute.xlu0 %6477  ;;  %v8979_v62 = vld [vmem:[#allocation5] sm:$0xff]   ;;  %v6759_v5 = vsel %vm9554_vm13, %v6757_v57, %v6758_v59  ;;  %v7395_v7 = vrot.slane %v7393_v39, 5  ;;  %v7378_v32 = vsel %vm9290_vm10, %v7373_v8, %v7377_v47 }
 0x4e4   : > { %6567 = vst.msk [vmem:[#allocation5 + $0x14] sm:$0xf] %vm6561_vm3, %v6476_v61  ;;  %6568 = vst.msk [vmem:[#allocation5 + $0x18] sm:$0xf] %vm6561_vm3, %v6478_v10  ;;  %8868 = vmatprep.mubr.msk.bf16.mxu1 %vm8178_vm11, %v8979_v62  ;;  %v7151_v61 = vld [vmem:[#allocation4 + $0x80] sm:$0x1]  ;;  %v7382_v10 = vor.u32 %v7381_v2, %v7377_v47 }
 0x4e5   : > { %7924 = vrot.lane.b32.xlu1 %v7837_v56, %s9070_s10  ;;  %6497 = vrot.lane.b32.xlu0 %v6286_v12, %s9066_s7  ;;  %v6949_v12 = vld [vmem:[#allocation4 + $0x7c] sm:$0xf]  ;;  %v7385_v9 = vshll.u32 %v7151_v61, 16  ;;  %v7396_v19 = vor.u32 %v7395_v7, %v7392_v21  ;;  %v8696_v21 = vrot.slane %v7713_v22, 9  ;;  %v7715_v7 = vld [vmem:[#allocation4 + $0x8c] sm:$0x1] }
 0x4e7   : > { %v6480_v43 = vpop.permute.xlu1 %6479  ;;  %v6811_v20 = vpop.permute.xlu0 %6810  ;;  %v8980_v18 = vld [vmem:[#allocation5 + $0x8] sm:$0xff]   ;;  %v7387_v48 = vrot.slane %v7385_v9, 5  ;;  %v7397_v29 = vrot.slane %v7396_v19, 4 }
 0x4e8   : > { %6569 = vst.msk [vmem:[#allocation5 + $0x1c] sm:$0xf] %vm6561_vm3, %v6480_v43  ;;  %8869 = vmatmul.mubr.msk.bf16.vlgmr.msra.gmra.mxu1 %vm8178_vm11, %v8980_v18  ;;  %v6063_v43 = vld [vmem:[#allocation4 + $0x84] sm:$0xf]  ;;  %v7154_v18 = vld [vmem:[#allocation4 + $0x8c] sm:$0x1] }
 0x4e9   : > { %6903 = vst.msk [vmem:[#allocation5 + $0x10] sm:$0xf] %vm6898_vm4, %v6811_v20  ;;  %6499 = vrot.lane.b32.xlu1 %v6296_v17, %s9066_s7  ;;  %6501 = vrot.lane.b32.xlu0 %v6310_v1, %s9066_s7  ;;  %v7383_v20 = vrot.slane %v7382_v10, 4  ;;  %v7406_v17 = vor.u32 %v7405_v0, %v7401_v13  ;;  %v7710_v1 = vld [vmem:[#allocation4 + $0x78] sm:$0xe]  ;;  %v6322_v27 = vshrl.u32 %v6063_v43, 16  ;;  %v7402_v26 = vsel %vm9290_vm10, %v7397_v29, %v7401_v13 }
 0x4ea   : > { %v6325_v54 = vshll.u32 %v6063_v43, 16  ;;  %v8695_v37 = vrot.slane %v7710_v1, 9  ;;  %v6065_v13 = vld [vmem:[#allocation4 + $0x8c] sm:$0x1]  ;;  %v7850_v43 = vrot.slane %v7715_v7, 5 }
 0x4eb   : > { %v6813_v34 = vpop.permute.xlu1 %6812  ;;  %v6815_v49 = vpop.permute.xlu0 %6814  ;;  %v7388_v11 = vsel %vm9290_vm10, %v7383_v20, %v7387_v48  ;;  %v7407_v31 = vrot.slane %v7406_v17, 4  ;;  %v6324_v45 = vrot.slane %v6322_v27, 4  ;;  %v6341_v20 = vshll.u32 %v6065_v13, 16  ;;  %v7159_v7 = vld [vmem:[#allocation4 + $0xa0] sm:$0xf] }
 0x4ec   : > { %6904 = vst.msk [vmem:[#allocation5 + $0x14] sm:$0xf] %vm6898_vm4, %v6813_v34  ;;  %6905 = vst.msk [vmem:[#allocation5 + $0x18] sm:$0xf] %vm6898_vm4, %v6815_v49  ;;  %v6064_v34 = vld [vmem:[#allocation4 + $0x88] sm:$0xf] }
 0x4ed   : > { %6503 = vrot.lane.b32.xlu1 %v6320_v16, %s9066_s7  ;;  %6834 = vrot.lane.b32.xlu0 %v6749_v30, %s9067_s13  ;;  %v7409_v49 = vshll.u32 %v7154_v18, 16  ;;  %v7840_v16 = vrot.slane %v7711_v24, 5  ;;  %v6327_v46 = vrot.slane %v6325_v54, 5  ;;  %v6331_v25 = vshll.u32 %v6064_v34, 16  ;;  %v6068_v18 = vld [vmem:[#allocation4 + $0x98] sm:$0x1] }
 0x4ee   : > { %v6343_v48 = vrot.slane %v6341_v20, 5  ;;  %v6365_v29 = vshll.u32 %v6068_v18, 16  ;;  %v7451_v18 = vshrl.u32 %v7159_v7, 16 }
 0x4ef   : > { %v6817_v50 = vpop.permute.xlu1 %6816  ;;  %v7005_v41 = vpop.permute.xlu0 %7004  ;;  %v7411_v53 = vrot.slane %v7409_v49, 5  ;;  %v7841_v57 = vsel %vm9554_vm13, %v8695_v37, %v7840_v16  ;;  %v7842_v58 = vrot.slane %v7840_v16, 4  ;;  %v6328_v2 = vor.u32 %v6327_v46, %v6324_v45  ;;  %v6624_v37 = vld [vmem:[#allocation4 + $0x84] sm:$0xe]  ;;  %v7155_v45 = vld [vmem:[#allocation4 + $0x90] sm:$0xf] }
 0x4f0   : > { %6906 = vst.msk [vmem:[#allocation5 + $0x1c] sm:$0xf] %vm6898_vm4, %v6817_v50  ;;  %v6335_v50 = vshrl.u32 %v6064_v34, 16  ;;  %v6367_v46 = vrot.slane %v6365_v29, 5  ;;  %v7414_v22 = vshrl.u32 %v7155_v45, 16 }
 0x4f1   : > { %7097 = vst.msk [vmem:[#allocation5 + $0x10] sm:$0xf] %vm7092_vm5, %v7005_v41  ;;  %6836 = vrot.lane.b32.xlu1 %v6752_v38, %s9067_s13  ;;  %6838 = vrot.lane.b32.xlu0 %v6756_v55, %s9067_s13  ;;  %v6067_v41 = vld [vmem:[#allocation4 + $0x94] sm:$0xf]  ;;  %v6346_v38 = vshrl.u32 %v6066_v36, 16  ;;  %v6349_v55 = vshll.u32 %v6066_v36, 16  ;;  %v7412_v47 = vsel %vm9290_vm10, %v7407_v31, %v7411_v53 }
 0x4f2   : > { %v6337_v60 = vrot.slane %v6335_v50, 4  ;;  %v6626_v31 = vld [vmem:[#allocation4 + $0x8c] sm:$0x1]  ;;  %v6627_v50 = vld [vmem:[#allocation4 + $0x90] sm:$0xe]  ;;  %v6769_v53 = vrot.slane %v6628_v44, 5 }
 0x4f3   : > { %v7007_v3 = vpop.permute.xlu1 %7006  ;;  %v7009_v4 = vpop.permute.xlu0 %7008  ;;  %v6348_v33 = vrot.slane %v6346_v38, 4  ;;  %v7716_v44 = vld [vmem:[#allocation4 + $0x90] sm:$0xe] }
 0x4f4   : > { %7098 = vst.msk [vmem:[#allocation5 + $0x14] sm:$0xf] %vm7092_vm5, %v7007_v3  ;;  %7099 = vst.msk [vmem:[#allocation5 + $0x18] sm:$0xf] %vm7092_vm5, %v7009_v4  ;;  %v6333_v3 = vrot.slane %v6331_v25, 5  ;;  %v6355_v4 = vshll.u32 %v6067_v41, 16 }
 0x4f5   : > { %6840 = vrot.lane.b32.xlu1 %v6759_v5, %s9067_s13  ;;  %7028 = vrot.lane.b32.xlu0 %v6948_v6, %s9068_s14  ;;  %v6351_v5 = vrot.slane %v6349_v55, 5  ;;  %v6359_v6 = vshrl.u32 %v6067_v41, 16  ;;  %v8681_v25 = vrot.slane %v6624_v37, 9  ;;  %v6765_v55 = vrot.slane %v6626_v31, 5  ;;  %v7717_v37 = vld [vmem:[#allocation4 + $0x94] sm:$0xf] }
 0x4f6   : > { %v6357_v0 = vrot.slane %v6355_v4, 5  ;;  %v6338_v8 = vor.u32 %v6337_v60, %v6333_v3 }
 0x4f7   : > { %v7011_v56 = vpop.permute.xlu1 %7010  ;;  %v7566_v62 = vpop.permute.xlu0 %7565  ;;  %v6352_v9 = vor.u32 %v6351_v5, %v6348_v33  ;;  %v6361_v19 = vrot.slane %v6359_v6, 4  ;;  %v6771_v33 = vrot.slane %v6769_v53, 4 }
 0x4f8   : > { %7100 = vst.msk [vmem:[#allocation5 + $0x1c] sm:$0xf] %vm7092_vm5, %v7011_v56  ;;  %v7844_v56 = vsel %vm9554_vm13, %v7842_v58, %v7843_v52  ;;  %v6339_v54 = vrot.slane %v6338_v8, 4  ;;  %v7156_v58 = vld [vmem:[#allocation4 + $0x94] sm:$0xf]  ;;  %v7416_v52 = vrot.slane %v7414_v22, 4 }
 0x4f9   : > { %7658 = vst.msk [vmem:[#allocation5 + $0x10] sm:$0xf] %vm7653_vm7, %v7566_v62  ;;  %7030 = vrot.lane.b32.xlu1 %v6949_v12, %s9068_s14  ;;  %7032 = vrot.lane.b32.xlu0 %v6950_v15, %s9068_s14  ;;  %v7848_v62 = vsel %vm9554_vm13, %v8696_v21, %v7847_v63  ;;  %v7849_v12 = vrot.slane %v7847_v63, 4  ;;  %v6329_v15 = vrot.slane %v6328_v2, 4  ;;  %v7417_v63 = vshll.u32 %v7155_v45, 16 }
 0x4fa   : > { %v6344_v16 = vsel %vm9290_vm10, %v6339_v54, %v6343_v48  ;;  %v6629_v2 = vld [vmem:[#allocation4 + $0x98] sm:$0x1]  ;;  %v7423_v5 = vshll.u32 %v7156_v58, 16  ;;  %v7427_v6 = vshrl.u32 %v7156_v58, 16  ;;  %v7447_v8 = vshll.u32 %v7159_v7, 16 }
 0x4fb   : > { %v7568_v42 = vpop.permute.xlu1 %7567  ;;  %v7570_v23 = vpop.permute.xlu0 %7569  ;;  %v7851_v1 = vsel %vm9554_vm13, %v7849_v12, %v7850_v43  ;;  %v6334_v27 = vsel %vm9290_vm10, %v6329_v15, %v6333_v3  ;;  %v7419_v21 = vrot.slane %v7417_v63, 5  ;;  %v7453_v48 = vrot.slane %v7451_v18, 4  ;;  %v6070_v58 = vld [vmem:[#allocation4 + $0xa0] sm:$0xf] }
 0x4fc   : > { %7659 = vst.msk [vmem:[#allocation5 + $0x14] sm:$0xf] %vm7653_vm7, %v7568_v42  ;;  %7660 = vst.msk [vmem:[#allocation5 + $0x18] sm:$0xf] %vm7653_vm7, %v7570_v23  ;;  %v6625_v42 = vld [vmem:[#allocation4 + $0x88] sm:$0xf] }
 0x4fd   : > { %7034 = vrot.lane.b32.xlu1 %v6951_v28, %s9068_s14  ;;  %7589 = vrot.lane.b32.xlu0 %v7378_v32, %s9069_s26  ;;  %v6353_v28 = vrot.slane %v6352_v9, 4  ;;  %v6362_v32 = vor.u32 %v6361_v19, %v6357_v0  ;;  %v6762_v34 = vrot.slane %v6625_v42, 5  ;;  %v7429_v15 = vrot.slane %v7427_v6, 4  ;;  %v6952_v9 = vld [vmem:[#allocation4 + $0x90] sm:$0xf] }
 0x4fe   : > { %v7420_v19 = vor.u32 %v7419_v21, %v7416_v52  ;;  %v7157_v42 = vld [vmem:[#allocation4 + $0x98] sm:$0x1]  ;;  %v6379_v21 = vshll.u32 %v6070_v58, 16  ;;  %v6383_v7 = vshrl.u32 %v6070_v58, 16  ;;  %v6630_v58 = vld [vmem:[#allocation4 + $0x9c] sm:$0xe] }
 0x4ff   : > { %v7572_v30 = vpop.permute.xlu1 %7571  ;;  %v7903_v40 = vpop.permute.xlu0 %7902  ;;  %v6763_v14 = vsel %vm9554_vm13, %v8681_v25, %v6762_v34  ;;  %v7433_v29 = vshll.u32 %v7157_v42, 16  ;;  %v6069_v25 = vld [vmem:[#allocation4 + $0x9c] sm:$0xf] }
 0x500   : > { %7661 = vst.msk [vmem:[#allocation5 + $0x1c] sm:$0xf] %vm7653_vm7, %v7572_v30  ;;  %v6358_v30 = vsel %vm9290_vm10, %v6353_v28, %v6357_v0  ;;  %v7425_v0 = vrot.slane %v7423_v5, 5  ;;  %v7421_v54 = vrot.slane %v7420_v19, 4  ;;  %v6385_v18 = vrot.slane %v6383_v7, 4 }
 0x501   : > { %7995 = vst.msk [vmem:[#allocation5 + $0x10] sm:$0xf] %vm7990_vm9, %v7903_v40  ;;  %7591 = vrot.lane.b32.xlu1 %v7388_v11, %s9069_s26  ;;  %7593 = vrot.lane.b32.xlu0 %v7402_v26, %s9069_s26  ;;  %v6363_v40 = vrot.slane %v6362_v32, 4  ;;  %v6764_v26 = vrot.slane %v6762_v34, 4  ;;  %v7449_v32 = vrot.slane %v7447_v8, 5  ;;  %v7435_v45 = vrot.slane %v7433_v29, 5 }
 0x502   : > { %v7160_v34 = vld [vmem:[#allocation4 + $0xa4] sm:$0x1] }
 0x503   : > { %v7905_v39 = vpop.permute.xlu1 %7904  ;;  %v7907_v59 = vpop.permute.xlu0 %7906  ;;  %v7454_v31 = vor.u32 %v7453_v48, %v7449_v32  ;;  %v7721_v8 = vld [vmem:[#allocation4 + $0xa4] sm:$0x1] }
 0x504   : > { %7996 = vst.msk [vmem:[#allocation5 + $0x14] sm:$0xf] %vm7990_vm9, %v7905_v39  ;;  %7997 = vst.msk [vmem:[#allocation5 + $0x18] sm:$0xf] %vm7990_vm9, %v7907_v59  ;;  %v8682_v39 = vrot.slane %v6627_v50, 9 }
 0x505   : > { %7595 = vrot.lane.b32.xlu1 %v7412_v47, %s9069_s26  ;;  %7926 = vrot.lane.b32.xlu0 %v7841_v57, %s9070_s10  ;;  %v6368_v57 = vsel %vm9290_vm10, %v6363_v40, %v6367_v46  ;;  %v7158_v59 = vld [vmem:[#allocation4 + $0x9c] sm:$0xf]  ;;  %v6766_v47 = vsel %vm9554_vm13, %v6764_v26, %v6765_v55  ;;  %v7457_v46 = vshll.u32 %v7160_v34, 16  ;;  %v7854_v26 = vrot.slane %v7717_v37, 5  ;;  %v7718_v50 = vld [vmem:[#allocation4 + $0x98] sm:$0x1] }
 0x506   : > { %v6770_v60 = vsel %vm9554_vm13, %v8682_v39, %v6769_v53  ;;  %v7455_v63 = vrot.slane %v7454_v31, 4  ;;  %v6370_v39 = vshrl.u32 %v6069_v25, 16 }
 0x507   : > { %v7909_v61 = vpop.permute.xlu1 %7908  ;;  %v6482_v10 = vpop.permute.xlu0 %6481 }
 0x508   : > { %7998 = vst.msk [vmem:[#allocation5 + $0x1c] sm:$0xf] %vm7990_vm9, %v7909_v61  ;;  %v7438_v61 = vshrl.u32 %v7158_v59, 16 }
 0x509   : > { %6570 = vst.msk [vmem:[#allocation5 + $0x20] sm:$0xf] %vm6561_vm3, %v6482_v10  ;;  %7928 = vrot.lane.b32.xlu1 %v7844_v56, %s9070_s10  ;;  %7930 = vrot.lane.b32.xlu0 %v7848_v62, %s9070_s10  ;;  %v7441_v10 = vshll.u32 %v7158_v59, 16  ;;  %v6772_v56 = vrot.slane %v6629_v2, 5  ;;  %v6373_v59 = vshll.u32 %v6069_v25, 16  ;;  %v7459_v2 = vrot.slane %v7457_v46, 5 }
 0x50a   : > { %v7440_v43 = vrot.slane %v7438_v61, 4  ;;  %v5867_v46 = vld [vmem:[#allocation4 + $0xac] sm:$0xf] }
 0x50b   : > { %v6484_v23 = vpop.permute.xlu1 %6483  ;;  %v6486_v17 = vpop.permute.xlu0 %6485  ;;  %v8981_v24 = vld [vmem:[#allocation5 + $0x10] sm:$0xff]   ;;  %v6773_v13 = vsel %vm9554_vm13, %v6771_v33, %v6772_v56  ;;  %v7443_v20 = vrot.slane %v7441_v10, 5  ;;  %v7460_v10 = vsel %vm9290_vm10, %v7455_v63, %v7459_v2  ;;  %v6372_v56 = vrot.slane %v6370_v39, 4 }
 0x50c   : > { %6571 = vst.msk [vmem:[#allocation5 + $0x24] sm:$0xf] %vm6561_vm3, %v6484_v23  ;;  %6572 = vst.msk [vmem:[#allocation5 + $0x28] sm:$0xf] %vm6561_vm3, %v6486_v17  ;;  %8872 = vmatprep.mubr.msk.bf16.mxu1 %vm8178_vm11, %v8981_v24  ;;  %v7430_v24 = vor.u32 %v7429_v15, %v7425_v0  ;;  %v7161_v2 = vld [vmem:[#allocation4 + $0xa8] sm:$0xf] }
 0x50d   : > { %7932 = vrot.lane.b32.xlu1 %v7851_v1, %s9070_s10  ;;  %6505 = vrot.lane.b32.xlu0 %v6334_v27, %s9066_s7  ;;  %v6953_v1 = vld [vmem:[#allocation4 + $0x94] sm:$0xf]  ;;  %v6954_v27 = vld [vmem:[#allocation4 + $0x9c] sm:$0xf]  ;;  %v7444_v28 = vor.u32 %v7443_v20, %v7440_v43  ;;  %v6381_v20 = vrot.slane %v6379_v21, 5  ;;  %v7462_v7 = vshrl.u32 %v7161_v2, 16 }
 0x50e   : > { %v7162_v21 = vld [vmem:[#allocation4 + $0xac] sm:$0xf] }
 0x50f   : > { %v6488_v49 = vpop.permute.xlu1 %6487  ;;  %v6819_v36 = vpop.permute.xlu0 %6818  ;;  %v8982_v11 = vld [vmem:[#allocation5 + $0x18] sm:$0xff]   ;;  %v7445_v40 = vrot.slane %v7444_v28, 4  ;;  %v6386_v34 = vor.u32 %v6385_v18, %v6381_v20 }
 0x510   : > { %6573 = vst.msk [vmem:[#allocation5 + $0x2c] sm:$0xf] %vm6561_vm3, %v6488_v49  ;;  %8873 = vmatmul.mubr.msk.bf16.gmra.mxu1 %vm8178_vm11, %v8982_v11  ;;  %v7431_v11 = vrot.slane %v7430_v24, 4 }
 0x511   : > { %6907 = vst.msk [vmem:[#allocation5 + $0x20] sm:$0xf] %vm6898_vm4, %v6819_v36  ;;  %6507 = vrot.lane.b32.xlu1 %v6344_v16, %s9066_s7  ;;  %6509 = vrot.lane.b32.xlu0 %v6358_v30, %s9066_s7  ;;  %v6955_v16 = vld [vmem:[#allocation4 + $0xa0] sm:$0xf]  ;;  %v7426_v30 = vsel %vm9290_vm10, %v7421_v54, %v7425_v0  ;;  %v7450_v22 = vsel %vm9290_vm10, %v7445_v40, %v7449_v32  ;;  %v6071_v54 = vld [vmem:[#allocation4 + $0xa4] sm:$0x1] }
 0x512   : > { %v7436_v53 = vsel %vm9290_vm10, %v7431_v11, %v7435_v45  ;;  %v6074_v45 = vld [vmem:[#allocation4 + $0xb0] sm:$0x1] }
 0x513   : > { %v6821_v41 = vpop.permute.xlu1 %6820  ;;  %v6823_v38 = vpop.permute.xlu0 %6822 }
 0x514   : > { %6908 = vst.msk [vmem:[#allocation5 + $0x24] sm:$0xf] %vm6898_vm4, %v6821_v41  ;;  %6909 = vst.msk [vmem:[#allocation5 + $0x28] sm:$0xf] %vm6898_vm4, %v6823_v38  ;;  %v7719_v41 = vld [vmem:[#allocation4 + $0x9c] sm:$0xe] }
 0x515   : > { %6511 = vrot.lane.b32.xlu1 %v6368_v57, %s9066_s7  ;;  %6842 = vrot.lane.b32.xlu0 %v6763_v14, %s9067_s13  ;;  %v8697_v57 = vrot.slane %v7716_v44, 9  ;;  %v7720_v14 = vld [vmem:[#allocation4 + $0xa0] sm:$0xf]  ;;  %v8698_v52 = vrot.slane %v7719_v41, 9 }
 0x516   : > { %v7861_v33 = vrot.slane %v7720_v14, 5 }
 0x517   : > { %v6825_v3 = vpop.permute.xlu1 %6824  ;;  %v7013_v4 = vpop.permute.xlu0 %7012 }
 0x518   : > { %6910 = vst.msk [vmem:[#allocation5 + $0x2c] sm:$0xf] %vm6898_vm4, %v6825_v3  ;;  %v7855_v3 = vsel %vm9554_vm13, %v8697_v57, %v7854_v26  ;;  %v7862_v15 = vsel %vm9554_vm13, %v8698_v52, %v7861_v33  ;;  %v7863_v43 = vrot.slane %v7861_v33, 4  ;;  %v6633_v33 = vld [vmem:[#allocation4 + $0xa8] sm:$0xe] }
 0x519   : > { %7101 = vst.msk [vmem:[#allocation5 + $0x20] sm:$0xf] %vm7092_vm5, %v7013_v4  ;;  %6844 = vrot.lane.b32.xlu1 %v6766_v47, %s9067_s13  ;;  %6846 = vrot.lane.b32.xlu0 %v6770_v60, %s9067_s13  ;;  %v6072_v47 = vld [vmem:[#allocation4 + $0xa8] sm:$0xf]  ;;  %v7856_v4 = vrot.slane %v7854_v26, 4  ;;  %v7857_v60 = vrot.slane %v7718_v50, 5 }
 0x51a   : > { %v6394_v61 = vshrl.u32 %v6072_v47, 16  ;;  %v6387_v26 = vrot.slane %v6386_v34, 4 }
 0x51b   : > { %v7015_v62 = vpop.permute.xlu1 %7014  ;;  %v7017_v12 = vpop.permute.xlu0 %7016  ;;  %v7858_v0 = vsel %vm9554_vm13, %v7856_v4, %v7857_v60  ;;  %v8683_v4 = vrot.slane %v6630_v58, 9  ;;  %v6632_v60 = vld [vmem:[#allocation4 + $0xa4] sm:$0x1]  ;;  %v6959_v58 = vld [vmem:[#allocation4 + $0xb8] sm:$0xf] }
 0x51c   : > { %7102 = vst.msk [vmem:[#allocation5 + $0x24] sm:$0xf] %vm7092_vm5, %v7015_v62  ;;  %7103 = vst.msk [vmem:[#allocation5 + $0x28] sm:$0xf] %vm7092_vm5, %v7017_v12  ;;  %v6375_v62 = vrot.slane %v6373_v59, 5  ;;  %v6397_v12 = vshll.u32 %v6072_v47, 16 }
 0x51d   : > { %6848 = vrot.lane.b32.xlu1 %v6773_v13, %s9067_s13  ;;  %7036 = vrot.lane.b32.xlu0 %v6952_v9, %s9068_s14  ;;  %v6073_v13 = vld [vmem:[#allocation4 + $0xac] sm:$0xf]  ;;  %v6396_v42 = vrot.slane %v6394_v61, 4  ;;  %v7465_v61 = vshll.u32 %v7161_v2, 16 }
 0x51e   : > { %v6407_v24 = vshrl.u32 %v6073_v13, 16  ;;  %v6634_v47 = vld [vmem:[#allocation4 + $0xac] sm:$0xf] }
 0x51f   : > { %v7019_v23 = vpop.permute.xlu1 %7018  ;;  %v7574_v17 = vpop.permute.xlu0 %7573  ;;  %v6783_v52 = vrot.slane %v6634_v47, 5  ;;  %v7467_v18 = vrot.slane %v7465_v61, 5  ;;  %v7723_v2 = vld [vmem:[#allocation4 + $0xac] sm:$0xf] }
 0x520   : > { %7104 = vst.msk [vmem:[#allocation5 + $0x2c] sm:$0xf] %vm7092_vm5, %v7019_v23  ;;  %v6376_v23 = vor.u32 %v6375_v62, %v6372_v56  ;;  %v7868_v61 = vrot.slane %v7723_v2, 5 }
 0x521   : > { %7662 = vst.msk [vmem:[#allocation5 + $0x20] sm:$0xf] %vm7653_vm7, %v7574_v17  ;;  %7038 = vrot.lane.b32.xlu1 %v6953_v1, %s9068_s14  ;;  %7040 = vrot.lane.b32.xlu0 %v6954_v27, %s9068_s14  ;;  %v6399_v17 = vrot.slane %v6397_v12, 5  ;;  %v6403_v1 = vshll.u32 %v6073_v13, 16  ;;  %v7864_v27 = vrot.slane %v7721_v8, 5  ;;  %v6779_v13 = vrot.slane %v6632_v60, 5 }
 0x522   : > { %v7164_v12 = vld [vmem:[#allocation4 + $0xb4] sm:$0xf]  ;;  %v7471_v8 = vshll.u32 %v7162_v21, 16 }
 0x523   : > { %v7576_v49 = vpop.permute.xlu1 %7575  ;;  %v7578_v36 = vpop.permute.xlu0 %7577  ;;  %v7865_v48 = vsel %vm9554_vm13, %v7863_v43, %v7864_v27  ;;  %v6400_v11 = vor.u32 %v6399_v17, %v6396_v42  ;;  %v6405_v37 = vrot.slane %v6403_v1, 5  ;;  %v6785_v43 = vrot.slane %v6783_v52, 4 }
 0x524   : > { %7663 = vst.msk [vmem:[#allocation5 + $0x24] sm:$0xf] %vm7653_vm7, %v7576_v49  ;;  %7664 = vst.msk [vmem:[#allocation5 + $0x28] sm:$0xf] %vm7653_vm7, %v7578_v36  ;;  %v5866_v49 = vld [vmem:[#allocation4 + $0xa8] sm:$0xf] }
 0x525   : > { %7042 = vrot.lane.b32.xlu1 %v6955_v16, %s9068_s14  ;;  %7597 = vrot.lane.b32.xlu0 %v7426_v30, %s9069_s26  ;;  %v6377_v36 = vrot.slane %v6376_v23, 4  ;;  %v6409_v16 = vrot.slane %v6407_v24, 4  ;;  %v6389_v30 = vshll.u32 %v6071_v54, 16  ;;  %v6401_v50 = vrot.slane %v6400_v11, 4  ;;  %v7165_v54 = vld [vmem:[#allocation4 + $0xb8] sm:$0xf] }
 0x526   : > { %v7475_v42 = vshrl.u32 %v7162_v21, 16  ;;  %v7486_v1 = vshrl.u32 %v7164_v12, 16  ;;  %v7489_v24 = vshll.u32 %v7164_v12, 16  ;;  %v7473_v34 = vrot.slane %v7471_v8, 5  ;;  %v7725_v12 = vld [vmem:[#allocation4 + $0xb4] sm:$0xe] }
 0x527   : > { %v7580_v38 = vpop.permute.xlu1 %7579  ;;  %v7911_v55 = vpop.permute.xlu0 %7910  ;;  %v6382_v25 = vsel %vm9290_vm10, %v6377_v36, %v6381_v20  ;;  %v6410_v41 = vor.u32 %v6409_v16, %v6405_v37  ;;  %v6406_v63 = vsel %vm9290_vm10, %v6401_v50, %v6405_v37  ;;  %v7464_v20 = vrot.slane %v7462_v7, 4  ;;  %v6956_v36 = vld [vmem:[#allocation4 + $0xa8] sm:$0xf] }
 0x528   : > { %7665 = vst.msk [vmem:[#allocation5 + $0x2c] sm:$0xf] %vm7653_vm7, %v7580_v38  ;;  %v6631_v38 = vld [vmem:[#allocation4 + $0xa0] sm:$0xf]  ;;  %v7488_v11 = vrot.slane %v7486_v1, 4  ;;  %v7491_v37 = vrot.slane %v7489_v24, 5 }
 0x529   : > { %7999 = vst.msk [vmem:[#allocation5 + $0x20] sm:$0xf] %vm7990_vm9, %v7911_v55  ;;  %7599 = vrot.lane.b32.xlu1 %v7436_v53, %s9069_s26  ;;  %7601 = vrot.lane.b32.xlu0 %v7450_v22, %s9069_s26  ;;  %v6391_v55 = vrot.slane %v6389_v30, 5  ;;  %v6413_v53 = vshll.u32 %v6074_v45, 16  ;;  %v6411_v39 = vrot.slane %v6410_v41, 4  ;;  %v6776_v59 = vrot.slane %v6631_v38, 5 }
 0x52a   : > { %v7495_v16 = vshll.u32 %v7165_v54, 16  ;;  %v7499_v30 = vshrl.u32 %v7165_v54, 16  ;;  %v7163_v45 = vld [vmem:[#allocation4 + $0xb0] sm:$0x1]  ;;  %v7492_v50 = vor.u32 %v7491_v37, %v7488_v11  ;;  %v7727_v1 = vld [vmem:[#allocation4 + $0xbc] sm:$0x1] }
 0x52b   : > { %v7913_v5 = vpop.permute.xlu1 %7912  ;;  %v7915_v6 = vpop.permute.xlu0 %7914  ;;  %v6392_v22 = vsel %vm9290_vm10, %v6387_v26, %v6391_v55  ;;  %v6777_v56 = vsel %vm9554_vm13, %v8683_v4, %v6776_v59  ;;  %v6778_v62 = vrot.slane %v6776_v59, 4  ;;  %v7481_v55 = vshll.u32 %v7163_v45, 16 }
 0x52c   : > { %8000 = vst.msk [vmem:[#allocation5 + $0x24] sm:$0xf] %vm7990_vm9, %v7913_v5  ;;  %8001 = vst.msk [vmem:[#allocation5 + $0x28] sm:$0xf] %vm7990_vm9, %v7915_v6  ;;  %v7497_v41 = vrot.slane %v7495_v16, 5  ;;  %v7501_v38 = vrot.slane %v7499_v30, 4 }
 0x52d   : > { %7603 = vrot.lane.b32.xlu1 %v7460_v10, %s9069_s26  ;;  %7934 = vrot.lane.b32.xlu0 %v7855_v3, %s9070_s10  ;;  %v6415_v3 = vrot.slane %v6413_v53, 5  ;;  %v6780_v23 = vsel %vm9554_vm13, %v6778_v62, %v6779_v13  ;;  %v7166_v53 = vld [vmem:[#allocation4 + $0xbc] sm:$0x1]  ;;  %v7878_v16 = vrot.slane %v7727_v1, 5  ;;  %v6079_v30 = vld [vmem:[#allocation4 + $0xc4] sm:$0xf] }
 0x52e   : > { %v7502_v59 = vor.u32 %v7501_v38, %v7497_v41  ;;  %v7505_v47 = vshll.u32 %v7166_v53, 16  ;;  %v6455_v53 = vshrl.u32 %v6079_v30, 16 }
 0x52f   : > { %v7917_v9 = vpop.permute.xlu1 %7916  ;;  %v6490_v19 = vpop.permute.xlu0 %6489  ;;  %v6416_v10 = vsel %vm9290_vm10, %v6411_v39, %v6415_v3  ;;  %v7493_v39 = vrot.slane %v7492_v50, 4  ;;  %v7483_v3 = vrot.slane %v7481_v55, 5  ;;  %v5868_v50 = vld [vmem:[#allocation4 + $0xb4] sm:$0xf]  ;;  %v6451_v55 = vshll.u32 %v6079_v30, 16 }
 0x530   : > { %8002 = vst.msk [vmem:[#allocation5 + $0x2c] sm:$0xf] %vm7990_vm9, %v7917_v9  ;;  %v7503_v7 = vrot.slane %v7502_v59, 4 }
 0x531   : > { %6574 = vst.msk [vmem:[#allocation5 + $0x30] sm:$0xf] %vm6561_vm3, %v6490_v19  ;;  %7936 = vrot.lane.b32.xlu1 %v7858_v0, %s9070_s10  ;;  %7938 = vrot.lane.b32.xlu0 %v7862_v15, %s9070_s10  ;;  %v8684_v0 = vrot.slane %v6633_v33, 9  ;;  %v6635_v15 = vld [vmem:[#allocation4 + $0xb0] sm:$0x1]  ;;  %v7498_v21 = vsel %vm9290_vm10, %v7493_v39, %v7497_v41  ;;  %v6453_v2 = vrot.slane %v6451_v55, 5 }
 0x532   : > { %v6786_v27 = vrot.slane %v6635_v15, 5  ;;  %v7722_v33 = vld [vmem:[#allocation4 + $0xa8] sm:$0xe]  ;;  %v5870_v39 = vld [vmem:[#allocation4 + $0xc0] sm:$0xf] }
 0x533   : > { %v6492_v28 = vpop.permute.xlu1 %6491  ;;  %v6494_v32 = vpop.permute.xlu0 %6493  ;;  %v8983_v29 = vld [vmem:[#allocation5 + $0x20] sm:$0xff]   ;;  %v6784_v17 = vsel %vm9554_vm13, %v8684_v0, %v6783_v52  ;;  %v8699_v62 = vrot.slane %v7722_v33, 9 }
 0x534   : > { %6575 = vst.msk [vmem:[#allocation5 + $0x34] sm:$0xf] %vm6561_vm3, %v6492_v28  ;;  %6576 = vst.msk [vmem:[#allocation5 + $0x38] sm:$0xf] %vm6561_vm3, %v6494_v32  ;;  %8876 = vmatprep.mubr.msk.bf16.mxu1 %vm8178_vm11, %v8983_v29  ;;  %v7468_v29 = vor.u32 %v7467_v18, %v7464_v20  ;;  %v7870_v18 = vrot.slane %v7868_v61, 4 }
 0x535   : > { %7940 = vrot.lane.b32.xlu1 %v7865_v48, %s9070_s10  ;;  %5956 = vrot.lane.b32.xlu0 %v5866_v49, %s9064_s15  ;;  %v6787_v48 = vsel %vm9554_vm13, %v6785_v43, %v6786_v27  ;;  %v7477_v49 = vrot.slane %v7475_v42, 4  ;;  %v7869_v20 = vsel %vm9554_vm13, %v8699_v62, %v7868_v61 }
 0x536   : > { %v7469_v26 = vrot.slane %v7468_v29, 4 }
 0x537   : > { %v6496_v40 = vpop.permute.xlu1 %6495  ;;  %v6827_v31 = vpop.permute.xlu0 %6826  ;;  %v8984_v44 = vld [vmem:[#allocation5 + $0x28] sm:$0xff]  }
 0x538   : > { %6577 = vst.msk [vmem:[#allocation5 + $0x3c] sm:$0xf] %vm6561_vm3, %v6496_v40  ;;  %8877 = vmatmul.mubr.msk.bf16.gmra.mxu1 %vm8178_vm11, %v8984_v44  ;;  %v6957_v44 = vld [vmem:[#allocation4 + $0xac] sm:$0xf] }
 0x539   : > { %6911 = vst.msk [vmem:[#allocation5 + $0x30] sm:$0xf] %vm6898_vm4, %v6827_v31  ;;  %5958 = vrot.lane.b32.xlu1 %v5867_v46, %s9064_s15  ;;  %6513 = vrot.lane.b32.xlu0 %v6382_v25, %s9066_s7  ;;  %v7478_v46 = vor.u32 %v7477_v49, %v7473_v34  ;;  %v6958_v25 = vld [vmem:[#allocation4 + $0xb4] sm:$0xf] }
 0x53b   : > { %v6829_v57 = vpop.permute.xlu1 %6828  ;;  %v6831_v14 = vpop.permute.xlu0 %6830 }
 0x53c   : > { %6912 = vst.msk [vmem:[#allocation5 + $0x34] sm:$0xf] %vm6898_vm4, %v6829_v57  ;;  %6913 = vst.msk [vmem:[#allocation5 + $0x38] sm:$0xf] %vm6898_vm4, %v6831_v14 }
 0x53d   : > { %6515 = vrot.lane.b32.xlu1 %v6392_v22, %s9066_s7  ;;  %6517 = vrot.lane.b32.xlu0 %v6406_v63, %s9066_s7  ;;  %v7474_v22 = vsel %vm9290_vm10, %v7469_v26, %v7473_v34  ;;  %v7479_v63 = vrot.slane %v7478_v46, 4 }
 0x53f   : > { %v6833_v5 = vpop.permute.xlu1 %6832  ;;  %v7021_v6 = vpop.permute.xlu0 %7020  ;;  %v7484_v52 = vsel %vm9290_vm10, %v7479_v63, %v7483_v3  ;;  %v5869_v63 = vld [vmem:[#allocation4 + $0xb8] sm:$0xf]  ;;  %v6457_v3 = vrot.slane %v6455_v53, 4 }
 0x540   : > { %6914 = vst.msk [vmem:[#allocation5 + $0x3c] sm:$0xf] %vm6898_vm4, %v6833_v5  ;;  %v7726_v5 = vld [vmem:[#allocation4 + $0xb8] sm:$0xf] }
 0x541   : > { %7105 = vst.msk [vmem:[#allocation5 + $0x30] sm:$0xf] %vm7092_vm5, %v7021_v6  ;;  %6519 = vrot.lane.b32.xlu1 %v6416_v10, %s9066_s7  ;;  %6850 = vrot.lane.b32.xlu0 %v6777_v56, %s9067_s13  ;;  %v6075_v6 = vld [vmem:[#allocation4 + $0xb4] sm:$0xf]  ;;  %v7507_v10 = vrot.slane %v7505_v47, 5  ;;  %v7875_v13 = vrot.slane %v7726_v5, 5  ;;  %v6458_v61 = vor.u32 %v6457_v3, %v6453_v2 }
 0x542   : > { %v7724_v56 = vld [vmem:[#allocation4 + $0xb0] sm:$0x1]  ;;  %v6418_v0 = vshrl.u32 %v6075_v6, 16  ;;  %v6421_v15 = vshll.u32 %v6075_v6, 16  ;;  %v6080_v5 = vld [vmem:[#allocation4 + $0xc8] sm:$0x1] }
 0x543   : > { %v7023_v9 = vpop.permute.xlu1 %7022  ;;  %v7025_v19 = vpop.permute.xlu0 %7024  ;;  %v7508_v43 = vsel %vm9290_vm10, %v7503_v7, %v7507_v10  ;;  %v7871_v42 = vrot.slane %v7724_v56, 5  ;;  %v7877_v24 = vrot.slane %v7875_v13, 4  ;;  %v5871_v6 = vld [vmem:[#allocation4 + $0xc4] sm:$0xf]  ;;  %v6637_v10 = vld [vmem:[#allocation4 + $0xb8] sm:$0xf] }
 0x544   : > { %7106 = vst.msk [vmem:[#allocation5 + $0x34] sm:$0xf] %vm7092_vm5, %v7023_v9  ;;  %7107 = vst.msk [vmem:[#allocation5 + $0x38] sm:$0xf] %vm7092_vm5, %v7025_v19  ;;  %v6076_v19 = vld [vmem:[#allocation4 + $0xb8] sm:$0xf] }
 0x545   : > { %6852 = vrot.lane.b32.xlu1 %v6780_v23, %s9067_s13  ;;  %6854 = vrot.lane.b32.xlu0 %v6784_v17, %s9067_s13  ;;  %v8700_v23 = vrot.slane %v7725_v12, 9  ;;  %v6078_v17 = vld [vmem:[#allocation4 + $0xc0] sm:$0xf]  ;;  %v6420_v27 = vrot.slane %v6418_v0, 4  ;;  %v6423_v54 = vrot.slane %v6421_v15, 5  ;;  %v6431_v34 = vshrl.u32 %v6076_v19, 16 }
 0x546   : > { %v7872_v49 = vsel %vm9554_vm13, %v7870_v18, %v7871_v42  ;;  %v6442_v11 = vshrl.u32 %v6078_v17, 16  ;;  %v6445_v37 = vshll.u32 %v6078_v17, 16  ;;  %v6461_v62 = vshll.u32 %v6080_v5, 16  ;;  %v6636_v0 = vld [vmem:[#allocation4 + $0xb4] sm:$0xe] }
 0x547   : > { %v7027_v28 = vpop.permute.xlu1 %7026  ;;  %v7582_v32 = vpop.permute.xlu0 %7581  ;;  %v6424_v46 = vor.u32 %v6423_v54, %v6420_v27  ;;  %v6433_v26 = vrot.slane %v6431_v34, 4  ;;  %v6790_v15 = vrot.slane %v6637_v10, 5  ;;  %v8685_v42 = vrot.slane %v6636_v0, 9  ;;  %v6639_v17 = vld [vmem:[#allocation4 + $0xc0] sm:$0xe] }
 0x548   : > { %7108 = vst.msk [vmem:[#allocation5 + $0x3c] sm:$0xf] %vm7092_vm5, %v7027_v28  ;;  %v6427_v28 = vshll.u32 %v6076_v19, 16  ;;  %v6444_v41 = vrot.slane %v6442_v11, 4  ;;  %v6447_v38 = vrot.slane %v6445_v37, 5  ;;  %v6459_v19 = vrot.slane %v6458_v61, 4 }
 0x549   : > { %7666 = vst.msk [vmem:[#allocation5 + $0x30] sm:$0xf] %vm7653_vm7, %v7582_v32  ;;  %6856 = vrot.lane.b32.xlu1 %v6787_v48, %s9067_s13  ;;  %7044 = vrot.lane.b32.xlu0 %v6956_v36, %s9068_s14  ;;  %v7876_v36 = vsel %vm9554_vm13, %v8700_v23, %v7875_v13  ;;  %v6463_v18 = vrot.slane %v6461_v62, 5  ;;  %v6638_v23 = vld [vmem:[#allocation4 + $0xbc] sm:$0x1]  ;;  %v6792_v27 = vrot.slane %v6790_v15, 4 }
 0x54a   : > { %v6448_v47 = vor.u32 %v6447_v38, %v6444_v41  ;;  %v7168_v11 = vld [vmem:[#allocation4 + $0xc4] sm:$0xf]  ;;  %v6641_v37 = vld [vmem:[#allocation4 + $0xc8] sm:$0x1] }
 0x54b   : > { %v7584_v40 = vpop.permute.xlu1 %7583  ;;  %v7586_v31 = vpop.permute.xlu0 %7585  ;;  %v7519_v41 = vshll.u32 %v7168_v11, 16  ;;  %v7523_v38 = vshrl.u32 %v7168_v11, 16  ;;  %v6800_v55 = vrot.slane %v6641_v37, 5  ;;  %v6961_v61 = vld [vmem:[#allocation4 + $0xc4] sm:$0xf] }
 0x54c   : > { %7667 = vst.msk [vmem:[#allocation5 + $0x34] sm:$0xf] %vm7653_vm7, %v7584_v40  ;;  %7668 = vst.msk [vmem:[#allocation5 + $0x38] sm:$0xf] %vm7653_vm7, %v7586_v31  ;;  %v6449_v7 = vrot.slane %v6448_v47, 4 }
 0x54d   : > { %7046 = vrot.lane.b32.xlu1 %v6957_v44, %s9068_s14  ;;  %7048 = vrot.lane.b32.xlu0 %v6958_v25, %s9068_s14  ;;  %v7879_v44 = vsel %vm9554_vm13, %v7877_v24, %v7878_v16  ;;  %v6429_v25 = vrot.slane %v6427_v28, 5  ;;  %v7170_v28 = vld [vmem:[#allocation4 + $0xcc] sm:$0xf]  ;;  %v7525_v3 = vrot.slane %v7523_v38, 4 }
 0x54e   : > { %v7534_v16 = vshrl.u32 %v7170_v28, 16  ;;  %v7537_v30 = vshll.u32 %v7170_v28, 16 }
 0x54f   : > { %v7588_v57 = vpop.permute.xlu1 %7587  ;;  %v7919_v14 = vpop.permute.xlu0 %7918  ;;  %v6434_v59 = vor.u32 %v6433_v26, %v6429_v25 }
 0x550   : > { %7669 = vst.msk [vmem:[#allocation5 + $0x3c] sm:$0xf] %vm7653_vm7, %v7588_v57  ;;  %v7536_v53 = vrot.slane %v7534_v16, 4 }
 0x551   : > { %8003 = vst.msk [vmem:[#allocation5 + $0x30] sm:$0xf] %vm7990_vm9, %v7919_v14  ;;  %7050 = vrot.lane.b32.xlu1 %v6959_v58, %s9068_s14  ;;  %7605 = vrot.lane.b32.xlu0 %v7474_v22, %s9069_s26  ;;  %v6425_v58 = vrot.slane %v6424_v46, 4  ;;  %v6077_v22 = vld [vmem:[#allocation4 + $0xbc] sm:$0x1] }
 0x553   : > { %v7921_v4 = vpop.permute.xlu1 %7920  ;;  %v7923_v60 = vpop.permute.xlu0 %7922 }
 0x554   : > { %8004 = vst.msk [vmem:[#allocation5 + $0x34] sm:$0xf] %vm7990_vm9, %v7921_v4  ;;  %8005 = vst.msk [vmem:[#allocation5 + $0x38] sm:$0xf] %vm7990_vm9, %v7923_v60  ;;  %v6437_v4 = vshll.u32 %v6077_v22, 16 }
 0x555   : > { %7607 = vrot.lane.b32.xlu1 %v7484_v52, %s9069_s26  ;;  %7609 = vrot.lane.b32.xlu0 %v7498_v21, %s9069_s26  ;;  %v6430_v52 = vsel %vm9290_vm10, %v6425_v58, %v6429_v25  ;;  %v6435_v21 = vrot.slane %v6434_v59, 4  ;;  %v7171_v25 = vld [vmem:[#allocation4 + $0xd0] sm:$0xf]  ;;  %v6960_v59 = vld [vmem:[#allocation4 + $0xc0] sm:$0xf] }
 0x556   : > { %v6439_v56 = vrot.slane %v6437_v4, 5  ;;  %v7547_v58 = vshrl.u32 %v7171_v25, 16  ;;  %v6962_v4 = vld [vmem:[#allocation4 + $0xcc] sm:$0xf] }
 0x557   : > { %v7925_v8 = vpop.permute.xlu1 %7924  ;;  %v6498_v9 = vpop.permute.xlu0 %6497 }
 0x558   : > { %8006 = vst.msk [vmem:[#allocation5 + $0x3c] sm:$0xf] %vm7990_vm9, %v7925_v8  ;;  %v6440_v8 = vsel %vm9290_vm10, %v6435_v21, %v6439_v56 }
 0x559   : > { %6578 = vst.msk [vmem:[#allocation5 + $0x40] sm:$0xf] %vm6561_vm3, %v6498_v9  ;;  %7611 = vrot.lane.b32.xlu1 %v7508_v43, %s9069_s26  ;;  %7942 = vrot.lane.b32.xlu0 %v7869_v20, %s9070_s10  ;;  %v6454_v9 = vsel %vm9290_vm10, %v6449_v7, %v6453_v2  ;;  %v6640_v43 = vld [vmem:[#allocation4 + $0xc4] sm:$0xf]  ;;  %v7167_v20 = vld [vmem:[#allocation4 + $0xc0] sm:$0xf] }
 0x55a   : > { %v6797_v54 = vrot.slane %v6640_v43, 5  ;;  %v7513_v34 = vshll.u32 %v7167_v20, 16  ;;  %v7521_v2 = vrot.slane %v7519_v41, 5  ;;  %v7172_v7 = vld [vmem:[#allocation4 + $0xd4] sm:$0x1] }
 0x55b   : > { %v6500_v32 = vpop.permute.xlu1 %6499  ;;  %v6502_v48 = vpop.permute.xlu0 %6501  ;;  %v8985_v29 = vld [vmem:[#allocation5 + $0x30] sm:$0xff]  }
 0x55c   : > { %6579 = vst.msk [vmem:[#allocation5 + $0x44] sm:$0xf] %vm6561_vm3, %v6500_v32  ;;  %6580 = vst.msk [vmem:[#allocation5 + $0x48] sm:$0xf] %vm6561_vm3, %v6502_v48  ;;  %8880 = vmatprep.mubr.msk.bf16.mxu1 %vm8178_vm11, %v8985_v29  ;;  %v6464_v32 = vsel %vm9290_vm10, %v6459_v19, %v6463_v18  ;;  %v6791_v48 = vsel %vm9554_vm13, %v8685_v42, %v6790_v15  ;;  %v7510_v29 = vshrl.u32 %v7167_v20, 16  ;;  %v6799_v46 = vrot.slane %v6797_v54, 4 }
 0x55d   : > { %7944 = vrot.lane.b32.xlu1 %v7872_v49, %s9070_s10  ;;  %7946 = vrot.lane.b32.xlu0 %v7876_v36, %s9070_s10  ;;  %v6793_v49 = vrot.slane %v6638_v23, 5  ;;  %v8686_v36 = vrot.slane %v6639_v17, 9  ;;  %v7526_v56 = vor.u32 %v7525_v3, %v7521_v2  ;;  %v7553_v15 = vshll.u32 %v7172_v7, 16  ;;  %v7728_v18 = vld [vmem:[#allocation4 + $0xc0] sm:$0xe] }
 0x55e   : > { %v7512_v26 = vrot.slane %v7510_v29, 4  ;;  %v7729_v42 = vld [vmem:[#allocation4 + $0xc4] sm:$0xf] }
 0x55f   : > { %v6504_v40 = vpop.permute.xlu1 %6503  ;;  %v6835_v31 = vpop.permute.xlu0 %6834  ;;  %v8986_v45 = vld [vmem:[#allocation5 + $0x38] sm:$0xff]   ;;  %v7527_v43 = vrot.slane %v7526_v56, 4  ;;  %v7882_v29 = vrot.slane %v7729_v42, 5 }
 0x560   : > { %6581 = vst.msk [vmem:[#allocation5 + $0x4c] sm:$0xf] %vm6561_vm3, %v6504_v40  ;;  %8881 = vmatmul.mubr.msk.bf16.gmra.mxu1 %vm8178_vm11, %v8986_v45  ;;  %v6798_v45 = vsel %vm9554_vm13, %v8686_v36, %v6797_v54  ;;  %v7730_v36 = vld [vmem:[#allocation4 + $0xc8] sm:$0x1] }
 0x561   : > { %6915 = vst.msk [vmem:[#allocation5 + $0x40] sm:$0xf] %vm6898_vm4, %v6835_v31  ;;  %7948 = vrot.lane.b32.xlu1 %v7879_v44, %s9070_s10  ;;  %5960 = vrot.lane.b32.xlu0 %v5868_v50, %s9064_s15  ;;  %v6794_v44 = vsel %vm9554_vm13, %v6792_v27, %v6793_v49  ;;  %v7515_v50 = vrot.slane %v7513_v34, 5  ;;  %v7731_v27 = vld [vmem:[#allocation4 + $0xcc] sm:$0xe]  ;;  %v8701_v49 = vrot.slane %v7728_v18, 9 }
 0x562   : > { %v8702_v37 = vrot.slane %v7731_v27, 9  ;;  %v7885_v35 = vrot.slane %v7730_v36, 5 }
 0x563   : > { %v6837_v57 = vpop.permute.xlu1 %6836  ;;  %v6839_v14 = vpop.permute.xlu0 %6838  ;;  %v7516_v47 = vor.u32 %v7515_v50, %v7512_v26 }
 0x564   : > { %6916 = vst.msk [vmem:[#allocation5 + $0x44] sm:$0xf] %vm6898_vm4, %v6837_v57  ;;  %6917 = vst.msk [vmem:[#allocation5 + $0x48] sm:$0xf] %vm6898_vm4, %v6839_v14  ;;  %v7539_v57 = vrot.slane %v7537_v30, 5  ;;  %v7543_v14 = vshll.u32 %v7171_v25, 16 }
 0x565   : > { %5962 = vrot.lane.b32.xlu1 %v5869_v63, %s9064_s15  ;;  %5964 = vrot.lane.b32.xlu0 %v5870_v39, %s9064_s15  ;;  %v6801_v39 = vsel %vm9554_vm13, %v6799_v46, %v6800_v55  ;;  %v7517_v10 = vrot.slane %v7516_v47, 4 }
 0x566   : > { %v7545_v5 = vrot.slane %v7543_v14, 5 }
 0x567   : > { %v6841_v60 = vpop.permute.xlu1 %6840  ;;  %v7029_v33 = vpop.permute.xlu0 %7028  ;;  %v7522_v19 = vsel %vm9290_vm10, %v7517_v10, %v7521_v2 }
 0x568   : > { %6918 = vst.msk [vmem:[#allocation5 + $0x4c] sm:$0xf] %vm6898_vm4, %v6841_v60  ;;  %v7169_v60 = vld [vmem:[#allocation4 + $0xc8] sm:$0x1] }
 0x569   : > { %7109 = vst.msk [vmem:[#allocation5 + $0x40] sm:$0xf] %vm7092_vm5, %v7029_v33  ;;  %5966 = vrot.lane.b32.xlu1 %v5871_v6, %s9064_s15  ;;  %6521 = vrot.lane.b32.xlu0 %v6430_v52, %s9066_s7  ;;  %v7540_v33 = vor.u32 %v7539_v57, %v7536_v53  ;;  %v7549_v6 = vrot.slane %v7547_v58, 4  ;;  %v7529_v62 = vshll.u32 %v7169_v60, 16  ;;  %s215_s15 = sand.u32 1, %s9048_s19  }
 0x56a   : > { %s11925_s22 = scalar_lea.sflag [#allocation7], %s215_s15 }
 0x56b   : > { %v7031_v12 = vpop.permute.xlu1 %7030  ;;  %v7033_v13 = vpop.permute.xlu0 %7032  ;;  %v7550_v0 = vor.u32 %v7549_v6, %v7545_v5  ;;  %v7531_v20 = vrot.slane %v7529_v62, 5 }
 0x56c   : > { %7110 = vst.msk [vmem:[#allocation5 + $0x44] sm:$0xf] %vm7092_vm5, %v7031_v12  ;;  %7111 = vst.msk [vmem:[#allocation5 + $0x48] sm:$0xf] %vm7092_vm5, %v7033_v13  ;;  %v6963_v12 = vld [vmem:[#allocation4 + $0xd0] sm:$0xf] }
 0x56d   : > { %6523 = vrot.lane.b32.xlu1 %v6440_v8, %s9066_s7  ;;  %6525 = vrot.lane.b32.xlu0 %v6454_v9, %s9066_s7  ;;  %v7541_v13 = vrot.slane %v7540_v33, 4  ;;  %v7551_v17 = vrot.slane %v7550_v0, 4  ;;  %v11793_v33 = vld [vmem:[%s11970_s4] ss:$0 sm:$0xff] }
 0x56f   : > { %v7035_v1 = vpop.permute.xlu1 %7034  ;;  %v7590_v24 = vpop.permute.xlu0 %7589  ;;  %v7546_v23 = vsel %vm9290_vm10, %v7541_v13, %v7545_v5 }
 0x570   : > { %7112 = vst.msk [vmem:[#allocation5 + $0x4c] sm:$0xf] %vm7092_vm5, %v7035_v1  ;;  %v7555_v1 = vrot.slane %v7553_v15, 5 }
 0x571   : > { %7670 = vst.msk [vmem:[#allocation5 + $0x40] sm:$0xf] %vm7653_vm7, %v7590_v24  ;;  %6527 = vrot.lane.b32.xlu1 %v6464_v32, %s9066_s7  ;;  %6858 = vrot.lane.b32.xlu0 %v6791_v48, %s9067_s13  ;;  %v7732_v24 = vld [vmem:[#allocation4 + $0xd0] sm:$0xf]  ;;  %v7532_v48 = vsel %vm9290_vm10, %v7527_v43, %v7531_v20 }
 0x572   : > { %v7556_v34 = vsel %vm9290_vm10, %v7551_v17, %v7555_v1  ;;  %v7889_v11 = vrot.slane %v7732_v24, 5 }
 0x573   : > { %v7592_v40 = vpop.permute.xlu1 %7591  ;;  %v7594_v31 = vpop.permute.xlu0 %7593 }
 0x574   : > { %7671 = vst.msk [vmem:[#allocation5 + $0x44] sm:$0xf] %vm7653_vm7, %v7592_v40  ;;  %7672 = vst.msk [vmem:[#allocation5 + $0x48] sm:$0xf] %vm7653_vm7, %v7594_v31  ;;  %v7733_v31 = vld [vmem:[#allocation4 + $0xd4] sm:$0x1]  ;;  %v7890_v26 = vsel %vm9554_vm13, %v8702_v37, %v7889_v11 }
 0x575   : > { %6860 = vrot.lane.b32.xlu1 %v6794_v44, %s9067_s13  ;;  %6862 = vrot.lane.b32.xlu0 %v6798_v45, %s9067_s13  ;;  %v7883_v44 = vsel %vm9554_vm13, %v8701_v49, %v7882_v29  ;;  %v7884_v45 = vrot.slane %v7882_v29, 4  ;;  %v7891_v46 = vrot.slane %v7889_v11, 4  ;;  %v7892_v25 = vrot.slane %v7733_v31, 5 }
 0x577   : > { %v7596_v22 = vpop.permute.xlu1 %7595  ;;  %v7927_v63 = vpop.permute.xlu0 %7926  ;;  %v7886_v38 = vsel %vm9554_vm13, %v7884_v45, %v7885_v35  ;;  %v7893_v55 = vsel %vm9554_vm13, %v7891_v46, %v7892_v25 }
 0x578   : > { %7673 = vst.msk [vmem:[#allocation5 + $0x4c] sm:$0xf] %vm7653_vm7, %v7596_v22 }
 0x579   : > { %8007 = vst.msk [vmem:[#allocation5 + $0x40] sm:$0xf] %vm7990_vm9, %v7927_v63  ;;  %6864 = vrot.lane.b32.xlu1 %v6801_v39, %s9067_s13  ;;  %7052 = vrot.lane.b32.xlu0 %v6960_v59, %s9068_s14 }
 0x57b   : > { %v7929_v52 = vpop.permute.xlu1 %7928  ;;  %v7931_v21 = vpop.permute.xlu0 %7930 }
 0x57c   : > { %8008 = vst.msk [vmem:[#allocation5 + $0x44] sm:$0xf] %vm7990_vm9, %v7929_v52  ;;  %8009 = vst.msk [vmem:[#allocation5 + $0x48] sm:$0xf] %vm7990_vm9, %v7931_v21 }
 0x57d   : > { %7054 = vrot.lane.b32.xlu1 %v6961_v61, %s9068_s14  ;;  %7056 = vrot.lane.b32.xlu0 %v6962_v4, %s9068_s14 }
 0x57f   : > { %v7933_v8 = vpop.permute.xlu1 %7932  ;;  %v6506_v9 = vpop.permute.xlu0 %6505 }
 0x580   : > { %8010 = vst.msk [vmem:[#allocation5 + $0x4c] sm:$0xf] %vm7990_vm9, %v7933_v8 }
 0x581   : > { %6582 = vst.msk [vmem:[#allocation5 + $0x50] sm:$0xf] %vm6561_vm3, %v6506_v9  ;;  %7058 = vrot.lane.b32.xlu1 %v6963_v12, %s9068_s14  ;;  %7613 = vrot.lane.b32.xlu0 %v7522_v19, %s9069_s26  ;;  %s8536_s14 = sshll.u32 %s215_s15, 8 }
 0x582   : > { %s11802_s17 = scalar_lea.vmem [#allocation6], %s8536_s14 }
 0x583   : > { %v6508_v54 = vpop.permute.xlu1 %6507  ;;  %v6510_v28 = vpop.permute.xlu0 %6509  ;;  %v8987_v32 = vld [vmem:[#allocation5 + $0x40] sm:$0xff]   ;;  %s8470_s25 = sshll.u32 %s11802_s17, 4  ;;  %s11920_s25 = int_to_ptr.vmem [resolvable:$true] %s8470_s25 }
 0x584   : > { %6583 = vst.msk [vmem:[#allocation5 + $0x54] sm:$0xf] %vm6561_vm3, %v6508_v54  ;;  %6584 = vst.msk [vmem:[#allocation5 + $0x58] sm:$0xf] %vm6561_vm3, %v6510_v28  ;;  %8884 = vmatprep.mubr.msk.bf16.mxu1 %vm8178_vm11, %v8987_v32  ;;  %s8996_s8 = scalar_lea.vmem %s11920_s25, 4096 }
 0x585   : > { %7615 = vrot.lane.b32.xlu1 %v7532_v48, %s9069_s26  ;;  %7617 = vrot.lane.b32.xlu0 %v7546_v23, %s9069_s26  ;;  %p8997_p11 = scmp.ne.s32.totalorder %s11920_s25, %s8996_s8 }
 0x587   : > { %v6512_v16 = vpop.permute.xlu1 %6511  ;;  %v6843_v30 = vpop.permute.xlu0 %6842  ;;  %v8988_v40 = vld [vmem:[#allocation5 + $0x48] sm:$0xff]   ;;  %p8998_p12 = pnand %p8997_p11, %p9141_p5 }
 0x588   : > { %6585 = vst.msk [vmem:[#allocation5 + $0x5c] sm:$0xf] %vm6561_vm3, %v6512_v16  ;;  %8885 = vmatmul.mubr.msk.bf16.gmra.mxu1 %vm8178_vm11, %v8988_v40 }
 0x589   : > { %6919 = vst.msk [vmem:[#allocation5 + $0x50] sm:$0xf] %vm6898_vm4, %v6843_v30  ;;  %7619 = vrot.lane.b32.xlu1 %v7556_v34, %s9069_s26  ;;  %7950 = vrot.lane.b32.xlu0 %v7883_v44, %s9070_s10  ;;  %p8999_p13 = pneg %p8998_p12 }
 0x58b   : > { %v6845_v50 = vpop.permute.xlu1 %6844  ;;  %v6847_v41 = vpop.permute.xlu0 %6846 }
 0x58c   : > { %6920 = vst.msk [vmem:[#allocation5 + $0x54] sm:$0xf] %vm6898_vm4, %v6845_v50  ;;  %6921 = vst.msk [vmem:[#allocation5 + $0x58] sm:$0xf] %vm6898_vm4, %v6847_v41 }
 0x58d   : > { %7952 = vrot.lane.b32.xlu1 %v7886_v38, %s9070_s10  ;;  %7954 = vrot.lane.b32.xlu0 %v7890_v26, %s9070_s10 }
 0x58f   : > { %v6849_v53 = vpop.permute.xlu1 %6848  ;;  %v7037_v57 = vpop.permute.xlu0 %7036 }
 0x590   : > { %6922 = vst.msk [vmem:[#allocation5 + $0x5c] sm:$0xf] %vm6898_vm4, %v6849_v53 }
 0x591   : > { %7113 = vst.msk [vmem:[#allocation5 + $0x50] sm:$0xf] %vm7092_vm5, %v7037_v57  ;;  %7956 = vrot.lane.b32.xlu1 %v7893_v55, %s9070_s10  ;;  %s9000_s10 = sshll.u32 %s9071_s9, 4  ;;  %s9001_s10 = int_to_ptr.vmem [resolvable:$false] %s9000_s10 }
 0x592   : > { %s9002_s12 = scalar_lea.vmem %s9001_s10, 8192  ;;  %p9003_p0 = scmp.lt.s32.totalorder %s11920_s25, %s9001_s10 }
 0x593   : > { %v7039_v14 = vpop.permute.xlu1 %7038  ;;  %v7041_v58 = vpop.permute.xlu0 %7040  ;;  %p9004_p1 = scmp.lt.s32.totalorder %s9002_s12, %s8996_s8 }
 0x594   : > { %7114 = vst.msk [vmem:[#allocation5 + $0x54] sm:$0xf] %vm7092_vm5, %v7039_v14  ;;  %7115 = vst.msk [vmem:[#allocation5 + $0x58] sm:$0xf] %vm7092_vm5, %v7041_v58 }
 0x595   : > { %p9005_p2 = por %p9004_p1, %p9003_p0 }
 0x597   : > { %v7043_v22 = vpop.permute.xlu1 %7042  ;;  %v7598_v63 = vpop.permute.xlu0 %7597  ;;  %p9006_p3 = pnand %p9005_p2, %p8999_p13 }
 0x598   : > { %7116 = vst.msk [vmem:[#allocation5 + $0x5c] sm:$0xf] %vm7092_vm5, %v7043_v22 }
 0x599   : > { %7674 = vst.msk [vmem:[#allocation5 + $0x50] sm:$0xf] %vm7653_vm7, %v7598_v63 }
 0x59b   : > { %v7600_v51 = vpop.permute.xlu1 %7599  ;;  %v7602_v39 = vpop.permute.xlu0 %7601 }
 0x59c   : > { %7675 = vst.msk [vmem:[#allocation5 + $0x54] sm:$0xf] %vm7653_vm7, %v7600_v51  ;;  %7676 = vst.msk [vmem:[#allocation5 + $0x58] sm:$0xf] %vm7653_vm7, %v7602_v39 }
 0x59f   : > { %v7604_v59 = vpop.permute.xlu1 %7603  ;;  %v7935_v47 = vpop.permute.xlu0 %7934 }
 0x5a0   : > { %7677 = vst.msk [vmem:[#allocation5 + $0x5c] sm:$0xf] %vm7653_vm7, %v7604_v59 }
 0x5a1   : > { %8011 = vst.msk [vmem:[#allocation5 + $0x50] sm:$0xf] %vm7990_vm9, %v7935_v47 }
 0x5a3   : > { %v7937_v2 = vpop.permute.xlu1 %7936  ;;  %v7939_v3 = vpop.permute.xlu0 %7938 }
 0x5a4   : > { %8012 = vst.msk [vmem:[#allocation5 + $0x54] sm:$0xf] %vm7990_vm9, %v7937_v2  ;;  %8013 = vst.msk [vmem:[#allocation5 + $0x58] sm:$0xf] %vm7990_vm9, %v7939_v3 }
 0x5a7   : > { %v7941_v4 = vpop.permute.xlu1 %7940  ;;  %v5957_v60 = vpop.permute.xlu0 %5956 }
 0x5a8   : > { %8014 = vst.msk [vmem:[#allocation5 + $0x5c] sm:$0xf] %vm7990_vm9, %v7941_v4  ;;  %v8870_v5 = vpop.f32.mrf.mxu1 }
 0x5a9   : > { %6027 = vst.msk [vmem:[#allocation5 + $0x68] sm:$0xf] %vm6000_vm2, %v5957_v60  ;;  %v8274_v6 = vadd.f32 %v8870_v5, %v11793_v33 }
 0x5aa   : > { %v8265_v61 = vpop.f32.mrf.mxu1 }
 0x5ab   : > { %v5959_v52 = vpop.permute.xlu1 %5958  ;;  %v6514_v21 = vpop.permute.xlu0 %6513  ;;  %v8989_v7 = vld [vmem:[#allocation5 + $0x50] sm:$0xff]   ;;  %v8394_v10 = vmax.f32 %v8274_v6, 0.0  ;;  %v8266_v56 = vadd.f32 %v11793_v33, %v8265_v61 }
 0x5ac   : > { %6028 = vst.msk [vmem:[#allocation5 + $0x6c] sm:$0xf] %vm6000_vm2, %v5959_v52  ;;  %8888 = vmatprep.mubr.msk.bf16.mxu1 %vm8178_vm11, %v8989_v7  ;;  %v8871_v62 = vpop.f32.mrf.mxu1 }
 0x5ad   : > { %6586 = vst.msk [vmem:[#allocation5 + $0x60] sm:$0xf] %vm6561_vm3, %v6514_v21  ;;  %8426 = vst [vmem:[%s11802_s17 + $0x10] sm:$0xff] %v8394_v10  ;;  %v8392_v12 = vmax.f32 %v8266_v56, 0.0  ;;  %v8277_v13 = vadd.f32 %v8871_v62, %v11793_v33 }
 0x5ae   : > { %v8268_v9 = vpop.f32.mrf.mxu1 }
 0x5af   : > { %v6516_v0 = vpop.permute.xlu1 %6515  ;;  %v6518_v15 = vpop.permute.xlu0 %6517  ;;  %v8990_v8 = vld [vmem:[#allocation5 + $0x58] sm:$0xff]   ;;  %8424 = vst [vmem:[%s11802_s17] sm:$0xff] %v8392_v12  ;;  %v8395_v19 = vmax.f32 %v8277_v13, 0.0  ;;  %v8269_v43 = vadd.f32 %v11793_v33, %v8268_v9 }
 0x5b0   : > { %6587 = vst.msk [vmem:[#allocation5 + $0x64] sm:$0xf] %vm6561_vm3, %v6516_v0  ;;  %6588 = vst.msk [vmem:[#allocation5 + $0x68] sm:$0xf] %vm6561_vm3, %v6518_v15  ;;  %8889 = vmatmul.mubr.msk.bf16.gmra.mxu1 %vm8178_vm11, %v8990_v8 }
 0x5b1   : > { %8427 = vst [vmem:[%s11802_s17 + $0x18] sm:$0xff] %v8395_v19  ;;  %v8393_v20 = vmax.f32 %v8269_v43, 0.0 }
 0x5b3   : > { %v6520_v18 = vpop.permute.xlu1 %6519  ;;  %v6851_v42 = vpop.permute.xlu0 %6850  ;;  %8425 = vst [vmem:[%s11802_s17 + $0x8] sm:$0xff] %v8393_v20 }
 0x5b4   : > { %6589 = vst.msk [vmem:[#allocation5 + $0x6c] sm:$0xf] %vm6561_vm3, %v6520_v18 }
 0x5b5   : > { %6923 = vst.msk [vmem:[#allocation5 + $0x60] sm:$0xf] %vm6898_vm4, %v6851_v42 }
 0x5b7   : > { %v6853_v23 = vpop.permute.xlu1 %6852  ;;  %v6855_v17 = vpop.permute.xlu0 %6854 }
 0x5b8   : > { %6924 = vst.msk [vmem:[#allocation5 + $0x64] sm:$0xf] %vm6898_vm4, %v6853_v23  ;;  %6925 = vst.msk [vmem:[#allocation5 + $0x68] sm:$0xf] %vm6898_vm4, %v6855_v17 }
 0x5bb   : > { %v6857_v1 = vpop.permute.xlu1 %6856  ;;  %v7045_v24 = vpop.permute.xlu0 %7044 }
 0x5bc   : > { %6926 = vst.msk [vmem:[#allocation5 + $0x6c] sm:$0xf] %vm6898_vm4, %v6857_v1 }
 0x5bd   : > { %7117 = vst.msk [vmem:[#allocation5 + $0x60] sm:$0xf] %vm7092_vm5, %v7045_v24 }
 0x5bf   : > { %v7047_v27 = vpop.permute.xlu1 %7046  ;;  %v7049_v54 = vpop.permute.xlu0 %7048 }
 0x5c0   : > { %7118 = vst.msk [vmem:[#allocation5 + $0x64] sm:$0xf] %vm7092_vm5, %v7047_v27  ;;  %7119 = vst.msk [vmem:[#allocation5 + $0x68] sm:$0xf] %vm7092_vm5, %v7049_v54 }
 0x5c3   : > { %v7051_v28 = vpop.permute.xlu1 %7050  ;;  %v7606_v32 = vpop.permute.xlu0 %7605 }
 0x5c4   : > { %7120 = vst.msk [vmem:[#allocation5 + $0x6c] sm:$0xf] %vm7092_vm5, %v7051_v28 }
 0x5c5   : > { %7678 = vst.msk [vmem:[#allocation5 + $0x60] sm:$0xf] %vm7653_vm7, %v7606_v32 }
 0x5c7   : > { %v7608_v48 = vpop.permute.xlu1 %7607  ;;  %v7610_v29 = vpop.permute.xlu0 %7609 }
 0x5c8   : > { %7679 = vst.msk [vmem:[#allocation5 + $0x64] sm:$0xf] %vm7653_vm7, %v7608_v48  ;;  %7680 = vst.msk [vmem:[#allocation5 + $0x68] sm:$0xf] %vm7653_vm7, %v7610_v29 }
 0x5cb   : > { %v7612_v34 = vpop.permute.xlu1 %7611  ;;  %v7943_v49 = vpop.permute.xlu0 %7942 }
 0x5cc   : > { %7681 = vst.msk [vmem:[#allocation5 + $0x6c] sm:$0xf] %vm7653_vm7, %v7612_v34 }
 0x5cd   : > { %8015 = vst.msk [vmem:[#allocation5 + $0x60] sm:$0xf] %vm7990_vm9, %v7943_v49 }
 0x5cf   : > { %v7945_v36 = vpop.permute.xlu1 %7944  ;;  %v7947_v11 = vpop.permute.xlu0 %7946 }
 0x5d0   : > { %8016 = vst.msk [vmem:[#allocation5 + $0x64] sm:$0xf] %vm7990_vm9, %v7945_v36  ;;  %8017 = vst.msk [vmem:[#allocation5 + $0x68] sm:$0xf] %vm7990_vm9, %v7947_v11  ;;  %v8874_v37 = vpop.f32.mrf.mxu1 }
 0x5d1   : > { %v8290_v16 = vadd.f32 %v8874_v37, %v11793_v33 }
 0x5d2   : > { %v8281_v31 = vpop.f32.mrf.mxu1 }
 0x5d3   : > { %v7949_v30 = vpop.permute.xlu1 %7948  ;;  %v5961_v40 = vpop.permute.xlu0 %5960  ;;  %v8398_v44 = vmax.f32 %v8290_v16, 0.0  ;;  %v8282_v45 = vadd.f32 %v11793_v33, %v8281_v31 }
 0x5d4   : > { %8018 = vst.msk [vmem:[#allocation5 + $0x6c] sm:$0xf] %vm7990_vm9, %v7949_v30  ;;  %v8875_v35 = vpop.f32.mrf.mxu1 }
 0x5d5   : > { %6029 = vst.msk [vmem:[#allocation5 + $0x70] sm:$0xf] %vm6000_vm2, %v5961_v40  ;;  %8430 = vst [vmem:[%s11802_s17 + $0x30] sm:$0xff] %v8398_v44  ;;  %v8396_v46 = vmax.f32 %v8282_v45, 0.0  ;;  %v8293_v25 = vadd.f32 %v8875_v35, %v11793_v33 }
 0x5d6   : > { %v8284_v38 = vpop.f32.mrf.mxu1 }
 0x5d7   : > { %v5963_v26 = vpop.permute.xlu1 %5962  ;;  %v5965_v50 = vpop.permute.xlu0 %5964  ;;  %v8991_v41 = vld [vmem:[#allocation5 + $0x60] sm:$0xff]   ;;  %8428 = vst [vmem:[%s11802_s17 + $0x20] sm:$0xff] %v8396_v46  ;;  %v8399_v55 = vmax.f32 %v8293_v25, 0.0  ;;  %v8285_v53 = vadd.f32 %v11793_v33, %v8284_v38 }
 0x5d8   : > { %6030 = vst.msk [vmem:[#allocation5 + $0x74] sm:$0xf] %vm6000_vm2, %v5963_v26  ;;  %6031 = vst.msk [vmem:[#allocation5 + $0x78] sm:$0xf] %vm6000_vm2, %v5965_v50  ;;  %8892 = vmatprep.mubr.msk.bf16.mxu1 %vm8178_vm11, %v8991_v41 }
 0x5d9   : > { %8431 = vst [vmem:[%s11802_s17 + $0x38] sm:$0xff] %v8399_v55  ;;  %v8397_v57 = vmax.f32 %v8285_v53, 0.0 }
 0x5db   : > { %v5967_v14 = vpop.permute.xlu1 %5966  ;;  %v6522_v58 = vpop.permute.xlu0 %6521  ;;  %v8992_v22 = vld [vmem:[#allocation5 + $0x68] sm:$0xff]   ;;  %8429 = vst [vmem:[%s11802_s17 + $0x28] sm:$0xff] %v8397_v57 }
 0x5dc   : > { %6032 = vst.msk [vmem:[#allocation5 + $0x7c] sm:$0xf] %vm6000_vm2, %v5967_v14  ;;  %8893 = vmatmul.mubr.msk.bf16.gmra.mxu1 %vm8178_vm11, %v8992_v22 }
 0x5dd   : > { %6590 = vst.msk [vmem:[#allocation5 + $0x70] sm:$0xf] %vm6561_vm3, %v6522_v58 }
 0x5df   : > { %v6524_v63 = vpop.permute.xlu1 %6523  ;;  %v6526_v51 = vpop.permute.xlu0 %6525 }
 0x5e0   : > { %6591 = vst.msk [vmem:[#allocation5 + $0x74] sm:$0xf] %vm6561_vm3, %v6524_v63  ;;  %6592 = vst.msk [vmem:[#allocation5 + $0x78] sm:$0xf] %vm6561_vm3, %v6526_v51 }
 0x5e3   : > { %v6528_v39 = vpop.permute.xlu1 %6527  ;;  %v6859_v59 = vpop.permute.xlu0 %6858 }
 0x5e4   : > { %6593 = vst.msk [vmem:[#allocation5 + $0x7c] sm:$0xf] %vm6561_vm3, %v6528_v39 }
 0x5e5   : > { %6927 = vst.msk [vmem:[#allocation5 + $0x70] sm:$0xf] %vm6898_vm4, %v6859_v59 }
 0x5e7   : > { %v6861_v47 = vpop.permute.xlu1 %6860  ;;  %v6863_v2 = vpop.permute.xlu0 %6862 }
 0x5e8   : > { %6928 = vst.msk [vmem:[#allocation5 + $0x74] sm:$0xf] %vm6898_vm4, %v6861_v47  ;;  %6929 = vst.msk [vmem:[#allocation5 + $0x78] sm:$0xf] %vm6898_vm4, %v6863_v2 }
 0x5eb   : > { %v6865_v3 = vpop.permute.xlu1 %6864  ;;  %v7053_v4 = vpop.permute.xlu0 %7052 }
 0x5ec   : > { %6930 = vst.msk [vmem:[#allocation5 + $0x7c] sm:$0xf] %vm6898_vm4, %v6865_v3 }
 0x5ed   : > { %7121 = vst.msk [vmem:[#allocation5 + $0x70] sm:$0xf] %vm7092_vm5, %v7053_v4 }
 0x5ef   : > { %v7055_v60 = vpop.permute.xlu1 %7054  ;;  %v7057_v5 = vpop.permute.xlu0 %7056 }
 0x5f0   : > { %7122 = vst.msk [vmem:[#allocation5 + $0x74] sm:$0xf] %vm7092_vm5, %v7055_v60  ;;  %7123 = vst.msk [vmem:[#allocation5 + $0x78] sm:$0xf] %vm7092_vm5, %v7057_v5 }
 0x5f3   : > { %v7059_v6 = vpop.permute.xlu1 %7058  ;;  %v7614_v52 = vpop.permute.xlu0 %7613 }
 0x5f4   : > { %7124 = vst.msk [vmem:[#allocation5 + $0x7c] sm:$0xf] %vm7092_vm5, %v7059_v6 }
 0x5f5   : > { %7682 = vst.msk [vmem:[#allocation5 + $0x70] sm:$0xf] %vm7653_vm7, %v7614_v52 }
 0x5f7   : > { %v7616_v21 = vpop.permute.xlu1 %7615  ;;  %v7618_v7 = vpop.permute.xlu0 %7617 }
 0x5f8   : > { %7683 = vst.msk [vmem:[#allocation5 + $0x74] sm:$0xf] %vm7653_vm7, %v7616_v21  ;;  %7684 = vst.msk [vmem:[#allocation5 + $0x78] sm:$0xf] %vm7653_vm7, %v7618_v7  ;;  %v8878_v61 = vpop.f32.mrf.mxu1 }
 0x5f9   : > { %v8306_v10 = vadd.f32 %v8878_v61, %v11793_v33 }
 0x5fa   : > { %v8297_v12 = vpop.f32.mrf.mxu1 }
 0x5fb   : > { %v7620_v56 = vpop.permute.xlu1 %7619  ;;  %v7951_v62 = vpop.permute.xlu0 %7950  ;;  %v8402_v13 = vmax.f32 %v8306_v10, 0.0  ;;  %v8298_v0 = vadd.f32 %v11793_v33, %v8297_v12 }
 0x5fc   : > { %7685 = vst.msk [vmem:[#allocation5 + $0x7c] sm:$0xf] %vm7653_vm7, %v7620_v56  ;;  %v8879_v15 = vpop.f32.mrf.mxu1 }
 0x5fd   : > { %8019 = vst.msk [vmem:[#allocation5 + $0x70] sm:$0xf] %vm7990_vm9, %v7951_v62  ;;  %8434 = vst [vmem:[%s11802_s17 + $0x50] sm:$0xff] %v8402_v13  ;;  %v8400_v8 = vmax.f32 %v8298_v0, 0.0  ;;  %v8309_v9 = vadd.f32 %v8879_v15, %v11793_v33 }
 0x5fe   : > { %v8300_v20 = vpop.f32.mrf.mxu1 }
 0x5ff   : > { %v7953_v19 = vpop.permute.xlu1 %7952  ;;  %v7955_v43 = vpop.permute.xlu0 %7954  ;;  %8432 = vst [vmem:[%s11802_s17 + $0x40] sm:$0xff] %v8400_v8  ;;  %v8403_v18 = vmax.f32 %v8309_v9, 0.0  ;;  %v8301_v42 = vadd.f32 %v11793_v33, %v8300_v20 }
 0x600   : > { %8020 = vst.msk [vmem:[#allocation5 + $0x74] sm:$0xf] %vm7990_vm9, %v7953_v19  ;;  %8021 = vst.msk [vmem:[#allocation5 + $0x78] sm:$0xf] %vm7990_vm9, %v7955_v43 }
 0x601   : > { %8435 = vst [vmem:[%s11802_s17 + $0x58] sm:$0xff] %v8403_v18  ;;  %v8401_v23 = vmax.f32 %v8301_v42, 0.0 }
 0x603   : > { %v7957_v17 = vpop.permute.xlu1 %7956  ;;  %8433 = vst [vmem:[%s11802_s17 + $0x48] sm:$0xff] %v8401_v23 }
 0x604   : > { %8022 = vst.msk [vmem:[#allocation5 + $0x7c] sm:$0xf] %vm7990_vm9, %v7957_v17 }
 0x607   : > { %v8993_v1 = vld [vmem:[#allocation5 + $0x70] sm:$0xff]  }
 0x608   : > { %8896 = vmatprep.mubr.msk.bf16.mxu1 %vm8178_vm11, %v8993_v1 }
 0x60b   : > { %v8994_v24 = vld [vmem:[#allocation5 + $0x78] sm:$0xff]  }
 0x60c   : > { %8897 = vmatmul.mubr.msk.bf16.gmra.mxu1 %vm8178_vm11, %v8994_v24 }
 0x620   : > { %v8882_v27 = vpop.f32.mrf.mxu1 }
 0x621   : > { %v8322_v54 = vadd.f32 %v8882_v27, %v11793_v33 }
 0x622   : > { %v8313_v28 = vpop.f32.mrf.mxu1 }
 0x623   : > { %v8406_v32 = vmax.f32 %v8322_v54, 0.0  ;;  %v8314_v48 = vadd.f32 %v11793_v33, %v8313_v28 }
 0x624   : > { %v8883_v29 = vpop.f32.mrf.mxu1 }
 0x625   : > { %8438 = vst [vmem:[%s11802_s17 + $0x70] sm:$0xff] %v8406_v32  ;;  %v8404_v34 = vmax.f32 %v8314_v48, 0.0  ;;  %v8325_v49 = vadd.f32 %v8883_v29, %v11793_v33 }
 0x626   : > { %v8316_v36 = vpop.f32.mrf.mxu1 }
 0x627   : > { %8436 = vst [vmem:[%s11802_s17 + $0x60] sm:$0xff] %v8404_v34  ;;  %v8407_v11 = vmax.f32 %v8325_v49, 0.0  ;;  %v8317_v37 = vadd.f32 %v11793_v33, %v8316_v36 }
 0x629   : > { %8439 = vst [vmem:[%s11802_s17 + $0x78] sm:$0xff] %v8407_v11  ;;  %v8405_v16 = vmax.f32 %v8317_v37, 0.0 }
 0x62b   : > { %8437 = vst [vmem:[%s11802_s17 + $0x68] sm:$0xff] %v8405_v16 }
 0x648   : > { %v8886_v30 = vpop.f32.mrf.mxu1 }
 0x649   : > { %v8338_v40 = vadd.f32 %v8886_v30, %v11793_v33 }
 0x64a   : > { %v8329_v31 = vpop.f32.mrf.mxu1 }
 0x64b   : > { %v8410_v44 = vmax.f32 %v8338_v40, 0.0  ;;  %v8330_v45 = vadd.f32 %v11793_v33, %v8329_v31 }
 0x64c   : > { %v8887_v35 = vpop.f32.mrf.mxu1 }
 0x64d   : > { %8442 = vst [vmem:[%s11802_s17 + $0x90] sm:$0xff] %v8410_v44  ;;  %v8408_v46 = vmax.f32 %v8330_v45, 0.0  ;;  %v8341_v25 = vadd.f32 %v8887_v35, %v11793_v33 }
 0x64e   : > { %v8332_v26 = vpop.f32.mrf.mxu1 }
 0x64f   : > { %8440 = vst [vmem:[%s11802_s17 + $0x80] sm:$0xff] %v8408_v46  ;;  %v8411_v50 = vmax.f32 %v8341_v25, 0.0  ;;  %v8333_v41 = vadd.f32 %v11793_v33, %v8332_v26 }
 0x651   : > { %8443 = vst [vmem:[%s11802_s17 + $0x98] sm:$0xff] %v8411_v50  ;;  %v8409_v38 = vmax.f32 %v8333_v41, 0.0 }
 0x653   : > { %8441 = vst [vmem:[%s11802_s17 + $0x88] sm:$0xff] %v8409_v38 }
 0x670   : > { %v8890_v55 = vpop.f32.mrf.mxu1 }
 0x671   : > { %v8354_v53 = vadd.f32 %v8890_v55, %v11793_v33 }
 0x672   : > { %v8345_v57 = vpop.f32.mrf.mxu1 }
 0x673   : > { %v8414_v14 = vmax.f32 %v8354_v53, 0.0  ;;  %v8346_v58 = vadd.f32 %v11793_v33, %v8345_v57 }
 0x674   : > { %v8891_v22 = vpop.f32.mrf.mxu1 }
 0x675   : > { %8446 = vst [vmem:[%s11802_s17 + $0xb0] sm:$0xff] %v8414_v14  ;;  %v8412_v63 = vmax.f32 %v8346_v58, 0.0  ;;  %v8357_v51 = vadd.f32 %v8891_v22, %v11793_v33 }
 0x676   : > { %v8348_v39 = vpop.f32.mrf.mxu1 }
 0x677   : > { %8444 = vst [vmem:[%s11802_s17 + $0xa0] sm:$0xff] %v8412_v63  ;;  %v8415_v59 = vmax.f32 %v8357_v51, 0.0  ;;  %v8349_v47 = vadd.f32 %v11793_v33, %v8348_v39 }
 0x679   : > { %8447 = vst [vmem:[%s11802_s17 + $0xb8] sm:$0xff] %v8415_v59  ;;  %v8413_v2 = vmax.f32 %v8349_v47, 0.0 }
 0x67b   : > { %8445 = vst [vmem:[%s11802_s17 + $0xa8] sm:$0xff] %v8413_v2 }
 0x69c   : > { %v8894_v3 = vpop.f32.mrf.mxu1 }
 0x69d   : > { %v8370_v4 = vadd.f32 %v8894_v3, %v11793_v33 }
 0x69e   : > { %v8361_v60 = vpop.f32.mrf.mxu1 }
 0x69f   : > { %v8418_v5 = vmax.f32 %v8370_v4, 0.0  ;;  %v8362_v6 = vadd.f32 %v11793_v33, %v8361_v60 }
 0x6a0   : > { %v8895_v52 = vpop.f32.mrf.mxu1 }
 0x6a1   : > { %8450 = vst [vmem:[%s11802_s17 + $0xd0] sm:$0xff] %v8418_v5  ;;  %v8416_v21 = vmax.f32 %v8362_v6, 0.0  ;;  %v8373_v7 = vadd.f32 %v8895_v52, %v11793_v33 }
 0x6a2   : > { %v8364_v61 = vpop.f32.mrf.mxu1 }
 0x6a3   : > { %8448 = vst [vmem:[%s11802_s17 + $0xc0] sm:$0xff] %v8416_v21  ;;  %v8419_v10 = vmax.f32 %v8373_v7, 0.0  ;;  %v8365_v56 = vadd.f32 %v11793_v33, %v8364_v61 }
 0x6a5   : > { %8451 = vst [vmem:[%s11802_s17 + $0xd8] sm:$0xff] %v8419_v10  ;;  %v8417_v62 = vmax.f32 %v8365_v56, 0.0 }
 0x6a7   : > { %8449 = vst [vmem:[%s11802_s17 + $0xc8] sm:$0xff] %v8417_v62 }
 0x6cc   : > { %v8898_v12 = vpop.f32.mrf.mxu1 }
 0x6cd   : > { %v8386_v13 = vadd.f32 %v8898_v12, %v11793_v33 }
 0x6ce   : > { %v8377_v0 = vpop.f32.mrf.mxu1 }
 0x6cf   : > { %v8422_v15 = vmax.f32 %v8386_v13, 0.0  ;;  %v8378_v8 = vadd.f32 %v11793_v33, %v8377_v0 }
 0x6d0   : > { %v8899_v9 = vpop.f32.mrf.mxu1 }
 0x6d1   : > { %8454 = vst [vmem:[%s11802_s17 + $0xf0] sm:$0xff] %v8422_v15  ;;  %v8420_v19 = vmax.f32 %v8378_v8, 0.0  ;;  %v8389_v43 = vadd.f32 %v8899_v9, %v11793_v33 }
 0x6d2   : > { %v8380_v20 = vpop.f32.mrf.mxu1 }
 0x6d3   : > { %8452 = vst [vmem:[%s11802_s17 + $0xe0] sm:$0xff] %v8420_v19  ;;  %v8423_v18 = vmax.f32 %v8389_v43, 0.0  ;;  %v8381_v42 = vadd.f32 %v11793_v33, %v8380_v20 }
 0x6d5   : > { %8455 = vst [vmem:[%s11802_s17 + $0xf8] sm:$0xff] %v8423_v18  ;;  %v8421_v23 = vmax.f32 %v8381_v42, 0.0 }
 0x6d7   : > { %8453 = vst [vmem:[%s11802_s17 + $0xe8] sm:$0xff] %v8421_v23 }
 0x6d8   : > { %9009 = shalt.err (!%p9006_p3)
}
 0x6d9   : > { %s9010_s16 = scalar_lea.hbm %s11917_s6, 4096  ;;  %s9014_s13 = scalar_lea.hbm %s11971_s5, 8192 }
 0x6da   : > { %p9011_p4 = scmp.ne.s32.totalorder %s11917_s6, %s9010_s16  ;;  %p9015_p9 = scmp.lt.s32.totalorder %s11917_s6, %s11971_s5 }
 0x6db   : > { %p9016_p10 = scmp.lt.s32.totalorder %s9014_s13, %s9010_s16 }
 0x6dc   : > { %p9012_p7 = pnand %p9011_p4, %p9141_p5 }
 0x6dd   : > { %p9017_p11 = por %p9016_p10, %p9015_p9 }
 0x6de   : > { %p9013_p8 = pneg %p9012_p7 }
 0x6e0   : > { %p9018_p12 = pnand %p9017_p11, %p9013_p8 }
 0x6e2   : > { %9021 = shalt.err (!%p9018_p12)
}
 0x6e3   : > { %s9072_s23 = smov 128  }
 0x6e4   : > { %8902 = dma.vmem_to_hbm [thread:$0]  (%p9141_p5), %s11920_s25, 4096, %s11917_s6, %s11925_s22, %s9072_s23, %s9072_s23, %s9060_s11  }
 0x6e5 PF: > { %p8908_p13 = scmp.ge.s32.totalorder %s9056_s21, 2  ;;  %s8485_s26 = sand.u32 1, %s9044_s18  }
 0x6e6   : > { %s8486_s30 = scalar_lea.sflag [#allocation7], %s8485_s26 }
 0x6e7   : > { %p8905_p0 = pnand %p8908_p13, %p9145_p6 }
 0x6e9   : > { %p8906_p1 = pneg %p8905_p0 }
 0x6eb   : > { %9039 = dma.done.wait (%p8906_p1), %s8486_s30, 4096  }
 0x6ec   : > { %9041 = vsyncadd (%p8906_p1), %s8486_s30, 4294963200  ;;  %p15_p2 = scmp.ge.s32.totalorder %s9128_s24, 4   ;;  %s11988_s18 = smov %s9048_s19 }
 0x6ed   : > { %s11989_s19 = smov %s9052_s20  ;;  %s11990_s20 = smov %s9139_s27 }
 0x6ee   : > { %s11991_s21 = smov %s9128_s24  ;;  %17 = sbr.rel (!%p15_p2) target bundleno = 3 (0x3), region = 79 }
 0x6f3   :  { %8491 = vsyncpa [#allocation7], 1 }
 0x6f4   :  { %8493 = vsyncpa [#allocation7 + $0x1], 1 }

</bundles_post_ra>
